<compile_context>
chip_gen: v7x
topology: tpu7x:2x2x1
jax: 0.10.0
libtpu: 0.0.40
codegen_flags: <defaults>
</compile_context>

<pallas_src>
import functools

import jax
import jax.numpy as jnp
from jax.experimental import pallas as pl
from jax.experimental.pallas import tpu as pltpu

BN_EPS = 1e-5
NUM_CLASSES = 4  # e.g. angry / happy / relaxed / sad

# Static ResNet-18 block architecture: (cin, cout, stride) per BasicBlock.
RESNET18_BLOCKS = (
    (64, 64, 1), (64, 64, 1),
    (64, 128, 2), (128, 128, 1),
    (128, 256, 2), (256, 256, 1),
    (256, 512, 2), (512, 512, 1),
)


# ---------------------------------------------------------------------------
# small static helpers (all tiling decisions are made here, used both by the
# one-time param-prep step and by the per-forward matmul wrapper)
# ---------------------------------------------------------------------------
def _round_up(x, m):
    return -(-x // m) * m


def _tile(dim, align, max_tile):
    """Return (tile, padded_dim) with tile a multiple of `align`."""
    padded = _round_up(dim, align)
    tile = min(max_tile, padded)
    return tile, _round_up(padded, tile)


def _tile_k(k, max_tk=1024):
    """K tile: single full-K step when possible, else 128-multiples <=1024."""
    if k <= max_tk and k % 16 == 0:
        return k, k                       # full-dim block, no K padding
    kp = _round_up(k, 128)
    if kp <= max_tk:
        return kp, kp
    best = None
    for cand in range(max_tk, 127, -128):
        kpp = _round_up(kp, cand)
        key = (kpp // cand, kpp)          # minimize steps, then padding
        if best is None or key < best[0]:
            best = (key, cand, kpp)
    return best[1], best[2]


def _tile_n(n, max_tn=512):
    np_ = _round_up(n, 128)
    if np_ <= max_tn:
        return np_, np_
    for cand in range(max_tn, 127, -128):
        if np_ % cand == 0:
            return cand, np_
    return 128, np_


def _ensure_two_parallel_tiles(tm, mp, tn, np_):
    """Make sure the parallel (M, N) axes have >=2 tiles (v7x has 2 TCs)."""
    if (mp // tm) * (np_ // tn) >= 2:
        return tm, tn
    if np_ >= 256:
        half = np_ // 2
        return tm, (half if half % 128 == 0 else 128)
    if mp >= 32 and (mp // 2) % 16 == 0:
        return mp // 2, tn
    return tm, tn


def _pad2(a, rows, cols):
    r, c = a.shape
    if r == rows and c == cols:
        return a
    return jnp.pad(a, ((0, rows - r), (0, cols - c)))


def _full_vmem_spec():
    return pl.BlockSpec(memory_space=pltpu.MemorySpace.VMEM)


# ---------------------------------------------------------------------------
# Pallas kernels
# ---------------------------------------------------------------------------
def _matmul_epilogue_kernel(*refs, relu, has_residual):
    """Tiled (M,K)@(K,N) with f32 accumulator; epilogue: +bias (+res) (+ReLU)."""
    if has_residual:
        x_ref, w_ref, b_ref, res_ref, o_ref, acc_ref = refs
    else:
        x_ref, w_ref, b_ref, o_ref, acc_ref = refs
        res_ref = None

    k = pl.program_id(2)

    @pl.when(k == 0)
    def _():
        acc_ref[...] = jnp.zeros_like(acc_ref)

    acc_ref[...] += jnp.dot(x_ref[...], w_ref[...],
                            preferred_element_type=jnp.float32)

    @pl.when(k == pl.num_programs(2) - 1)
    def _():
        out = acc_ref[...] + b_ref[...]
        if res_ref is not None:
            out = out + res_ref[...].astype(jnp.float32)
        if relu:
            out = jnp.maximum(out, 0.0)
        o_ref[...] = out.astype(o_ref.dtype)


def _max9_kernel(*refs):
    """Elementwise max of 9 equally-shaped tiles (3x3 maxpool)."""
    in_refs, o_ref = refs[:-1], refs[-1]
    out = in_refs[0][...]
    for r in in_refs[1:]:
        out = jnp.maximum(out, r[...])
    o_ref[...] = out


def _avgpool_fc_kernel(x_ref, w_ref, b_ref, o_ref):
    """x_ref: (N, HW, C). Global average pool over HW, then fc matmul + bias."""
    hw = x_ref.shape[1]
    feat = jnp.sum(x_ref[...].astype(jnp.float32), axis=1) * (1.0 / hw)  # (N, C)
    out = jnp.dot(feat, w_ref[...], preferred_element_type=jnp.float32)
    o_ref[...] = (out + b_ref[...]).astype(o_ref.dtype)


# ---------------------------------------------------------------------------
# Pallas-call wrappers
# ---------------------------------------------------------------------------
def fused_matmul_bias(x, w_pad, b_pad, *, n_out, residual=None, relu=True):
    """bf16 (M,K)@(K,N) -> bf16, fused bias / residual / ReLU epilogue.

    `w_pad` / `b_pad` are the pre-folded, pre-padded weight matrix and bias
    from `prepare_params` (shape (kp, np_) / (1, np_))."""
    m, k = x.shape
    kp, np_ = w_pad.shape
    tk, kp_chk = _tile_k(k)
    tn, np_chk = _tile_n(n_out)
    assert (kp_chk, np_chk) == (kp, np_), "pre-padded weight / tiling mismatch"

    tm, mp = _tile(m, 16, 256)
    tm, tn = _ensure_two_parallel_tiles(tm, mp, tn, np_)

    x = _pad2(x.astype(jnp.bfloat16), mp, kp)

    args = [x, w_pad, b_pad]
    in_specs = [
        pl.BlockSpec((tm, tk), lambda i, j, kk: (i, kk)),
        pl.BlockSpec((tk, tn), lambda i, j, kk: (kk, j)),
        pl.BlockSpec((1, tn), lambda i, j, kk: (0, j)),
    ]
    if residual is not None:
        args.append(_pad2(residual.astype(jnp.bfloat16), mp, np_))
        in_specs.append(pl.BlockSpec((tm, tn), lambda i, j, kk: (i, j)))

    grid = (mp // tm, np_ // tn, kp // tk)
    kernel = functools.partial(_matmul_epilogue_kernel, relu=relu,
                               has_residual=residual is not None)

    bytes_accessed = (mp * kp + kp * np_ + mp * np_) * 2
    if residual is not None:
        bytes_accessed += mp * np_ * 2

    out = pl.pallas_call(
        kernel,
        out_shape=jax.ShapeDtypeStruct((mp, np_), jnp.bfloat16),
        grid_spec=pltpu.PrefetchScalarGridSpec(
            num_scalar_prefetch=0,
            grid=grid,
            in_specs=in_specs,
            out_specs=pl.BlockSpec((tm, tn), lambda i, j, kk: (i, j)),
            scratch_shapes=[pltpu.VMEM((tm, tn), jnp.float32)],
        ),
        compiler_params=pltpu.CompilerParams(
            dimension_semantics=("parallel", "parallel", "arbitrary"),
        ),
        cost_estimate=pl.CostEstimate(
            flops=2 * mp * kp * np_,
            transcendentals=0,
            bytes_accessed=bytes_accessed,
        ),
    )(*args)
    return out[:m, :n_out]


def conv_bn(x_nhwc, w_pad, b_pad, *, ksize, stride, padding, cin, cout,
            relu=True, residual=None):
    """Conv2d (no bias) + folded BatchNorm (+ residual) (+ ReLU) via im2col."""
    n, h, w, _ = x_nhwc.shape
    kh = kw = ksize
    ho = (h + 2 * padding - kh) // stride + 1
    wo = (w + 2 * padding - kw) // stride + 1

    xp = x_nhwc
    if padding > 0:
        xp = jnp.pad(x_nhwc,
                     ((0, 0), (padding, padding), (padding, padding), (0, 0)))

    # TODO(synk): replace host-side im2col with in-kernel tap accumulation
    # (halo DMA) to cut activation read traffic back to ~1x at large inputs.
    cols = [xp[:, dh:dh + stride * ho:stride, dw:dw + stride * wo:stride, :]
            for dh in range(kh) for dw in range(kw)]
    m = n * ho * wo
    if len(cols) == 1:
        patches = cols[0].reshape(m, cin)
    else:
        patches = jnp.concatenate(cols, axis=-1).reshape(m, kh * kw * cin)

    res = None if residual is None else residual.reshape(m, cout)
    out = fused_matmul_bias(patches, w_pad, b_pad, n_out=cout,
                            residual=res, relu=relu)
    return out.reshape(n, ho, wo, cout)


def maxpool_3x3_s2_p1(x_nhwc):
    n, h, w, c = x_nhwc.shape
    k, s, p = 3, 2, 1
    ho = (h + 2 * p - k) // s + 1
    wo = (w + 2 * p - k) // s + 1
    neg = float(jnp.finfo(x_nhwc.dtype).min)
    xp = jnp.pad(x_nhwc, ((0, 0), (p, p), (p, p), (0, 0)), constant_values=neg)

    m = n * ho * wo
    views = [xp[:, dh:dh + s * ho:s, dw:dw + s * wo:s, :].reshape(m, c)
             for dh in range(k) for dw in range(k)]

    # Lane-dense repack: fold rows into lanes so stores are full 128-lane vst.
    if c < 128 and (m * c) % 128 == 0:
        rows, cols = (m * c) // 128, 128
        views = [v.reshape(rows, cols) for v in views]
    else:
        rows, cols = m, c

    tm, rp = _tile(rows, 16, 512)
    views = [_pad2(v, rp, cols) for v in views]

    out = pl.pallas_call(
        _max9_kernel,
        out_shape=jax.ShapeDtypeStruct((rp, cols), x_nhwc.dtype),
        grid_spec=pltpu.PrefetchScalarGridSpec(
            num_scalar_prefetch=0,
            grid=(rp // tm,),
            in_specs=[pl.BlockSpec((tm, cols), lambda i: (i, 0)) for _ in views],
            out_specs=pl.BlockSpec((tm, cols), lambda i: (i, 0)),
        ),
        compiler_params=pltpu.CompilerParams(
            dimension_semantics=("parallel",),
        ),
    )(*views)
    return out[:rows].reshape(m, c)[:m].reshape(n, ho, wo, c)


def avgpool_fc(x_nhwc, fc_w_pad, fc_b_pad, num_classes):
    n, h, w, c = x_nhwc.shape
    x = x_nhwc.reshape(n, h * w, c)
    np_ = fc_w_pad.shape[1]
    out = pl.pallas_call(
        _avgpool_fc_kernel,
        out_shape=jax.ShapeDtypeStruct((n, np_), jnp.float32),
        in_specs=[_full_vmem_spec(), _full_vmem_spec(), _full_vmem_spec()],
        out_specs=_full_vmem_spec(),
    )(x, fc_w_pad, fc_b_pad)
    return out[:, :num_classes]


# ---------------------------------------------------------------------------
# ResNet-18 parameters (deterministic synthetic init), one-time prep, forward
# ---------------------------------------------------------------------------
def make_resnet18_params(key, num_classes):
    # TODO(synk): pretrained ImageNet weights are replaced by deterministic
    # Kaiming-style random init (no file/network access allowed here).
    keys = iter(jax.random.split(key, 64))

    def conv_w(cout, cin, k):
        fan_in = cin * k * k
        std = (2.0 / fan_in) ** 0.5
        return std * jax.random.normal(next(keys), (cout, cin, k, k), jnp.float32)

    def bn(c):
        # (gamma, beta, running_mean, running_var)
        return (jnp.ones((c,), jnp.float32), jnp.zeros((c,), jnp.float32),
                jnp.zeros((c,), jnp.float32), jnp.ones((c,), jnp.float32))

    blocks = []
    for cin, cout, stride in RESNET18_BLOCKS:
        blk = {
            "conv1": conv_w(cout, cin, 3), "bn1": bn(cout),
            "conv2": conv_w(cout, cout, 3), "bn2": bn(cout),
        }
        if stride != 1 or cin != cout:
            blk["down_w"] = conv_w(cout, cin, 1)
            blk["down_bn"] = bn(cout)
        blocks.append(blk)

    params = {"conv1": conv_w(64, 3, 7), "bn1": bn(64), "blocks": blocks}
    # fc head: nn.Linear(512, num_classes), uniform(-1/sqrt(512), 1/sqrt(512))
    bound = 1.0 / (512.0 ** 0.5)
    params["fc_w"] = jax.random.uniform(next(keys), (512, num_classes),
                                        jnp.float32, -bound, bound)
    params["fc_b"] = jax.random.uniform(next(keys), (num_classes,),
                                        jnp.float32, -bound, bound)
    return params


def _prep_conv(w_oihw, bn):
    """Fold BN into the conv weight, reshape OIHW->(K,N), cast bf16, pad."""
    cout, cin, kh, kw = w_oihw.shape
    gamma, beta, mean, var = bn
    inv_std = jax.lax.rsqrt(var + BN_EPS)
    scale = gamma * inv_std
    bias = (beta - mean * scale).reshape(1, cout).astype(jnp.float32)
    w_mat = jnp.transpose(w_oihw, (2, 3, 1, 0)).reshape(kh * kw * cin, cout)
    w_mat = (w_mat * scale.reshape(1, cout)).astype(jnp.bfloat16)

    _, kp = _tile_k(kh * kw * cin)
    _, np_ = _tile_n(cout)
    return {"w": _pad2(w_mat, kp, np_), "b": _pad2(bias, 1, np_)}


def prepare_params(params):
    """One-time parameter prep: all weight re-layout happens here, not in the
    per-forward graph."""
    prepared = {"stem": _prep_conv(params["conv1"], params["bn1"]), "blocks": []}
    for blk in params["blocks"]:
        pblk = {
            "conv1": _prep_conv(blk["conv1"], blk["bn1"]),
            "conv2": _prep_conv(blk["conv2"], blk["bn2"]),
        }
        if "down_w" in blk:
            pblk["down"] = _prep_conv(blk["down_w"], blk["down_bn"])
        prepared["blocks"].append(pblk)

    num_classes = params["fc_w"].shape[1]
    np_ = _round_up(num_classes, 128)            # lane-dense fc output
    prepared["fc_w"] = jnp.pad(params["fc_w"],
                               ((0, 0), (0, np_ - num_classes))).astype(jnp.float32)
    prepared["fc_b"] = jnp.pad(params["fc_b"],
                               (0, np_ - num_classes)).reshape(1, np_).astype(jnp.float32)
    return prepared


def resnet18_forward(prepared, x_nchw, num_classes):
    x = jnp.transpose(x_nchw, (0, 2, 3, 1)).astype(jnp.bfloat16)   # -> NHWC bf16
    # stem: conv 7x7/2 + BN + ReLU, maxpool 3x3/2
    x = conv_bn(x, prepared["stem"]["w"], prepared["stem"]["b"],
                ksize=7, stride=2, padding=3, cin=3, cout=64, relu=True)
    x = maxpool_3x3_s2_p1(x)
    # 4 stages x 2 BasicBlocks (strides come from the STATIC config)
    for (cin, cout, stride), blk in zip(RESNET18_BLOCKS, prepared["blocks"]):
        identity = x
        out = conv_bn(x, blk["conv1"]["w"], blk["conv1"]["b"], ksize=3,
                      stride=stride, padding=1, cin=cin, cout=cout, relu=True)
        if "down" in blk:
            identity = conv_bn(x, blk["down"]["w"], blk["down"]["b"], ksize=1,
                               stride=stride, padding=0, cin=cin, cout=cout,
                               relu=False)
        # conv2 + BN + residual add + ReLU fused in one gridded Pallas kernel
        x = conv_bn(out, blk["conv2"]["w"], blk["conv2"]["b"], ksize=3,
                    stride=1, padding=1, cin=cout, cout=cout, relu=True,
                    residual=identity)
    # adaptive avg pool to (1,1) + fc
    return avgpool_fc(x, prepared["fc_w"], prepared["fc_b"], num_classes)


@functools.partial(jax.jit, static_argnums=(2,))
def simple_dog_emotion_model(prepared, x_nchw, num_classes):
    return resnet18_forward(prepared, x_nchw, num_classes)


if __name__ == "__main__":
    root = jax.random.PRNGKey(0)
    k_param, k_data = jax.random.split(root)
    raw_params = make_resnet18_params(k_param, NUM_CLASSES)
    prepared = prepare_params(raw_params)        # one-time weight prep
    # Small spatial size (ResNet-18 collapses 32x32 -> 1x1 before the head).
    x = jax.random.normal(k_data, (2, 3, 32, 32), jnp.float32)   # NCHW
    logits = simple_dog_emotion_model(prepared, x, NUM_CLASSES)
    jax.block_until_ready(logits)
    assert logits.shape == (2, NUM_CLASSES)
    assert bool(jnp.all(jnp.isfinite(logits)))
    print("KERNEL_OK")
</pallas_src>

<mosaic_0001>
module attributes {stable_mosaic.version = 11 : i64} {
  func.func @_matmul_epilogue_kernel(%arg0: i32, %arg1: i32, %arg2: i32, %arg3: memref<256x256xbf16, #tpu.memory_space<vmem>>, %arg4: memref<256x128xbf16, #tpu.memory_space<vmem>>, %arg5: memref<1x128xf32, #tpu.memory_space<vmem>>, %arg6: memref<256x128xbf16, #tpu.memory_space<vmem>>, %arg7: memref<256x128xf32, #tpu.memory_space<vmem>>) attributes {dimension_semantics = [#tpu.dimension_semantics<parallel>, #tpu.dimension_semantics<parallel>, #tpu.dimension_semantics<arbitrary>], iteration_bounds = array<i64: 2, 1, 1>, scalar_prefetch = 0 : i64, scratch_operands = 1 : i64, tpu.core_type = #tpu.core_type<tc>, window_params = [{transform_indices = @transform_0, window_bounds = array<i64: 256, 256>}, {transform_indices = @transform_1, window_bounds = array<i64: 256, 128>}, {transform_indices = @transform_2, window_bounds = array<i64: 1, 128>}, {transform_indices = @transform_3, window_bounds = array<i64: 256, 128>}]} {
    %c0_i32 = arith.constant 0 : i32
    %0 = arith.cmpi eq, %arg2, %c0_i32 : i32
    %1 = arith.extui %0 : i1 to i32
    %c0_i32_0 = arith.constant 0 : i32
    %2 = arith.cmpi ne, %1, %c0_i32_0 : i32
    scf.if %2 {
      %cst_10 = arith.constant 0.000000e+00 : f32
      %12 = vector.broadcast %cst_10 : f32 to vector<256x128xf32>
      %c0_11 = arith.constant 0 : index
      %c0_12 = arith.constant 0 : index
      %13 = vector.load %arg7[%c0_11, %c0_12] : memref<256x128xf32, #tpu.memory_space<vmem>>, vector<256x128xf32>
      tpu.vector_store %arg7[%c0_11, %c0_12], %12 {strides = array<i32>} : memref<256x128xf32, #tpu.memory_space<vmem>>, vector<256x128xf32>,
    } else {
    }
    %c0 = arith.constant 0 : index
    %c0_1 = arith.constant 0 : index
    %3 = vector.load %arg7[%c0, %c0_1] : memref<256x128xf32, #tpu.memory_space<vmem>>, vector<256x128xf32>
    %c0_2 = arith.constant 0 : index
    %c0_3 = arith.constant 0 : index
    %4 = vector.load %arg3[%c0_2, %c0_3] : memref<256x256xbf16, #tpu.memory_space<vmem>>, vector<256x256xbf16>
    %c0_4 = arith.constant 0 : index
    %c0_5 = arith.constant 0 : index
    %5 = vector.load %arg4[%c0_4, %c0_5] : memref<256x128xbf16, #tpu.memory_space<vmem>>, vector<256x128xbf16>
    %cst = arith.constant dense<0.000000e+00> : vector<256x128xf32>
    %6 = tpu.matmul %4, %5, %cst {dimension_numbers = #tpu.dot_dimension_numbers<[1], [0], [0], [1], [0, 0, 1, 1], [], []>} : vector<256x256xbf16>, vector<256x128xbf16>, vector<256x128xf32> -> vector<256x128xf32>
    %7 = arith.addf %3, %6 : vector<256x128xf32>
    %c0_6 = arith.constant 0 : index
    %c0_7 = arith.constant 0 : index
    %8 = vector.load %arg7[%c0_6, %c0_7] : memref<256x128xf32, #tpu.memory_space<vmem>>, vector<256x128xf32>
    tpu.vector_store %arg7[%c0_6, %c0_7], %7 {strides = array<i32>} : memref<256x128xf32, #tpu.memory_space<vmem>>, vector<256x128xf32>,
    %c0_i32_8 = arith.constant 0 : i32
    %9 = arith.cmpi eq, %arg2, %c0_i32_8 : i32
    %10 = arith.extui %9 : i1 to i32
    %c0_i32_9 = arith.constant 0 : i32
    %11 = arith.cmpi ne, %10, %c0_i32_9 : i32
    scf.if %11 {
      %c0_10 = arith.constant 0 : index
      %c0_11 = arith.constant 0 : index
      %12 = vector.load %arg7[%c0_10, %c0_11] : memref<256x128xf32, #tpu.memory_space<vmem>>, vector<256x128xf32>
      %c0_12 = arith.constant 0 : index
      %c0_13 = arith.constant 0 : index
      %13 = vector.load %arg5[%c0_12, %c0_13] : memref<1x128xf32, #tpu.memory_space<vmem>>, vector<1x128xf32>
      %14 = vector.broadcast %13 : vector<1x128xf32> to vector<256x128xf32>
      %15 = arith.addf %12, %14 : vector<256x128xf32>
      %cst_14 = arith.constant 0.000000e+00 : f32
      %16 = vector.broadcast %cst_14 : f32 to vector<256x128xf32>
      %17 = arith.maximumf %15, %16 : vector<256x128xf32>
      %18 = arith.truncf %17 : vector<256x128xf32> to vector<256x128xbf16>
      %c0_15 = arith.constant 0 : index
      %c0_16 = arith.constant 0 : index
      %19 = vector.load %arg6[%c0_15, %c0_16] : memref<256x128xbf16, #tpu.memory_space<vmem>>, vector<256x128xbf16>
      tpu.vector_store %arg6[%c0_15, %c0_16], %18 {strides = array<i32>} : memref<256x128xbf16, #tpu.memory_space<vmem>>, vector<256x128xbf16>,
    } else {
    }
    return
  }
  func.func @transform_0(%arg0: i32, %arg1: i32, %arg2: i32) -> (i32, i32) {
    %c0_i32 = arith.constant 0 : i32
    return %arg0, %arg2 : i32, i32
  }
  func.func @transform_1(%arg0: i32, %arg1: i32, %arg2: i32) -> (i32, i32) {
    %c0_i32 = arith.constant 0 : i32
    return %arg2, %arg1 : i32, i32
  }
  func.func @transform_2(%arg0: i32, %arg1: i32, %arg2: i32) -> (i32, i32) {
    %c0_i32 = arith.constant 0 : i32
    %c0_i32_0 = arith.constant 0 : i32
    return %c0_i32, %arg1 : i32, i32
  }
  func.func @transform_3(%arg0: i32, %arg1: i32, %arg2: i32) -> (i32, i32) {
    %c0_i32 = arith.constant 0 : i32
    return %arg0, %arg1 : i32, i32
  }
}

module attributes {stable_mosaic.version = 11 : i64} {
  func.func @_max9_kernel(%arg0: i32, %arg1: memref<64x128xbf16, #tpu.memory_space<vmem>>, %arg2: memref<64x128xbf16, #tpu.memory_space<vmem>>, %arg3: memref<64x128xbf16, #tpu.memory_space<vmem>>, %arg4: memref<64x128xbf16, #tpu.memory_space<vmem>>, %arg5: memref<64x128xbf16, #tpu.memory_space<vmem>>, %arg6: memref<64x128xbf16, #tpu.memory_space<vmem>>, %arg7: memref<64x128xbf16, #tpu.memory_space<vmem>>, %arg8: memref<64x128xbf16, #tpu.memory_space<vmem>>, %arg9: memref<64x128xbf16, #tpu.memory_space<vmem>>, %arg10: memref<64x128xbf16, #tpu.memory_space<vmem>>) attributes {dimension_semantics = [#tpu.dimension_semantics<parallel>], iteration_bounds = array<i64: 1>, scalar_prefetch = 0 : i64, scratch_operands = 0 : i64, tpu.core_type = #tpu.core_type<tc>, window_params = [{transform_indices = @transform_0, window_bounds = array<i64: 64, 128>}, {transform_indices = @transform_1, window_bounds = array<i64: 64, 128>}, {transform_indices = @transform_2, window_bounds = array<i64: 64, 128>}, {transform_indices = @transform_3, window_bounds = array<i64: 64, 128>}, {transform_indices = @transform_4, window_bounds = array<i64: 64, 128>}, {transform_indices = @transform_5, window_bounds = array<i64: 64, 128>}, {transform_indices = @transform_6, window_bounds = array<i64: 64, 128>}, {transform_indices = @transform_7, window_bounds = array<i64: 64, 128>}, {transform_indices = @transform_8, window_bounds = array<i64: 64, 128>}, {transform_indices = @transform_9, window_bounds = array<i64: 64, 128>}]} {
    %c0 = arith.constant 0 : index
    %c0_0 = arith.constant 0 : index
    %0 = vector.load %arg1[%c0, %c0_0] : memref<64x128xbf16, #tpu.memory_space<vmem>>, vector<64x128xbf16>
    %c0_1 = arith.constant 0 : index
    %c0_2 = arith.constant 0 : index
    %1 = vector.load %arg2[%c0_1, %c0_2] : memref<64x128xbf16, #tpu.memory_space<vmem>>, vector<64x128xbf16>
    %2 = arith.maximumf %0, %1 : vector<64x128xbf16>
    %c0_3 = arith.constant 0 : index
    %c0_4 = arith.constant 0 : index
    %3 = vector.load %arg3[%c0_3, %c0_4] : memref<64x128xbf16, #tpu.memory_space<vmem>>, vector<64x128xbf16>
    %4 = arith.maximumf %2, %3 : vector<64x128xbf16>
    %c0_5 = arith.constant 0 : index
    %c0_6 = arith.constant 0 : index
    %5 = vector.load %arg4[%c0_5, %c0_6] : memref<64x128xbf16, #tpu.memory_space<vmem>>, vector<64x128xbf16>
    %6 = arith.maximumf %4, %5 : vector<64x128xbf16>
    %c0_7 = arith.constant 0 : index
    %c0_8 = arith.constant 0 : index
    %7 = vector.load %arg5[%c0_7, %c0_8] : memref<64x128xbf16, #tpu.memory_space<vmem>>, vector<64x128xbf16>
    %8 = arith.maximumf %6, %7 : vector<64x128xbf16>
    %c0_9 = arith.constant 0 : index
    %c0_10 = arith.constant 0 : index
    %9 = vector.load %arg6[%c0_9, %c0_10] : memref<64x128xbf16, #tpu.memory_space<vmem>>, vector<64x128xbf16>
    %10 = arith.maximumf %8, %9 : vector<64x128xbf16>
    %c0_11 = arith.constant 0 : index
    %c0_12 = arith.constant 0 : index
    %11 = vector.load %arg7[%c0_11, %c0_12] : memref<64x128xbf16, #tpu.memory_space<vmem>>, vector<64x128xbf16>
    %12 = arith.maximumf %10, %11 : vector<64x128xbf16>
    %c0_13 = arith.constant 0 : index
    %c0_14 = arith.constant 0 : index
    %13 = vector.load %arg8[%c0_13, %c0_14] : memref<64x128xbf16, #tpu.memory_space<vmem>>, vector<64x128xbf16>
    %14 = arith.maximumf %12, %13 : vector<64x128xbf16>
    %c0_15 = arith.constant 0 : index
    %c0_16 = arith.constant 0 : index
    %15 = vector.load %arg9[%c0_15, %c0_16] : memref<64x128xbf16, #tpu.memory_space<vmem>>, vector<64x128xbf16>
    %16 = arith.maximumf %14, %15 : vector<64x128xbf16>
    %c0_17 = arith.constant 0 : index
    %c0_18 = arith.constant 0 : index
    %17 = vector.load %arg10[%c0_17, %c0_18] : memref<64x128xbf16, #tpu.memory_space<vmem>>, vector<64x128xbf16>
    tpu.vector_store %arg10[%c0_17, %c0_18], %16 {strides = array<i32>} : memref<64x128xbf16, #tpu.memory_space<vmem>>, vector<64x128xbf16>,
    return
  }
  func.func @transform_0(%arg0: i32) -> (i32, i32) {
    %c0_i32 = arith.constant 0 : i32
    %c0_i32_0 = arith.constant 0 : i32
    return %arg0, %c0_i32 : i32, i32
  }
  func.func @transform_1(%arg0: i32) -> (i32, i32) {
    %c0_i32 = arith.constant 0 : i32
    %c0_i32_0 = arith.constant 0 : i32
    return %arg0, %c0_i32 : i32, i32
  }
  func.func @transform_2(%arg0: i32) -> (i32, i32) {
    %c0_i32 = arith.constant 0 : i32
    %c0_i32_0 = arith.constant 0 : i32
    return %arg0, %c0_i32 : i32, i32
  }
  func.func @transform_3(%arg0: i32) -> (i32, i32) {
    %c0_i32 = arith.constant 0 : i32
    %c0_i32_0 = arith.constant 0 : i32
    return %arg0, %c0_i32 : i32, i32
  }
  func.func @transform_4(%arg0: i32) -> (i32, i32) {
    %c0_i32 = arith.constant 0 : i32
    %c0_i32_0 = arith.constant 0 : i32
    return %arg0, %c0_i32 : i32, i32
  }
  func.func @transform_5(%arg0: i32) -> (i32, i32) {
    %c0_i32 = arith.constant 0 : i32
    %c0_i32_0 = arith.constant 0 : i32
    return %arg0, %c0_i32 : i32, i32
  }
  func.func @transform_6(%arg0: i32) -> (i32, i32) {
    %c0_i32 = arith.constant 0 : i32
    %c0_i32_0 = arith.constant 0 : i32
    return %arg0, %c0_i32 : i32, i32
  }
  func.func @transform_7(%arg0: i32) -> (i32, i32) {
    %c0_i32 = arith.constant 0 : i32
    %c0_i32_0 = arith.constant 0 : i32
    return %arg0, %c0_i32 : i32, i32
  }
  func.func @transform_8(%arg0: i32) -> (i32, i32) {
    %c0_i32 = arith.constant 0 : i32
    %c0_i32_0 = arith.constant 0 : i32
    return %arg0, %c0_i32 : i32, i32
  }
  func.func @transform_9(%arg0: i32) -> (i32, i32) {
    %c0_i32 = arith.constant 0 : i32
    %c0_i32_0 = arith.constant 0 : i32
    return %arg0, %c0_i32 : i32, i32
  }
}

module attributes {stable_mosaic.version = 11 : i64} {
  func.func @_matmul_epilogue_kernel(%arg0: i32, %arg1: i32, %arg2: i32, %arg3: memref<64x576xbf16, #tpu.memory_space<vmem>>, %arg4: memref<576x128xbf16, #tpu.memory_space<vmem>>, %arg5: memref<1x128xf32, #tpu.memory_space<vmem>>, %arg6: memref<64x128xbf16, #tpu.memory_space<vmem>>, %arg7: memref<64x128xf32, #tpu.memory_space<vmem>>) attributes {dimension_semantics = [#tpu.dimension_semantics<parallel>, #tpu.dimension_semantics<parallel>, #tpu.dimension_semantics<arbitrary>], iteration_bounds = array<i64: 2, 1, 1>, scalar_prefetch = 0 : i64, scratch_operands = 1 : i64, tpu.core_type = #tpu.core_type<tc>, window_params = [{transform_indices = @transform_0, window_bounds = array<i64: 64, 576>}, {transform_indices = @transform_1, window_bounds = array<i64: 576, 128>}, {transform_indices = @transform_2, window_bounds = array<i64: 1, 128>}, {transform_indices = @transform_3, window_bounds = array<i64: 64, 128>}]} {
    %c0_i32 = arith.constant 0 : i32
    %0 = arith.cmpi eq, %arg2, %c0_i32 : i32
    %1 = arith.extui %0 : i1 to i32
    %c0_i32_0 = arith.constant 0 : i32
    %2 = arith.cmpi ne, %1, %c0_i32_0 : i32
    scf.if %2 {
      %cst_10 = arith.constant 0.000000e+00 : f32
      %12 = vector.broadcast %cst_10 : f32 to vector<64x128xf32>
      %c0_11 = arith.constant 0 : index
      %c0_12 = arith.constant 0 : index
      %13 = vector.load %arg7[%c0_11, %c0_12] : memref<64x128xf32, #tpu.memory_space<vmem>>, vector<64x128xf32>
      tpu.vector_store %arg7[%c0_11, %c0_12], %12 {strides = array<i32>} : memref<64x128xf32, #tpu.memory_space<vmem>>, vector<64x128xf32>,
    } else {
    }
    %c0 = arith.constant 0 : index
    %c0_1 = arith.constant 0 : index
    %3 = vector.load %arg7[%c0, %c0_1] : memref<64x128xf32, #tpu.memory_space<vmem>>, vector<64x128xf32>
    %c0_2 = arith.constant 0 : index
    %c0_3 = arith.constant 0 : index
    %4 = vector.load %arg3[%c0_2, %c0_3] : memref<64x576xbf16, #tpu.memory_space<vmem>>, vector<64x576xbf16>
    %c0_4 = arith.constant 0 : index
    %c0_5 = arith.constant 0 : index
    %5 = vector.load %arg4[%c0_4, %c0_5] : memref<576x128xbf16, #tpu.memory_space<vmem>>, vector<576x128xbf16>
    %cst = arith.constant dense<0.000000e+00> : vector<64x128xf32>
    %6 = tpu.matmul %4, %5, %cst {dimension_numbers = #tpu.dot_dimension_numbers<[1], [0], [0], [1], [0, 0, 1, 1], [], []>} : vector<64x576xbf16>, vector<576x128xbf16>, vector<64x128xf32> -> vector<64x128xf32>
    %7 = arith.addf %3, %6 : vector<64x128xf32>
    %c0_6 = arith.constant 0 : index
    %c0_7 = arith.constant 0 : index
    %8 = vector.load %arg7[%c0_6, %c0_7] : memref<64x128xf32, #tpu.memory_space<vmem>>, vector<64x128xf32>
    tpu.vector_store %arg7[%c0_6, %c0_7], %7 {strides = array<i32>} : memref<64x128xf32, #tpu.memory_space<vmem>>, vector<64x128xf32>,
    %c0_i32_8 = arith.constant 0 : i32
    %9 = arith.cmpi eq, %arg2, %c0_i32_8 : i32
    %10 = arith.extui %9 : i1 to i32
    %c0_i32_9 = arith.constant 0 : i32
    %11 = arith.cmpi ne, %10, %c0_i32_9 : i32
    scf.if %11 {
      %c0_10 = arith.constant 0 : index
      %c0_11 = arith.constant 0 : index
      %12 = vector.load %arg7[%c0_10, %c0_11] : memref<64x128xf32, #tpu.memory_space<vmem>>, vector<64x128xf32>
      %c0_12 = arith.constant 0 : index
      %c0_13 = arith.constant 0 : index
      %13 = vector.load %arg5[%c0_12, %c0_13] : memref<1x128xf32, #tpu.memory_space<vmem>>, vector<1x128xf32>
      %14 = vector.broadcast %13 : vector<1x128xf32> to vector<64x128xf32>
      %15 = arith.addf %12, %14 : vector<64x128xf32>
      %cst_14 = arith.constant 0.000000e+00 : f32
      %16 = vector.broadcast %cst_14 : f32 to vector<64x128xf32>
      %17 = arith.maximumf %15, %16 : vector<64x128xf32>
      %18 = arith.truncf %17 : vector<64x128xf32> to vector<64x128xbf16>
      %c0_15 = arith.constant 0 : index
      %c0_16 = arith.constant 0 : index
      %19 = vector.load %arg6[%c0_15, %c0_16] : memref<64x128xbf16, #tpu.memory_space<vmem>>, vector<64x128xbf16>
      tpu.vector_store %arg6[%c0_15, %c0_16], %18 {strides = array<i32>} : memref<64x128xbf16, #tpu.memory_space<vmem>>, vector<64x128xbf16>,
    } else {
    }
    return
  }
  func.func @transform_0(%arg0: i32, %arg1: i32, %arg2: i32) -> (i32, i32) {
    %c0_i32 = arith.constant 0 : i32
    return %arg0, %arg2 : i32, i32
  }
  func.func @transform_1(%arg0: i32, %arg1: i32, %arg2: i32) -> (i32, i32) {
    %c0_i32 = arith.constant 0 : i32
    return %arg2, %arg1 : i32, i32
  }
  func.func @transform_2(%arg0: i32, %arg1: i32, %arg2: i32) -> (i32, i32) {
    %c0_i32 = arith.constant 0 : i32
    %c0_i32_0 = arith.constant 0 : i32
    return %c0_i32, %arg1 : i32, i32
  }
  func.func @transform_3(%arg0: i32, %arg1: i32, %arg2: i32) -> (i32, i32) {
    %c0_i32 = arith.constant 0 : i32
    return %arg0, %arg1 : i32, i32
  }
}

module attributes {stable_mosaic.version = 11 : i64} {
  func.func @_matmul_epilogue_kernel(%arg0: i32, %arg1: i32, %arg2: i32, %arg3: memref<64x576xbf16, #tpu.memory_space<vmem>>, %arg4: memref<576x128xbf16, #tpu.memory_space<vmem>>, %arg5: memref<1x128xf32, #tpu.memory_space<vmem>>, %arg6: memref<64x128xbf16, #tpu.memory_space<vmem>>, %arg7: memref<64x128xbf16, #tpu.memory_space<vmem>>, %arg8: memref<64x128xf32, #tpu.memory_space<vmem>>) attributes {dimension_semantics = [#tpu.dimension_semantics<parallel>, #tpu.dimension_semantics<parallel>, #tpu.dimension_semantics<arbitrary>], iteration_bounds = array<i64: 2, 1, 1>, scalar_prefetch = 0 : i64, scratch_operands = 1 : i64, tpu.core_type = #tpu.core_type<tc>, window_params = [{transform_indices = @transform_0, window_bounds = array<i64: 64, 576>}, {transform_indices = @transform_1, window_bounds = array<i64: 576, 128>}, {transform_indices = @transform_2, window_bounds = array<i64: 1, 128>}, {transform_indices = @transform_3, window_bounds = array<i64: 64, 128>}, {transform_indices = @transform_4, window_bounds = array<i64: 64, 128>}]} {
    %c0_i32 = arith.constant 0 : i32
    %0 = arith.cmpi eq, %arg2, %c0_i32 : i32
    %1 = arith.extui %0 : i1 to i32
    %c0_i32_0 = arith.constant 0 : i32
    %2 = arith.cmpi ne, %1, %c0_i32_0 : i32
    scf.if %2 {
      %cst_10 = arith.constant 0.000000e+00 : f32
      %12 = vector.broadcast %cst_10 : f32 to vector<64x128xf32>
      %c0_11 = arith.constant 0 : index
      %c0_12 = arith.constant 0 : index
      %13 = vector.load %arg8[%c0_11, %c0_12] : memref<64x128xf32, #tpu.memory_space<vmem>>, vector<64x128xf32>
      tpu.vector_store %arg8[%c0_11, %c0_12], %12 {strides = array<i32>} : memref<64x128xf32, #tpu.memory_space<vmem>>, vector<64x128xf32>,
    } else {
    }
    %c0 = arith.constant 0 : index
    %c0_1 = arith.constant 0 : index
    %3 = vector.load %arg8[%c0, %c0_1] : memref<64x128xf32, #tpu.memory_space<vmem>>, vector<64x128xf32>
    %c0_2 = arith.constant 0 : index
    %c0_3 = arith.constant 0 : index
    %4 = vector.load %arg3[%c0_2, %c0_3] : memref<64x576xbf16, #tpu.memory_space<vmem>>, vector<64x576xbf16>
    %c0_4 = arith.constant 0 : index
    %c0_5 = arith.constant 0 : index
    %5 = vector.load %arg4[%c0_4, %c0_5] : memref<576x128xbf16, #tpu.memory_space<vmem>>, vector<576x128xbf16>
    %cst = arith.constant dense<0.000000e+00> : vector<64x128xf32>
    %6 = tpu.matmul %4, %5, %cst {dimension_numbers = #tpu.dot_dimension_numbers<[1], [0], [0], [1], [0, 0, 1, 1], [], []>} : vector<64x576xbf16>, vector<576x128xbf16>, vector<64x128xf32> -> vector<64x128xf32>
    %7 = arith.addf %3, %6 : vector<64x128xf32>
    %c0_6 = arith.constant 0 : index
    %c0_7 = arith.constant 0 : index
    %8 = vector.load %arg8[%c0_6, %c0_7] : memref<64x128xf32, #tpu.memory_space<vmem>>, vector<64x128xf32>
    tpu.vector_store %arg8[%c0_6, %c0_7], %7 {strides = array<i32>} : memref<64x128xf32, #tpu.memory_space<vmem>>, vector<64x128xf32>,
    %c0_i32_8 = arith.constant 0 : i32
    %9 = arith.cmpi eq, %arg2, %c0_i32_8 : i32
    %10 = arith.extui %9 : i1 to i32
    %c0_i32_9 = arith.constant 0 : i32
    %11 = arith.cmpi ne, %10, %c0_i32_9 : i32
    scf.if %11 {
      %c0_10 = arith.constant 0 : index
      %c0_11 = arith.constant 0 : index
      %12 = vector.load %arg8[%c0_10, %c0_11] : memref<64x128xf32, #tpu.memory_space<vmem>>, vector<64x128xf32>
      %c0_12 = arith.constant 0 : index
      %c0_13 = arith.constant 0 : index
      %13 = vector.load %arg5[%c0_12, %c0_13] : memref<1x128xf32, #tpu.memory_space<vmem>>, vector<1x128xf32>
      %14 = vector.broadcast %13 : vector<1x128xf32> to vector<64x128xf32>
      %15 = arith.addf %12, %14 : vector<64x128xf32>
      %c0_14 = arith.constant 0 : index
      %c0_15 = arith.constant 0 : index
      %16 = vector.load %arg6[%c0_14, %c0_15] : memref<64x128xbf16, #tpu.memory_space<vmem>>, vector<64x128xbf16>
      %17 = arith.extf %16 : vector<64x128xbf16> to vector<64x128xf32>
      %18 = arith.addf %15, %17 : vector<64x128xf32>
      %cst_16 = arith.constant 0.000000e+00 : f32
      %19 = vector.broadcast %cst_16 : f32 to vector<64x128xf32>
      %20 = arith.maximumf %18, %19 : vector<64x128xf32>
      %21 = arith.truncf %20 : vector<64x128xf32> to vector<64x128xbf16>
      %c0_17 = arith.constant 0 : index
      %c0_18 = arith.constant 0 : index
      %22 = vector.load %arg7[%c0_17, %c0_18] : memref<64x128xbf16, #tpu.memory_space<vmem>>, vector<64x128xbf16>
      tpu.vector_store %arg7[%c0_17, %c0_18], %21 {strides = array<i32>} : memref<64x128xbf16, #tpu.memory_space<vmem>>, vector<64x128xbf16>,
    } else {
    }
    return
  }
  func.func @transform_0(%arg0: i32, %arg1: i32, %arg2: i32) -> (i32, i32) {
    %c0_i32 = arith.constant 0 : i32
    return %arg0, %arg2 : i32, i32
  }
  func.func @transform_1(%arg0: i32, %arg1: i32, %arg2: i32) -> (i32, i32) {
    %c0_i32 = arith.constant 0 : i32
    return %arg2, %arg1 : i32, i32
  }
  func.func @transform_2(%arg0: i32, %arg1: i32, %arg2: i32) -> (i32, i32) {
    %c0_i32 = arith.constant 0 : i32
    %c0_i32_0 = arith.constant 0 : i32
    return %c0_i32, %arg1 : i32, i32
  }
  func.func @transform_3(%arg0: i32, %arg1: i32, %arg2: i32) -> (i32, i32) {
    %c0_i32 = arith.constant 0 : i32
    return %arg0, %arg1 : i32, i32
  }
  func.func @transform_4(%arg0: i32, %arg1: i32, %arg2: i32) -> (i32, i32) {
    %c0_i32 = arith.constant 0 : i32
    return %arg0, %arg1 : i32, i32
  }
}

module attributes {stable_mosaic.version = 11 : i64} {
  func.func @_matmul_epilogue_kernel(%arg0: i32, %arg1: i32, %arg2: i32, %arg3: memref<16x576xbf16, #tpu.memory_space<vmem>>, %arg4: memref<576x128xbf16, #tpu.memory_space<vmem>>, %arg5: memref<1x128xf32, #tpu.memory_space<vmem>>, %arg6: memref<16x128xbf16, #tpu.memory_space<vmem>>, %arg7: memref<16x128xf32, #tpu.memory_space<vmem>>) attributes {dimension_semantics = [#tpu.dimension_semantics<parallel>, #tpu.dimension_semantics<parallel>, #tpu.dimension_semantics<arbitrary>], iteration_bounds = array<i64: 2, 1, 1>, scalar_prefetch = 0 : i64, scratch_operands = 1 : i64, tpu.core_type = #tpu.core_type<tc>, window_params = [{transform_indices = @transform_0, window_bounds = array<i64: 16, 576>}, {transform_indices = @transform_1, window_bounds = array<i64: 576, 128>}, {transform_indices = @transform_2, window_bounds = array<i64: 1, 128>}, {transform_indices = @transform_3, window_bounds = array<i64: 16, 128>}]} {
    %c0_i32 = arith.constant 0 : i32
    %0 = arith.cmpi eq, %arg2, %c0_i32 : i32
    %1 = arith.extui %0 : i1 to i32
    %c0_i32_0 = arith.constant 0 : i32
    %2 = arith.cmpi ne, %1, %c0_i32_0 : i32
    scf.if %2 {
      %cst_10 = arith.constant 0.000000e+00 : f32
      %12 = vector.broadcast %cst_10 : f32 to vector<16x128xf32>
      %c0_11 = arith.constant 0 : index
      %c0_12 = arith.constant 0 : index
      %13 = vector.load %arg7[%c0_11, %c0_12] : memref<16x128xf32, #tpu.memory_space<vmem>>, vector<16x128xf32>
      tpu.vector_store %arg7[%c0_11, %c0_12], %12 {strides = array<i32>} : memref<16x128xf32, #tpu.memory_space<vmem>>, vector<16x128xf32>,
    } else {
    }
    %c0 = arith.constant 0 : index
    %c0_1 = arith.constant 0 : index
    %3 = vector.load %arg7[%c0, %c0_1] : memref<16x128xf32, #tpu.memory_space<vmem>>, vector<16x128xf32>
    %c0_2 = arith.constant 0 : index
    %c0_3 = arith.constant 0 : index
    %4 = vector.load %arg3[%c0_2, %c0_3] : memref<16x576xbf16, #tpu.memory_space<vmem>>, vector<16x576xbf16>
    %c0_4 = arith.constant 0 : index
    %c0_5 = arith.constant 0 : index
    %5 = vector.load %arg4[%c0_4, %c0_5] : memref<576x128xbf16, #tpu.memory_space<vmem>>, vector<576x128xbf16>
    %cst = arith.constant dense<0.000000e+00> : vector<16x128xf32>
    %6 = tpu.matmul %4, %5, %cst {dimension_numbers = #tpu.dot_dimension_numbers<[1], [0], [0], [1], [0, 0, 1, 1], [], []>} : vector<16x576xbf16>, vector<576x128xbf16>, vector<16x128xf32> -> vector<16x128xf32>
    %7 = arith.addf %3, %6 : vector<16x128xf32>
    %c0_6 = arith.constant 0 : index
    %c0_7 = arith.constant 0 : index
    %8 = vector.load %arg7[%c0_6, %c0_7] : memref<16x128xf32, #tpu.memory_space<vmem>>, vector<16x128xf32>
    tpu.vector_store %arg7[%c0_6, %c0_7], %7 {strides = array<i32>} : memref<16x128xf32, #tpu.memory_space<vmem>>, vector<16x128xf32>,
    %c0_i32_8 = arith.constant 0 : i32
    %9 = arith.cmpi eq, %arg2, %c0_i32_8 : i32
    %10 = arith.extui %9 : i1 to i32
    %c0_i32_9 = arith.constant 0 : i32
    %11 = arith.cmpi ne, %10, %c0_i32_9 : i32
    scf.if %11 {
      %c0_10 = arith.constant 0 : index
      %c0_11 = arith.constant 0 : index
      %12 = vector.load %arg7[%c0_10, %c0_11] : memref<16x128xf32, #tpu.memory_space<vmem>>, vector<16x128xf32>
      %c0_12 = arith.constant 0 : index
      %c0_13 = arith.constant 0 : index
      %13 = vector.load %arg5[%c0_12, %c0_13] : memref<1x128xf32, #tpu.memory_space<vmem>>, vector<1x128xf32>
      %14 = vector.broadcast %13 : vector<1x128xf32> to vector<16x128xf32>
      %15 = arith.addf %12, %14 : vector<16x128xf32>
      %cst_14 = arith.constant 0.000000e+00 : f32
      %16 = vector.broadcast %cst_14 : f32 to vector<16x128xf32>
      %17 = arith.maximumf %15, %16 : vector<16x128xf32>
      %18 = arith.truncf %17 : vector<16x128xf32> to vector<16x128xbf16>
      %c0_15 = arith.constant 0 : index
      %c0_16 = arith.constant 0 : index
      %19 = vector.load %arg6[%c0_15, %c0_16] : memref<16x128xbf16, #tpu.memory_space<vmem>>, vector<16x128xbf16>
      tpu.vector_store %arg6[%c0_15, %c0_16], %18 {strides = array<i32>} : memref<16x128xbf16, #tpu.memory_space<vmem>>, vector<16x128xbf16>,
    } else {
    }
    return
  }
  func.func @transform_0(%arg0: i32, %arg1: i32, %arg2: i32) -> (i32, i32) {
    %c0_i32 = arith.constant 0 : i32
    return %arg0, %arg2 : i32, i32
  }
  func.func @transform_1(%arg0: i32, %arg1: i32, %arg2: i32) -> (i32, i32) {
    %c0_i32 = arith.constant 0 : i32
    return %arg2, %arg1 : i32, i32
  }
  func.func @transform_2(%arg0: i32, %arg1: i32, %arg2: i32) -> (i32, i32) {
    %c0_i32 = arith.constant 0 : i32
    %c0_i32_0 = arith.constant 0 : i32
    return %c0_i32, %arg1 : i32, i32
  }
  func.func @transform_3(%arg0: i32, %arg1: i32, %arg2: i32) -> (i32, i32) {
    %c0_i32 = arith.constant 0 : i32
    return %arg0, %arg1 : i32, i32
  }
}

module attributes {stable_mosaic.version = 11 : i64} {
  func.func @_matmul_epilogue_kernel(%arg0: i32, %arg1: i32, %arg2: i32, %arg3: memref<16x640xbf16, #tpu.memory_space<vmem>>, %arg4: memref<640x128xbf16, #tpu.memory_space<vmem>>, %arg5: memref<1x128xf32, #tpu.memory_space<vmem>>, %arg6: memref<16x128xbf16, #tpu.memory_space<vmem>>, %arg7: memref<16x128xbf16, #tpu.memory_space<vmem>>, %arg8: memref<16x128xf32, #tpu.memory_space<vmem>>) attributes {dimension_semantics = [#tpu.dimension_semantics<parallel>, #tpu.dimension_semantics<parallel>, #tpu.dimension_semantics<arbitrary>], iteration_bounds = array<i64: 2, 1, 2>, scalar_prefetch = 0 : i64, scratch_operands = 1 : i64, tpu.core_type = #tpu.core_type<tc>, window_params = [{transform_indices = @transform_0, window_bounds = array<i64: 16, 640>}, {transform_indices = @transform_1, window_bounds = array<i64: 640, 128>}, {transform_indices = @transform_2, window_bounds = array<i64: 1, 128>}, {transform_indices = @transform_3, window_bounds = array<i64: 16, 128>}, {transform_indices = @transform_4, window_bounds = array<i64: 16, 128>}]} {
    %c0_i32 = arith.constant 0 : i32
    %0 = arith.cmpi eq, %arg2, %c0_i32 : i32
    %1 = arith.extui %0 : i1 to i32
    %c0_i32_0 = arith.constant 0 : i32
    %2 = arith.cmpi ne, %1, %c0_i32_0 : i32
    scf.if %2 {
      %cst_9 = arith.constant 0.000000e+00 : f32
      %12 = vector.broadcast %cst_9 : f32 to vector<16x128xf32>
      %c0_10 = arith.constant 0 : index
      %c0_11 = arith.constant 0 : index
      %13 = vector.load %arg8[%c0_10, %c0_11] : memref<16x128xf32, #tpu.memory_space<vmem>>, vector<16x128xf32>
      tpu.vector_store %arg8[%c0_10, %c0_11], %12 {strides = array<i32>} : memref<16x128xf32, #tpu.memory_space<vmem>>, vector<16x128xf32>,
    } else {
    }
    %c0 = arith.constant 0 : index
    %c0_1 = arith.constant 0 : index
    %3 = vector.load %arg8[%c0, %c0_1] : memref<16x128xf32, #tpu.memory_space<vmem>>, vector<16x128xf32>
    %c0_2 = arith.constant 0 : index
    %c0_3 = arith.constant 0 : index
    %4 = vector.load %arg3[%c0_2, %c0_3] : memref<16x640xbf16, #tpu.memory_space<vmem>>, vector<16x640xbf16>
    %c0_4 = arith.constant 0 : index
    %c0_5 = arith.constant 0 : index
    %5 = vector.load %arg4[%c0_4, %c0_5] : memref<640x128xbf16, #tpu.memory_space<vmem>>, vector<640x128xbf16>
    %cst = arith.constant dense<0.000000e+00> : vector<16x128xf32>
    %6 = tpu.matmul %4, %5, %cst {dimension_numbers = #tpu.dot_dimension_numbers<[1], [0], [0], [1], [0, 0, 1, 1], [], []>} : vector<16x640xbf16>, vector<640x128xbf16>, vector<16x128xf32> -> vector<16x128xf32>
    %7 = arith.addf %3, %6 : vector<16x128xf32>
    %c0_6 = arith.constant 0 : index
    %c0_7 = arith.constant 0 : index
    %8 = vector.load %arg8[%c0_6, %c0_7] : memref<16x128xf32, #tpu.memory_space<vmem>>, vector<16x128xf32>
    tpu.vector_store %arg8[%c0_6, %c0_7], %7 {strides = array<i32>} : memref<16x128xf32, #tpu.memory_space<vmem>>, vector<16x128xf32>,
    %c1_i32 = arith.constant 1 : i32
    %9 = arith.cmpi eq, %arg2, %c1_i32 : i32
    %10 = arith.extui %9 : i1 to i32
    %c0_i32_8 = arith.constant 0 : i32
    %11 = arith.cmpi ne, %10, %c0_i32_8 : i32
    scf.if %11 {
      %c0_9 = arith.constant 0 : index
      %c0_10 = arith.constant 0 : index
      %12 = vector.load %arg8[%c0_9, %c0_10] : memref<16x128xf32, #tpu.memory_space<vmem>>, vector<16x128xf32>
      %c0_11 = arith.constant 0 : index
      %c0_12 = arith.constant 0 : index
      %13 = vector.load %arg5[%c0_11, %c0_12] : memref<1x128xf32, #tpu.memory_space<vmem>>, vector<1x128xf32>
      %14 = vector.broadcast %13 : vector<1x128xf32> to vector<16x128xf32>
      %15 = arith.addf %12, %14 : vector<16x128xf32>
      %c0_13 = arith.constant 0 : index
      %c0_14 = arith.constant 0 : index
      %16 = vector.load %arg6[%c0_13, %c0_14] : memref<16x128xbf16, #tpu.memory_space<vmem>>, vector<16x128xbf16>
      %17 = arith.extf %16 : vector<16x128xbf16> to vector<16x128xf32>
      %18 = arith.addf %15, %17 : vector<16x128xf32>
      %cst_15 = arith.constant 0.000000e+00 : f32
      %19 = vector.broadcast %cst_15 : f32 to vector<16x128xf32>
      %20 = arith.maximumf %18, %19 : vector<16x128xf32>
      %21 = arith.truncf %20 : vector<16x128xf32> to vector<16x128xbf16>
      %c0_16 = arith.constant 0 : index
      %c0_17 = arith.constant 0 : index
      %22 = vector.load %arg7[%c0_16, %c0_17] : memref<16x128xbf16, #tpu.memory_space<vmem>>, vector<16x128xbf16>
      tpu.vector_store %arg7[%c0_16, %c0_17], %21 {strides = array<i32>} : memref<16x128xbf16, #tpu.memory_space<vmem>>, vector<16x128xbf16>,
    } else {
    }
    return
  }
  func.func @transform_0(%arg0: i32, %arg1: i32, %arg2: i32) -> (i32, i32) {
    %c0_i32 = arith.constant 0 : i32
    return %arg0, %arg2 : i32, i32
  }
  func.func @transform_1(%arg0: i32, %arg1: i32, %arg2: i32) -> (i32, i32) {
    %c0_i32 = arith.constant 0 : i32
    return %arg2, %arg1 : i32, i32
  }
  func.func @transform_2(%arg0: i32, %arg1: i32, %arg2: i32) -> (i32, i32) {
    %c0_i32 = arith.constant 0 : i32
    %c0_i32_0 = arith.constant 0 : i32
    return %c0_i32, %arg1 : i32, i32
  }
  func.func @transform_3(%arg0: i32, %arg1: i32, %arg2: i32) -> (i32, i32) {
    %c0_i32 = arith.constant 0 : i32
    return %arg0, %arg1 : i32, i32
  }
  func.func @transform_4(%arg0: i32, %arg1: i32, %arg2: i32) -> (i32, i32) {
    %c0_i32 = arith.constant 0 : i32
    return %arg0, %arg1 : i32, i32
  }
}

module attributes {stable_mosaic.version = 11 : i64} {
  func.func @_matmul_epilogue_kernel(%arg0: i32, %arg1: i32, %arg2: i32, %arg3: memref<16x64xbf16, #tpu.memory_space<vmem>>, %arg4: memref<64x128xbf16, #tpu.memory_space<vmem>>, %arg5: memref<1x128xf32, #tpu.memory_space<vmem>>, %arg6: memref<16x128xbf16, #tpu.memory_space<vmem>>, %arg7: memref<16x128xf32, #tpu.memory_space<vmem>>) attributes {dimension_semantics = [#tpu.dimension_semantics<parallel>, #tpu.dimension_semantics<parallel>, #tpu.dimension_semantics<arbitrary>], iteration_bounds = array<i64: 2, 1, 1>, scalar_prefetch = 0 : i64, scratch_operands = 1 : i64, tpu.core_type = #tpu.core_type<tc>, window_params = [{transform_indices = @transform_0, window_bounds = array<i64: 16, 64>}, {transform_indices = @transform_1, window_bounds = array<i64: 64, 128>}, {transform_indices = @transform_2, window_bounds = array<i64: 1, 128>}, {transform_indices = @transform_3, window_bounds = array<i64: 16, 128>}]} {
    %c0_i32 = arith.constant 0 : i32
    %0 = arith.cmpi eq, %arg2, %c0_i32 : i32
    %1 = arith.extui %0 : i1 to i32
    %c0_i32_0 = arith.constant 0 : i32
    %2 = arith.cmpi ne, %1, %c0_i32_0 : i32
    scf.if %2 {
      %cst_10 = arith.constant 0.000000e+00 : f32
      %12 = vector.broadcast %cst_10 : f32 to vector<16x128xf32>
      %c0_11 = arith.constant 0 : index
      %c0_12 = arith.constant 0 : index
      %13 = vector.load %arg7[%c0_11, %c0_12] : memref<16x128xf32, #tpu.memory_space<vmem>>, vector<16x128xf32>
      tpu.vector_store %arg7[%c0_11, %c0_12], %12 {strides = array<i32>} : memref<16x128xf32, #tpu.memory_space<vmem>>, vector<16x128xf32>,
    } else {
    }
    %c0 = arith.constant 0 : index
    %c0_1 = arith.constant 0 : index
    %3 = vector.load %arg7[%c0, %c0_1] : memref<16x128xf32, #tpu.memory_space<vmem>>, vector<16x128xf32>
    %c0_2 = arith.constant 0 : index
    %c0_3 = arith.constant 0 : index
    %4 = vector.load %arg3[%c0_2, %c0_3] : memref<16x64xbf16, #tpu.memory_space<vmem>>, vector<16x64xbf16>
    %c0_4 = arith.constant 0 : index
    %c0_5 = arith.constant 0 : index
    %5 = vector.load %arg4[%c0_4, %c0_5] : memref<64x128xbf16, #tpu.memory_space<vmem>>, vector<64x128xbf16>
    %cst = arith.constant dense<0.000000e+00> : vector<16x128xf32>
    %6 = tpu.matmul %4, %5, %cst {dimension_numbers = #tpu.dot_dimension_numbers<[1], [0], [0], [1], [0, 0, 1, 1], [], []>} : vector<16x64xbf16>, vector<64x128xbf16>, vector<16x128xf32> -> vector<16x128xf32>
    %7 = arith.addf %3, %6 : vector<16x128xf32>
    %c0_6 = arith.constant 0 : index
    %c0_7 = arith.constant 0 : index
    %8 = vector.load %arg7[%c0_6, %c0_7] : memref<16x128xf32, #tpu.memory_space<vmem>>, vector<16x128xf32>
    tpu.vector_store %arg7[%c0_6, %c0_7], %7 {strides = array<i32>} : memref<16x128xf32, #tpu.memory_space<vmem>>, vector<16x128xf32>,
    %c0_i32_8 = arith.constant 0 : i32
    %9 = arith.cmpi eq, %arg2, %c0_i32_8 : i32
    %10 = arith.extui %9 : i1 to i32
    %c0_i32_9 = arith.constant 0 : i32
    %11 = arith.cmpi ne, %10, %c0_i32_9 : i32
    scf.if %11 {
      %c0_10 = arith.constant 0 : index
      %c0_11 = arith.constant 0 : index
      %12 = vector.load %arg7[%c0_10, %c0_11] : memref<16x128xf32, #tpu.memory_space<vmem>>, vector<16x128xf32>
      %c0_12 = arith.constant 0 : index
      %c0_13 = arith.constant 0 : index
      %13 = vector.load %arg5[%c0_12, %c0_13] : memref<1x128xf32, #tpu.memory_space<vmem>>, vector<1x128xf32>
      %14 = vector.broadcast %13 : vector<1x128xf32> to vector<16x128xf32>
      %15 = arith.addf %12, %14 : vector<16x128xf32>
      %16 = arith.truncf %15 : vector<16x128xf32> to vector<16x128xbf16>
      %c0_14 = arith.constant 0 : index
      %c0_15 = arith.constant 0 : index
      %17 = vector.load %arg6[%c0_14, %c0_15] : memref<16x128xbf16, #tpu.memory_space<vmem>>, vector<16x128xbf16>
      tpu.vector_store %arg6[%c0_14, %c0_15], %16 {strides = array<i32>} : memref<16x128xbf16, #tpu.memory_space<vmem>>, vector<16x128xbf16>,
    } else {
    }
    return
  }
  func.func @transform_0(%arg0: i32, %arg1: i32, %arg2: i32) -> (i32, i32) {
    %c0_i32 = arith.constant 0 : i32
    return %arg0, %arg2 : i32, i32
  }
  func.func @transform_1(%arg0: i32, %arg1: i32, %arg2: i32) -> (i32, i32) {
    %c0_i32 = arith.constant 0 : i32
    return %arg2, %arg1 : i32, i32
  }
  func.func @transform_2(%arg0: i32, %arg1: i32, %arg2: i32) -> (i32, i32) {
    %c0_i32 = arith.constant 0 : i32
    %c0_i32_0 = arith.constant 0 : i32
    return %c0_i32, %arg1 : i32, i32
  }
  func.func @transform_3(%arg0: i32, %arg1: i32, %arg2: i32) -> (i32, i32) {
    %c0_i32 = arith.constant 0 : i32
    return %arg0, %arg1 : i32, i32
  }
}

module attributes {stable_mosaic.version = 11 : i64} {
  func.func @_matmul_epilogue_kernel(%arg0: i32, %arg1: i32, %arg2: i32, %arg3: memref<16x640xbf16, #tpu.memory_space<vmem>>, %arg4: memref<640x128xbf16, #tpu.memory_space<vmem>>, %arg5: memref<1x128xf32, #tpu.memory_space<vmem>>, %arg6: memref<16x128xbf16, #tpu.memory_space<vmem>>, %arg7: memref<16x128xf32, #tpu.memory_space<vmem>>) attributes {dimension_semantics = [#tpu.dimension_semantics<parallel>, #tpu.dimension_semantics<parallel>, #tpu.dimension_semantics<arbitrary>], iteration_bounds = array<i64: 2, 1, 2>, scalar_prefetch = 0 : i64, scratch_operands = 1 : i64, tpu.core_type = #tpu.core_type<tc>, window_params = [{transform_indices = @transform_0, window_bounds = array<i64: 16, 640>}, {transform_indices = @transform_1, window_bounds = array<i64: 640, 128>}, {transform_indices = @transform_2, window_bounds = array<i64: 1, 128>}, {transform_indices = @transform_3, window_bounds = array<i64: 16, 128>}]} {
    %c0_i32 = arith.constant 0 : i32
    %0 = arith.cmpi eq, %arg2, %c0_i32 : i32
    %1 = arith.extui %0 : i1 to i32
    %c0_i32_0 = arith.constant 0 : i32
    %2 = arith.cmpi ne, %1, %c0_i32_0 : i32
    scf.if %2 {
      %cst_9 = arith.constant 0.000000e+00 : f32
      %12 = vector.broadcast %cst_9 : f32 to vector<16x128xf32>
      %c0_10 = arith.constant 0 : index
      %c0_11 = arith.constant 0 : index
      %13 = vector.load %arg7[%c0_10, %c0_11] : memref<16x128xf32, #tpu.memory_space<vmem>>, vector<16x128xf32>
      tpu.vector_store %arg7[%c0_10, %c0_11], %12 {strides = array<i32>} : memref<16x128xf32, #tpu.memory_space<vmem>>, vector<16x128xf32>,
    } else {
    }
    %c0 = arith.constant 0 : index
    %c0_1 = arith.constant 0 : index
    %3 = vector.load %arg7[%c0, %c0_1] : memref<16x128xf32, #tpu.memory_space<vmem>>, vector<16x128xf32>
    %c0_2 = arith.constant 0 : index
    %c0_3 = arith.constant 0 : index
    %4 = vector.load %arg3[%c0_2, %c0_3] : memref<16x640xbf16, #tpu.memory_space<vmem>>, vector<16x640xbf16>
    %c0_4 = arith.constant 0 : index
    %c0_5 = arith.constant 0 : index
    %5 = vector.load %arg4[%c0_4, %c0_5] : memref<640x128xbf16, #tpu.memory_space<vmem>>, vector<640x128xbf16>
    %cst = arith.constant dense<0.000000e+00> : vector<16x128xf32>
    %6 = tpu.matmul %4, %5, %cst {dimension_numbers = #tpu.dot_dimension_numbers<[1], [0], [0], [1], [0, 0, 1, 1], [], []>} : vector<16x640xbf16>, vector<640x128xbf16>, vector<16x128xf32> -> vector<16x128xf32>
    %7 = arith.addf %3, %6 : vector<16x128xf32>
    %c0_6 = arith.constant 0 : index
    %c0_7 = arith.constant 0 : index
    %8 = vector.load %arg7[%c0_6, %c0_7] : memref<16x128xf32, #tpu.memory_space<vmem>>, vector<16x128xf32>
    tpu.vector_store %arg7[%c0_6, %c0_7], %7 {strides = array<i32>} : memref<16x128xf32, #tpu.memory_space<vmem>>, vector<16x128xf32>,
    %c1_i32 = arith.constant 1 : i32
    %9 = arith.cmpi eq, %arg2, %c1_i32 : i32
    %10 = arith.extui %9 : i1 to i32
    %c0_i32_8 = arith.constant 0 : i32
    %11 = arith.cmpi ne, %10, %c0_i32_8 : i32
    scf.if %11 {
      %c0_9 = arith.constant 0 : index
      %c0_10 = arith.constant 0 : index
      %12 = vector.load %arg7[%c0_9, %c0_10] : memref<16x128xf32, #tpu.memory_space<vmem>>, vector<16x128xf32>
      %c0_11 = arith.constant 0 : index
      %c0_12 = arith.constant 0 : index
      %13 = vector.load %arg5[%c0_11, %c0_12] : memref<1x128xf32, #tpu.memory_space<vmem>>, vector<1x128xf32>
      %14 = vector.broadcast %13 : vector<1x128xf32> to vector<16x128xf32>
      %15 = arith.addf %12, %14 : vector<16x128xf32>
      %cst_13 = arith.constant 0.000000e+00 : f32
      %16 = vector.broadcast %cst_13 : f32 to vector<16x128xf32>
      %17 = arith.maximumf %15, %16 : vector<16x128xf32>
      %18 = arith.truncf %17 : vector<16x128xf32> to vector<16x128xbf16>
      %c0_14 = arith.constant 0 : index
      %c0_15 = arith.constant 0 : index
      %19 = vector.load %arg6[%c0_14, %c0_15] : memref<16x128xbf16, #tpu.memory_space<vmem>>, vector<16x128xbf16>
      tpu.vector_store %arg6[%c0_14, %c0_15], %18 {strides = array<i32>} : memref<16x128xbf16, #tpu.memory_space<vmem>>, vector<16x128xbf16>,
    } else {
    }
    return
  }
  func.func @transform_0(%arg0: i32, %arg1: i32, %arg2: i32) -> (i32, i32) {
    %c0_i32 = arith.constant 0 : i32
    return %arg0, %arg2 : i32, i32
  }
  func.func @transform_1(%arg0: i32, %arg1: i32, %arg2: i32) -> (i32, i32) {
    %c0_i32 = arith.constant 0 : i32
    return %arg2, %arg1 : i32, i32
  }
  func.func @transform_2(%arg0: i32, %arg1: i32, %arg2: i32) -> (i32, i32) {
    %c0_i32 = arith.constant 0 : i32
    %c0_i32_0 = arith.constant 0 : i32
    return %c0_i32, %arg1 : i32, i32
  }
  func.func @transform_3(%arg0: i32, %arg1: i32, %arg2: i32) -> (i32, i32) {
    %c0_i32 = arith.constant 0 : i32
    return %arg0, %arg1 : i32, i32
  }
}

module attributes {stable_mosaic.version = 11 : i64} {
  func.func @_matmul_epilogue_kernel(%arg0: i32, %arg1: i32, %arg2: i32, %arg3: memref<16x640xbf16, #tpu.memory_space<vmem>>, %arg4: memref<640x128xbf16, #tpu.memory_space<vmem>>, %arg5: memref<1x128xf32, #tpu.memory_space<vmem>>, %arg6: memref<16x128xbf16, #tpu.memory_space<vmem>>, %arg7: memref<16x128xf32, #tpu.memory_space<vmem>>) attributes {dimension_semantics = [#tpu.dimension_semantics<parallel>, #tpu.dimension_semantics<parallel>, #tpu.dimension_semantics<arbitrary>], iteration_bounds = array<i64: 1, 2, 2>, scalar_prefetch = 0 : i64, scratch_operands = 1 : i64, tpu.core_type = #tpu.core_type<tc>, window_params = [{transform_indices = @transform_0, window_bounds = array<i64: 16, 640>}, {transform_indices = @transform_1, window_bounds = array<i64: 640, 128>}, {transform_indices = @transform_2, window_bounds = array<i64: 1, 128>}, {transform_indices = @transform_3, window_bounds = array<i64: 16, 128>}]} {
    %c0_i32 = arith.constant 0 : i32
    %0 = arith.cmpi eq, %arg2, %c0_i32 : i32
    %1 = arith.extui %0 : i1 to i32
    %c0_i32_0 = arith.constant 0 : i32
    %2 = arith.cmpi ne, %1, %c0_i32_0 : i32
    scf.if %2 {
      %cst_9 = arith.constant 0.000000e+00 : f32
      %12 = vector.broadcast %cst_9 : f32 to vector<16x128xf32>
      %c0_10 = arith.constant 0 : index
      %c0_11 = arith.constant 0 : index
      %13 = vector.load %arg7[%c0_10, %c0_11] : memref<16x128xf32, #tpu.memory_space<vmem>>, vector<16x128xf32>
      tpu.vector_store %arg7[%c0_10, %c0_11], %12 {strides = array<i32>} : memref<16x128xf32, #tpu.memory_space<vmem>>, vector<16x128xf32>,
    } else {
    }
    %c0 = arith.constant 0 : index
    %c0_1 = arith.constant 0 : index
    %3 = vector.load %arg7[%c0, %c0_1] : memref<16x128xf32, #tpu.memory_space<vmem>>, vector<16x128xf32>
    %c0_2 = arith.constant 0 : index
    %c0_3 = arith.constant 0 : index
    %4 = vector.load %arg3[%c0_2, %c0_3] : memref<16x640xbf16, #tpu.memory_space<vmem>>, vector<16x640xbf16>
    %c0_4 = arith.constant 0 : index
    %c0_5 = arith.constant 0 : index
    %5 = vector.load %arg4[%c0_4, %c0_5] : memref<640x128xbf16, #tpu.memory_space<vmem>>, vector<640x128xbf16>
    %cst = arith.constant dense<0.000000e+00> : vector<16x128xf32>
    %6 = tpu.matmul %4, %5, %cst {dimension_numbers = #tpu.dot_dimension_numbers<[1], [0], [0], [1], [0, 0, 1, 1], [], []>} : vector<16x640xbf16>, vector<640x128xbf16>, vector<16x128xf32> -> vector<16x128xf32>
    %7 = arith.addf %3, %6 : vector<16x128xf32>
    %c0_6 = arith.constant 0 : index
    %c0_7 = arith.constant 0 : index
    %8 = vector.load %arg7[%c0_6, %c0_7] : memref<16x128xf32, #tpu.memory_space<vmem>>, vector<16x128xf32>
    tpu.vector_store %arg7[%c0_6, %c0_7], %7 {strides = array<i32>} : memref<16x128xf32, #tpu.memory_space<vmem>>, vector<16x128xf32>,
    %c1_i32 = arith.constant 1 : i32
    %9 = arith.cmpi eq, %arg2, %c1_i32 : i32
    %10 = arith.extui %9 : i1 to i32
    %c0_i32_8 = arith.constant 0 : i32
    %11 = arith.cmpi ne, %10, %c0_i32_8 : i32
    scf.if %11 {
      %c0_9 = arith.constant 0 : index
      %c0_10 = arith.constant 0 : index
      %12 = vector.load %arg7[%c0_9, %c0_10] : memref<16x128xf32, #tpu.memory_space<vmem>>, vector<16x128xf32>
      %c0_11 = arith.constant 0 : index
      %c0_12 = arith.constant 0 : index
      %13 = vector.load %arg5[%c0_11, %c0_12] : memref<1x128xf32, #tpu.memory_space<vmem>>, vector<1x128xf32>
      %14 = vector.broadcast %13 : vector<1x128xf32> to vector<16x128xf32>
      %15 = arith.addf %12, %14 : vector<16x128xf32>
      %cst_13 = arith.constant 0.000000e+00 : f32
      %16 = vector.broadcast %cst_13 : f32 to vector<16x128xf32>
      %17 = arith.maximumf %15, %16 : vector<16x128xf32>
      %18 = arith.truncf %17 : vector<16x128xf32> to vector<16x128xbf16>
      %c0_14 = arith.constant 0 : index
      %c0_15 = arith.constant 0 : index
      %19 = vector.load %arg6[%c0_14, %c0_15] : memref<16x128xbf16, #tpu.memory_space<vmem>>, vector<16x128xbf16>
      tpu.vector_store %arg6[%c0_14, %c0_15], %18 {strides = array<i32>} : memref<16x128xbf16, #tpu.memory_space<vmem>>, vector<16x128xbf16>,
    } else {
    }
    return
  }
  func.func @transform_0(%arg0: i32, %arg1: i32, %arg2: i32) -> (i32, i32) {
    %c0_i32 = arith.constant 0 : i32
    return %arg0, %arg2 : i32, i32
  }
  func.func @transform_1(%arg0: i32, %arg1: i32, %arg2: i32) -> (i32, i32) {
    %c0_i32 = arith.constant 0 : i32
    return %arg2, %arg1 : i32, i32
  }
  func.func @transform_2(%arg0: i32, %arg1: i32, %arg2: i32) -> (i32, i32) {
    %c0_i32 = arith.constant 0 : i32
    %c0_i32_0 = arith.constant 0 : i32
    return %c0_i32, %arg1 : i32, i32
  }
  func.func @transform_3(%arg0: i32, %arg1: i32, %arg2: i32) -> (i32, i32) {
    %c0_i32 = arith.constant 0 : i32
    return %arg0, %arg1 : i32, i32
  }
}

module attributes {stable_mosaic.version = 11 : i64} {
  func.func @_matmul_epilogue_kernel(%arg0: i32, %arg1: i32, %arg2: i32, %arg3: memref<16x128xbf16, #tpu.memory_space<vmem>>, %arg4: memref<128x128xbf16, #tpu.memory_space<vmem>>, %arg5: memref<1x128xf32, #tpu.memory_space<vmem>>, %arg6: memref<16x128xbf16, #tpu.memory_space<vmem>>, %arg7: memref<16x128xf32, #tpu.memory_space<vmem>>) attributes {dimension_semantics = [#tpu.dimension_semantics<parallel>, #tpu.dimension_semantics<parallel>, #tpu.dimension_semantics<arbitrary>], iteration_bounds = array<i64: 1, 2, 1>, scalar_prefetch = 0 : i64, scratch_operands = 1 : i64, tpu.core_type = #tpu.core_type<tc>, window_params = [{transform_indices = @transform_0, window_bounds = array<i64: 16, 128>}, {transform_indices = @transform_1, window_bounds = array<i64: 128, 128>}, {transform_indices = @transform_2, window_bounds = array<i64: 1, 128>}, {transform_indices = @transform_3, window_bounds = array<i64: 16, 128>}]} {
    %c0_i32 = arith.constant 0 : i32
    %0 = arith.cmpi eq, %arg2, %c0_i32 : i32
    %1 = arith.extui %0 : i1 to i32
    %c0_i32_0 = arith.constant 0 : i32
    %2 = arith.cmpi ne, %1, %c0_i32_0 : i32
    scf.if %2 {
      %cst_10 = arith.constant 0.000000e+00 : f32
      %12 = vector.broadcast %cst_10 : f32 to vector<16x128xf32>
      %c0_11 = arith.constant 0 : index
      %c0_12 = arith.constant 0 : index
      %13 = vector.load %arg7[%c0_11, %c0_12] : memref<16x128xf32, #tpu.memory_space<vmem>>, vector<16x128xf32>
      tpu.vector_store %arg7[%c0_11, %c0_12], %12 {strides = array<i32>} : memref<16x128xf32, #tpu.memory_space<vmem>>, vector<16x128xf32>,
    } else {
    }
    %c0 = arith.constant 0 : index
    %c0_1 = arith.constant 0 : index
    %3 = vector.load %arg7[%c0, %c0_1] : memref<16x128xf32, #tpu.memory_space<vmem>>, vector<16x128xf32>
    %c0_2 = arith.constant 0 : index
    %c0_3 = arith.constant 0 : index
    %4 = vector.load %arg3[%c0_2, %c0_3] : memref<16x128xbf16, #tpu.memory_space<vmem>>, vector<16x128xbf16>
    %c0_4 = arith.constant 0 : index
    %c0_5 = arith.constant 0 : index
    %5 = vector.load %arg4[%c0_4, %c0_5] : memref<128x128xbf16, #tpu.memory_space<vmem>>, vector<128x128xbf16>
    %cst = arith.constant dense<0.000000e+00> : vector<16x128xf32>
    %6 = tpu.matmul %4, %5, %cst {dimension_numbers = #tpu.dot_dimension_numbers<[1], [0], [0], [1], [0, 0, 1, 1], [], []>} : vector<16x128xbf16>, vector<128x128xbf16>, vector<16x128xf32> -> vector<16x128xf32>
    %7 = arith.addf %3, %6 : vector<16x128xf32>
    %c0_6 = arith.constant 0 : index
    %c0_7 = arith.constant 0 : index
    %8 = vector.load %arg7[%c0_6, %c0_7] : memref<16x128xf32, #tpu.memory_space<vmem>>, vector<16x128xf32>
    tpu.vector_store %arg7[%c0_6, %c0_7], %7 {strides = array<i32>} : memref<16x128xf32, #tpu.memory_space<vmem>>, vector<16x128xf32>,
    %c0_i32_8 = arith.constant 0 : i32
    %9 = arith.cmpi eq, %arg2, %c0_i32_8 : i32
    %10 = arith.extui %9 : i1 to i32
    %c0_i32_9 = arith.constant 0 : i32
    %11 = arith.cmpi ne, %10, %c0_i32_9 : i32
    scf.if %11 {
      %c0_10 = arith.constant 0 : index
      %c0_11 = arith.constant 0 : index
      %12 = vector.load %arg7[%c0_10, %c0_11] : memref<16x128xf32, #tpu.memory_space<vmem>>, vector<16x128xf32>
      %c0_12 = arith.constant 0 : index
      %c0_13 = arith.constant 0 : index
      %13 = vector.load %arg5[%c0_12, %c0_13] : memref<1x128xf32, #tpu.memory_space<vmem>>, vector<1x128xf32>
      %14 = vector.broadcast %13 : vector<1x128xf32> to vector<16x128xf32>
      %15 = arith.addf %12, %14 : vector<16x128xf32>
      %16 = arith.truncf %15 : vector<16x128xf32> to vector<16x128xbf16>
      %c0_14 = arith.constant 0 : index
      %c0_15 = arith.constant 0 : index
      %17 = vector.load %arg6[%c0_14, %c0_15] : memref<16x128xbf16, #tpu.memory_space<vmem>>, vector<16x128xbf16>
      tpu.vector_store %arg6[%c0_14, %c0_15], %16 {strides = array<i32>} : memref<16x128xbf16, #tpu.memory_space<vmem>>, vector<16x128xbf16>,
    } else {
    }
    return
  }
  func.func @transform_0(%arg0: i32, %arg1: i32, %arg2: i32) -> (i32, i32) {
    %c0_i32 = arith.constant 0 : i32
    return %arg0, %arg2 : i32, i32
  }
  func.func @transform_1(%arg0: i32, %arg1: i32, %arg2: i32) -> (i32, i32) {
    %c0_i32 = arith.constant 0 : i32
    return %arg2, %arg1 : i32, i32
  }
  func.func @transform_2(%arg0: i32, %arg1: i32, %arg2: i32) -> (i32, i32) {
    %c0_i32 = arith.constant 0 : i32
    %c0_i32_0 = arith.constant 0 : i32
    return %c0_i32, %arg1 : i32, i32
  }
  func.func @transform_3(%arg0: i32, %arg1: i32, %arg2: i32) -> (i32, i32) {
    %c0_i32 = arith.constant 0 : i32
    return %arg0, %arg1 : i32, i32
  }
}

module attributes {stable_mosaic.version = 11 : i64} {
  func.func @_matmul_epilogue_kernel(%arg0: i32, %arg1: i32, %arg2: i32, %arg3: memref<16x768xbf16, #tpu.memory_space<vmem>>, %arg4: memref<768x128xbf16, #tpu.memory_space<vmem>>, %arg5: memref<1x128xf32, #tpu.memory_space<vmem>>, %arg6: memref<16x128xbf16, #tpu.memory_space<vmem>>, %arg7: memref<16x128xbf16, #tpu.memory_space<vmem>>, %arg8: memref<16x128xf32, #tpu.memory_space<vmem>>) attributes {dimension_semantics = [#tpu.dimension_semantics<parallel>, #tpu.dimension_semantics<parallel>, #tpu.dimension_semantics<arbitrary>], iteration_bounds = array<i64: 1, 2, 3>, scalar_prefetch = 0 : i64, scratch_operands = 1 : i64, tpu.core_type = #tpu.core_type<tc>, window_params = [{transform_indices = @transform_0, window_bounds = array<i64: 16, 768>}, {transform_indices = @transform_1, window_bounds = array<i64: 768, 128>}, {transform_indices = @transform_2, window_bounds = array<i64: 1, 128>}, {transform_indices = @transform_3, window_bounds = array<i64: 16, 128>}, {transform_indices = @transform_4, window_bounds = array<i64: 16, 128>}]} {
    %c0_i32 = arith.constant 0 : i32
    %0 = arith.cmpi eq, %arg2, %c0_i32 : i32
    %1 = arith.extui %0 : i1 to i32
    %c0_i32_0 = arith.constant 0 : i32
    %2 = arith.cmpi ne, %1, %c0_i32_0 : i32
    scf.if %2 {
      %cst_9 = arith.constant 0.000000e+00 : f32
      %12 = vector.broadcast %cst_9 : f32 to vector<16x128xf32>
      %c0_10 = arith.constant 0 : index
      %c0_11 = arith.constant 0 : index
      %13 = vector.load %arg8[%c0_10, %c0_11] : memref<16x128xf32, #tpu.memory_space<vmem>>, vector<16x128xf32>
      tpu.vector_store %arg8[%c0_10, %c0_11], %12 {strides = array<i32>} : memref<16x128xf32, #tpu.memory_space<vmem>>, vector<16x128xf32>,
    } else {
    }
    %c0 = arith.constant 0 : index
    %c0_1 = arith.constant 0 : index
    %3 = vector.load %arg8[%c0, %c0_1] : memref<16x128xf32, #tpu.memory_space<vmem>>, vector<16x128xf32>
    %c0_2 = arith.constant 0 : index
    %c0_3 = arith.constant 0 : index
    %4 = vector.load %arg3[%c0_2, %c0_3] : memref<16x768xbf16, #tpu.memory_space<vmem>>, vector<16x768xbf16>
    %c0_4 = arith.constant 0 : index
    %c0_5 = arith.constant 0 : index
    %5 = vector.load %arg4[%c0_4, %c0_5] : memref<768x128xbf16, #tpu.memory_space<vmem>>, vector<768x128xbf16>
    %cst = arith.constant dense<0.000000e+00> : vector<16x128xf32>
    %6 = tpu.matmul %4, %5, %cst {dimension_numbers = #tpu.dot_dimension_numbers<[1], [0], [0], [1], [0, 0, 1, 1], [], []>} : vector<16x768xbf16>, vector<768x128xbf16>, vector<16x128xf32> -> vector<16x128xf32>
    %7 = arith.addf %3, %6 : vector<16x128xf32>
    %c0_6 = arith.constant 0 : index
    %c0_7 = arith.constant 0 : index
    %8 = vector.load %arg8[%c0_6, %c0_7] : memref<16x128xf32, #tpu.memory_space<vmem>>, vector<16x128xf32>
    tpu.vector_store %arg8[%c0_6, %c0_7], %7 {strides = array<i32>} : memref<16x128xf32, #tpu.memory_space<vmem>>, vector<16x128xf32>,
    %c2_i32 = arith.constant 2 : i32
    %9 = arith.cmpi eq, %arg2, %c2_i32 : i32
    %10 = arith.extui %9 : i1 to i32
    %c0_i32_8 = arith.constant 0 : i32
    %11 = arith.cmpi ne, %10, %c0_i32_8 : i32
    scf.if %11 {
      %c0_9 = arith.constant 0 : index
      %c0_10 = arith.constant 0 : index
      %12 = vector.load %arg8[%c0_9, %c0_10] : memref<16x128xf32, #tpu.memory_space<vmem>>, vector<16x128xf32>
      %c0_11 = arith.constant 0 : index
      %c0_12 = arith.constant 0 : index
      %13 = vector.load %arg5[%c0_11, %c0_12] : memref<1x128xf32, #tpu.memory_space<vmem>>, vector<1x128xf32>
      %14 = vector.broadcast %13 : vector<1x128xf32> to vector<16x128xf32>
      %15 = arith.addf %12, %14 : vector<16x128xf32>
      %c0_13 = arith.constant 0 : index
      %c0_14 = arith.constant 0 : index
      %16 = vector.load %arg6[%c0_13, %c0_14] : memref<16x128xbf16, #tpu.memory_space<vmem>>, vector<16x128xbf16>
      %17 = arith.extf %16 : vector<16x128xbf16> to vector<16x128xf32>
      %18 = arith.addf %15, %17 : vector<16x128xf32>
      %cst_15 = arith.constant 0.000000e+00 : f32
      %19 = vector.broadcast %cst_15 : f32 to vector<16x128xf32>
      %20 = arith.maximumf %18, %19 : vector<16x128xf32>
      %21 = arith.truncf %20 : vector<16x128xf32> to vector<16x128xbf16>
      %c0_16 = arith.constant 0 : index
      %c0_17 = arith.constant 0 : index
      %22 = vector.load %arg7[%c0_16, %c0_17] : memref<16x128xbf16, #tpu.memory_space<vmem>>, vector<16x128xbf16>
      tpu.vector_store %arg7[%c0_16, %c0_17], %21 {strides = array<i32>} : memref<16x128xbf16, #tpu.memory_space<vmem>>, vector<16x128xbf16>,
    } else {
    }
    return
  }
  func.func @transform_0(%arg0: i32, %arg1: i32, %arg2: i32) -> (i32, i32) {
    %c0_i32 = arith.constant 0 : i32
    return %arg0, %arg2 : i32, i32
  }
  func.func @transform_1(%arg0: i32, %arg1: i32, %arg2: i32) -> (i32, i32) {
    %c0_i32 = arith.constant 0 : i32
    return %arg2, %arg1 : i32, i32
  }
  func.func @transform_2(%arg0: i32, %arg1: i32, %arg2: i32) -> (i32, i32) {
    %c0_i32 = arith.constant 0 : i32
    %c0_i32_0 = arith.constant 0 : i32
    return %c0_i32, %arg1 : i32, i32
  }
  func.func @transform_3(%arg0: i32, %arg1: i32, %arg2: i32) -> (i32, i32) {
    %c0_i32 = arith.constant 0 : i32
    return %arg0, %arg1 : i32, i32
  }
  func.func @transform_4(%arg0: i32, %arg1: i32, %arg2: i32) -> (i32, i32) {
    %c0_i32 = arith.constant 0 : i32
    return %arg0, %arg1 : i32, i32
  }
}

module attributes {stable_mosaic.version = 11 : i64} {
  func.func @_matmul_epilogue_kernel(%arg0: i32, %arg1: i32, %arg2: i32, %arg3: memref<16x768xbf16, #tpu.memory_space<vmem>>, %arg4: memref<768x128xbf16, #tpu.memory_space<vmem>>, %arg5: memref<1x128xf32, #tpu.memory_space<vmem>>, %arg6: memref<16x128xbf16, #tpu.memory_space<vmem>>, %arg7: memref<16x128xf32, #tpu.memory_space<vmem>>) attributes {dimension_semantics = [#tpu.dimension_semantics<parallel>, #tpu.dimension_semantics<parallel>, #tpu.dimension_semantics<arbitrary>], iteration_bounds = array<i64: 1, 2, 3>, scalar_prefetch = 0 : i64, scratch_operands = 1 : i64, tpu.core_type = #tpu.core_type<tc>, window_params = [{transform_indices = @transform_0, window_bounds = array<i64: 16, 768>}, {transform_indices = @transform_1, window_bounds = array<i64: 768, 128>}, {transform_indices = @transform_2, window_bounds = array<i64: 1, 128>}, {transform_indices = @transform_3, window_bounds = array<i64: 16, 128>}]} {
    %c0_i32 = arith.constant 0 : i32
    %0 = arith.cmpi eq, %arg2, %c0_i32 : i32
    %1 = arith.extui %0 : i1 to i32
    %c0_i32_0 = arith.constant 0 : i32
    %2 = arith.cmpi ne, %1, %c0_i32_0 : i32
    scf.if %2 {
      %cst_9 = arith.constant 0.000000e+00 : f32
      %12 = vector.broadcast %cst_9 : f32 to vector<16x128xf32>
      %c0_10 = arith.constant 0 : index
      %c0_11 = arith.constant 0 : index
      %13 = vector.load %arg7[%c0_10, %c0_11] : memref<16x128xf32, #tpu.memory_space<vmem>>, vector<16x128xf32>
      tpu.vector_store %arg7[%c0_10, %c0_11], %12 {strides = array<i32>} : memref<16x128xf32, #tpu.memory_space<vmem>>, vector<16x128xf32>,
    } else {
    }
    %c0 = arith.constant 0 : index
    %c0_1 = arith.constant 0 : index
    %3 = vector.load %arg7[%c0, %c0_1] : memref<16x128xf32, #tpu.memory_space<vmem>>, vector<16x128xf32>
    %c0_2 = arith.constant 0 : index
    %c0_3 = arith.constant 0 : index
    %4 = vector.load %arg3[%c0_2, %c0_3] : memref<16x768xbf16, #tpu.memory_space<vmem>>, vector<16x768xbf16>
    %c0_4 = arith.constant 0 : index
    %c0_5 = arith.constant 0 : index
    %5 = vector.load %arg4[%c0_4, %c0_5] : memref<768x128xbf16, #tpu.memory_space<vmem>>, vector<768x128xbf16>
    %cst = arith.constant dense<0.000000e+00> : vector<16x128xf32>
    %6 = tpu.matmul %4, %5, %cst {dimension_numbers = #tpu.dot_dimension_numbers<[1], [0], [0], [1], [0, 0, 1, 1], [], []>} : vector<16x768xbf16>, vector<768x128xbf16>, vector<16x128xf32> -> vector<16x128xf32>
    %7 = arith.addf %3, %6 : vector<16x128xf32>
    %c0_6 = arith.constant 0 : index
    %c0_7 = arith.constant 0 : index
    %8 = vector.load %arg7[%c0_6, %c0_7] : memref<16x128xf32, #tpu.memory_space<vmem>>, vector<16x128xf32>
    tpu.vector_store %arg7[%c0_6, %c0_7], %7 {strides = array<i32>} : memref<16x128xf32, #tpu.memory_space<vmem>>, vector<16x128xf32>,
    %c2_i32 = arith.constant 2 : i32
    %9 = arith.cmpi eq, %arg2, %c2_i32 : i32
    %10 = arith.extui %9 : i1 to i32
    %c0_i32_8 = arith.constant 0 : i32
    %11 = arith.cmpi ne, %10, %c0_i32_8 : i32
    scf.if %11 {
      %c0_9 = arith.constant 0 : index
      %c0_10 = arith.constant 0 : index
      %12 = vector.load %arg7[%c0_9, %c0_10] : memref<16x128xf32, #tpu.memory_space<vmem>>, vector<16x128xf32>
      %c0_11 = arith.constant 0 : index
      %c0_12 = arith.constant 0 : index
      %13 = vector.load %arg5[%c0_11, %c0_12] : memref<1x128xf32, #tpu.memory_space<vmem>>, vector<1x128xf32>
      %14 = vector.broadcast %13 : vector<1x128xf32> to vector<16x128xf32>
      %15 = arith.addf %12, %14 : vector<16x128xf32>
      %cst_13 = arith.constant 0.000000e+00 : f32
      %16 = vector.broadcast %cst_13 : f32 to vector<16x128xf32>
      %17 = arith.maximumf %15, %16 : vector<16x128xf32>
      %18 = arith.truncf %17 : vector<16x128xf32> to vector<16x128xbf16>
      %c0_14 = arith.constant 0 : index
      %c0_15 = arith.constant 0 : index
      %19 = vector.load %arg6[%c0_14, %c0_15] : memref<16x128xbf16, #tpu.memory_space<vmem>>, vector<16x128xbf16>
      tpu.vector_store %arg6[%c0_14, %c0_15], %18 {strides = array<i32>} : memref<16x128xbf16, #tpu.memory_space<vmem>>, vector<16x128xbf16>,
    } else {
    }
    return
  }
  func.func @transform_0(%arg0: i32, %arg1: i32, %arg2: i32) -> (i32, i32) {
    %c0_i32 = arith.constant 0 : i32
    return %arg0, %arg2 : i32, i32
  }
  func.func @transform_1(%arg0: i32, %arg1: i32, %arg2: i32) -> (i32, i32) {
    %c0_i32 = arith.constant 0 : i32
    return %arg2, %arg1 : i32, i32
  }
  func.func @transform_2(%arg0: i32, %arg1: i32, %arg2: i32) -> (i32, i32) {
    %c0_i32 = arith.constant 0 : i32
    %c0_i32_0 = arith.constant 0 : i32
    return %c0_i32, %arg1 : i32, i32
  }
  func.func @transform_3(%arg0: i32, %arg1: i32, %arg2: i32) -> (i32, i32) {
    %c0_i32 = arith.constant 0 : i32
    return %arg0, %arg1 : i32, i32
  }
}

module attributes {stable_mosaic.version = 11 : i64} {
  func.func @_matmul_epilogue_kernel(%arg0: i32, %arg1: i32, %arg2: i32, %arg3: memref<16x768xbf16, #tpu.memory_space<vmem>>, %arg4: memref<768x256xbf16, #tpu.memory_space<vmem>>, %arg5: memref<1x256xf32, #tpu.memory_space<vmem>>, %arg6: memref<16x256xbf16, #tpu.memory_space<vmem>>, %arg7: memref<16x256xf32, #tpu.memory_space<vmem>>) attributes {dimension_semantics = [#tpu.dimension_semantics<parallel>, #tpu.dimension_semantics<parallel>, #tpu.dimension_semantics<arbitrary>], iteration_bounds = array<i64: 1, 2, 3>, scalar_prefetch = 0 : i64, scratch_operands = 1 : i64, tpu.core_type = #tpu.core_type<tc>, window_params = [{transform_indices = @transform_0, window_bounds = array<i64: 16, 768>}, {transform_indices = @transform_1, window_bounds = array<i64: 768, 256>}, {transform_indices = @transform_2, window_bounds = array<i64: 1, 256>}, {transform_indices = @transform_3, window_bounds = array<i64: 16, 256>}]} {
    %c0_i32 = arith.constant 0 : i32
    %0 = arith.cmpi eq, %arg2, %c0_i32 : i32
    %1 = arith.extui %0 : i1 to i32
    %c0_i32_0 = arith.constant 0 : i32
    %2 = arith.cmpi ne, %1, %c0_i32_0 : i32
    scf.if %2 {
      %cst_9 = arith.constant 0.000000e+00 : f32
      %12 = vector.broadcast %cst_9 : f32 to vector<16x256xf32>
      %c0_10 = arith.constant 0 : index
      %c0_11 = arith.constant 0 : index
      %13 = vector.load %arg7[%c0_10, %c0_11] : memref<16x256xf32, #tpu.memory_space<vmem>>, vector<16x256xf32>
      tpu.vector_store %arg7[%c0_10, %c0_11], %12 {strides = array<i32>} : memref<16x256xf32, #tpu.memory_space<vmem>>, vector<16x256xf32>,
    } else {
    }
    %c0 = arith.constant 0 : index
    %c0_1 = arith.constant 0 : index
    %3 = vector.load %arg7[%c0, %c0_1] : memref<16x256xf32, #tpu.memory_space<vmem>>, vector<16x256xf32>
    %c0_2 = arith.constant 0 : index
    %c0_3 = arith.constant 0 : index
    %4 = vector.load %arg3[%c0_2, %c0_3] : memref<16x768xbf16, #tpu.memory_space<vmem>>, vector<16x768xbf16>
    %c0_4 = arith.constant 0 : index
    %c0_5 = arith.constant 0 : index
    %5 = vector.load %arg4[%c0_4, %c0_5] : memref<768x256xbf16, #tpu.memory_space<vmem>>, vector<768x256xbf16>
    %cst = arith.constant dense<0.000000e+00> : vector<16x256xf32>
    %6 = tpu.matmul %4, %5, %cst {dimension_numbers = #tpu.dot_dimension_numbers<[1], [0], [0], [1], [0, 0, 1, 1], [], []>} : vector<16x768xbf16>, vector<768x256xbf16>, vector<16x256xf32> -> vector<16x256xf32>
    %7 = arith.addf %3, %6 : vector<16x256xf32>
    %c0_6 = arith.constant 0 : index
    %c0_7 = arith.constant 0 : index
    %8 = vector.load %arg7[%c0_6, %c0_7] : memref<16x256xf32, #tpu.memory_space<vmem>>, vector<16x256xf32>
    tpu.vector_store %arg7[%c0_6, %c0_7], %7 {strides = array<i32>} : memref<16x256xf32, #tpu.memory_space<vmem>>, vector<16x256xf32>,
    %c2_i32 = arith.constant 2 : i32
    %9 = arith.cmpi eq, %arg2, %c2_i32 : i32
    %10 = arith.extui %9 : i1 to i32
    %c0_i32_8 = arith.constant 0 : i32
    %11 = arith.cmpi ne, %10, %c0_i32_8 : i32
    scf.if %11 {
      %c0_9 = arith.constant 0 : index
      %c0_10 = arith.constant 0 : index
      %12 = vector.load %arg7[%c0_9, %c0_10] : memref<16x256xf32, #tpu.memory_space<vmem>>, vector<16x256xf32>
      %c0_11 = arith.constant 0 : index
      %c0_12 = arith.constant 0 : index
      %13 = vector.load %arg5[%c0_11, %c0_12] : memref<1x256xf32, #tpu.memory_space<vmem>>, vector<1x256xf32>
      %14 = vector.broadcast %13 : vector<1x256xf32> to vector<16x256xf32>
      %15 = arith.addf %12, %14 : vector<16x256xf32>
      %cst_13 = arith.constant 0.000000e+00 : f32
      %16 = vector.broadcast %cst_13 : f32 to vector<16x256xf32>
      %17 = arith.maximumf %15, %16 : vector<16x256xf32>
      %18 = arith.truncf %17 : vector<16x256xf32> to vector<16x256xbf16>
      %c0_14 = arith.constant 0 : index
      %c0_15 = arith.constant 0 : index
      %19 = vector.load %arg6[%c0_14, %c0_15] : memref<16x256xbf16, #tpu.memory_space<vmem>>, vector<16x256xbf16>
      tpu.vector_store %arg6[%c0_14, %c0_15], %18 {strides = array<i32>} : memref<16x256xbf16, #tpu.memory_space<vmem>>, vector<16x256xbf16>,
    } else {
    }
    return
  }
  func.func @transform_0(%arg0: i32, %arg1: i32, %arg2: i32) -> (i32, i32) {
    %c0_i32 = arith.constant 0 : i32
    return %arg0, %arg2 : i32, i32
  }
  func.func @transform_1(%arg0: i32, %arg1: i32, %arg2: i32) -> (i32, i32) {
    %c0_i32 = arith.constant 0 : i32
    return %arg2, %arg1 : i32, i32
  }
  func.func @transform_2(%arg0: i32, %arg1: i32, %arg2: i32) -> (i32, i32) {
    %c0_i32 = arith.constant 0 : i32
    %c0_i32_0 = arith.constant 0 : i32
    return %c0_i32, %arg1 : i32, i32
  }
  func.func @transform_3(%arg0: i32, %arg1: i32, %arg2: i32) -> (i32, i32) {
    %c0_i32 = arith.constant 0 : i32
    return %arg0, %arg1 : i32, i32
  }
}

module attributes {stable_mosaic.version = 11 : i64} {
  func.func @_matmul_epilogue_kernel(%arg0: i32, %arg1: i32, %arg2: i32, %arg3: memref<16x256xbf16, #tpu.memory_space<vmem>>, %arg4: memref<256x256xbf16, #tpu.memory_space<vmem>>, %arg5: memref<1x256xf32, #tpu.memory_space<vmem>>, %arg6: memref<16x256xbf16, #tpu.memory_space<vmem>>, %arg7: memref<16x256xf32, #tpu.memory_space<vmem>>) attributes {dimension_semantics = [#tpu.dimension_semantics<parallel>, #tpu.dimension_semantics<parallel>, #tpu.dimension_semantics<arbitrary>], iteration_bounds = array<i64: 1, 2, 1>, scalar_prefetch = 0 : i64, scratch_operands = 1 : i64, tpu.core_type = #tpu.core_type<tc>, window_params = [{transform_indices = @transform_0, window_bounds = array<i64: 16, 256>}, {transform_indices = @transform_1, window_bounds = array<i64: 256, 256>}, {transform_indices = @transform_2, window_bounds = array<i64: 1, 256>}, {transform_indices = @transform_3, window_bounds = array<i64: 16, 256>}]} {
    %c0_i32 = arith.constant 0 : i32
    %0 = arith.cmpi eq, %arg2, %c0_i32 : i32
    %1 = arith.extui %0 : i1 to i32
    %c0_i32_0 = arith.constant 0 : i32
    %2 = arith.cmpi ne, %1, %c0_i32_0 : i32
    scf.if %2 {
      %cst_10 = arith.constant 0.000000e+00 : f32
      %12 = vector.broadcast %cst_10 : f32 to vector<16x256xf32>
      %c0_11 = arith.constant 0 : index
      %c0_12 = arith.constant 0 : index
      %13 = vector.load %arg7[%c0_11, %c0_12] : memref<16x256xf32, #tpu.memory_space<vmem>>, vector<16x256xf32>
      tpu.vector_store %arg7[%c0_11, %c0_12], %12 {strides = array<i32>} : memref<16x256xf32, #tpu.memory_space<vmem>>, vector<16x256xf32>,
    } else {
    }
    %c0 = arith.constant 0 : index
    %c0_1 = arith.constant 0 : index
    %3 = vector.load %arg7[%c0, %c0_1] : memref<16x256xf32, #tpu.memory_space<vmem>>, vector<16x256xf32>
    %c0_2 = arith.constant 0 : index
    %c0_3 = arith.constant 0 : index
    %4 = vector.load %arg3[%c0_2, %c0_3] : memref<16x256xbf16, #tpu.memory_space<vmem>>, vector<16x256xbf16>
    %c0_4 = arith.constant 0 : index
    %c0_5 = arith.constant 0 : index
    %5 = vector.load %arg4[%c0_4, %c0_5] : memref<256x256xbf16, #tpu.memory_space<vmem>>, vector<256x256xbf16>
    %cst = arith.constant dense<0.000000e+00> : vector<16x256xf32>
    %6 = tpu.matmul %4, %5, %cst {dimension_numbers = #tpu.dot_dimension_numbers<[1], [0], [0], [1], [0, 0, 1, 1], [], []>} : vector<16x256xbf16>, vector<256x256xbf16>, vector<16x256xf32> -> vector<16x256xf32>
    %7 = arith.addf %3, %6 : vector<16x256xf32>
    %c0_6 = arith.constant 0 : index
    %c0_7 = arith.constant 0 : index
    %8 = vector.load %arg7[%c0_6, %c0_7] : memref<16x256xf32, #tpu.memory_space<vmem>>, vector<16x256xf32>
    tpu.vector_store %arg7[%c0_6, %c0_7], %7 {strides = array<i32>} : memref<16x256xf32, #tpu.memory_space<vmem>>, vector<16x256xf32>,
    %c0_i32_8 = arith.constant 0 : i32
    %9 = arith.cmpi eq, %arg2, %c0_i32_8 : i32
    %10 = arith.extui %9 : i1 to i32
    %c0_i32_9 = arith.constant 0 : i32
    %11 = arith.cmpi ne, %10, %c0_i32_9 : i32
    scf.if %11 {
      %c0_10 = arith.constant 0 : index
      %c0_11 = arith.constant 0 : index
      %12 = vector.load %arg7[%c0_10, %c0_11] : memref<16x256xf32, #tpu.memory_space<vmem>>, vector<16x256xf32>
      %c0_12 = arith.constant 0 : index
      %c0_13 = arith.constant 0 : index
      %13 = vector.load %arg5[%c0_12, %c0_13] : memref<1x256xf32, #tpu.memory_space<vmem>>, vector<1x256xf32>
      %14 = vector.broadcast %13 : vector<1x256xf32> to vector<16x256xf32>
      %15 = arith.addf %12, %14 : vector<16x256xf32>
      %16 = arith.truncf %15 : vector<16x256xf32> to vector<16x256xbf16>
      %c0_14 = arith.constant 0 : index
      %c0_15 = arith.constant 0 : index
      %17 = vector.load %arg6[%c0_14, %c0_15] : memref<16x256xbf16, #tpu.memory_space<vmem>>, vector<16x256xbf16>
      tpu.vector_store %arg6[%c0_14, %c0_15], %16 {strides = array<i32>} : memref<16x256xbf16, #tpu.memory_space<vmem>>, vector<16x256xbf16>,
    } else {
    }
    return
  }
  func.func @transform_0(%arg0: i32, %arg1: i32, %arg2: i32) -> (i32, i32) {
    %c0_i32 = arith.constant 0 : i32
    return %arg0, %arg2 : i32, i32
  }
  func.func @transform_1(%arg0: i32, %arg1: i32, %arg2: i32) -> (i32, i32) {
    %c0_i32 = arith.constant 0 : i32
    return %arg2, %arg1 : i32, i32
  }
  func.func @transform_2(%arg0: i32, %arg1: i32, %arg2: i32) -> (i32, i32) {
    %c0_i32 = arith.constant 0 : i32
    %c0_i32_0 = arith.constant 0 : i32
    return %c0_i32, %arg1 : i32, i32
  }
  func.func @transform_3(%arg0: i32, %arg1: i32, %arg2: i32) -> (i32, i32) {
    %c0_i32 = arith.constant 0 : i32
    return %arg0, %arg1 : i32, i32
  }
}

module attributes {stable_mosaic.version = 11 : i64} {
  func.func @_matmul_epilogue_kernel(%arg0: i32, %arg1: i32, %arg2: i32, %arg3: memref<16x1024xbf16, #tpu.memory_space<vmem>>, %arg4: memref<1024x256xbf16, #tpu.memory_space<vmem>>, %arg5: memref<1x256xf32, #tpu.memory_space<vmem>>, %arg6: memref<16x256xbf16, #tpu.memory_space<vmem>>, %arg7: memref<16x256xbf16, #tpu.memory_space<vmem>>, %arg8: memref<16x256xf32, #tpu.memory_space<vmem>>) attributes {dimension_semantics = [#tpu.dimension_semantics<parallel>, #tpu.dimension_semantics<parallel>, #tpu.dimension_semantics<arbitrary>], iteration_bounds = array<i64: 1, 2, 5>, scalar_prefetch = 0 : i64, scratch_operands = 1 : i64, tpu.core_type = #tpu.core_type<tc>, window_params = [{transform_indices = @transform_0, window_bounds = array<i64: 16, 1024>}, {transform_indices = @transform_1, window_bounds = array<i64: 1024, 256>}, {transform_indices = @transform_2, window_bounds = array<i64: 1, 256>}, {transform_indices = @transform_3, window_bounds = array<i64: 16, 256>}, {transform_indices = @transform_4, window_bounds = array<i64: 16, 256>}]} {
    %c0_i32 = arith.constant 0 : i32
    %0 = arith.cmpi eq, %arg2, %c0_i32 : i32
    %1 = arith.extui %0 : i1 to i32
    %c0_i32_0 = arith.constant 0 : i32
    %2 = arith.cmpi ne, %1, %c0_i32_0 : i32
    scf.if %2 {
      %cst_9 = arith.constant 0.000000e+00 : f32
      %12 = vector.broadcast %cst_9 : f32 to vector<16x256xf32>
      %c0_10 = arith.constant 0 : index
      %c0_11 = arith.constant 0 : index
      %13 = vector.load %arg8[%c0_10, %c0_11] : memref<16x256xf32, #tpu.memory_space<vmem>>, vector<16x256xf32>
      tpu.vector_store %arg8[%c0_10, %c0_11], %12 {strides = array<i32>} : memref<16x256xf32, #tpu.memory_space<vmem>>, vector<16x256xf32>,
    } else {
    }
    %c0 = arith.constant 0 : index
    %c0_1 = arith.constant 0 : index
    %3 = vector.load %arg8[%c0, %c0_1] : memref<16x256xf32, #tpu.memory_space<vmem>>, vector<16x256xf32>
    %c0_2 = arith.constant 0 : index
    %c0_3 = arith.constant 0 : index
    %4 = vector.load %arg3[%c0_2, %c0_3] : memref<16x1024xbf16, #tpu.memory_space<vmem>>, vector<16x1024xbf16>
    %c0_4 = arith.constant 0 : index
    %c0_5 = arith.constant 0 : index
    %5 = vector.load %arg4[%c0_4, %c0_5] : memref<1024x256xbf16, #tpu.memory_space<vmem>>, vector<1024x256xbf16>
    %cst = arith.constant dense<0.000000e+00> : vector<16x256xf32>
    %6 = tpu.matmul %4, %5, %cst {dimension_numbers = #tpu.dot_dimension_numbers<[1], [0], [0], [1], [0, 0, 1, 1], [], []>} : vector<16x1024xbf16>, vector<1024x256xbf16>, vector<16x256xf32> -> vector<16x256xf32>
    %7 = arith.addf %3, %6 : vector<16x256xf32>
    %c0_6 = arith.constant 0 : index
    %c0_7 = arith.constant 0 : index
    %8 = vector.load %arg8[%c0_6, %c0_7] : memref<16x256xf32, #tpu.memory_space<vmem>>, vector<16x256xf32>
    tpu.vector_store %arg8[%c0_6, %c0_7], %7 {strides = array<i32>} : memref<16x256xf32, #tpu.memory_space<vmem>>, vector<16x256xf32>,
    %c4_i32 = arith.constant 4 : i32
    %9 = arith.cmpi eq, %arg2, %c4_i32 : i32
    %10 = arith.extui %9 : i1 to i32
    %c0_i32_8 = arith.constant 0 : i32
    %11 = arith.cmpi ne, %10, %c0_i32_8 : i32
    scf.if %11 {
      %c0_9 = arith.constant 0 : index
      %c0_10 = arith.constant 0 : index
      %12 = vector.load %arg8[%c0_9, %c0_10] : memref<16x256xf32, #tpu.memory_space<vmem>>, vector<16x256xf32>
      %c0_11 = arith.constant 0 : index
      %c0_12 = arith.constant 0 : index
      %13 = vector.load %arg5[%c0_11, %c0_12] : memref<1x256xf32, #tpu.memory_space<vmem>>, vector<1x256xf32>
      %14 = vector.broadcast %13 : vector<1x256xf32> to vector<16x256xf32>
      %15 = arith.addf %12, %14 : vector<16x256xf32>
      %c0_13 = arith.constant 0 : index
      %c0_14 = arith.constant 0 : index
      %16 = vector.load %arg6[%c0_13, %c0_14] : memref<16x256xbf16, #tpu.memory_space<vmem>>, vector<16x256xbf16>
      %17 = arith.extf %16 : vector<16x256xbf16> to vector<16x256xf32>
      %18 = arith.addf %15, %17 : vector<16x256xf32>
      %cst_15 = arith.constant 0.000000e+00 : f32
      %19 = vector.broadcast %cst_15 : f32 to vector<16x256xf32>
      %20 = arith.maximumf %18, %19 : vector<16x256xf32>
      %21 = arith.truncf %20 : vector<16x256xf32> to vector<16x256xbf16>
      %c0_16 = arith.constant 0 : index
      %c0_17 = arith.constant 0 : index
      %22 = vector.load %arg7[%c0_16, %c0_17] : memref<16x256xbf16, #tpu.memory_space<vmem>>, vector<16x256xbf16>
      tpu.vector_store %arg7[%c0_16, %c0_17], %21 {strides = array<i32>} : memref<16x256xbf16, #tpu.memory_space<vmem>>, vector<16x256xbf16>,
    } else {
    }
    return
  }
  func.func @transform_0(%arg0: i32, %arg1: i32, %arg2: i32) -> (i32, i32) {
    %c0_i32 = arith.constant 0 : i32
    return %arg0, %arg2 : i32, i32
  }
  func.func @transform_1(%arg0: i32, %arg1: i32, %arg2: i32) -> (i32, i32) {
    %c0_i32 = arith.constant 0 : i32
    return %arg2, %arg1 : i32, i32
  }
  func.func @transform_2(%arg0: i32, %arg1: i32, %arg2: i32) -> (i32, i32) {
    %c0_i32 = arith.constant 0 : i32
    %c0_i32_0 = arith.constant 0 : i32
    return %c0_i32, %arg1 : i32, i32
  }
  func.func @transform_3(%arg0: i32, %arg1: i32, %arg2: i32) -> (i32, i32) {
    %c0_i32 = arith.constant 0 : i32
    return %arg0, %arg1 : i32, i32
  }
  func.func @transform_4(%arg0: i32, %arg1: i32, %arg2: i32) -> (i32, i32) {
    %c0_i32 = arith.constant 0 : i32
    return %arg0, %arg1 : i32, i32
  }
}

module attributes {stable_mosaic.version = 11 : i64} {
  func.func @_matmul_epilogue_kernel(%arg0: i32, %arg1: i32, %arg2: i32, %arg3: memref<16x1024xbf16, #tpu.memory_space<vmem>>, %arg4: memref<1024x256xbf16, #tpu.memory_space<vmem>>, %arg5: memref<1x256xf32, #tpu.memory_space<vmem>>, %arg6: memref<16x256xbf16, #tpu.memory_space<vmem>>, %arg7: memref<16x256xf32, #tpu.memory_space<vmem>>) attributes {dimension_semantics = [#tpu.dimension_semantics<parallel>, #tpu.dimension_semantics<parallel>, #tpu.dimension_semantics<arbitrary>], iteration_bounds = array<i64: 1, 2, 5>, scalar_prefetch = 0 : i64, scratch_operands = 1 : i64, tpu.core_type = #tpu.core_type<tc>, window_params = [{transform_indices = @transform_0, window_bounds = array<i64: 16, 1024>}, {transform_indices = @transform_1, window_bounds = array<i64: 1024, 256>}, {transform_indices = @transform_2, window_bounds = array<i64: 1, 256>}, {transform_indices = @transform_3, window_bounds = array<i64: 16, 256>}]} {
    %c0_i32 = arith.constant 0 : i32
    %0 = arith.cmpi eq, %arg2, %c0_i32 : i32
    %1 = arith.extui %0 : i1 to i32
    %c0_i32_0 = arith.constant 0 : i32
    %2 = arith.cmpi ne, %1, %c0_i32_0 : i32
    scf.if %2 {
      %cst_9 = arith.constant 0.000000e+00 : f32
      %12 = vector.broadcast %cst_9 : f32 to vector<16x256xf32>
      %c0_10 = arith.constant 0 : index
      %c0_11 = arith.constant 0 : index
      %13 = vector.load %arg7[%c0_10, %c0_11] : memref<16x256xf32, #tpu.memory_space<vmem>>, vector<16x256xf32>
      tpu.vector_store %arg7[%c0_10, %c0_11], %12 {strides = array<i32>} : memref<16x256xf32, #tpu.memory_space<vmem>>, vector<16x256xf32>,
    } else {
    }
    %c0 = arith.constant 0 : index
    %c0_1 = arith.constant 0 : index
    %3 = vector.load %arg7[%c0, %c0_1] : memref<16x256xf32, #tpu.memory_space<vmem>>, vector<16x256xf32>
    %c0_2 = arith.constant 0 : index
    %c0_3 = arith.constant 0 : index
    %4 = vector.load %arg3[%c0_2, %c0_3] : memref<16x1024xbf16, #tpu.memory_space<vmem>>, vector<16x1024xbf16>
    %c0_4 = arith.constant 0 : index
    %c0_5 = arith.constant 0 : index
    %5 = vector.load %arg4[%c0_4, %c0_5] : memref<1024x256xbf16, #tpu.memory_space<vmem>>, vector<1024x256xbf16>
    %cst = arith.constant dense<0.000000e+00> : vector<16x256xf32>
    %6 = tpu.matmul %4, %5, %cst {dimension_numbers = #tpu.dot_dimension_numbers<[1], [0], [0], [1], [0, 0, 1, 1], [], []>} : vector<16x1024xbf16>, vector<1024x256xbf16>, vector<16x256xf32> -> vector<16x256xf32>
    %7 = arith.addf %3, %6 : vector<16x256xf32>
    %c0_6 = arith.constant 0 : index
    %c0_7 = arith.constant 0 : index
    %8 = vector.load %arg7[%c0_6, %c0_7] : memref<16x256xf32, #tpu.memory_space<vmem>>, vector<16x256xf32>
    tpu.vector_store %arg7[%c0_6, %c0_7], %7 {strides = array<i32>} : memref<16x256xf32, #tpu.memory_space<vmem>>, vector<16x256xf32>,
    %c4_i32 = arith.constant 4 : i32
    %9 = arith.cmpi eq, %arg2, %c4_i32 : i32
    %10 = arith.extui %9 : i1 to i32
    %c0_i32_8 = arith.constant 0 : i32
    %11 = arith.cmpi ne, %10, %c0_i32_8 : i32
    scf.if %11 {
      %c0_9 = arith.constant 0 : index
      %c0_10 = arith.constant 0 : index
      %12 = vector.load %arg7[%c0_9, %c0_10] : memref<16x256xf32, #tpu.memory_space<vmem>>, vector<16x256xf32>
      %c0_11 = arith.constant 0 : index
      %c0_12 = arith.constant 0 : index
      %13 = vector.load %arg5[%c0_11, %c0_12] : memref<1x256xf32, #tpu.memory_space<vmem>>, vector<1x256xf32>
      %14 = vector.broadcast %13 : vector<1x256xf32> to vector<16x256xf32>
      %15 = arith.addf %12, %14 : vector<16x256xf32>
      %cst_13 = arith.constant 0.000000e+00 : f32
      %16 = vector.broadcast %cst_13 : f32 to vector<16x256xf32>
      %17 = arith.maximumf %15, %16 : vector<16x256xf32>
      %18 = arith.truncf %17 : vector<16x256xf32> to vector<16x256xbf16>
      %c0_14 = arith.constant 0 : index
      %c0_15 = arith.constant 0 : index
      %19 = vector.load %arg6[%c0_14, %c0_15] : memref<16x256xbf16, #tpu.memory_space<vmem>>, vector<16x256xbf16>
      tpu.vector_store %arg6[%c0_14, %c0_15], %18 {strides = array<i32>} : memref<16x256xbf16, #tpu.memory_space<vmem>>, vector<16x256xbf16>,
    } else {
    }
    return
  }
  func.func @transform_0(%arg0: i32, %arg1: i32, %arg2: i32) -> (i32, i32) {
    %c0_i32 = arith.constant 0 : i32
    return %arg0, %arg2 : i32, i32
  }
  func.func @transform_1(%arg0: i32, %arg1: i32, %arg2: i32) -> (i32, i32) {
    %c0_i32 = arith.constant 0 : i32
    return %arg2, %arg1 : i32, i32
  }
  func.func @transform_2(%arg0: i32, %arg1: i32, %arg2: i32) -> (i32, i32) {
    %c0_i32 = arith.constant 0 : i32
    %c0_i32_0 = arith.constant 0 : i32
    return %c0_i32, %arg1 : i32, i32
  }
  func.func @transform_3(%arg0: i32, %arg1: i32, %arg2: i32) -> (i32, i32) {
    %c0_i32 = arith.constant 0 : i32
    return %arg0, %arg1 : i32, i32
  }
}

module attributes {stable_mosaic.version = 11 : i64} {
  func.func @_avgpool_fc_kernel(%arg0: memref<2x1x512xbf16, #tpu.memory_space<vmem>>, %arg1: memref<512x128xf32, #tpu.memory_space<vmem>>, %arg2: memref<1x128xf32, #tpu.memory_space<vmem>>, %arg3: memref<2x128xf32, #tpu.memory_space<vmem>>) attributes {dimension_semantics = [], scalar_prefetch = 0 : i64, scratch_operands = 0 : i64, tpu.core_type = #tpu.core_type<tc>} {
    %c0 = arith.constant 0 : index
    %c0_0 = arith.constant 0 : index
    %c0_1 = arith.constant 0 : index
    %0 = vector.load %arg0[%c0, %c0_0, %c0_1] : memref<2x1x512xbf16, #tpu.memory_space<vmem>>, vector<2x1x512xbf16>
    %1 = arith.extf %0 : vector<2x1x512xbf16> to vector<2x1x512xf32>
    %cst = arith.constant dense<0.000000e+00> : vector<2x512xf32>
    %2 = vector.multi_reduction <add>, %1, %cst [1] : vector<2x1x512xf32> to vector<2x512xf32>
    %cst_2 = arith.constant 1.000000e+00 : f32
    %3 = vector.broadcast %cst_2 : f32 to vector<2x512xf32>
    %4 = arith.mulf %2, %3 : vector<2x512xf32>
    %c0_3 = arith.constant 0 : index
    %c0_4 = arith.constant 0 : index
    %5 = vector.load %arg1[%c0_3, %c0_4] : memref<512x128xf32, #tpu.memory_space<vmem>>, vector<512x128xf32>
    %cst_5 = arith.constant dense<0.000000e+00> : vector<2x128xf32>
    %6 = tpu.matmul %4, %5, %cst_5 {dimension_numbers = #tpu.dot_dimension_numbers<[1], [0], [0], [1], [0, 0, 1, 1], [], []>} : vector<2x512xf32>, vector<512x128xf32>, vector<2x128xf32> -> vector<2x128xf32>
    %c0_6 = arith.constant 0 : index
    %c0_7 = arith.constant 0 : index
    %7 = vector.load %arg2[%c0_6, %c0_7] : memref<1x128xf32, #tpu.memory_space<vmem>>, vector<1x128xf32>
    %8 = vector.broadcast %7 : vector<1x128xf32> to vector<2x128xf32>
    %9 = arith.addf %6, %8 : vector<2x128xf32>
    %c0_8 = arith.constant 0 : index
    %c0_9 = arith.constant 0 : index
    %10 = vector.load %arg3[%c0_8, %c0_9] : memref<2x128xf32, #tpu.memory_space<vmem>>, vector<2x128xf32>
    tpu.vector_store %arg3[%c0_8, %c0_9], %9 {strides = array<i32>} : memref<2x128xf32, #tpu.memory_space<vmem>>, vector<2x128xf32>,
    return
  }
}

</mosaic_0001>

<bundles_post_ra>
// kernel: simple_dog_emotion_model.22
= control target key start
LH: loop header
LB: loop body
LE: loop exit
PB: predicated region body
PF: predicated region fallthrough
CT: control target
= control target key end

     0   :  { %s1744_s12 = smov 0   ;;  %s1746_s13 = smov 0   ;;  %s1918_s0 = inlined_call_operand.vmem [shape: bf16[512,256], index: 0, kind: input, shape index: {}]   ;;  %s1919_s1 = inlined_call_operand.vmem [shape: bf16[256,128], index: 1, kind: input, shape index: {}]   ;;  %s1920_s2 = inlined_call_operand.vmem [shape: f32[1,128], index: 2, kind: input, shape index: {}]   ;;  %s1921_s3 = inlined_call_operand.vmem [shape: bf16[512,128], index: 3, kind: output, shape index: {}]  }
   0x1   :  { %s1748_s14 = smov 0  }
   0x2 LB: > { %s32_s15 = sadd.s32 1, %s1718_s13  ;;  %p1267_p0 = scmp.ge.s32.totalorder %s1722_s14, 1  ;;  %s1722_s14 = sphi %s1748_s14, %s13_s14   ;;  %s1718_s13 = sphi %s1746_s13, %s1923_s13   ;;  %s1714_s12 = sphi %s1744_s12, %s1922_s12  }
   0x3   : > { %p34_p1 = scmp.ge.s32.totalorder %s32_s15, 2  ;;  %p191_p2 = scmp.lt.s32.totalorder %s1722_s14, 3 }
   0x5   : > { %s1925_s15 = smov (%p34_p1, %s32_s15), 0  ;;  %p192_p3 = pnand %p1267_p0, %p191_p2 }
   0x6   : > { %v1636_v0 = vld [vmem:[%s1919_s1 + $0x40] sm:$0xff] (!%p192_p3)   ;;  %s1268_s18 = sshll.u32 (!%p192_p3), %s1714_s12, 5  ;;  %v1638_v2 = vld [vmem:[%s1919_s1 + $0x48] sm:$0xff] (!%p192_p3)   ;;  %v1640_v4 = vld [vmem:[%s1919_s1 + $0x50] sm:$0xff] (!%p192_p3)  }
   0x7   : > { %195 = sbr.rel (%p192_p3) target bundleno = 320 (0x140), region = 32  ;;  %v1637_v1 = vld [vmem:[%s1919_s1] sm:$0xff] (!%p192_p3)   ;;  %1484 = vmatprep.subr.bf16.mxu0 (!%p192_p3), %v1636_v0  ;;  %1596 = vmatprep.subr.bf16.mxu1 (!%p192_p3), %v1636_v0  ;;  %v1639_v3 = vld [vmem:[%s1919_s1 + $0x8] sm:$0xff] (!%p192_p3)   ;;  %p236_p4 = scmp.lt.s32.totalorder (!%p192_p3), %s1268_s18, 63  ;;  %v1641_v5 = vld [vmem:[%s1919_s1 + $0x10] sm:$0xff] (!%p192_p3)  }
   0x8   : > { %1485 = vmatpush3.bf16.msra.mxu0 (!%p192_p3), %v1637_v1  ;;  %1604 = vmatpush3.bf16.msra.mxu1 (!%p192_p3), %v1637_v1  ;;  %v1642_v6 = vld [vmem:[%s1919_s1 + $0x58] sm:$0xff] (!%p192_p3)   ;;  %v1644_v8 = vld [vmem:[%s1919_s1 + $0x60] sm:$0xff] (!%p192_p3)   ;;  %v1646_v10 = vld [vmem:[%s1919_s1 + $0x68] sm:$0xff] (!%p192_p3)  }
   0x9   : > { %1486 = vmatprep.subr.bf16.mxu0 (!%p192_p3), %v1638_v2  ;;  %1597 = vmatprep.subr.bf16.mxu1 (!%p192_p3), %v1638_v2  ;;  %v1643_v7 = vld [vmem:[%s1919_s1 + $0x18] sm:$0xff] (!%p192_p3)   ;;  %v1645_v9 = vld [vmem:[%s1919_s1 + $0x20] sm:$0xff] (!%p192_p3)   ;;  %v1647_v13 = vld [vmem:[%s1919_s1 + $0x28] sm:$0xff] (!%p192_p3)  }
   0xa   : > { %v1648_v14 = vld [vmem:[%s1919_s1 + $0x70] sm:$0xff] (!%p192_p3)   ;;  %v1650_v16 = vld [vmem:[%s1919_s1 + $0x78] sm:$0xff] (!%p192_p3)   ;;  %v1853_v51 = vld [vmem:[%s1920_s2] ss:$0 sm:$0xff] (!%p192_p3) }
   0xb   : > { %v1649_v15 = vld [vmem:[%s1919_s1 + $0x30] sm:$0xff] (!%p192_p3)   ;;  %v1651_v17 = vld [vmem:[%s1919_s1 + $0x38] sm:$0xff] (!%p192_p3)  }
   0xc   : > { %1487 = vmatpush3.bf16.msra.mxu0 (!%p192_p3), %v1639_v3  ;;  %1605 = vmatpush3.bf16.msra.mxu1 (!%p192_p3), %v1639_v3 }
   0xd   : > { %1488 = vmatprep.subr.bf16.mxu0 (!%p192_p3), %v1640_v4  ;;  %1598 = vmatprep.subr.bf16.mxu1 (!%p192_p3), %v1640_v4 }
   0xe   : > { %s1927_s18 = smov (!%p236_p4, %s1268_s18), 63 }
   0xf   : > { %s1356_s6 = sshll.u32 %s1927_s18, 3  ;;  %s1272_s5 = sshll.u32 %s1927_s18, 2 }
  0x10   : > { %1489 = vmatpush3.bf16.msra.mxu0 %v1641_v5  ;;  %1606 = vmatpush3.bf16.msra.mxu1 %v1641_v5  ;;  %s1795_s11 = scalar_lea.vmem %s1918_s0, %s1356_s6  ;;  %s1863_s8 = scalar_lea.vmem %s1921_s3, %s1272_s5 }
  0x11   : > { %1490 = vmatprep.subr.bf16.mxu0 %v1642_v6  ;;  %1599 = vmatprep.subr.bf16.mxu1 %v1642_v6  ;;  %v1654_v11 = vld [vmem:[%s1795_s11 + $0x4] ss:$8 sps:$4 sm:$0xff]   ;;  %v1652_v18 = vld [vmem:[%s1795_s11] ss:$8 sps:$4 sm:$0xff]   ;;  %v1658_v20 = vld [vmem:[%s1795_s11 + $0x14] ss:$8 sps:$4 sm:$0xff]  }
  0x12   : > { %v1657_v12 = vld [vmem:[%s1795_s11 + $0x84] ss:$8 sps:$4 sm:$0xff]   ;;  %688 = vmatprep.mubr.bf16.mxu0 %v1654_v11  ;;  %v1655_v19 = vld [vmem:[%s1795_s11 + $0x80] ss:$8 sps:$4 sm:$0xff]   ;;  %v1660_v21 = vld [vmem:[%s1795_s11 + $0x94] ss:$8 sps:$4 sm:$0xff]  }
  0x13   : > { %752 = vmatprep.mubr.bf16.mxu1 %v1657_v12  ;;  %v1662_v22 = vld [vmem:[%s1795_s11 + $0x10] ss:$8 sps:$4 sm:$0xff]   ;;  %v1664_v24 = vld [vmem:[%s1795_s11 + $0x24] ss:$8 sps:$4 sm:$0xff]   ;;  %v1668_v26 = vld [vmem:[%s1795_s11 + $0x20] ss:$8 sps:$4 sm:$0xff]  }
  0x14   : > { %1491 = vmatpush3.bf16.msra.mxu0 %v1643_v7  ;;  %1607 = vmatpush3.bf16.msra.mxu1 %v1643_v7  ;;  %v1663_v23 = vld [vmem:[%s1795_s11 + $0x90] ss:$8 sps:$4 sm:$0xff]   ;;  %v1666_v25 = vld [vmem:[%s1795_s11 + $0xa4] ss:$8 sps:$4 sm:$0xff]   ;;  %v1669_v27 = vld [vmem:[%s1795_s11 + $0xa0] ss:$8 sps:$4 sm:$0xff]  }
  0x15   : > { %1492 = vmatprep.subr.bf16.mxu0 %v1644_v8  ;;  %1600 = vmatprep.subr.bf16.mxu1 %v1644_v8  ;;  %v1670_v28 = vld [vmem:[%s1795_s11 + $0x34] ss:$8 sps:$4 sm:$0xff]   ;;  %v1674_v30 = vld [vmem:[%s1795_s11 + $0x30] ss:$8 sps:$4 sm:$0xff]   ;;  %v1676_v32 = vld [vmem:[%s1795_s11 + $0x44] ss:$8 sps:$4 sm:$0xff]  }
  0x16   : > { %v1672_v29 = vld [vmem:[%s1795_s11 + $0xb4] ss:$8 sps:$4 sm:$0xff]   ;;  %v1675_v31 = vld [vmem:[%s1795_s11 + $0xb0] ss:$8 sps:$4 sm:$0xff]   ;;  %v1678_v33 = vld [vmem:[%s1795_s11 + $0xc4] ss:$8 sps:$4 sm:$0xff]  }
  0x17   : > { %v1680_v34 = vld [vmem:[%s1795_s11 + $0x40] ss:$8 sps:$4 sm:$0xff]   ;;  %v1682_v36 = vld [vmem:[%s1795_s11 + $0x54] ss:$8 sps:$4 sm:$0xff]   ;;  %v1686_v38 = vld [vmem:[%s1795_s11 + $0x50] ss:$8 sps:$4 sm:$0xff]  }
  0x18   : > { %1493 = vmatpush3.bf16.msra.mxu0 %v1645_v9  ;;  %1608 = vmatpush3.bf16.msra.mxu1 %v1645_v9  ;;  %v1681_v35 = vld [vmem:[%s1795_s11 + $0xc0] ss:$8 sps:$4 sm:$0xff]   ;;  %v1684_v37 = vld [vmem:[%s1795_s11 + $0xd4] ss:$8 sps:$4 sm:$0xff]   ;;  %v1687_v39 = vld [vmem:[%s1795_s11 + $0xd0] ss:$8 sps:$4 sm:$0xff]  }
  0x19   : > { %1494 = vmatprep.subr.bf16.mxu0 %v1646_v10  ;;  %1601 = vmatprep.subr.bf16.mxu1 %v1646_v10  ;;  %v1688_v40 = vld [vmem:[%s1795_s11 + $0x64] ss:$8 sps:$4 sm:$0xff]   ;;  %v1692_v42 = vld [vmem:[%s1795_s11 + $0x60] ss:$8 sps:$4 sm:$0xff]   ;;  %v1694_v44 = vld [vmem:[%s1795_s11 + $0x74] ss:$8 sps:$4 sm:$0xff]  }
  0x1a   : > { %v1690_v41 = vld [vmem:[%s1795_s11 + $0xe4] ss:$8 sps:$4 sm:$0xff]   ;;  %v1693_v43 = vld [vmem:[%s1795_s11 + $0xe0] ss:$8 sps:$4 sm:$0xff]   ;;  %v1696_v45 = vld [vmem:[%s1795_s11 + $0xf4] ss:$8 sps:$4 sm:$0xff]  }
  0x1b   : > { %v1698_v46 = vld [vmem:[%s1795_s11 + $0x70] ss:$8 sps:$4 sm:$0xff]  }
  0x1c   : > { %1495 = vmatpush3.bf16.msra.mxu0 %v1647_v13  ;;  %1609 = vmatpush3.bf16.msra.mxu1 %v1647_v13  ;;  %v1699_v47 = vld [vmem:[%s1795_s11 + $0xf0] ss:$8 sps:$4 sm:$0xff]  }
  0x1d   : > { %1496 = vmatprep.subr.bf16.mxu0 %v1648_v14  ;;  %1602 = vmatprep.subr.bf16.mxu1 %v1648_v14 }
  0x20   : > { %1497 = vmatpush3.bf16.msra.mxu0 %v1649_v15  ;;  %1610 = vmatpush3.bf16.msra.mxu1 %v1649_v15 }
  0x21   : > { %1498 = vmatprep.subr.bf16.mxu0 %v1650_v16  ;;  %1603 = vmatprep.subr.bf16.mxu1 %v1650_v16 }
  0x24   : > { %1499 = vmatpush3.bf16.msra.mxu0 %v1651_v17  ;;  %1611 = vmatpush3.bf16.msra.mxu1 %v1651_v17 }
  0x27   : > { %689 = vmatmul.mubr.bf16.vlgmr.msra.gmra.mrb[0].mxu0 %v1652_v18  ;;  %753 = vmatmul.mubr.bf16.vlgmr.msra.gmra.mrb[0].mxu1 %v1655_v19 }
  0x28   : > { %696 = vmatprep.mubr.bf16.mxu0 %v1658_v20  ;;  %760 = vmatprep.mubr.bf16.mxu1 %v1660_v21 }
  0x2f   : > { %697 = vmatmul.mubr.bf16.gmra.mrb[4].mxu0 %v1662_v22  ;;  %761 = vmatmul.mubr.bf16.gmra.mrb[4].mxu1 %v1663_v23 }
  0x30   : > { %704 = vmatprep.mubr.bf16.mxu0 %v1664_v24  ;;  %768 = vmatprep.mubr.bf16.mxu1 %v1666_v25 }
  0x37   : > { %705 = vmatmul.mubr.bf16.gmra.mrb[8].mxu0 %v1668_v26  ;;  %769 = vmatmul.mubr.bf16.gmra.mrb[8].mxu1 %v1669_v27 }
  0x38   : > { %712 = vmatprep.mubr.bf16.mxu0 %v1670_v28  ;;  %776 = vmatprep.mubr.bf16.mxu1 %v1672_v29 }
  0x3f   : > { %713 = vmatmul.mubr.bf16.gmra.mrb[12].mxu0 %v1674_v30  ;;  %777 = vmatmul.mubr.bf16.gmra.mrb[12].mxu1 %v1675_v31 }
  0x40   : > { %720 = vmatprep.mubr.bf16.mxu0 %v1676_v32  ;;  %784 = vmatprep.mubr.bf16.mxu1 %v1678_v33 }
  0x47   : > { %721 = vmatmul.mubr.bf16.gmra.mrb[16].mxu0 %v1680_v34  ;;  %785 = vmatmul.mubr.bf16.gmra.mrb[16].mxu1 %v1681_v35 }
  0x48   : > { %728 = vmatprep.mubr.bf16.mxu0 %v1682_v36  ;;  %792 = vmatprep.mubr.bf16.mxu1 %v1684_v37 }
  0x4f   : > { %729 = vmatmul.mubr.bf16.gmra.mrb[20].mxu0 %v1686_v38  ;;  %793 = vmatmul.mubr.bf16.gmra.mrb[20].mxu1 %v1687_v39 }
  0x50   : > { %736 = vmatprep.mubr.bf16.mxu0 %v1688_v40  ;;  %800 = vmatprep.mubr.bf16.mxu1 %v1690_v41 }
  0x57   : > { %737 = vmatmul.mubr.bf16.gmra.mrb[24].mxu0 %v1692_v42  ;;  %801 = vmatmul.mubr.bf16.gmra.mrb[24].mxu1 %v1693_v43 }
  0x58   : > { %744 = vmatprep.mubr.bf16.mxu0 %v1694_v44  ;;  %808 = vmatprep.mubr.bf16.mxu1 %v1696_v45 }
  0x5f   : > { %745 = vmatmul.mubr.bf16.gmra.mrb[28].mxu0 %v1698_v46  ;;  %809 = vmatmul.mubr.bf16.gmra.mrb[28].mxu1 %v1699_v47 }
  0xfa   : > { %v1500_v48 = vpop.f32.mrb[0].mxu0  ;;  %v1548_v49 = vpop.f32.mrb[0].mxu1 }
  0xfb   : > { %v1501_v50 = vpop.f32.mrb[1].mxu0  ;;  %v1549_v52 = vpop.f32.mrb[1].mxu1 }
  0xfc   : > { %v1502_v53 = vadd.f32 %v1501_v50, %v1500_v48  ;;  %v1550_v54 = vadd.f32 %v1549_v52, %v1548_v49  ;;  %v1503_v55 = vpop.f32.mrb[2].mxu0  ;;  %v1551_v56 = vpop.f32.mrb[2].mxu1 }
  0xfd   : > { %v1504_v57 = vpop.f32.mrb[3].mxu0  ;;  %v1552_v58 = vpop.f32.mrb[3].mxu1 }
  0xfe   : > { %v923_v59 = vadd.f32 %v1502_v53, %v1853_v51  ;;  %v939_v60 = vadd.f32 %v1550_v54, %v1853_v51  ;;  %v1505_v61 = vadd.f32 %v1504_v57, %v1503_v55  ;;  %v1553_v62 = vadd.f32 %v1552_v58, %v1551_v56 }
 0x100   : > { %v924_v63 = vadd.f32 %v1505_v61, %v1853_v51  ;;  %v940_v0 = vadd.f32 %v1553_v62, %v1853_v51  ;;  %v955_v1 = vmax.f32 %v923_v59, 0.0  ;;  %v971_v2 = vmax.f32 %v939_v60, 0.0 }
 0x102   : > { %v956_v3 = vmax.f32 %v924_v63, 0.0  ;;  %v972_v4 = vmax.f32 %v940_v0, 0.0  ;;  %v1506_v5 = vpop.f32.mrb[4].mxu0  ;;  %v1554_v6 = vpop.f32.mrb[4].mxu1 }
 0x103   : > { %v1507_v7 = vpop.f32.mrb[5].mxu0  ;;  %v1555_v8 = vpop.f32.mrb[5].mxu1 }
 0x104   : > { %v1392_v9 = vpack.c.bf16 %v956_v3, %v955_v1  ;;  %v1432_v10 = vpack.c.bf16 %v972_v4, %v971_v2  ;;  %v1508_v11 = vadd.f32 %v1507_v7, %v1506_v5  ;;  %v1556_v12 = vadd.f32 %v1555_v8, %v1554_v6  ;;  %v1509_v13 = vpop.f32.mrb[6].mxu0  ;;  %v1557_v14 = vpop.f32.mrb[6].mxu1 }
 0x105   : > { %v1510_v15 = vpop.f32.mrb[7].mxu0  ;;  %v1558_v16 = vpop.f32.mrb[7].mxu1 }
 0x106   : > { %1393 = vst [vmem:[%s1863_s8] sm:$0xff] %v1392_v9   ;;  %1476 = vst [vmem:[%s1863_s8 + $0x40] sm:$0xff] %v1432_v10   ;;  %v925_v17 = vadd.f32 %v1508_v11, %v1853_v51  ;;  %v941_v18 = vadd.f32 %v1556_v12, %v1853_v51  ;;  %v1511_v19 = vadd.f32 %v1510_v15, %v1509_v13 }
 0x107   : > { %v1559_v20 = vadd.f32 %v1558_v16, %v1557_v14 }
 0x108   : > { %v926_v21 = vadd.f32 %v1511_v19, %v1853_v51  ;;  %v957_v23 = vmax.f32 %v925_v17, 0.0  ;;  %v973_v24 = vmax.f32 %v941_v18, 0.0 }
 0x109   : > { %v942_v22 = vadd.f32 %v1559_v20, %v1853_v51 }
 0x10a   : > { %v958_v25 = vmax.f32 %v926_v21, 0.0  ;;  %v1512_v27 = vpop.f32.mrb[8].mxu0  ;;  %v1560_v28 = vpop.f32.mrb[8].mxu1 }
 0x10b   : > { %v974_v26 = vmax.f32 %v942_v22, 0.0  ;;  %v1513_v29 = vpop.f32.mrb[9].mxu0  ;;  %v1561_v30 = vpop.f32.mrb[9].mxu1 }
 0x10c   : > { %v1397_v31 = vpack.c.bf16 %v958_v25, %v957_v23  ;;  %v1514_v33 = vadd.f32 %v1513_v29, %v1512_v27  ;;  %v1562_v34 = vadd.f32 %v1561_v30, %v1560_v28  ;;  %v1515_v35 = vpop.f32.mrb[10].mxu0  ;;  %v1563_v36 = vpop.f32.mrb[10].mxu1 }
 0x10d   : > { %v1437_v32 = vpack.c.bf16 %v974_v26, %v973_v24  ;;  %v1516_v37 = vpop.f32.mrb[11].mxu0  ;;  %v1564_v38 = vpop.f32.mrb[11].mxu1 }
 0x10e   : > { %1469 = vst [vmem:[%s1863_s8 + $0x8] sm:$0xff] %v1397_v31   ;;  %v927_v39 = vadd.f32 %v1514_v33, %v1853_v51  ;;  %v943_v40 = vadd.f32 %v1562_v34, %v1853_v51  ;;  %v1517_v41 = vadd.f32 %v1516_v37, %v1515_v35  ;;  %v1565_v42 = vadd.f32 %v1564_v38, %v1563_v36 }
 0x10f   : > { %1477 = vst [vmem:[%s1863_s8 + $0x48] sm:$0xff] %v1437_v32  }
 0x110   : > { %v928_v43 = vadd.f32 %v1517_v41, %v1853_v51  ;;  %v944_v44 = vadd.f32 %v1565_v42, %v1853_v51  ;;  %v959_v45 = vmax.f32 %v927_v39, 0.0  ;;  %v975_v46 = vmax.f32 %v943_v40, 0.0 }
 0x112   : > { %v960_v47 = vmax.f32 %v928_v43, 0.0  ;;  %v976_v48 = vmax.f32 %v944_v44, 0.0  ;;  %v1518_v49 = vpop.f32.mrb[12].mxu0  ;;  %v1566_v50 = vpop.f32.mrb[12].mxu1 }
 0x113   : > { %v1519_v52 = vpop.f32.mrb[13].mxu0  ;;  %v1567_v53 = vpop.f32.mrb[13].mxu1 }
 0x114   : > { %v1402_v54 = vpack.c.bf16 %v960_v47, %v959_v45  ;;  %v1442_v55 = vpack.c.bf16 %v976_v48, %v975_v46  ;;  %v1520_v56 = vadd.f32 %v1519_v52, %v1518_v49  ;;  %v1568_v57 = vadd.f32 %v1567_v53, %v1566_v50  ;;  %v1521_v58 = vpop.f32.mrb[14].mxu0  ;;  %v1569_v59 = vpop.f32.mrb[14].mxu1 }
 0x115   : > { %v1522_v60 = vpop.f32.mrb[15].mxu0  ;;  %v1570_v61 = vpop.f32.mrb[15].mxu1 }
 0x116   : > { %1470 = vst [vmem:[%s1863_s8 + $0x10] sm:$0xff] %v1402_v54   ;;  %1478 = vst [vmem:[%s1863_s8 + $0x50] sm:$0xff] %v1442_v55   ;;  %v929_v62 = vadd.f32 %v1520_v56, %v1853_v51  ;;  %v945_v63 = vadd.f32 %v1568_v57, %v1853_v51  ;;  %v1523_v0 = vadd.f32 %v1522_v60, %v1521_v58 }
 0x117   : > { %v1571_v1 = vadd.f32 %v1570_v61, %v1569_v59 }
 0x118   : > { %v930_v2 = vadd.f32 %v1523_v0, %v1853_v51  ;;  %v961_v4 = vmax.f32 %v929_v62, 0.0  ;;  %v977_v5 = vmax.f32 %v945_v63, 0.0 }
 0x119   : > { %v946_v3 = vadd.f32 %v1571_v1, %v1853_v51 }
 0x11a   : > { %v962_v6 = vmax.f32 %v930_v2, 0.0  ;;  %v1524_v8 = vpop.f32.mrb[16].mxu0  ;;  %v1572_v9 = vpop.f32.mrb[16].mxu1 }
 0x11b   : > { %v978_v7 = vmax.f32 %v946_v3, 0.0  ;;  %v1525_v10 = vpop.f32.mrb[17].mxu0  ;;  %v1573_v11 = vpop.f32.mrb[17].mxu1 }
 0x11c   : > { %v1407_v12 = vpack.c.bf16 %v962_v6, %v961_v4  ;;  %v1526_v14 = vadd.f32 %v1525_v10, %v1524_v8  ;;  %v1574_v15 = vadd.f32 %v1573_v11, %v1572_v9  ;;  %v1527_v16 = vpop.f32.mrb[18].mxu0  ;;  %v1575_v17 = vpop.f32.mrb[18].mxu1 }
 0x11d   : > { %v1447_v13 = vpack.c.bf16 %v978_v7, %v977_v5  ;;  %v1528_v18 = vpop.f32.mrb[19].mxu0  ;;  %v1576_v19 = vpop.f32.mrb[19].mxu1 }
 0x11e   : > { %1471 = vst [vmem:[%s1863_s8 + $0x18] sm:$0xff] %v1407_v12   ;;  %v931_v20 = vadd.f32 %v1526_v14, %v1853_v51  ;;  %v947_v21 = vadd.f32 %v1574_v15, %v1853_v51  ;;  %v1529_v22 = vadd.f32 %v1528_v18, %v1527_v16  ;;  %v1577_v23 = vadd.f32 %v1576_v19, %v1575_v17 }
 0x11f   : > { %1479 = vst [vmem:[%s1863_s8 + $0x58] sm:$0xff] %v1447_v13  }
 0x120   : > { %v932_v24 = vadd.f32 %v1529_v22, %v1853_v51  ;;  %v948_v25 = vadd.f32 %v1577_v23, %v1853_v51  ;;  %v963_v26 = vmax.f32 %v931_v20, 0.0  ;;  %v979_v27 = vmax.f32 %v947_v21, 0.0 }
 0x122   : > { %v964_v28 = vmax.f32 %v932_v24, 0.0  ;;  %v980_v29 = vmax.f32 %v948_v25, 0.0  ;;  %v1530_v30 = vpop.f32.mrb[20].mxu0  ;;  %v1578_v31 = vpop.f32.mrb[20].mxu1 }
 0x123   : > { %v1531_v32 = vpop.f32.mrb[21].mxu0  ;;  %v1579_v33 = vpop.f32.mrb[21].mxu1 }
 0x124   : > { %v1412_v34 = vpack.c.bf16 %v964_v28, %v963_v26  ;;  %v1452_v35 = vpack.c.bf16 %v980_v29, %v979_v27  ;;  %v1532_v36 = vadd.f32 %v1531_v32, %v1530_v30  ;;  %v1580_v37 = vadd.f32 %v1579_v33, %v1578_v31  ;;  %v1533_v38 = vpop.f32.mrb[22].mxu0  ;;  %v1581_v39 = vpop.f32.mrb[22].mxu1 }
 0x125   : > { %v1534_v40 = vpop.f32.mrb[23].mxu0  ;;  %v1582_v41 = vpop.f32.mrb[23].mxu1 }
 0x126   : > { %1472 = vst [vmem:[%s1863_s8 + $0x20] sm:$0xff] %v1412_v34   ;;  %1480 = vst [vmem:[%s1863_s8 + $0x60] sm:$0xff] %v1452_v35   ;;  %v933_v42 = vadd.f32 %v1532_v36, %v1853_v51  ;;  %v949_v43 = vadd.f32 %v1580_v37, %v1853_v51  ;;  %v1535_v44 = vadd.f32 %v1534_v40, %v1533_v38 }
 0x127   : > { %v1583_v45 = vadd.f32 %v1582_v41, %v1581_v39 }
 0x128   : > { %v934_v46 = vadd.f32 %v1535_v44, %v1853_v51  ;;  %v965_v48 = vmax.f32 %v933_v42, 0.0  ;;  %v981_v49 = vmax.f32 %v949_v43, 0.0 }
 0x129   : > { %v950_v47 = vadd.f32 %v1583_v45, %v1853_v51 }
 0x12a   : > { %v966_v50 = vmax.f32 %v934_v46, 0.0  ;;  %v1536_v53 = vpop.f32.mrb[24].mxu0  ;;  %v1584_v54 = vpop.f32.mrb[24].mxu1 }
 0x12b   : > { %v982_v52 = vmax.f32 %v950_v47, 0.0  ;;  %v1537_v55 = vpop.f32.mrb[25].mxu0  ;;  %v1585_v56 = vpop.f32.mrb[25].mxu1 }
 0x12c   : > { %v1417_v57 = vpack.c.bf16 %v966_v50, %v965_v48  ;;  %v1538_v59 = vadd.f32 %v1537_v55, %v1536_v53  ;;  %v1586_v60 = vadd.f32 %v1585_v56, %v1584_v54  ;;  %v1539_v61 = vpop.f32.mrb[26].mxu0  ;;  %v1587_v62 = vpop.f32.mrb[26].mxu1 }
 0x12d   : > { %v1457_v58 = vpack.c.bf16 %v982_v52, %v981_v49  ;;  %v1540_v63 = vpop.f32.mrb[27].mxu0  ;;  %v1588_v0 = vpop.f32.mrb[27].mxu1 }
 0x12e   : > { %1473 = vst [vmem:[%s1863_s8 + $0x28] sm:$0xff] %v1417_v57   ;;  %v935_v1 = vadd.f32 %v1538_v59, %v1853_v51  ;;  %v951_v2 = vadd.f32 %v1586_v60, %v1853_v51  ;;  %v1541_v3 = vadd.f32 %v1540_v63, %v1539_v61  ;;  %v1589_v4 = vadd.f32 %v1588_v0, %v1587_v62 }
 0x12f   : > { %1481 = vst [vmem:[%s1863_s8 + $0x68] sm:$0xff] %v1457_v58  }
 0x130   : > { %v936_v5 = vadd.f32 %v1541_v3, %v1853_v51  ;;  %v952_v6 = vadd.f32 %v1589_v4, %v1853_v51  ;;  %v967_v7 = vmax.f32 %v935_v1, 0.0  ;;  %v983_v8 = vmax.f32 %v951_v2, 0.0 }
 0x132   : > { %v968_v9 = vmax.f32 %v936_v5, 0.0  ;;  %v984_v10 = vmax.f32 %v952_v6, 0.0  ;;  %v1542_v11 = vpop.f32.mrb[28].mxu0  ;;  %v1590_v12 = vpop.f32.mrb[28].mxu1 }
 0x133   : > { %v1543_v13 = vpop.f32.mrb[29].mxu0  ;;  %v1591_v14 = vpop.f32.mrb[29].mxu1 }
 0x134   : > { %v1422_v15 = vpack.c.bf16 %v968_v9, %v967_v7  ;;  %v1462_v16 = vpack.c.bf16 %v984_v10, %v983_v8  ;;  %v1544_v17 = vadd.f32 %v1543_v13, %v1542_v11  ;;  %v1592_v18 = vadd.f32 %v1591_v14, %v1590_v12  ;;  %v1545_v19 = vpop.f32.mrb[30].mxu0  ;;  %v1593_v20 = vpop.f32.mrb[30].mxu1 }
 0x135   : > { %v1546_v21 = vpop.f32.mrb[31].mxu0  ;;  %v1594_v22 = vpop.f32.mrb[31].mxu1 }
 0x136   : > { %1474 = vst [vmem:[%s1863_s8 + $0x30] sm:$0xff] %v1422_v15   ;;  %1482 = vst [vmem:[%s1863_s8 + $0x70] sm:$0xff] %v1462_v16   ;;  %v937_v23 = vadd.f32 %v1544_v17, %v1853_v51  ;;  %v953_v24 = vadd.f32 %v1592_v18, %v1853_v51  ;;  %v1547_v25 = vadd.f32 %v1546_v21, %v1545_v19 }
 0x137   : > { %v1595_v26 = vadd.f32 %v1594_v22, %v1593_v20 }
 0x138   : > { %v938_v27 = vadd.f32 %v1547_v25, %v1853_v51  ;;  %v969_v29 = vmax.f32 %v937_v23, 0.0  ;;  %v985_v30 = vmax.f32 %v953_v24, 0.0 }
 0x139   : > { %v954_v28 = vadd.f32 %v1595_v26, %v1853_v51 }
 0x13a   : > { %v970_v31 = vmax.f32 %v938_v27, 0.0 }
 0x13b   : > { %v986_v32 = vmax.f32 %v954_v28, 0.0 }
 0x13c   : > { %v1427_v33 = vpack.c.bf16 %v970_v31, %v969_v29 }
 0x13d   : > { %v1467_v34 = vpack.c.bf16 %v986_v32, %v985_v30 }
 0x13e   : > { %1475 = vst [vmem:[%s1863_s8 + $0x38] sm:$0xff] %v1427_v33  }
 0x13f   : > { %1483 = vst [vmem:[%s1863_s8 + $0x78] sm:$0xff] %v1467_v34  }
 0x140 PF: > { %s13_s14 = sadd.s32 1, %s1722_s14   ;;  %s1922_s12 = smov %s1718_s13 }
 0x141   : > { %p10_p5 = scmp.ge.s32.totalorder %s13_s14, 4   ;;  %s1923_s13 = smov %s1925_s15 }
 0x143   :  { %12 = sbr.rel (!%p10_p5) target bundleno = 2 (0x2), region = 76 }

// kernel: simple_dog_emotion_model.23
= control target key start
LH: loop header
LB: loop body
LE: loop exit
PB: predicated region body
PF: predicated region fallthrough
CT: control target
= control target key end

     0   :  { %s485_s0 = inlined_call_operand.vmem [shape: bf16[64,128], index: 0, kind: input, shape index: {}]   ;;  %s486_s1 = inlined_call_operand.vmem [shape: bf16[64,128], index: 1, kind: input, shape index: {}]   ;;  %s487_s2 = inlined_call_operand.vmem [shape: bf16[64,128], index: 2, kind: input, shape index: {}]   ;;  %s488_s3 = inlined_call_operand.vmem [shape: bf16[64,128], index: 3, kind: input, shape index: {}]   ;;  %s489_s4 = inlined_call_operand.vmem [shape: bf16[64,128], index: 4, kind: input, shape index: {}]   ;;  %s490_s5 = inlined_call_operand.vmem [shape: bf16[64,128], index: 5, kind: input, shape index: {}]   ;;  %s491_s6 = inlined_call_operand.vmem [shape: bf16[64,128], index: 6, kind: input, shape index: {}]   ;;  %s492_s7 = inlined_call_operand.vmem [shape: bf16[64,128], index: 7, kind: input, shape index: {}]   ;;  %s493_s8 = inlined_call_operand.vmem [shape: bf16[64,128], index: 8, kind: input, shape index: {}]   ;;  %s494_s9 = inlined_call_operand.vmem [shape: bf16[64,128], index: 9, kind: output, shape index: {}]  }
   0x1   :  { %v32_v0 = vld [vmem:[%s485_s0] sm:$0xf]  ;;  %v33_v1 = vld [vmem:[%s485_s0 + $0x4] sm:$0xf]  ;;  %v34_v18 = vld [vmem:[%s485_s0 + $0x8] sm:$0xf] }
   0x2   :  { %v40_v2 = vld [vmem:[%s486_s1] sm:$0xf]  ;;  %v41_v3 = vld [vmem:[%s486_s1 + $0x4] sm:$0xf]  ;;  %v35_v19 = vld [vmem:[%s485_s0 + $0xc] sm:$0xf] }
   0x3   :  { %v48_v4 = vmax.bf16 %v40_v2, %v32_v0  ;;  %v56_v5 = vld [vmem:[%s487_s2] sm:$0xf]  ;;  %v57_v6 = vld [vmem:[%s487_s2 + $0x4] sm:$0xf]  ;;  %v49_v7 = vmax.bf16 %v41_v3, %v33_v1  ;;  %v42_v20 = vld [vmem:[%s486_s1 + $0x8] sm:$0xf] }
   0x4   :  { %v72_v8 = vld [vmem:[%s488_s3] sm:$0xf]  ;;  %v73_v10 = vld [vmem:[%s488_s3 + $0x4] sm:$0xf]  ;;  %v43_v22 = vld [vmem:[%s486_s1 + $0xc] sm:$0xf]  ;;  %v50_v23 = vmax.bf16 %v42_v20, %v34_v18 }
   0x5   :  { %v64_v9 = vmax.bf16 %v56_v5, %v48_v4  ;;  %v65_v11 = vmax.bf16 %v57_v6, %v49_v7  ;;  %v88_v12 = vld [vmem:[%s489_s4] sm:$0xf]  ;;  %v89_v14 = vld [vmem:[%s489_s4 + $0x4] sm:$0xf]  ;;  %v58_v24 = vld [vmem:[%s487_s2 + $0x8] sm:$0xf]  ;;  %v51_v28 = vmax.bf16 %v43_v22, %v35_v19 }
   0x6   :  { %v104_v15 = vld [vmem:[%s490_s5] sm:$0xf]  ;;  %v105_v16 = vld [vmem:[%s490_s5 + $0x4] sm:$0xf]  ;;  %v59_v25 = vld [vmem:[%s487_s2 + $0xc] sm:$0xf]  ;;  %v66_v33 = vmax.bf16 %v58_v24, %v50_v23 }
   0x7   :  { %v80_v13 = vmax.bf16 %v72_v8, %v64_v9  ;;  %v81_v17 = vmax.bf16 %v73_v10, %v65_v11  ;;  %v120_v27 = vld [vmem:[%s491_s6] sm:$0xf]  ;;  %v74_v29 = vld [vmem:[%s488_s3 + $0x8] sm:$0xf]  ;;  %v121_v31 = vld [vmem:[%s491_s6 + $0x4] sm:$0xf]  ;;  %v67_v38 = vmax.bf16 %v59_v25, %v51_v28 }
   0x8   :  { %v136_v32 = vld [vmem:[%s492_s7] sm:$0xf]  ;;  %v75_v34 = vld [vmem:[%s488_s3 + $0xc] sm:$0xf]  ;;  %v137_v36 = vld [vmem:[%s492_s7 + $0x4] sm:$0xf]  ;;  %v82_v42 = vmax.bf16 %v74_v29, %v66_v33 }
   0x9   :  { %v96_v21 = vmax.bf16 %v88_v12, %v80_v13  ;;  %v97_v26 = vmax.bf16 %v89_v14, %v81_v17  ;;  %v152_v37 = vld [vmem:[%s493_s8] sm:$0xf]  ;;  %v90_v39 = vld [vmem:[%s489_s4 + $0x8] sm:$0xf]  ;;  %v153_v41 = vld [vmem:[%s493_s8 + $0x4] sm:$0xf]  ;;  %v83_v47 = vmax.bf16 %v75_v34, %v67_v38 }
   0xa   :  { %v91_v43 = vld [vmem:[%s489_s4 + $0xc] sm:$0xf]  ;;  %v106_v44 = vld [vmem:[%s490_s5 + $0x8] sm:$0xf]  ;;  %v36_v48 = vld [vmem:[%s485_s0 + $0x10] sm:$0xf]  ;;  %v98_v52 = vmax.bf16 %v90_v39, %v82_v42 }
   0xb   :  { %v112_v30 = vmax.bf16 %v104_v15, %v96_v21  ;;  %v113_v35 = vmax.bf16 %v105_v16, %v97_v26  ;;  %v107_v45 = vld [vmem:[%s490_s5 + $0xc] sm:$0xf]  ;;  %v37_v49 = vld [vmem:[%s485_s0 + $0x14] sm:$0xf]  ;;  %v44_v50 = vld [vmem:[%s486_s1 + $0x10] sm:$0xf]  ;;  %v99_v58 = vmax.bf16 %v91_v43, %v83_v47 }
   0xc   :  { %v45_v53 = vld [vmem:[%s486_s1 + $0x14] sm:$0xf]  ;;  %v52_v54 = vmax.bf16 %v44_v50, %v36_v48  ;;  %v60_v55 = vld [vmem:[%s487_s2 + $0x10] sm:$0xf]  ;;  %v122_v59 = vld [vmem:[%s491_s6 + $0x8] sm:$0xf]  ;;  %v114_v63 = vmax.bf16 %v106_v44, %v98_v52 }
   0xd   :  { %v128_v40 = vmax.bf16 %v120_v27, %v112_v30  ;;  %v129_v46 = vmax.bf16 %v121_v31, %v113_v35  ;;  %v61_v56 = vld [vmem:[%s487_s2 + $0x14] sm:$0xf]  ;;  %v53_v60 = vmax.bf16 %v45_v53, %v37_v49  ;;  %v76_v61 = vld [vmem:[%s488_s3 + $0x10] sm:$0xf]  ;;  %v123_v0 = vld [vmem:[%s491_s6 + $0xc] sm:$0xf]  ;;  %v115_v5 = vmax.bf16 %v107_v45, %v99_v58 }
   0xe   :  { %v138_v1 = vld [vmem:[%s492_s7 + $0x8] sm:$0xf]  ;;  %v68_v2 = vmax.bf16 %v60_v55, %v52_v54  ;;  %v77_v3 = vld [vmem:[%s488_s3 + $0x14] sm:$0xf]  ;;  %v139_v6 = vld [vmem:[%s492_s7 + $0xc] sm:$0xf]  ;;  %v130_v10 = vmax.bf16 %v122_v59, %v114_v63 }
   0xf   :  { %v144_v51 = vmax.bf16 %v136_v32, %v128_v40  ;;  %v145_v57 = vmax.bf16 %v137_v36, %v129_v46  ;;  %v154_v7 = vld [vmem:[%s493_s8 + $0x8] sm:$0xf]  ;;  %v69_v8 = vmax.bf16 %v61_v56, %v53_v60  ;;  %v92_v9 = vld [vmem:[%s489_s4 + $0x10] sm:$0xf]  ;;  %v155_v11 = vld [vmem:[%s493_s8 + $0xc] sm:$0xf]  ;;  %v131_v17 = vmax.bf16 %v123_v0, %v115_v5 }
  0x10   :  { %v84_v12 = vmax.bf16 %v76_v61, %v68_v2  ;;  %v93_v13 = vld [vmem:[%s489_s4 + $0x14] sm:$0xf]  ;;  %v108_v14 = vld [vmem:[%s490_s5 + $0x10] sm:$0xf]  ;;  %v38_v19 = vld [vmem:[%s485_s0 + $0x18] sm:$0xf]  ;;  %v146_v22 = vmax.bf16 %v138_v1, %v130_v10 }
  0x11   :  { %v160_v62 = vmax.bf16 %v152_v37, %v144_v51  ;;  %v161_v4 = vmax.bf16 %v153_v41, %v145_v57  ;;  %v109_v15 = vld [vmem:[%s490_s5 + $0x14] sm:$0xf]  ;;  %v85_v18 = vmax.bf16 %v77_v3, %v69_v8  ;;  %v39_v20 = vld [vmem:[%s485_s0 + $0x1c] sm:$0xf]  ;;  %v46_v21 = vld [vmem:[%s486_s1 + $0x18] sm:$0xf]  ;;  %v147_v28 = vmax.bf16 %v139_v6, %v131_v17 }
  0x12   :  { %v100_v23 = vmax.bf16 %v92_v9, %v84_v12  ;;  %v47_v24 = vld [vmem:[%s486_s1 + $0x1c] sm:$0xf]  ;;  %v54_v25 = vmax.bf16 %v46_v21, %v38_v19  ;;  %v62_v26 = vld [vmem:[%s487_s2 + $0x18] sm:$0xf]  ;;  %v124_v30 = vld [vmem:[%s491_s6 + $0x10] sm:$0xf]  ;;  %v162_v33 = vmax.bf16 %v154_v7, %v146_v22 }
  0x13   :  { %v200_v16 = vcombine.low %v160_v62, %v161_v4  ;;  %v63_v27 = vld [vmem:[%s487_s2 + $0x1c] sm:$0xf]  ;;  %v101_v29 = vmax.bf16 %v93_v13, %v85_v18  ;;  %v55_v31 = vmax.bf16 %v47_v24, %v39_v20  ;;  %v78_v32 = vld [vmem:[%s488_s3 + $0x18] sm:$0xf]  ;;  %v125_v35 = vld [vmem:[%s491_s6 + $0x14] sm:$0xf]  ;;  %v163_v38 = vmax.bf16 %v155_v11, %v147_v28 }
  0x14   :  { %v116_v34 = vmax.bf16 %v108_v14, %v100_v23  ;;  %v70_v36 = vmax.bf16 %v62_v26, %v54_v25  ;;  %v79_v37 = vld [vmem:[%s488_s3 + $0x1c] sm:$0xf]  ;;  %v140_v40 = vld [vmem:[%s492_s7 + $0x10] sm:$0xf]  ;;  %v94_v42 = vld [vmem:[%s489_s4 + $0x18] sm:$0xf] }
  0x15   :  { %184 = vst [vmem:[%s494_s9] sm:$0xff] %v200_v16   ;;  %v117_v39 = vmax.bf16 %v109_v15, %v101_v29  ;;  %v71_v41 = vmax.bf16 %v63_v27, %v55_v31  ;;  %v141_v44 = vld [vmem:[%s492_s7 + $0x14] sm:$0xf]  ;;  %v95_v46 = vld [vmem:[%s489_s4 + $0x1c] sm:$0xf]  ;;  %v201_v47 = vcombine.low %v162_v33, %v163_v38  ;;  %v156_v49 = vld [vmem:[%s493_s8 + $0x10] sm:$0xf] }
  0x16   :  { %v132_v43 = vmax.bf16 %v124_v30, %v116_v34  ;;  %v86_v45 = vmax.bf16 %v78_v32, %v70_v36  ;;  %v110_v51 = vld [vmem:[%s490_s5 + $0x18] sm:$0xf]  ;;  %v157_v53 = vld [vmem:[%s493_s8 + $0x14] sm:$0xf]  ;;  %v111_v55 = vld [vmem:[%s490_s5 + $0x1c] sm:$0xf] }
  0x17   :  { %v133_v48 = vmax.bf16 %v125_v35, %v117_v39  ;;  %v87_v50 = vmax.bf16 %v79_v37, %v71_v41  ;;  %202 = vst [vmem:[%s494_s9 + $0x8] sm:$0xff] %v201_v47   ;;  %v126_v58 = vld [vmem:[%s491_s6 + $0x18] sm:$0xf]  ;;  %v127_v61 = vld [vmem:[%s491_s6 + $0x1c] sm:$0xf] }
  0x18   :  { %v148_v52 = vmax.bf16 %v140_v40, %v132_v43  ;;  %v102_v54 = vmax.bf16 %v94_v42, %v86_v45  ;;  %v142_v0 = vld [vmem:[%s492_s7 + $0x18] sm:$0xf]  ;;  %v143_v2 = vld [vmem:[%s492_s7 + $0x1c] sm:$0xf] }
  0x19   :  { %v149_v56 = vmax.bf16 %v141_v44, %v133_v48  ;;  %v103_v57 = vmax.bf16 %v95_v46, %v87_v50  ;;  %v158_v5 = vld [vmem:[%s493_s8 + $0x18] sm:$0xf]  ;;  %v159_v7 = vld [vmem:[%s493_s8 + $0x1c] sm:$0xf] }
  0x1a   :  { %v164_v59 = vmax.bf16 %v156_v49, %v148_v52  ;;  %v118_v60 = vmax.bf16 %v110_v51, %v102_v54 }
  0x1b   :  { %v165_v62 = vmax.bf16 %v157_v53, %v149_v56  ;;  %v119_v63 = vmax.bf16 %v111_v55, %v103_v57 }
  0x1c   :  { %v134_v1 = vmax.bf16 %v126_v58, %v118_v60 }
  0x1d   :  { %v203_v3 = vcombine.low %v164_v59, %v165_v62  ;;  %v135_v4 = vmax.bf16 %v127_v61, %v119_v63 }
  0x1e   :  { %v150_v6 = vmax.bf16 %v142_v0, %v134_v1 }
  0x1f   :  { %204 = vst [vmem:[%s494_s9 + $0x10] sm:$0xff] %v203_v3   ;;  %v151_v8 = vmax.bf16 %v143_v2, %v135_v4 }
  0x20   :  { %v166_v9 = vmax.bf16 %v158_v5, %v150_v6 }
  0x21   :  { %v167_v10 = vmax.bf16 %v159_v7, %v151_v8 }
  0x23   :  { %v205_v11 = vcombine.low %v166_v9, %v167_v10 }
  0x25   :  { %206 = vst [vmem:[%s494_s9 + $0x18] sm:$0xff] %v205_v11  }

// kernel: simple_dog_emotion_model.24
= control target key start
LH: loop header
LB: loop body
LE: loop exit
PB: predicated region body
PF: predicated region fallthrough
CT: control target
= control target key end

     0   :  { %s1470_s12 = smov 0   ;;  %s1472_s13 = smov 0   ;;  %s1643_s0 = inlined_call_operand.vmem [shape: bf16[128,576], index: 0, kind: input, shape index: {}]   ;;  %s1644_s1 = inlined_call_operand.vmem [shape: bf16[576,128], index: 1, kind: input, shape index: {}]   ;;  %s1645_s2 = inlined_call_operand.vmem [shape: f32[1,128], index: 2, kind: input, shape index: {}]   ;;  %s1646_s3 = inlined_call_operand.vmem [shape: bf16[128,128], index: 3, kind: output, shape index: {}]  }
   0x1   :  { %s1474_s14 = smov 0  }
   0x2 LB: > { %s32_s15 = sadd.s32 1, %s1444_s13  ;;  %p1118_p0 = scmp.ge.s32.totalorder %s1448_s14, 1  ;;  %s1448_s14 = sphi %s1474_s14, %s13_s14   ;;  %s1444_s13 = sphi %s1472_s13, %s1648_s13   ;;  %s1440_s12 = sphi %s1470_s12, %s1647_s12  }
   0x3   : > { %p34_p1 = scmp.ge.s32.totalorder %s32_s15, 2  ;;  %p191_p2 = scmp.lt.s32.totalorder %s1448_s14, 3 }
   0x5   : > { %s1650_s15 = smov (%p34_p1, %s32_s15), 0  ;;  %p192_p3 = pnand %p1118_p0, %p191_p2 }
   0x6   : > { %v1362_v0 = vld [vmem:[%s1644_s1 + $0x40] sm:$0xff] (!%p192_p3)   ;;  %v1366_v4 = vld [vmem:[%s1644_s1 + $0x48] sm:$0xff] (!%p192_p3)   ;;  %v1370_v8 = vld [vmem:[%s1644_s1 + $0x50] sm:$0xff] (!%p192_p3)   ;;  %s1119_s23 = sshll.u32 (!%p192_p3), %s1440_s12, 3  ;;  %vm700_vm0 = vcmask (!%p192_p3), 523264  }
   0x7   : > { %195 = sbr.rel (%p192_p3) target bundleno = 297 (0x129), region = 32  ;;  %v1363_v1 = vld [vmem:[%s1644_s1 + $0xc0] sm:$0xff] (!%p192_p3)   ;;  %1225 = vmatprep.subr.bf16.mxu0 (!%p192_p3), %v1362_v0  ;;  %v1367_v5 = vld [vmem:[%s1644_s1 + $0xc8] sm:$0xff] (!%p192_p3)   ;;  %v1371_v9 = vld [vmem:[%s1644_s1 + $0xd0] sm:$0xff] (!%p192_p3)   ;;  %p236_p4 = scmp.lt.s32.totalorder (!%p192_p3), %s1119_s23, 15 }
   0x8   : > { %v1364_v2 = vld [vmem:[%s1644_s1] sm:$0xff] (!%p192_p3)   ;;  %1265 = vmatprep.subr.bf16.mxu1 (!%p192_p3), %v1363_v1  ;;  %v1368_v6 = vld [vmem:[%s1644_s1 + $0x8] sm:$0xff] (!%p192_p3)   ;;  %v1372_v10 = vld [vmem:[%s1644_s1 + $0x10] sm:$0xff] (!%p192_p3)  }
   0x9   : > { %v1365_v3 = vld [vmem:[%s1644_s1 + $0x80] sm:$0xff] (!%p192_p3)   ;;  %1226 = vmatpush3.bf16.msra.mxu0 (!%p192_p3), %v1364_v2  ;;  %v1369_v7 = vld [vmem:[%s1644_s1 + $0x88] sm:$0xff] (!%p192_p3)   ;;  %v1373_v11 = vld [vmem:[%s1644_s1 + $0x90] sm:$0xff] (!%p192_p3)  }
   0xa   : > { %1266 = vmatpush3.bf16.msra.mxu1 (!%p192_p3), %v1365_v3  ;;  %1227 = vmatprep.subr.bf16.mxu0 (!%p192_p3), %v1366_v4  ;;  %v1374_v12 = vld [vmem:[%s1644_s1 + $0x58] sm:$0xff] (!%p192_p3)   ;;  %v1378_v16 = vld [vmem:[%s1644_s1 + $0x60] sm:$0xff] (!%p192_p3)   ;;  %v1382_v20 = vld [vmem:[%s1644_s1 + $0x68] sm:$0xff] (!%p192_p3)  }
   0xb   : > { %1267 = vmatprep.subr.bf16.mxu1 (!%p192_p3), %v1367_v5  ;;  %v1375_v13 = vld [vmem:[%s1644_s1 + $0xd8] sm:$0xff] (!%p192_p3)   ;;  %v1379_v17 = vld [vmem:[%s1644_s1 + $0xe0] sm:$0xff] (!%p192_p3)   ;;  %v1383_v21 = vld [vmem:[%s1644_s1 + $0xe8] sm:$0xff] (!%p192_p3)  }
   0xc   : > { %v1376_v14 = vld [vmem:[%s1644_s1 + $0x18] sm:$0xff] (!%p192_p3)   ;;  %v1380_v18 = vld [vmem:[%s1644_s1 + $0x20] sm:$0xff] (!%p192_p3)   ;;  %v1384_v22 = vld [vmem:[%s1644_s1 + $0x28] sm:$0xff] (!%p192_p3)  }
   0xd   : > { %1228 = vmatpush3.bf16.msra.mxu0 (!%p192_p3), %v1368_v6  ;;  %v1377_v15 = vld [vmem:[%s1644_s1 + $0x98] sm:$0xff] (!%p192_p3)   ;;  %v1381_v19 = vld [vmem:[%s1644_s1 + $0xa0] sm:$0xff] (!%p192_p3)   ;;  %v1385_v23 = vld [vmem:[%s1644_s1 + $0xa8] sm:$0xff] (!%p192_p3)  }
   0xe   : > { %1268 = vmatpush3.bf16.msra.mxu1 %v1369_v7  ;;  %1229 = vmatprep.subr.bf16.mxu0 %v1370_v8  ;;  %s1652_s23 = smov (!%p236_p4, %s1119_s23), 15  ;;  %v1386_v24 = vld [vmem:[%s1644_s1 + $0x70] sm:$0xff]   ;;  %v1390_v28 = vld [vmem:[%s1644_s1 + $0x78] sm:$0xff]   ;;  %v1400_v36 = vld [vmem:[%s1644_s1 + $0x100] sm:$0xff]  }
   0xf   : > { %1269 = vmatprep.subr.bf16.mxu1 %v1371_v9  ;;  %v1387_v25 = vld [vmem:[%s1644_s1 + $0xf0] sm:$0xff]   ;;  %s1337_s22 = smul.u32 20, %s1652_s23  ;;  %v1391_v29 = vld [vmem:[%s1644_s1 + $0xf8] sm:$0xff]   ;;  %v1407_v39 = vld [vmem:[%s1644_s1 + $0x108] sm:$0xff]   ;;  %s1122_s26 = sshll.u32 %s1652_s23, 2 }
  0x10   : > { %v1388_v26 = vld [vmem:[%s1644_s1 + $0x30] sm:$0xff]   ;;  %v1392_v30 = vld [vmem:[%s1644_s1 + $0x38] sm:$0xff]   ;;  %s265_s29 = scalar_lea.vmem %s1646_s3, %s1122_s26 }
  0x11   : > { %1230 = vmatpush3.bf16.msra.mxu0 %v1372_v10  ;;  %v1389_v27 = vld [vmem:[%s1644_s1 + $0xb0] sm:$0xff]   ;;  %s1587_s6 = scalar_lea.vmem %s1643_s0, %s1337_s22  ;;  %v1393_v31 = vld [vmem:[%s1644_s1 + $0xb8] sm:$0xff]  }
  0x12   : > { %1270 = vmatpush3.bf16.msra.mxu1 %v1373_v11  ;;  %1231 = vmatprep.subr.bf16.mxu0 %v1374_v12  ;;  %v1394_v32 = vld [vmem:[%s1587_s6] ss:$20 sps:$4 sm:$0xff]   ;;  %v1396_v33 = vld [vmem:[%s1587_s6 + $0x4] ss:$20 sps:$4 sm:$0xff]   ;;  %v1397_v34 = vld [vmem:[%s1587_s6 + $0x8] ss:$20 sps:$4 sm:$0xff]  }
  0x13   : > { %1271 = vmatprep.subr.bf16.mxu1 %v1375_v13  ;;  %v1399_v35 = vld [vmem:[%s1587_s6 + $0xc] ss:$20 sps:$4 sm:$0xff]   ;;  %745 = vmatprep.mubr.bf16.mxu0 %v1396_v33  ;;  %v1403_v38 = vld [vmem:[%s1587_s6 + $0x34] ss:$20 sps:$4 sm:$0xff]   ;;  %v1406_v41 = vld [vmem:[%s1587_s6 + $0x30] ss:$20 sps:$4 sm:$0xff]  }
  0x14   : > { %810 = vmatprep.mubr.bf16.mxu1 %v1399_v35  ;;  %v1401_v37 = vld [vmem:[%s1587_s6 + $0x2c] ss:$20 sps:$4 sm:$0xff]   ;;  %v1405_v40 = vld [vmem:[%s1587_s6 + $0x28] ss:$20 sps:$4 sm:$0xff]   ;;  %v1414_v44 = vld [vmem:[%s1644_s1 + $0x110] sm:$0xff]  }
  0x15   : > { %1232 = vmatpush3.bf16.msra.mxu0 %v1376_v14  ;;  %v1408_v42 = vld [vmem:[%s1587_s6 + $0x54] ss:$20 sps:$4 sm:$0xff]   ;;  %v1410_v43 = vld [vmem:[%s1587_s6 + $0x5c] ss:$20 sps:$4 sm:$0xff]   ;;  %v1413_v47 = vld [vmem:[%s1587_s6 + $0x58] ss:$20 sps:$4 sm:$0xff]  }
  0x16   : > { %1272 = vmatpush3.bf16.msra.mxu1 %v1377_v15  ;;  %1233 = vmatprep.subr.bf16.mxu0 %v1378_v16  ;;  %v1421_v45 = vld [vmem:[%s1644_s1 + $0x118] sm:$0xff]   ;;  %v1412_v46 = vld [vmem:[%s1587_s6 + $0x50] ss:$20 sps:$4 sm:$0xff]   ;;  %v1420_v51 = vld [vmem:[%s1587_s6 + $0x80] ss:$20 sps:$4 sm:$0xff]  }
  0x17   : > { %1273 = vmatprep.subr.bf16.mxu1 %v1379_v17  ;;  %v1415_v48 = vld [vmem:[%s1587_s6 + $0x7c] ss:$20 sps:$4 sm:$0xff]   ;;  %v1417_v49 = vld [vmem:[%s1587_s6 + $0x84] ss:$20 sps:$4 sm:$0xff]   ;;  %v1423_v53 = vld [vmem:[%s1587_s6 + $0x60] ss:$20 sps:$4 sm:$0xff]  }
  0x18   : > { %v1419_v50 = vld [vmem:[%s1587_s6 + $0x78] ss:$20 sps:$4 sm:$0xff]   ;;  %v1422_v52 = vld [vmem:[%s1587_s6 + $0x10] ss:$20 sps:$4 sm:$0xff]   ;;  %v1425_v55 = vld [vmem:[%s1587_s6 + $0x88] ss:$20 sps:$4 sm:$0xff]  }
  0x19   : > { %1234 = vmatpush3.bf16.msra.mxu0 %v1380_v18  ;;  %v1424_v54 = vld [vmem:[%s1587_s6 + $0x38] ss:$20 sps:$4 sm:$0xff]  }
  0x1a   : > { %1274 = vmatpush3.bf16.msra.mxu1 %v1381_v19  ;;  %1235 = vmatprep.subr.bf16.mxu0 %v1382_v20 }
  0x1b   : > { %1275 = vmatprep.subr.bf16.mxu1 %v1383_v21 }
  0x1d   : > { %1236 = vmatpush3.bf16.msra.mxu0 %v1384_v22 }
  0x1e   : > { %1276 = vmatpush3.bf16.msra.mxu1 %v1385_v23  ;;  %1237 = vmatprep.subr.bf16.mxu0 %v1386_v24 }
  0x1f   : > { %1277 = vmatprep.subr.bf16.mxu1 %v1387_v25 }
  0x21   : > { %1238 = vmatpush3.bf16.msra.mxu0 %v1388_v26 }
  0x22   : > { %1278 = vmatpush3.bf16.msra.mxu1 %v1389_v27  ;;  %1239 = vmatprep.subr.bf16.mxu0 %v1390_v28 }
  0x23   : > { %1279 = vmatprep.subr.bf16.mxu1 %v1391_v29 }
  0x25   : > { %1240 = vmatpush3.bf16.msra.mxu0 %v1392_v30 }
  0x26   : > { %1280 = vmatpush3.bf16.msra.mxu1 %v1393_v31  ;;  %1313 = vmatprep.subr.bf16.mxu0 %v1400_v36 }
  0x27   : > { %1329 = vmatprep.subr.bf16.mxu1 %v1400_v36 }
  0x28   : > { %746 = vmatmul.mubr.bf16.vlgmr.msra.gmra.mrb[0].mxu0 %v1394_v32 }
  0x29   : > { %811 = vmatmul.mubr.bf16.vlgmr.msra.gmra.mrb[0].mxu1 %v1397_v34  ;;  %1314 = vmatpush3.bf16.msra.mxu0 %v1400_v36 }
  0x2a   : > { %1333 = vmatpush3.bf16.msra.mxu1 %v1400_v36  ;;  %753 = vmatprep.mubr.bf16.mxu0 %v1401_v37 }
  0x2b   : > { %818 = vmatprep.mubr.bf16.mxu1 %v1403_v38  ;;  %1315 = vmatprep.subr.bf16.mxu0 %v1407_v39 }
  0x2c   : > { %1330 = vmatprep.subr.bf16.mxu1 %v1407_v39 }
  0x2d   : > { %1316 = vmatpush3.bf16.msra.mxu0 %v1407_v39 }
  0x2e   : > { %1334 = vmatpush3.bf16.msra.mxu1 %v1407_v39  ;;  %1317 = vmatprep.subr.bf16.mxu0 %v1414_v44 }
  0x2f   : > { %1331 = vmatprep.subr.bf16.mxu1 %v1414_v44 }
  0x30   : > { %754 = vmatmul.mubr.bf16.gmra.mrb[4].mxu0 %v1405_v40 }
  0x31   : > { %819 = vmatmul.mubr.bf16.gmra.mrb[4].mxu1 %v1406_v41  ;;  %761 = vmatprep.mubr.bf16.mxu0 %v1408_v42 }
  0x32   : > { %826 = vmatprep.mubr.bf16.mxu1 %v1410_v43  ;;  %1318 = vmatpush3.bf16.msra.mxu0 %v1414_v44 }
  0x33   : > { %1335 = vmatpush3.bf16.msra.mxu1 %v1414_v44  ;;  %1319 = vmatprep.subr.bf16.mxu0 %v1421_v45 }
  0x34   : > { %1332 = vmatprep.subr.bf16.mxu1 %v1421_v45 }
  0x36   : > { %1320 = vmatpush3.bf16.msra.mxu0 %v1421_v45 }
  0x37   : > { %1336 = vmatpush3.bf16.msra.mxu1 %v1421_v45 }
  0x38   : > { %762 = vmatmul.mubr.bf16.gmra.mrb[8].mxu0 %v1412_v46 }
  0x39   : > { %827 = vmatmul.mubr.bf16.gmra.mrb[8].mxu1 %v1413_v47  ;;  %769 = vmatprep.mubr.bf16.mxu0 %v1415_v48 }
  0x3a   : > { %834 = vmatprep.mubr.bf16.mxu1 %v1417_v49  ;;  %v1183_v49 = vld [vmem:[%s1645_s2] ss:$0 sm:$0xff] }
  0x40   : > { %770 = vmatmul.mubr.bf16.gmra.mrb[12].mxu0 %v1419_v50 }
  0x41   : > { %835 = vmatmul.mubr.bf16.gmra.mrb[12].mxu1 %v1420_v51  ;;  %1321 = vmatprep.mubr.msk.bf16.mxu0 %vm700_vm0, %v1422_v52 }
  0x42   : > { %1325 = vmatprep.mubr.msk.bf16.mxu1 %vm700_vm0, %v1423_v53 }
  0x48   : > { %1322 = vmatmul.mubr.msk.bf16.vlgmr.msra.gmra.mrb[16].mxu0 %vm700_vm0, %v1424_v54 }
  0x49   : > { %1326 = vmatmul.mubr.msk.bf16.vlgmr.msra.gmra.mrb[16].mxu1 %vm700_vm0, %v1425_v55 }
  0xfb   : > { %v1241_v56 = vpop.f32.mrb[0].mxu0 }
  0xfc   : > { %v1281_v57 = vpop.f32.mrb[0].mxu1  ;;  %v1242_v58 = vpop.f32.mrb[1].mxu0 }
  0xfd   : > { %v1243_v59 = vadd.f32 %v1242_v58, %v1241_v56  ;;  %v1282_v60 = vpop.f32.mrb[1].mxu1  ;;  %v1244_v61 = vpop.f32.mrb[2].mxu0 }
  0xfe   : > { %v1283_v62 = vadd.f32 %v1282_v60, %v1281_v57  ;;  %v1284_v63 = vpop.f32.mrb[2].mxu1  ;;  %v1245_v0 = vpop.f32.mrb[3].mxu0 }
  0xff   : > { %v1246_v1 = vadd.f32 %v1245_v0, %v1244_v61  ;;  %v1285_v2 = vpop.f32.mrb[3].mxu1 }
 0x100   : > { %v1286_v3 = vadd.f32 %v1285_v2, %v1284_v63  ;;  %v813_v4 = vadd.f32 %v1283_v62, %v1243_v59 }
 0x102   : > { %v816_v5 = vadd.f32 %v1286_v3, %v1246_v1 }
 0x103   : > { %v1247_v6 = vpop.f32.mrb[4].mxu0 }
 0x104   : > { %v1287_v7 = vpop.f32.mrb[4].mxu1  ;;  %v1248_v8 = vpop.f32.mrb[5].mxu0 }
 0x105   : > { %v1249_v9 = vadd.f32 %v1248_v8, %v1247_v6  ;;  %v1288_v10 = vpop.f32.mrb[5].mxu1  ;;  %v1250_v11 = vpop.f32.mrb[6].mxu0 }
 0x106   : > { %v1289_v12 = vadd.f32 %v1288_v10, %v1287_v7  ;;  %v1290_v13 = vpop.f32.mrb[6].mxu1  ;;  %v1251_v14 = vpop.f32.mrb[7].mxu0 }
 0x107   : > { %v1252_v15 = vadd.f32 %v1251_v14, %v1250_v11  ;;  %v1291_v16 = vpop.f32.mrb[7].mxu1 }
 0x108   : > { %v1292_v17 = vadd.f32 %v1291_v16, %v1290_v13  ;;  %v821_v18 = vadd.f32 %v1289_v12, %v1249_v9 }
 0x10a   : > { %v824_v19 = vadd.f32 %v1292_v17, %v1252_v15 }
 0x10b   : > { %v1253_v20 = vpop.f32.mrb[8].mxu0 }
 0x10c   : > { %v1293_v21 = vpop.f32.mrb[8].mxu1  ;;  %v1254_v22 = vpop.f32.mrb[9].mxu0 }
 0x10d   : > { %v1255_v23 = vadd.f32 %v1254_v22, %v1253_v20  ;;  %v1294_v24 = vpop.f32.mrb[9].mxu1  ;;  %v1256_v25 = vpop.f32.mrb[10].mxu0 }
 0x10e   : > { %v1295_v26 = vadd.f32 %v1294_v24, %v1293_v21  ;;  %v1296_v27 = vpop.f32.mrb[10].mxu1  ;;  %v1257_v28 = vpop.f32.mrb[11].mxu0 }
 0x10f   : > { %v1258_v29 = vadd.f32 %v1257_v28, %v1256_v25  ;;  %v1297_v30 = vpop.f32.mrb[11].mxu1 }
 0x110   : > { %v1298_v31 = vadd.f32 %v1297_v30, %v1296_v27  ;;  %v829_v32 = vadd.f32 %v1295_v26, %v1255_v23 }
 0x112   : > { %v832_v33 = vadd.f32 %v1298_v31, %v1258_v29 }
 0x113   : > { %v1259_v34 = vpop.f32.mrb[12].mxu0 }
 0x114   : > { %v1299_v35 = vpop.f32.mrb[12].mxu1  ;;  %v1260_v36 = vpop.f32.mrb[13].mxu0 }
 0x115   : > { %v1261_v37 = vadd.f32 %v1260_v36, %v1259_v34  ;;  %v1300_v38 = vpop.f32.mrb[13].mxu1  ;;  %v1262_v39 = vpop.f32.mrb[14].mxu0 }
 0x116   : > { %v1301_v40 = vadd.f32 %v1300_v38, %v1299_v35  ;;  %v1302_v41 = vpop.f32.mrb[14].mxu1  ;;  %v1263_v42 = vpop.f32.mrb[15].mxu0 }
 0x117   : > { %v1264_v43 = vadd.f32 %v1263_v42, %v1262_v39  ;;  %v1303_v44 = vpop.f32.mrb[15].mxu1 }
 0x118   : > { %v1304_v45 = vadd.f32 %v1303_v44, %v1302_v41  ;;  %v837_v46 = vadd.f32 %v1301_v40, %v1261_v37 }
 0x11a   : > { %v840_v47 = vadd.f32 %v1304_v45, %v1264_v43 }
 0x11b   : > { %v1323_v48 = vpop.f32.mrb[16].mxu0 }
 0x11c   : > { %v886_v50 = vadd.f32 %v1323_v48, %v821_v18  ;;  %v1327_v51 = vpop.f32.mrb[16].mxu1  ;;  %v877_v52 = vpop.f32.mrb[17].mxu0 }
 0x11d   : > { %v902_v53 = vadd.f32 %v1327_v51, %v837_v46  ;;  %v878_v54 = vadd.f32 %v877_v52, %v813_v4  ;;  %v893_v55 = vpop.f32.mrb[17].mxu1  ;;  %v1324_v56 = vpop.f32.mrb[18].mxu0 }
 0x11e   : > { %v944_v57 = vadd.f32 %v1183_v49, %v886_v50  ;;  %v894_v58 = vadd.f32 %v893_v55, %v829_v32  ;;  %v889_v59 = vadd.f32 %v1324_v56, %v824_v19  ;;  %v1328_v60 = vpop.f32.mrb[18].mxu1  ;;  %v880_v61 = vpop.f32.mrb[19].mxu0 }
 0x11f   : > { %v948_v62 = vadd.f32 %v1183_v49, %v902_v53  ;;  %v942_v63 = vadd.f32 %v1183_v49, %v878_v54  ;;  %v905_v0 = vadd.f32 %v1328_v60, %v840_v47  ;;  %v881_v1 = vadd.f32 %v880_v61, %v816_v5  ;;  %v896_v2 = vpop.f32.mrb[19].mxu1 }
 0x120   : > { %v946_v3 = vadd.f32 %v1183_v49, %v894_v58  ;;  %v945_v6 = vadd.f32 %v1183_v49, %v889_v59  ;;  %v897_v7 = vadd.f32 %v896_v2, %v832_v33  ;;  %v952_v10 = vmax.f32 %v944_v57, 0.0 }
 0x121   : > { %v949_v8 = vadd.f32 %v1183_v49, %v905_v0  ;;  %v943_v9 = vadd.f32 %v1183_v49, %v881_v1  ;;  %v956_v12 = vmax.f32 %v948_v62, 0.0  ;;  %v950_v13 = vmax.f32 %v942_v63, 0.0 }
 0x122   : > { %v953_v4 = vmax.f32 %v945_v6, 0.0  ;;  %v947_v11 = vadd.f32 %v1183_v49, %v897_v7  ;;  %v954_v16 = vmax.f32 %v946_v3, 0.0 }
 0x123   : > { %v957_v14 = vmax.f32 %v949_v8, 0.0  ;;  %v951_v15 = vmax.f32 %v943_v9, 0.0 }
 0x124   : > { %v1210_v5 = vpack.c.bf16 %v953_v4, %v952_v10  ;;  %v955_v17 = vmax.f32 %v947_v11, 0.0 }
 0x125   : > { %v1220_v18 = vpack.c.bf16 %v957_v14, %v956_v12  ;;  %v1205_v19 = vpack.c.bf16 %v951_v15, %v950_v13 }
 0x126   : > { %1222 = vst [vmem:[%s265_s29 + $0x8] sm:$0xff] %v1210_v5   ;;  %v1215_v20 = vpack.c.bf16 %v955_v17, %v954_v16 }
 0x127   : > { %1224 = vst [vmem:[%s265_s29 + $0x18] sm:$0xff] %v1220_v18   ;;  %1206 = vst [vmem:[%s265_s29] sm:$0xff] %v1205_v19  }
 0x128   : > { %1223 = vst [vmem:[%s265_s29 + $0x10] sm:$0xff] %v1215_v20  }
 0x129 PF: > { %s13_s14 = sadd.s32 1, %s1448_s14   ;;  %s1647_s12 = smov %s1444_s13 }
 0x12a   : > { %p10_p5 = scmp.ge.s32.totalorder %s13_s14, 4   ;;  %s1648_s13 = smov %s1650_s15 }
 0x12c   :  { %12 = sbr.rel (!%p10_p5) target bundleno = 2 (0x2), region = 76 }

// kernel: simple_dog_emotion_model.25
= control target key start
LH: loop header
LB: loop body
LE: loop exit
PB: predicated region body
PF: predicated region fallthrough
CT: control target
= control target key end

     0   :  { %s1595_s15 = smov 0   ;;  %s1597_s16 = smov 0   ;;  %s1778_s0 = inlined_call_operand.vmem [shape: bf16[128,576], index: 0, kind: input, shape index: {}]   ;;  %s1779_s1 = inlined_call_operand.vmem [shape: bf16[576,128], index: 1, kind: input, shape index: {}]   ;;  %s1780_s2 = inlined_call_operand.vmem [shape: f32[1,128], index: 2, kind: input, shape index: {}]   ;;  %s1781_s3 = inlined_call_operand.vmem [shape: bf16[128,128], index: 3, kind: input, shape index: {}]   ;;  %s1782_s4 = inlined_call_operand.vmem [shape: bf16[128,128], index: 4, kind: output, shape index: {}]  }
   0x1   :  { %s1599_s17 = smov 0  }
   0x2 LB: > { %s33_s18 = sadd.s32 1, %s1564_s16  ;;  %p1217_p0 = scmp.ge.s32.totalorder %s1568_s17, 1  ;;  %s1568_s17 = sphi %s1599_s17, %s14_s17   ;;  %s1564_s16 = sphi %s1597_s16, %s1784_s16   ;;  %s1560_s15 = sphi %s1595_s15, %s1783_s15  }
   0x3   : > { %p35_p1 = scmp.ge.s32.totalorder %s33_s18, 2  ;;  %p232_p2 = scmp.lt.s32.totalorder %s1568_s17, 3 }
   0x5   : > { %s1786_s18 = smov (%p35_p1, %s33_s18), 0  ;;  %p233_p3 = pnand %p1217_p0, %p232_p2 }
   0x6   : > { %v1482_v0 = vld [vmem:[%s1779_s1 + $0x40] sm:$0xff] (!%p233_p3)   ;;  %v1486_v4 = vld [vmem:[%s1779_s1 + $0x48] sm:$0xff] (!%p233_p3)   ;;  %v1490_v8 = vld [vmem:[%s1779_s1 + $0x50] sm:$0xff] (!%p233_p3)   ;;  %s1218_s27 = sshll.u32 (!%p233_p3), %s1560_s15, 3  ;;  %vm760_vm0 = vcmask (!%p233_p3), 523264  }
   0x7   : > { %236 = sbr.rel (%p233_p3) target bundleno = 299 (0x12b), region = 36  ;;  %v1483_v1 = vld [vmem:[%s1779_s1 + $0xc0] sm:$0xff] (!%p233_p3)   ;;  %1345 = vmatprep.subr.bf16.mxu0 (!%p233_p3), %v1482_v0  ;;  %v1487_v5 = vld [vmem:[%s1779_s1 + $0xc8] sm:$0xff] (!%p233_p3)   ;;  %v1491_v9 = vld [vmem:[%s1779_s1 + $0xd0] sm:$0xff] (!%p233_p3)   ;;  %p287_p4 = scmp.lt.s32.totalorder (!%p233_p3), %s1218_s27, 15 }
   0x8   : > { %v1484_v2 = vld [vmem:[%s1779_s1] sm:$0xff] (!%p233_p3)   ;;  %1385 = vmatprep.subr.bf16.mxu1 (!%p233_p3), %v1483_v1  ;;  %v1488_v6 = vld [vmem:[%s1779_s1 + $0x8] sm:$0xff] (!%p233_p3)   ;;  %v1492_v10 = vld [vmem:[%s1779_s1 + $0x10] sm:$0xff] (!%p233_p3)  }
   0x9   : > { %v1485_v3 = vld [vmem:[%s1779_s1 + $0x80] sm:$0xff] (!%p233_p3)   ;;  %1346 = vmatpush3.bf16.msra.mxu0 (!%p233_p3), %v1484_v2  ;;  %v1489_v7 = vld [vmem:[%s1779_s1 + $0x88] sm:$0xff] (!%p233_p3)   ;;  %v1493_v11 = vld [vmem:[%s1779_s1 + $0x90] sm:$0xff] (!%p233_p3)  }
   0xa   : > { %1386 = vmatpush3.bf16.msra.mxu1 (!%p233_p3), %v1485_v3  ;;  %1347 = vmatprep.subr.bf16.mxu0 (!%p233_p3), %v1486_v4  ;;  %v1494_v12 = vld [vmem:[%s1779_s1 + $0x58] sm:$0xff] (!%p233_p3)   ;;  %v1498_v16 = vld [vmem:[%s1779_s1 + $0x60] sm:$0xff] (!%p233_p3)   ;;  %v1502_v20 = vld [vmem:[%s1779_s1 + $0x68] sm:$0xff] (!%p233_p3)  }
   0xb   : > { %1387 = vmatprep.subr.bf16.mxu1 (!%p233_p3), %v1487_v5  ;;  %v1495_v13 = vld [vmem:[%s1779_s1 + $0xd8] sm:$0xff] (!%p233_p3)   ;;  %v1499_v17 = vld [vmem:[%s1779_s1 + $0xe0] sm:$0xff] (!%p233_p3)   ;;  %v1503_v21 = vld [vmem:[%s1779_s1 + $0xe8] sm:$0xff] (!%p233_p3)  }
   0xc   : > { %v1496_v14 = vld [vmem:[%s1779_s1 + $0x18] sm:$0xff] (!%p233_p3)   ;;  %v1500_v18 = vld [vmem:[%s1779_s1 + $0x20] sm:$0xff] (!%p233_p3)   ;;  %v1504_v22 = vld [vmem:[%s1779_s1 + $0x28] sm:$0xff] (!%p233_p3)  }
   0xd   : > { %1348 = vmatpush3.bf16.msra.mxu0 (!%p233_p3), %v1488_v6  ;;  %v1497_v15 = vld [vmem:[%s1779_s1 + $0x98] sm:$0xff] (!%p233_p3)   ;;  %v1501_v19 = vld [vmem:[%s1779_s1 + $0xa0] sm:$0xff] (!%p233_p3)   ;;  %v1505_v23 = vld [vmem:[%s1779_s1 + $0xa8] sm:$0xff] (!%p233_p3)  }
   0xe   : > { %1388 = vmatpush3.bf16.msra.mxu1 %v1489_v7  ;;  %1349 = vmatprep.subr.bf16.mxu0 %v1490_v8  ;;  %s1788_s27 = smov (!%p287_p4, %s1218_s27), 15  ;;  %v1506_v24 = vld [vmem:[%s1779_s1 + $0x70] sm:$0xff]   ;;  %v1510_v28 = vld [vmem:[%s1779_s1 + $0x78] sm:$0xff]   ;;  %v1520_v36 = vld [vmem:[%s1779_s1 + $0x100] sm:$0xff]  }
   0xf   : > { %1389 = vmatprep.subr.bf16.mxu1 %v1491_v9  ;;  %v1507_v25 = vld [vmem:[%s1779_s1 + $0xf0] sm:$0xff]   ;;  %s1457_s28 = smul.u32 20, %s1788_s27  ;;  %v1511_v29 = vld [vmem:[%s1779_s1 + $0xf8] sm:$0xff]   ;;  %v1527_v39 = vld [vmem:[%s1779_s1 + $0x108] sm:$0xff]   ;;  %s1221_s30 = sshll.u32 %s1788_s27, 2 }
  0x10   : > { %v1508_v26 = vld [vmem:[%s1779_s1 + $0x30] sm:$0xff]   ;;  %v1512_v30 = vld [vmem:[%s1779_s1 + $0x38] sm:$0xff]   ;;  %s316_s7 = scalar_lea.vmem %s1781_s3, %s1221_s30  ;;  %s325_s11 = scalar_lea.vmem %s1782_s4, %s1221_s30 }
  0x11   : > { %1350 = vmatpush3.bf16.msra.mxu0 %v1492_v10  ;;  %v1509_v27 = vld [vmem:[%s1779_s1 + $0xb0] sm:$0xff]   ;;  %s1712_s12 = scalar_lea.vmem %s1778_s0, %s1457_s28  ;;  %v1513_v31 = vld [vmem:[%s1779_s1 + $0xb8] sm:$0xff]  }
  0x12   : > { %1390 = vmatpush3.bf16.msra.mxu1 %v1493_v11  ;;  %1351 = vmatprep.subr.bf16.mxu0 %v1494_v12  ;;  %v1514_v32 = vld [vmem:[%s1712_s12] ss:$20 sps:$4 sm:$0xff]   ;;  %v1516_v33 = vld [vmem:[%s1712_s12 + $0x4] ss:$20 sps:$4 sm:$0xff]   ;;  %v1517_v34 = vld [vmem:[%s1712_s12 + $0x8] ss:$20 sps:$4 sm:$0xff]  }
  0x13   : > { %1391 = vmatprep.subr.bf16.mxu1 %v1495_v13  ;;  %v1519_v35 = vld [vmem:[%s1712_s12 + $0xc] ss:$20 sps:$4 sm:$0xff]   ;;  %805 = vmatprep.mubr.bf16.mxu0 %v1516_v33  ;;  %v1523_v38 = vld [vmem:[%s1712_s12 + $0x34] ss:$20 sps:$4 sm:$0xff]   ;;  %v1526_v41 = vld [vmem:[%s1712_s12 + $0x30] ss:$20 sps:$4 sm:$0xff]  }
  0x14   : > { %870 = vmatprep.mubr.bf16.mxu1 %v1519_v35  ;;  %v1521_v37 = vld [vmem:[%s1712_s12 + $0x2c] ss:$20 sps:$4 sm:$0xff]   ;;  %v1525_v40 = vld [vmem:[%s1712_s12 + $0x28] ss:$20 sps:$4 sm:$0xff]   ;;  %v1534_v44 = vld [vmem:[%s1779_s1 + $0x110] sm:$0xff]  }
  0x15   : > { %1352 = vmatpush3.bf16.msra.mxu0 %v1496_v14  ;;  %v1528_v42 = vld [vmem:[%s1712_s12 + $0x54] ss:$20 sps:$4 sm:$0xff]   ;;  %v1530_v43 = vld [vmem:[%s1712_s12 + $0x5c] ss:$20 sps:$4 sm:$0xff]   ;;  %v1533_v47 = vld [vmem:[%s1712_s12 + $0x58] ss:$20 sps:$4 sm:$0xff]  }
  0x16   : > { %1392 = vmatpush3.bf16.msra.mxu1 %v1497_v15  ;;  %1353 = vmatprep.subr.bf16.mxu0 %v1498_v16  ;;  %v1541_v45 = vld [vmem:[%s1779_s1 + $0x118] sm:$0xff]   ;;  %v1532_v46 = vld [vmem:[%s1712_s12 + $0x50] ss:$20 sps:$4 sm:$0xff]   ;;  %v1540_v51 = vld [vmem:[%s1712_s12 + $0x80] ss:$20 sps:$4 sm:$0xff]  }
  0x17   : > { %1393 = vmatprep.subr.bf16.mxu1 %v1499_v17  ;;  %v1535_v48 = vld [vmem:[%s1712_s12 + $0x7c] ss:$20 sps:$4 sm:$0xff]   ;;  %v1537_v49 = vld [vmem:[%s1712_s12 + $0x84] ss:$20 sps:$4 sm:$0xff]   ;;  %v1543_v53 = vld [vmem:[%s1712_s12 + $0x60] ss:$20 sps:$4 sm:$0xff]  }
  0x18   : > { %v1539_v50 = vld [vmem:[%s1712_s12 + $0x78] ss:$20 sps:$4 sm:$0xff]   ;;  %v1542_v52 = vld [vmem:[%s1712_s12 + $0x10] ss:$20 sps:$4 sm:$0xff]   ;;  %v1545_v55 = vld [vmem:[%s1712_s12 + $0x88] ss:$20 sps:$4 sm:$0xff]  }
  0x19   : > { %1354 = vmatpush3.bf16.msra.mxu0 %v1500_v18  ;;  %v1544_v54 = vld [vmem:[%s1712_s12 + $0x38] ss:$20 sps:$4 sm:$0xff]  }
  0x1a   : > { %1394 = vmatpush3.bf16.msra.mxu1 %v1501_v19  ;;  %1355 = vmatprep.subr.bf16.mxu0 %v1502_v20 }
  0x1b   : > { %1395 = vmatprep.subr.bf16.mxu1 %v1503_v21 }
  0x1d   : > { %1356 = vmatpush3.bf16.msra.mxu0 %v1504_v22 }
  0x1e   : > { %1396 = vmatpush3.bf16.msra.mxu1 %v1505_v23  ;;  %1357 = vmatprep.subr.bf16.mxu0 %v1506_v24 }
  0x1f   : > { %1397 = vmatprep.subr.bf16.mxu1 %v1507_v25 }
  0x21   : > { %1358 = vmatpush3.bf16.msra.mxu0 %v1508_v26 }
  0x22   : > { %1398 = vmatpush3.bf16.msra.mxu1 %v1509_v27  ;;  %1359 = vmatprep.subr.bf16.mxu0 %v1510_v28 }
  0x23   : > { %1399 = vmatprep.subr.bf16.mxu1 %v1511_v29 }
  0x25   : > { %1360 = vmatpush3.bf16.msra.mxu0 %v1512_v30 }
  0x26   : > { %1400 = vmatpush3.bf16.msra.mxu1 %v1513_v31  ;;  %1433 = vmatprep.subr.bf16.mxu0 %v1520_v36 }
  0x27   : > { %1449 = vmatprep.subr.bf16.mxu1 %v1520_v36 }
  0x28   : > { %806 = vmatmul.mubr.bf16.vlgmr.msra.gmra.mrb[0].mxu0 %v1514_v32 }
  0x29   : > { %871 = vmatmul.mubr.bf16.vlgmr.msra.gmra.mrb[0].mxu1 %v1517_v34  ;;  %1434 = vmatpush3.bf16.msra.mxu0 %v1520_v36 }
  0x2a   : > { %1453 = vmatpush3.bf16.msra.mxu1 %v1520_v36  ;;  %813 = vmatprep.mubr.bf16.mxu0 %v1521_v37 }
  0x2b   : > { %878 = vmatprep.mubr.bf16.mxu1 %v1523_v38  ;;  %1435 = vmatprep.subr.bf16.mxu0 %v1527_v39 }
  0x2c   : > { %1450 = vmatprep.subr.bf16.mxu1 %v1527_v39 }
  0x2d   : > { %1436 = vmatpush3.bf16.msra.mxu0 %v1527_v39 }
  0x2e   : > { %1454 = vmatpush3.bf16.msra.mxu1 %v1527_v39  ;;  %1437 = vmatprep.subr.bf16.mxu0 %v1534_v44 }
  0x2f   : > { %1451 = vmatprep.subr.bf16.mxu1 %v1534_v44 }
  0x30   : > { %814 = vmatmul.mubr.bf16.gmra.mrb[4].mxu0 %v1525_v40 }
  0x31   : > { %879 = vmatmul.mubr.bf16.gmra.mrb[4].mxu1 %v1526_v41  ;;  %821 = vmatprep.mubr.bf16.mxu0 %v1528_v42 }
  0x32   : > { %886 = vmatprep.mubr.bf16.mxu1 %v1530_v43  ;;  %1438 = vmatpush3.bf16.msra.mxu0 %v1534_v44 }
  0x33   : > { %1455 = vmatpush3.bf16.msra.mxu1 %v1534_v44  ;;  %1439 = vmatprep.subr.bf16.mxu0 %v1541_v45 }
  0x34   : > { %1452 = vmatprep.subr.bf16.mxu1 %v1541_v45 }
  0x36   : > { %1440 = vmatpush3.bf16.msra.mxu0 %v1541_v45 }
  0x37   : > { %1456 = vmatpush3.bf16.msra.mxu1 %v1541_v45 }
  0x38   : > { %822 = vmatmul.mubr.bf16.gmra.mrb[8].mxu0 %v1532_v46  ;;  %v1339_v46 = vld [vmem:[%s316_s7 + $0x8] sm:$0xff]  }
  0x39   : > { %887 = vmatmul.mubr.bf16.gmra.mrb[8].mxu1 %v1533_v47  ;;  %829 = vmatprep.mubr.bf16.mxu0 %v1535_v48  ;;  %v1341_v48 = vld [vmem:[%s316_s7 + $0x18] sm:$0xff]  }
  0x3a   : > { %894 = vmatprep.mubr.bf16.mxu1 %v1537_v49  ;;  %v1304_v49 = vld [vmem:[%s316_s7] sm:$0xff]  }
  0x40   : > { %830 = vmatmul.mubr.bf16.gmra.mrb[12].mxu0 %v1539_v50  ;;  %v1340_v50 = vld [vmem:[%s316_s7 + $0x10] sm:$0xff]  }
  0x41   : > { %895 = vmatmul.mubr.bf16.gmra.mrb[12].mxu1 %v1540_v51  ;;  %1441 = vmatprep.mubr.msk.bf16.mxu0 %vm760_vm0, %v1542_v52 }
  0x42   : > { %1445 = vmatprep.mubr.msk.bf16.mxu1 %vm760_vm0, %v1543_v53  ;;  %v1284_v53 = vld [vmem:[%s1780_s2] ss:$0 sm:$0xff] }
  0x48   : > { %1442 = vmatmul.mubr.msk.bf16.vlgmr.msra.gmra.mrb[16].mxu0 %vm760_vm0, %v1544_v54  ;;  %v1309_v54 = vunpack.c.l.bf16 %v1339_v46 }
  0x49   : > { %1446 = vmatmul.mubr.msk.bf16.vlgmr.msra.gmra.mrb[16].mxu1 %vm760_vm0, %v1545_v55  ;;  %v1317_v55 = vunpack.c.l.bf16 %v1341_v48 }
  0xfb   : > { %v1361_v56 = vpop.f32.mrb[0].mxu0 }
  0xfc   : > { %v1401_v57 = vpop.f32.mrb[0].mxu1  ;;  %v1362_v58 = vpop.f32.mrb[1].mxu0 }
  0xfd   : > { %v1363_v59 = vadd.f32 %v1362_v58, %v1361_v56  ;;  %v1402_v60 = vpop.f32.mrb[1].mxu1  ;;  %v1364_v61 = vpop.f32.mrb[2].mxu0 }
  0xfe   : > { %v1403_v62 = vadd.f32 %v1402_v60, %v1401_v57  ;;  %v1404_v63 = vpop.f32.mrb[2].mxu1  ;;  %v1365_v0 = vpop.f32.mrb[3].mxu0  ;;  %v1313_v60 = vunpack.c.l.bf16 %v1340_v50 }
  0xff   : > { %v1366_v1 = vadd.f32 %v1365_v0, %v1364_v61  ;;  %v1405_v2 = vpop.f32.mrb[3].mxu1  ;;  %v1310_v61 = vunpack.c.h.bf16 %v1339_v46 }
 0x100   : > { %v1406_v3 = vadd.f32 %v1405_v2, %v1404_v63  ;;  %v873_v4 = vadd.f32 %v1403_v62, %v1363_v59  ;;  %v1305_v59 = vunpack.c.l.bf16 %v1304_v49  ;;  %v1318_v2 = vunpack.c.h.bf16 %v1341_v48 }
 0x102   : > { %v1752_v5 = vadd.f32 %v1406_v3, %v1366_v1  ;;  %v1306_v3 = vunpack.c.h.bf16 %v1304_v49 }
 0x103   : > { %v1367_v6 = vpop.f32.mrb[4].mxu0 }
 0x104   : > { %v1407_v7 = vpop.f32.mrb[4].mxu1  ;;  %v1368_v8 = vpop.f32.mrb[5].mxu0 }
 0x105   : > { %v1369_v9 = vadd.f32 %v1368_v8, %v1367_v6  ;;  %v1408_v10 = vpop.f32.mrb[5].mxu1  ;;  %v1370_v11 = vpop.f32.mrb[6].mxu0 }
 0x106   : > { %v1409_v12 = vadd.f32 %v1408_v10, %v1407_v7  ;;  %v1410_v13 = vpop.f32.mrb[6].mxu1  ;;  %v1371_v14 = vpop.f32.mrb[7].mxu0 }
 0x107   : > { %v1372_v15 = vadd.f32 %v1371_v14, %v1370_v11  ;;  %v1411_v16 = vpop.f32.mrb[7].mxu1  ;;  %v1314_v11 = vunpack.c.h.bf16 %v1340_v50 }
 0x108   : > { %v1412_v17 = vadd.f32 %v1411_v16, %v1410_v13  ;;  %v881_v18 = vadd.f32 %v1409_v12, %v1369_v9 }
 0x10a   : > { %v884_v19 = vadd.f32 %v1412_v17, %v1372_v15 }
 0x10b   : > { %v1373_v20 = vpop.f32.mrb[8].mxu0 }
 0x10c   : > { %v1413_v21 = vpop.f32.mrb[8].mxu1  ;;  %v1374_v22 = vpop.f32.mrb[9].mxu0 }
 0x10d   : > { %v1375_v23 = vadd.f32 %v1374_v22, %v1373_v20  ;;  %v1414_v24 = vpop.f32.mrb[9].mxu1  ;;  %v1376_v25 = vpop.f32.mrb[10].mxu0 }
 0x10e   : > { %v1415_v26 = vadd.f32 %v1414_v24, %v1413_v21  ;;  %v1416_v27 = vpop.f32.mrb[10].mxu1  ;;  %v1377_v28 = vpop.f32.mrb[11].mxu0 }
 0x10f   : > { %v1378_v29 = vadd.f32 %v1377_v28, %v1376_v25  ;;  %v1417_v30 = vpop.f32.mrb[11].mxu1 }
 0x110   : > { %v1418_v31 = vadd.f32 %v1417_v30, %v1416_v27  ;;  %v889_v32 = vadd.f32 %v1415_v26, %v1375_v23 }
 0x112   : > { %v892_v33 = vadd.f32 %v1418_v31, %v1378_v29 }
 0x113   : > { %v1379_v34 = vpop.f32.mrb[12].mxu0 }
 0x114   : > { %v1419_v35 = vpop.f32.mrb[12].mxu1  ;;  %v1380_v36 = vpop.f32.mrb[13].mxu0 }
 0x115   : > { %v1381_v37 = vadd.f32 %v1380_v36, %v1379_v34  ;;  %v1420_v38 = vpop.f32.mrb[13].mxu1  ;;  %v1382_v39 = vpop.f32.mrb[14].mxu0 }
 0x116   : > { %v1421_v40 = vadd.f32 %v1420_v38, %v1419_v35  ;;  %v1422_v41 = vpop.f32.mrb[14].mxu1  ;;  %v1383_v42 = vpop.f32.mrb[15].mxu0 }
 0x117   : > { %v1384_v43 = vadd.f32 %v1383_v42, %v1382_v39  ;;  %v1423_v44 = vpop.f32.mrb[15].mxu1 }
 0x118   : > { %v1424_v45 = vadd.f32 %v1423_v44, %v1422_v41  ;;  %v897_v47 = vadd.f32 %v1421_v40, %v1381_v37 }
 0x11a   : > { %v900_v51 = vadd.f32 %v1424_v45, %v1384_v43 }
 0x11b   : > { %v1443_v52 = vpop.f32.mrb[16].mxu0 }
 0x11c   : > { %v946_v56 = vadd.f32 %v1443_v52, %v881_v18  ;;  %v1447_v57 = vpop.f32.mrb[16].mxu1  ;;  %v937_v58 = vpop.f32.mrb[17].mxu0 }
 0x11d   : > { %v962_v62 = vadd.f32 %v1447_v57, %v897_v47  ;;  %v938_v63 = vadd.f32 %v937_v58, %v873_v4  ;;  %v953_v0 = vpop.f32.mrb[17].mxu1  ;;  %v1444_v1 = vpop.f32.mrb[18].mxu0 }
 0x11e   : > { %v1004_v6 = vadd.f32 %v1284_v53, %v946_v56  ;;  %v954_v7 = vadd.f32 %v953_v0, %v889_v32  ;;  %v949_v8 = vadd.f32 %v1444_v1, %v884_v19  ;;  %v1448_v9 = vpop.f32.mrb[18].mxu1  ;;  %v940_v10 = vpop.f32.mrb[19].mxu0 }
 0x11f   : > { %v1008_v12 = vadd.f32 %v1284_v53, %v962_v62  ;;  %v1002_v13 = vadd.f32 %v1284_v53, %v938_v63  ;;  %v965_v14 = vadd.f32 %v1448_v9, %v900_v51  ;;  %v941_v15 = vadd.f32 %v940_v10, %v1752_v5  ;;  %v956_v16 = vpop.f32.mrb[19].mxu1 }
 0x120   : > { %v1028_v17 = vadd.f32 %v1309_v54, %v1004_v6  ;;  %v1006_v18 = vadd.f32 %v1284_v53, %v954_v7  ;;  %v1005_v20 = vadd.f32 %v1284_v53, %v949_v8  ;;  %v957_v4 = vadd.f32 %v956_v16, %v892_v33 }
 0x121   : > { %v1032_v21 = vadd.f32 %v1317_v55, %v1008_v12  ;;  %v1026_v22 = vadd.f32 %v1305_v59, %v1002_v13  ;;  %v1009_v23 = vadd.f32 %v1284_v53, %v965_v14  ;;  %v1003_v24 = vadd.f32 %v1284_v53, %v941_v15 }
 0x122   : > { %v1030_v25 = vadd.f32 %v1313_v60, %v1006_v18  ;;  %v1029_v19 = vadd.f32 %v1310_v61, %v1005_v20  ;;  %v1007_v26 = vadd.f32 %v1284_v53, %v957_v4  ;;  %v1036_v29 = vmax.f32 %v1028_v17, 0.0 }
 0x123   : > { %v1033_v27 = vadd.f32 %v1318_v2, %v1009_v23  ;;  %v1027_v28 = vadd.f32 %v1306_v3, %v1003_v24  ;;  %v1040_v32 = vmax.f32 %v1032_v21, 0.0  ;;  %v1034_v5 = vmax.f32 %v1026_v22, 0.0 }
 0x124   : > { %v1037_v30 = vmax.f32 %v1029_v19, 0.0  ;;  %v1031_v31 = vadd.f32 %v1314_v11, %v1007_v26  ;;  %v1038_v35 = vmax.f32 %v1030_v25, 0.0 }
 0x125   : > { %v1041_v33 = vmax.f32 %v1033_v27, 0.0  ;;  %v1035_v34 = vmax.f32 %v1027_v28, 0.0 }
 0x126   : > { %v1327_v36 = vpack.c.bf16 %v1037_v30, %v1036_v29  ;;  %v1039_v37 = vmax.f32 %v1031_v31, 0.0 }
 0x127   : > { %v1337_v38 = vpack.c.bf16 %v1041_v33, %v1040_v32  ;;  %v1322_v39 = vpack.c.bf16 %v1035_v34, %v1034_v5 }
 0x128   : > { %1342 = vst [vmem:[%s325_s11 + $0x8] sm:$0xff] %v1327_v36   ;;  %v1332_v40 = vpack.c.bf16 %v1039_v37, %v1038_v35 }
 0x129   : > { %1344 = vst [vmem:[%s325_s11 + $0x18] sm:$0xff] %v1337_v38   ;;  %1323 = vst [vmem:[%s325_s11] sm:$0xff] %v1322_v39  }
 0x12a   : > { %1343 = vst [vmem:[%s325_s11 + $0x10] sm:$0xff] %v1332_v40  }
 0x12b PF: > { %s14_s17 = sadd.s32 1, %s1568_s17   ;;  %s1783_s15 = smov %s1564_s16 }
 0x12c   : > { %p11_p5 = scmp.ge.s32.totalorder %s14_s17, 4   ;;  %s1784_s16 = smov %s1786_s18 }
 0x12e   :  { %13 = sbr.rel (!%p11_p5) target bundleno = 2 (0x2), region = 83 }

// kernel: simple_dog_emotion_model.28
= control target key start
LH: loop header
LB: loop body
LE: loop exit
PB: predicated region body
PF: predicated region fallthrough
CT: control target
= control target key end

     0   :  { %s1108_s12 = smov 0   ;;  %s1110_s13 = smov 0   ;;  %s1259_s0 = inlined_call_operand.vmem [shape: bf16[32,576], index: 0, kind: input, shape index: {}]   ;;  %s1260_s1 = inlined_call_operand.vmem [shape: bf16[576,128], index: 1, kind: input, shape index: {}]   ;;  %s1261_s2 = inlined_call_operand.vmem [shape: f32[1,128], index: 2, kind: input, shape index: {}]   ;;  %s1262_s3 = inlined_call_operand.vmem [shape: bf16[32,128], index: 3, kind: output, shape index: {}]  }
   0x1   :  { %s1112_s14 = smov 0  }
   0x2 LB: > { %s32_s15 = sadd.s32 1, %s1080_s13  ;;  %p872_p0 = scmp.ge.s32.totalorder %s1084_s14, 1  ;;  %s1084_s14 = sphi %s1112_s14, %s13_s14   ;;  %s1080_s13 = sphi %s1110_s13, %s1264_s13   ;;  %s1076_s12 = sphi %s1108_s12, %s1263_s12  }
   0x3   : > { %p34_p1 = scmp.ge.s32.totalorder %s32_s15, 2  ;;  %p191_p2 = scmp.lt.s32.totalorder %s1084_s14, 3 }
   0x5   : > { %s1266_s15 = smov (%p34_p1, %s32_s15), 0  ;;  %p192_p3 = pnand %p872_p0, %p191_p2 }
   0x6   : > { %v1019_v0 = vld [vmem:[%s1260_s1 + $0x40] sm:$0xff] (!%p192_p3)   ;;  %v1023_v4 = vld [vmem:[%s1260_s1 + $0x48] sm:$0xff] (!%p192_p3)   ;;  %v1027_v8 = vld [vmem:[%s1260_s1 + $0x50] sm:$0xff] (!%p192_p3)   ;;  %s873_s23 = sshll.u32 (!%p192_p3), %s1076_s12, 1  ;;  %v1086_v34 = vmov (!%p192_p3), 0.0   ;;  %vm1087_vm0 = vmmov (!%p192_p3), 0  }
   0x7   : > { %195 = sbr.rel (%p192_p3) target bundleno = 279 (0x117), region = 32  ;;  %v1020_v1 = vld [vmem:[%s1260_s1 + $0xc0] sm:$0xff] (!%p192_p3)   ;;  %931 = vmatprep.subr.bf16.mxu0 (!%p192_p3), %v1019_v0  ;;  %v1024_v5 = vld [vmem:[%s1260_s1 + $0xc8] sm:$0xff] (!%p192_p3)   ;;  %v1028_v9 = vld [vmem:[%s1260_s1 + $0xd0] sm:$0xff] (!%p192_p3)   ;;  %p236_p4 = scmp.lt.s32.totalorder (!%p192_p3), %s873_s23, 3  ;;  %vm595_vm1 = vcmask (!%p192_p3), 523264  }
   0x8   : > { %v1021_v2 = vld [vmem:[%s1260_s1] sm:$0xff] (!%p192_p3)   ;;  %953 = vmatprep.subr.bf16.mxu1 (!%p192_p3), %v1020_v1  ;;  %v1025_v6 = vld [vmem:[%s1260_s1 + $0x8] sm:$0xff] (!%p192_p3)   ;;  %v1029_v10 = vld [vmem:[%s1260_s1 + $0x10] sm:$0xff] (!%p192_p3)  }
   0x9   : > { %v1022_v3 = vld [vmem:[%s1260_s1 + $0x80] sm:$0xff] (!%p192_p3)   ;;  %932 = vmatpush3.bf16.msra.mxu0 (!%p192_p3), %v1021_v2  ;;  %v1026_v7 = vld [vmem:[%s1260_s1 + $0x88] sm:$0xff] (!%p192_p3)   ;;  %v1030_v11 = vld [vmem:[%s1260_s1 + $0x90] sm:$0xff] (!%p192_p3)  }
   0xa   : > { %954 = vmatpush3.bf16.msra.mxu1 (!%p192_p3), %v1022_v3  ;;  %933 = vmatprep.subr.bf16.mxu0 (!%p192_p3), %v1023_v4  ;;  %v1031_v12 = vld [vmem:[%s1260_s1 + $0x58] sm:$0xff] (!%p192_p3)   ;;  %v1035_v16 = vld [vmem:[%s1260_s1 + $0x60] sm:$0xff] (!%p192_p3)   ;;  %v1039_v20 = vld [vmem:[%s1260_s1 + $0x68] sm:$0xff] (!%p192_p3)  }
   0xb   : > { %955 = vmatprep.subr.bf16.mxu1 (!%p192_p3), %v1024_v5  ;;  %v1032_v13 = vld [vmem:[%s1260_s1 + $0xd8] sm:$0xff] (!%p192_p3)   ;;  %v1036_v17 = vld [vmem:[%s1260_s1 + $0xe0] sm:$0xff] (!%p192_p3)   ;;  %v1040_v21 = vld [vmem:[%s1260_s1 + $0xe8] sm:$0xff] (!%p192_p3)  }
   0xc   : > { %v1033_v14 = vld [vmem:[%s1260_s1 + $0x18] sm:$0xff] (!%p192_p3)   ;;  %v1037_v18 = vld [vmem:[%s1260_s1 + $0x20] sm:$0xff] (!%p192_p3)   ;;  %v1041_v22 = vld [vmem:[%s1260_s1 + $0x28] sm:$0xff] (!%p192_p3)  }
   0xd   : > { %934 = vmatpush3.bf16.msra.mxu0 (!%p192_p3), %v1025_v6  ;;  %v1034_v15 = vld [vmem:[%s1260_s1 + $0x98] sm:$0xff] (!%p192_p3)   ;;  %v1038_v19 = vld [vmem:[%s1260_s1 + $0xa0] sm:$0xff] (!%p192_p3)   ;;  %v1042_v23 = vld [vmem:[%s1260_s1 + $0xa8] sm:$0xff] (!%p192_p3)  }
   0xe   : > { %956 = vmatpush3.bf16.msra.mxu1 %v1026_v7  ;;  %935 = vmatprep.subr.bf16.mxu0 %v1027_v8  ;;  %s1268_s23 = smov (!%p236_p4, %s873_s23), 3  ;;  %v1043_v24 = vld [vmem:[%s1260_s1 + $0x70] sm:$0xff]   ;;  %v1047_v28 = vld [vmem:[%s1260_s1 + $0x78] sm:$0xff]   ;;  %v1057_v37 = vld [vmem:[%s1260_s1 + $0x100] sm:$0xff]  }
   0xf   : > { %957 = vmatprep.subr.bf16.mxu1 %v1028_v9  ;;  %v1044_v25 = vld [vmem:[%s1260_s1 + $0xf0] sm:$0xff]   ;;  %s992_s22 = smul.u32 20, %s1268_s23  ;;  %v1048_v29 = vld [vmem:[%s1260_s1 + $0xf8] sm:$0xff]   ;;  %v1058_v38 = vld [vmem:[%s1260_s1 + $0x108] sm:$0xff]   ;;  %s876_s26 = sshll.u32 %s1268_s23, 2 }
  0x10   : > { %v1045_v26 = vld [vmem:[%s1260_s1 + $0x30] sm:$0xff]   ;;  %v1049_v30 = vld [vmem:[%s1260_s1 + $0x38] sm:$0xff]   ;;  %v919_v57 = vld [vmem:[%s1261_s2] ss:$0 sm:$0xff]  ;;  %s265_s29 = scalar_lea.vmem %s1262_s3, %s876_s26 }
  0x11   : > { %936 = vmatpush3.bf16.msra.mxu0 %v1029_v10  ;;  %v1046_v27 = vld [vmem:[%s1260_s1 + $0xb0] sm:$0xff]   ;;  %s243_s6 = scalar_lea.vmem %s1259_s0, %s992_s22  ;;  %v1050_v31 = vld [vmem:[%s1260_s1 + $0xb8] sm:$0xff]  }
  0x12   : > { %958 = vmatpush3.bf16.msra.mxu1 %v1030_v11  ;;  %937 = vmatprep.subr.bf16.mxu0 %v1031_v12  ;;  %v1051_v32 = vld [vmem:[%s243_s6] ss:$20 sps:$4 sm:$0xff]   ;;  %v1053_v33 = vld [vmem:[%s243_s6 + $0x4] ss:$20 sps:$4 sm:$0xff]   ;;  %v1054_v35 = vld [vmem:[%s243_s6 + $0x8] ss:$20 sps:$4 sm:$0xff]  }
  0x13   : > { %959 = vmatprep.subr.bf16.mxu1 %v1032_v13  ;;  %v1056_v36 = vld [vmem:[%s243_s6 + $0xc] ss:$20 sps:$4 sm:$0xff]   ;;  %631 = vmatprep.mubr.bf16.mxu0 %v1053_v33  ;;  %v1059_v39 = vld [vmem:[%s1260_s1 + $0x110] sm:$0xff]   ;;  %v1060_v40 = vld [vmem:[%s1260_s1 + $0x118] sm:$0xff]  }
  0x14   : > { %672 = vmatprep.mubr.bf16.mxu1 %v1056_v36  ;;  %v1061_v41 = vld [vmem:[%s243_s6 + $0x10] ss:$20 sps:$4 sm:$0xff]  }
  0x15   : > { %938 = vmatpush3.bf16.msra.mxu0 %v1033_v14 }
  0x16   : > { %960 = vmatpush3.bf16.msra.mxu1 %v1034_v15  ;;  %939 = vmatprep.subr.bf16.mxu0 %v1035_v16 }
  0x17   : > { %961 = vmatprep.subr.bf16.mxu1 %v1036_v17 }
  0x19   : > { %940 = vmatpush3.bf16.msra.mxu0 %v1037_v18 }
  0x1a   : > { %962 = vmatpush3.bf16.msra.mxu1 %v1038_v19  ;;  %941 = vmatprep.subr.bf16.mxu0 %v1039_v20 }
  0x1b   : > { %963 = vmatprep.subr.bf16.mxu1 %v1040_v21 }
  0x1d   : > { %942 = vmatpush3.bf16.msra.mxu0 %v1041_v22 }
  0x1e   : > { %964 = vmatpush3.bf16.msra.mxu1 %v1042_v23  ;;  %943 = vmatprep.subr.bf16.mxu0 %v1043_v24 }
  0x1f   : > { %965 = vmatprep.subr.bf16.mxu1 %v1044_v25 }
  0x21   : > { %944 = vmatpush3.bf16.msra.mxu0 %v1045_v26 }
  0x22   : > { %966 = vmatpush3.bf16.msra.mxu1 %v1046_v27  ;;  %945 = vmatprep.subr.bf16.mxu0 %v1047_v28 }
  0x23   : > { %967 = vmatprep.subr.bf16.mxu1 %v1048_v29 }
  0x25   : > { %946 = vmatpush3.bf16.msra.mxu0 %v1049_v30 }
  0x26   : > { %968 = vmatpush3.bf16.msra.mxu1 %v1050_v31  ;;  %980 = vmatprep.subr.bf16.mxu0 %v1086_v34 }
  0x28   : > { %632 = vmatmul.mubr.bf16.vlgmr.msra.gmra.mrb[0].mxu0 %v1051_v32 }
  0x29   : > { %673 = vmatmul.mubr.bf16.vlgmr.msra.gmra.mrb[0].mxu1 %v1054_v35  ;;  %981 = vmatpush3.bf16.msra.mxu0 %v1057_v37 }
  0x2a   : > { %982 = vmatprep.subr.bf16.mxu0 %v1086_v34  ;;  %988 = vmatprep.mubr.msk.bf16.mxu0 %vm1087_vm0, %v1086_v34 }
  0x2d   : > { %983 = vmatpush3.bf16.msra.mxu0 %v1058_v38 }
  0x2e   : > { %984 = vmatprep.subr.bf16.mxu0 %v1086_v34 }
  0x31   : > { %985 = vmatpush3.bf16.msra.mxu0 %v1059_v39 }
  0x32   : > { %986 = vmatprep.subr.bf16.mxu0 %v1086_v34 }
  0x35   : > { %987 = vmatpush3.bf16.msra.mxu0 %v1060_v40 }
  0x38   : > { %989 = vmatmul.mubr.msk.bf16.vlgmr.msra.gmra.mrb[4].mxu0 %vm595_vm1, %v1061_v41 }
  0xfb   : > { %v947_v42 = vpop.f32.mrb[0].mxu0 }
  0xfc   : > { %v969_v43 = vpop.f32.mrb[0].mxu1  ;;  %v948_v44 = vpop.f32.mrb[1].mxu0 }
  0xfd   : > { %v949_v45 = vadd.f32 %v948_v44, %v947_v42  ;;  %v970_v46 = vpop.f32.mrb[1].mxu1  ;;  %v950_v47 = vpop.f32.mrb[2].mxu0 }
  0xfe   : > { %v971_v48 = vadd.f32 %v970_v46, %v969_v43  ;;  %v972_v49 = vpop.f32.mrb[2].mxu1  ;;  %v951_v50 = vpop.f32.mrb[3].mxu0 }
  0xff   : > { %v952_v51 = vadd.f32 %v951_v50, %v950_v47  ;;  %v973_v52 = vpop.f32.mrb[3].mxu1 }
 0x100   : > { %v974_v53 = vadd.f32 %v973_v52, %v972_v49  ;;  %v675_v54 = vadd.f32 %v971_v48, %v949_v45 }
 0x102   : > { %v678_v55 = vadd.f32 %v974_v53, %v952_v51 }
 0x10b   : > { %v715_v56 = vpop.f32.mrb[4].mxu0 }
 0x10c   : > { %v716_v58 = vadd.f32 %v715_v56, %v675_v54  ;;  %v990_v59 = vpop.f32.mrb[5].mxu0 }
 0x10d   : > { %v718_v60 = vpop.f32.mrb[6].mxu0 }
 0x10e   : > { %v738_v61 = vadd.f32 %v919_v57, %v716_v58  ;;  %v719_v62 = vadd.f32 %v718_v60, %v678_v55  ;;  %v991_v63 = vpop.f32.mrb[7].mxu0 }
 0x110   : > { %v739_v0 = vadd.f32 %v919_v57, %v719_v62  ;;  %v740_v1 = vmax.f32 %v738_v61, 0.0 }
 0x112   : > { %v741_v2 = vmax.f32 %v739_v0, 0.0 }
 0x114   : > { %v929_v3 = vpack.c.bf16 %v741_v2, %v740_v1 }
 0x116   : > { %930 = vst [vmem:[%s265_s29] sm:$0xff] %v929_v3  }
 0x117 PF: > { %s13_s14 = sadd.s32 1, %s1084_s14   ;;  %s1263_s12 = smov %s1080_s13 }
 0x118   : > { %p10_p5 = scmp.ge.s32.totalorder %s13_s14, 4   ;;  %s1264_s13 = smov %s1266_s15 }
 0x11a   :  { %12 = sbr.rel (!%p10_p5) target bundleno = 2 (0x2), region = 76 }

// kernel: simple_dog_emotion_model.29
= control target key start
LH: loop header
LB: loop body
LE: loop exit
PB: predicated region body
PF: predicated region fallthrough
CT: control target
= control target key end

     0   :  { %s614_s12 = smov 0   ;;  %s616_s13 = smov 0   ;;  %s662_s0 = inlined_call_operand.vmem [shape: bf16[32,64], index: 0, kind: input, shape index: {}]   ;;  %s663_s1 = inlined_call_operand.vmem [shape: bf16[64,128], index: 1, kind: input, shape index: {}]   ;;  %s664_s2 = inlined_call_operand.vmem [shape: f32[1,128], index: 2, kind: input, shape index: {}]   ;;  %s665_s3 = inlined_call_operand.vmem [shape: bf16[32,128], index: 3, kind: output, shape index: {}]  }
   0x1   :  { %s618_s14 = smov 0  }
   0x2 LB: > { %s32_s15 = sadd.s32 1, %s586_s13  ;;  %p497_p0 = scmp.ge.s32.totalorder %s590_s14, 1  ;;  %s590_s14 = sphi %s618_s14, %s13_s14   ;;  %s586_s13 = sphi %s616_s13, %s667_s13   ;;  %s582_s12 = sphi %s614_s12, %s666_s12  }
   0x3   : > { %p34_p1 = scmp.ge.s32.totalorder %s32_s15, 2  ;;  %p188_p2 = scmp.lt.s32.totalorder %s590_s14, 3 }
   0x5   : > { %s669_s15 = smov (%p34_p1, %s32_s15), 0  ;;  %p189_p3 = pnand %p497_p0, %p188_p2 }
   0x6   : > { %v563_v0 = vld [vmem:[%s663_s1] sm:$0xff] (!%p189_p3)   ;;  %v592_v1 = vmov (!%p189_p3), 0.0   ;;  %v564_v2 = vld [vmem:[%s663_s1 + $0x8] sm:$0xff] (!%p189_p3)   ;;  %vm593_vm0 = vmmov (!%p189_p3), 0   ;;  %s498_s20 = sshll.u32 (!%p189_p3), %s582_s12, 1  ;;  %v565_v3 = vld [vmem:[%s663_s1 + $0x10] sm:$0xff] (!%p189_p3)  }
   0x7   : > { %192 = sbr.rel (%p189_p3) target bundleno = 242 (0xf2), region = 32  ;;  %525 = vmatprep.subr.bf16.mxu0 (!%p189_p3), %v592_v1  ;;  %533 = vmatprep.mubr.msk.bf16.mxu0 (!%p189_p3), %vm593_vm0, %v592_v1  ;;  %p230_p4 = scmp.lt.s32.totalorder (!%p189_p3), %s498_s20, 3  ;;  %v566_v4 = vld [vmem:[%s663_s1 + $0x18] sm:$0xff] (!%p189_p3)   ;;  %vm307_vm1 = vcmask (!%p189_p3), 523264   ;;  %v508_v7 = vld [vmem:[%s664_s2] ss:$0 sm:$0xff] (!%p189_p3) }
   0x8   : > { %526 = vmatpush3.bf16.msra.mxu0 (!%p189_p3), %v563_v0 }
   0x9   : > { %527 = vmatprep.subr.bf16.mxu0 (!%p189_p3), %v592_v1 }
   0xc   : > { %528 = vmatpush3.bf16.msra.mxu0 (!%p189_p3), %v564_v2 }
   0xd   : > { %529 = vmatprep.subr.bf16.mxu0 (!%p189_p3), %v592_v1 }
   0xe   : > { %s671_s20 = smov (!%p230_p4, %s498_s20), 3 }
   0xf   : > { %s499_s23 = sshll.u32 %s671_s20, 2 }
  0x10   : > { %s236_s26 = scalar_lea.vmem %s662_s0, %s499_s23  ;;  %530 = vmatpush3.bf16.msra.mxu0 %v565_v3  ;;  %s257_s6 = scalar_lea.vmem %s665_s3, %s499_s23 }
  0x11   : > { %531 = vmatprep.subr.bf16.mxu0 %v592_v1  ;;  %v567_v5 = vld [vmem:[%s236_s26] sm:$0xff]  }
  0x14   : > { %532 = vmatpush3.bf16.msra.mxu0 %v566_v4 }
  0x17   : > { %534 = vmatmul.mubr.msk.bf16.vlgmr.msra.gmra.mrb[0].mxu0 %vm307_vm1, %v567_v5 }
  0xea   : > { %v345_v6 = vpop.f32.mrb[0].mxu0 }
  0xeb   : > { %v535_v8 = vpop.f32.mrb[1].mxu0  ;;  %v368_v10 = vadd.f32 %v508_v7, %v345_v6 }
  0xec   : > { %v348_v9 = vpop.f32.mrb[2].mxu0 }
  0xed   : > { %v369_v11 = vadd.f32 %v508_v7, %v348_v9  ;;  %v536_v12 = vpop.f32.mrb[3].mxu0 }
  0xef   : > { %v518_v13 = vpack.c.bf16 %v369_v11, %v368_v10 }
  0xf1   : > { %519 = vst [vmem:[%s257_s6] sm:$0xff] %v518_v13  }
  0xf2 PF: > { %s13_s14 = sadd.s32 1, %s590_s14   ;;  %s666_s12 = smov %s586_s13 }
  0xf3   : > { %p10_p5 = scmp.ge.s32.totalorder %s13_s14, 4   ;;  %s667_s13 = smov %s669_s15 }
  0xf5   :  { %12 = sbr.rel (!%p10_p5) target bundleno = 2 (0x2), region = 76 }

// kernel: simple_dog_emotion_model.30
= control target key start
LH: loop header
LB: loop body
LE: loop exit
PB: predicated region body
PF: predicated region fallthrough
CT: control target
= control target key end

     0   :  { %s1356_s15 = smov 0   ;;  %s1358_s16 = smov 0   ;;  %s1511_s0 = inlined_call_operand.vmem [shape: bf16[32,1280], index: 0, kind: input, shape index: {}]   ;;  %s1512_s1 = inlined_call_operand.vmem [shape: bf16[1280,128], index: 1, kind: input, shape index: {}]   ;;  %s1513_s2 = inlined_call_operand.vmem [shape: f32[1,128], index: 2, kind: input, shape index: {}]   ;;  %s1514_s3 = inlined_call_operand.vmem [shape: bf16[32,128], index: 3, kind: input, shape index: {}]   ;;  %s1515_s4 = inlined_call_operand.vmem [shape: bf16[32,128], index: 4, kind: output, shape index: {}]  }
   0x1   :  { %s1360_s17 = smov 0   ;;  %s1362_s18 = smov 0  }
   0x2   :  { %s1364_s19 = smov 0   ;;  %s1366_s20 = smov 0  }
   0x3   :  { %s1368_s21 = smov 0  }
   0x4 LB: > { %s26_s22 = sadd.s32 1, %s1318_s19  ;;  %s33_s23 = sadd.s32 1, %s1322_s20  ;;  %s1326_s21 = sphi %s1368_s21, %s14_s21   ;;  %s1322_s20 = sphi %s1366_s20, %s1521_s20   ;;  %s1318_s19 = sphi %s1364_s19, %s1520_s19   ;;  %s1314_s18 = sphi %s1362_s18, %s1519_s18   ;;  %s1310_s17 = sphi %s1360_s17, %s1518_s17   ;;  %s1306_s16 = sphi %s1358_s16, %s1517_s16   ;;  %s1302_s15 = sphi %s1356_s15, %s1516_s15  }
   0x5   : > { %p27_p0 = scmp.ge.s32.totalorder %s26_s22, 2  ;;  %p49_p1 = scmp.ne.s32.totalorder %s1306_s16, %s1302_s15 }
   0x6   : > { %p50_p2 = scmp.eq.s32.totalorder %s1326_s21, 0  ;;  %s42_s27 = sadd.s32 1, %s1306_s16 }
   0x7   : > { %s1523_s22 = smov (%p27_p0, %s26_s22), 0  ;;  %s1525_s23 = smov (!%p27_p0, %s33_s23), %s1322_s20 }
   0x8   : > { %p51_p3 = por %p50_p2, %p49_p1  ;;  %p35_p4 = scmp.ge.s32.totalorder %s1525_s23, 2 }
   0x9   : > { %s38_s24 = ssub.s32 %s1318_s19, %s1523_s22  ;;  %p1013_p6 = scmp.ge.s32.totalorder %s1326_s21, 4 }
   0xa   : > { %s1527_s23 = smov (%p35_p4, %s1525_s23), 0 }
   0xb   : > { %s37_s25 = ssub.s32 %s1322_s20, %s1527_s23  ;;  %191 = sbr.rel (%p1013_p6) target bundleno = 30 (0x1e), region = 20 }
   0xc   : > { %s39_s26 = sor.u32 %s38_s24, %s37_s25 }
   0xd   : > { %p40_p5 = scmp.eq.s32.totalorder %s39_s26, 0 }
   0xf   : > { %s1407_s28 = scalar_select %p40_p5, %s1306_s16, %s42_s27  }
  0x12   : > { %194 = sbr.rel (!%p51_p3) target bundleno = 30 (0x1e), region = 24  ;;  %s196_s29 = sand.u32 (%p51_p3), 1, %s1306_s16  }
  0x13   : > { %s200_s30 = smul.u32 (%p51_p3), 5, %s1318_s19 }
  0x14   : > { %s1163_s5 = smul.u32 (%p51_p3), 40, %s196_s29 }
  0x15   : > { %s1164_s6 = smul.u32 (%p51_p3), 20, %s1322_s20 }
  0x16   : > { %s198_s12 = scalar_lea.vmem (%p51_p3), [#allocation3], %s1163_s5 }
  0x17   : > { %s202_s7 = sadd.s32 (%p51_p3), %s1164_s6, %s200_s30 }
  0x18   : > { %s1016_s8 = sshll.u32 (%p51_p3), %s202_s7, 2 }
  0x19   : > { %s204_s11 = scalar_lea.vmem %s1511_s0, %s1016_s8 }
  0x1a   : > { %v219_v0 = vld [vmem:[%s204_s11] sm:$0xff]  ;;  %v221_v1 = vld [vmem:[%s204_s11 + $0x8] sm:$0xff]  ;;  %v225_v3 = vld [vmem:[%s204_s11 + $0x30] sm:$0xff] }
  0x1b   : > { %v223_v2 = vld [vmem:[%s204_s11 + $0x28] sm:$0xff]  ;;  %220 = vst [vmem:[%s198_s12] sm:$0xff] %v219_v0  ;;  %222 = vst [vmem:[%s198_s12 + $0x8] sm:$0xff] %v221_v1  ;;  %v1017_v4 = vld [vmem:[%s204_s11 + $0x10] sm:$0xf] }
  0x1c   : > { %224 = vst [vmem:[%s198_s12 + $0x14] sm:$0xff] %v223_v2  ;;  %v1019_v5 = vld [vmem:[%s204_s11 + $0x38] sm:$0xf]  ;;  %226 = vst [vmem:[%s198_s12 + $0x1c] sm:$0xff] %v225_v3 }
  0x1d   : > { %1018 = vst [vmem:[%s198_s12 + $0x10] sm:$0xf] %v1017_v4  ;;  %1020 = vst [vmem:[%s198_s12 + $0x24] sm:$0xf] %v1019_v5 }
  0x1e PF: > { %p1021_p7 = scmp.ge.s32.totalorder %s1326_s21, 1  ;;  %p266_p8 = scmp.lt.s32.totalorder %s1326_s21, 5 }
  0x20   : > { %p267_p9 = pnand %p1021_p7, %p266_p8 }
  0x21   : > { %s273_s13 = sand.u32 (!%p267_p9), 1, %s1302_s15   ;;  %s322_s14 = smul.u32 (!%p267_p9), 80, %s1310_s17 }
  0x22   : > { %270 = sbr.rel (%p267_p9) target bundleno = 352 (0x160), region = 58  ;;  %s1023_s25 = sshll.u32 (!%p267_p9), %s1314_s18, 1 }
  0x23   : > { %s1165_s24 = smul.u32 (!%p267_p9), 40, %s273_s13  ;;  %p323_p10 = scmp.lt.s32.totalorder (!%p267_p9), %s322_s14, 159 }
  0x24   : > { %p335_p11 = scmp.lt.s32.totalorder (!%p267_p9), %s1023_s25, 3  ;;  %p1027_p12 = scmp.ne.s32.totalorder (!%p267_p9), %s1310_s17, 0 }
  0x25   : > { %s1436_s10 = scalar_lea.vmem (!%p267_p9), [#allocation3], %s1165_s24 }
  0x29   : > { %s1529_s14 = smov (!%p323_p10, %s322_s14), 159  ;;  %s1531_s25 = smov (!%p335_p11, %s1023_s25), 3 }
  0x2a   : > { %s1022_s26 = sshll.u32 %s1529_s14, 2  ;;  %s1024_s5 = sshll.u32 %s1531_s25, 2  ;;  %v1328_v6 = vmov (!%p1027_p12), 0.0  }
  0x2b   : > { %s1424_s30 = scalar_lea.vmem %s1512_s1, %s1022_s26  ;;  %s1429_s8 = scalar_lea.vmem %s1514_s3, %s1024_s5  ;;  %357 = vst [vmem:[#allocation2] sm:$0xff] (!%p1027_p12), %v1328_v6  ;;  %358 = vst [vmem:[#allocation2 + $0x8] sm:$0xff] (!%p1027_p12), %v1328_v6 }
  0x2c   : > { %s1434_s18 = scalar_lea.vmem %s1515_s4, %s1024_s5  ;;  %356 = sbr.rel (%p1027_p12) target bundleno = 51 (0x33), region = 66 }
  0x33 PF: > { %v1225_v7 = vld [vmem:[%s1424_s30 + $0x40] sm:$0xff]   ;;  %v1229_v11 = vld [vmem:[%s1424_s30 + $0x48] sm:$0xff]   ;;  %v1233_v15 = vld [vmem:[%s1424_s30 + $0x50] sm:$0xff]   ;;  %v1329_v41 = vmov 0.0   ;;  %vm1330_vm0 = vmmov 0   ;;  %p1073_p13 = scmp.ne.s32.totalorder %s1310_s17, 1 }
  0x34   : > { %v1226_v8 = vld [vmem:[%s1424_s30 + $0xc0] sm:$0xff]   ;;  %1090 = vmatprep.subr.bf16.mxu0 %v1225_v7  ;;  %v1230_v12 = vld [vmem:[%s1424_s30 + $0xc8] sm:$0xff]   ;;  %v1234_v16 = vld [vmem:[%s1424_s30 + $0xd0] sm:$0xff]  }
  0x35   : > { %v1227_v9 = vld [vmem:[%s1424_s30] sm:$0xff]   ;;  %1112 = vmatprep.subr.bf16.mxu1 %v1226_v8  ;;  %v1231_v13 = vld [vmem:[%s1424_s30 + $0x8] sm:$0xff]   ;;  %v1235_v17 = vld [vmem:[%s1424_s30 + $0x10] sm:$0xff]  }
  0x36   : > { %v1228_v10 = vld [vmem:[%s1424_s30 + $0x80] sm:$0xff]   ;;  %1091 = vmatpush3.bf16.msra.mxu0 %v1227_v9  ;;  %v1232_v14 = vld [vmem:[%s1424_s30 + $0x88] sm:$0xff]   ;;  %v1236_v18 = vld [vmem:[%s1424_s30 + $0x90] sm:$0xff]  }
  0x37   : > { %1113 = vmatpush3.bf16.msra.mxu1 %v1228_v10  ;;  %1092 = vmatprep.subr.bf16.mxu0 %v1229_v11  ;;  %v1237_v19 = vld [vmem:[%s1424_s30 + $0x58] sm:$0xff]   ;;  %v1241_v23 = vld [vmem:[%s1424_s30 + $0x60] sm:$0xff]   ;;  %v1245_v27 = vld [vmem:[%s1424_s30 + $0x68] sm:$0xff]  }
  0x38   : > { %1114 = vmatprep.subr.bf16.mxu1 %v1230_v12  ;;  %v1238_v20 = vld [vmem:[%s1424_s30 + $0xd8] sm:$0xff]   ;;  %v1242_v24 = vld [vmem:[%s1424_s30 + $0xe0] sm:$0xff]   ;;  %v1246_v28 = vld [vmem:[%s1424_s30 + $0xe8] sm:$0xff]  }
  0x39   : > { %v1239_v21 = vld [vmem:[%s1424_s30 + $0x18] sm:$0xff]   ;;  %v1243_v25 = vld [vmem:[%s1424_s30 + $0x20] sm:$0xff]   ;;  %v1247_v29 = vld [vmem:[%s1424_s30 + $0x28] sm:$0xff]  }
  0x3a   : > { %1093 = vmatpush3.bf16.msra.mxu0 %v1231_v13  ;;  %v1240_v22 = vld [vmem:[%s1424_s30 + $0x98] sm:$0xff]   ;;  %v1244_v26 = vld [vmem:[%s1424_s30 + $0xa0] sm:$0xff]   ;;  %v1248_v30 = vld [vmem:[%s1424_s30 + $0xa8] sm:$0xff]  }
  0x3b   : > { %1115 = vmatpush3.bf16.msra.mxu1 %v1232_v14  ;;  %1094 = vmatprep.subr.bf16.mxu0 %v1233_v15  ;;  %v1249_v31 = vld [vmem:[%s1424_s30 + $0x70] sm:$0xff]   ;;  %v1253_v35 = vld [vmem:[%s1424_s30 + $0x78] sm:$0xff]   ;;  %v1263_v44 = vld [vmem:[%s1424_s30 + $0x100] sm:$0xff]  }
  0x3c   : > { %1116 = vmatprep.subr.bf16.mxu1 %v1234_v16  ;;  %v1250_v32 = vld [vmem:[%s1424_s30 + $0xf0] sm:$0xff]   ;;  %v1254_v36 = vld [vmem:[%s1424_s30 + $0xf8] sm:$0xff]   ;;  %v1264_v45 = vld [vmem:[%s1424_s30 + $0x108] sm:$0xff]  }
  0x3d   : > { %v1251_v33 = vld [vmem:[%s1424_s30 + $0x30] sm:$0xff]   ;;  %v1255_v37 = vld [vmem:[%s1424_s30 + $0x38] sm:$0xff]   ;;  %v1267_v48 = vld [vmem:[%s1424_s30 + $0x120] sm:$0xff]  }
  0x3e   : > { %1095 = vmatpush3.bf16.msra.mxu0 %v1235_v17  ;;  %v1252_v34 = vld [vmem:[%s1424_s30 + $0xb0] sm:$0xff]   ;;  %v1256_v38 = vld [vmem:[%s1424_s30 + $0xb8] sm:$0xff]   ;;  %v1268_v49 = vld [vmem:[%s1424_s30 + $0x128] sm:$0xff]  }
  0x3f   : > { %1117 = vmatpush3.bf16.msra.mxu1 %v1236_v18  ;;  %1096 = vmatprep.subr.bf16.mxu0 %v1237_v19  ;;  %v1257_v39 = vld [vmem:[%s1436_s10] ss:$20 sps:$4 sm:$0xff]   ;;  %v1259_v40 = vld [vmem:[%s1436_s10 + $0x4] ss:$20 sps:$4 sm:$0xff]   ;;  %v1260_v42 = vld [vmem:[%s1436_s10 + $0x8] ss:$20 sps:$4 sm:$0xff]  }
  0x40   : > { %1118 = vmatprep.subr.bf16.mxu1 %v1238_v20  ;;  %v1262_v43 = vld [vmem:[%s1436_s10 + $0xc] ss:$20 sps:$4 sm:$0xff]   ;;  %745 = vmatprep.mubr.bf16.mxu0 %v1259_v40  ;;  %v1271_v52 = vld [vmem:[%s1436_s10 + $0x10] ss:$20 sps:$4 sm:$0xff]  }
  0x41   : > { %786 = vmatprep.mubr.bf16.mxu1 %v1262_v43  ;;  %v1265_v46 = vld [vmem:[%s1424_s30 + $0x110] sm:$0xff]   ;;  %v1266_v47 = vld [vmem:[%s1424_s30 + $0x118] sm:$0xff]   ;;  %v359_v3 = vld [vmem:[#allocation2] sm:$0xff] }
  0x42   : > { %1097 = vmatpush3.bf16.msra.mxu0 %v1239_v21  ;;  %v1269_v50 = vld [vmem:[%s1424_s30 + $0x130] sm:$0xff]   ;;  %v1270_v51 = vld [vmem:[%s1424_s30 + $0x138] sm:$0xff]   ;;  %v360_v7 = vld [vmem:[#allocation2 + $0x8] sm:$0xff] }
  0x43   : > { %1119 = vmatpush3.bf16.msra.mxu1 %v1240_v22  ;;  %1098 = vmatprep.subr.bf16.mxu0 %v1241_v23  ;;  %v1074_v15 = vld [vmem:[%s1513_s2] ss:$0 sm:$0xff] (!%p1073_p13) }
  0x44   : > { %1120 = vmatprep.subr.bf16.mxu1 %v1242_v24  ;;  %v1082_v18 = vld [vmem:[%s1429_s8] sm:$0xff] (!%p1073_p13)  }
  0x45   : > { %v1083_v19 = vunpack.c.l.bf16 (!%p1073_p13), %v1082_v18  ;;  %v1084_v20 = vunpack.c.h.bf16 (!%p1073_p13), %v1082_v18 }
  0x46   : > { %1099 = vmatpush3.bf16.msra.mxu0 %v1243_v25 }
  0x47   : > { %1121 = vmatpush3.bf16.msra.mxu1 %v1244_v26  ;;  %1100 = vmatprep.subr.bf16.mxu0 %v1245_v27 }
  0x48   : > { %1122 = vmatprep.subr.bf16.mxu1 %v1246_v28 }
  0x4a   : > { %1101 = vmatpush3.bf16.msra.mxu0 %v1247_v29 }
  0x4b   : > { %1123 = vmatpush3.bf16.msra.mxu1 %v1248_v30  ;;  %1102 = vmatprep.subr.bf16.mxu0 %v1249_v31 }
  0x4c   : > { %1124 = vmatprep.subr.bf16.mxu1 %v1250_v32 }
  0x4e   : > { %1103 = vmatpush3.bf16.msra.mxu0 %v1251_v33 }
  0x4f   : > { %1125 = vmatpush3.bf16.msra.mxu1 %v1252_v34  ;;  %1104 = vmatprep.subr.bf16.mxu0 %v1253_v35 }
  0x50   : > { %1126 = vmatprep.subr.bf16.mxu1 %v1254_v36 }
  0x52   : > { %1105 = vmatpush3.bf16.msra.mxu0 %v1255_v37 }
  0x53   : > { %1127 = vmatpush3.bf16.msra.mxu1 %v1256_v38  ;;  %1143 = vmatprep.subr.bf16.mxu0 %v1329_v41 }
  0x55   : > { %746 = vmatmul.mubr.bf16.vlgmr.msra.gmra.mrb[0].mxu0 %v1257_v39 }
  0x56   : > { %787 = vmatmul.mubr.bf16.vlgmr.msra.gmra.mrb[0].mxu1 %v1260_v42  ;;  %1144 = vmatpush3.bf16.msra.mxu0 %v1263_v44 }
  0x57   : > { %1145 = vmatprep.subr.bf16.mxu0 %v1329_v41  ;;  %1159 = vmatprep.mubr.msk.bf16.mxu0 %vm1330_vm0, %v1329_v41 }
  0x5a   : > { %1146 = vmatpush3.bf16.msra.mxu0 %v1264_v45 }
  0x5b   : > { %1147 = vmatprep.subr.bf16.mxu0 %v1329_v41 }
  0x5e   : > { %1148 = vmatpush3.bf16.msra.mxu0 %v1265_v46 }
  0x5f   : > { %1149 = vmatprep.subr.bf16.mxu0 %v1329_v41 }
  0x62   : > { %1150 = vmatpush3.bf16.msra.mxu0 %v1266_v47 }
  0x63   : > { %1151 = vmatprep.subr.bf16.mxu0 %v1329_v41 }
  0x66   : > { %1152 = vmatpush3.bf16.msra.mxu0 %v1267_v48 }
  0x67   : > { %1153 = vmatprep.subr.bf16.mxu0 %v1329_v41 }
  0x6a   : > { %1154 = vmatpush3.bf16.msra.mxu0 %v1268_v49 }
  0x6b   : > { %1155 = vmatprep.subr.bf16.mxu0 %v1329_v41 }
  0x6e   : > { %1156 = vmatpush3.bf16.msra.mxu0 %v1269_v50 }
  0x6f   : > { %1157 = vmatprep.subr.bf16.mxu0 %v1329_v41 }
  0x72   : > { %1158 = vmatpush3.bf16.msra.mxu0 %v1270_v51 }
  0x75   : > { %1160 = vmatmul.mubr.bf16.vlgmr.msra.gmra.mrb[4].mxu0 %v1271_v52 }
 0x128   : > { %v1106_v53 = vpop.f32.mrb[0].mxu0 }
 0x129   : > { %v1128_v54 = vpop.f32.mrb[0].mxu1  ;;  %v1107_v55 = vpop.f32.mrb[1].mxu0 }
 0x12a   : > { %v1108_v56 = vadd.f32 %v1107_v55, %v1106_v53  ;;  %v1129_v57 = vpop.f32.mrb[1].mxu1  ;;  %v1109_v58 = vpop.f32.mrb[2].mxu0 }
 0x12b   : > { %v1130_v59 = vadd.f32 %v1129_v57, %v1128_v54  ;;  %v1131_v60 = vpop.f32.mrb[2].mxu1  ;;  %v1110_v61 = vpop.f32.mrb[3].mxu0 }
 0x12c   : > { %v1111_v62 = vadd.f32 %v1110_v61, %v1109_v58  ;;  %v1132_v63 = vpop.f32.mrb[3].mxu1 }
 0x12d   : > { %v1133_v0 = vadd.f32 %v1132_v63, %v1131_v60  ;;  %v789_v1 = vadd.f32 %v1130_v59, %v1108_v56 }
 0x12f   : > { %v792_v2 = vadd.f32 %v1133_v0, %v1111_v62 }
 0x148   : > { %v829_v4 = vpop.f32.mrb[4].mxu0 }
 0x149   : > { %v830_v5 = vadd.f32 %v829_v4, %v789_v1  ;;  %v1161_v6 = vpop.f32.mrb[5].mxu0  ;;  %843 = sbr.rel (%p1073_p13) target bundleno = 352 (0x160), region = 70 }
 0x14a   : > { %v832_v8 = vpop.f32.mrb[6].mxu0 }
 0x14b   : > { %v836_v9 = vadd.f32 %v830_v5, %v359_v3  ;;  %v833_v10 = vadd.f32 %v832_v8, %v792_v2  ;;  %v1162_v11 = vpop.f32.mrb[7].mxu0 }
 0x14d   : > { %838 = vst [vmem:[#allocation2] sm:$0xff] %v836_v9  ;;  %v837_v12 = vadd.f32 %v833_v10, %v360_v7 }
 0x14f   : > { %839 = vst [vmem:[#allocation2 + $0x8] sm:$0xff] %v837_v12 }
 0x154   : > { %v844_v13 = vld [vmem:[#allocation2] sm:$0xff] }
 0x155   : > { %v853_v16 = vadd.f32 %v1074_v15, %v844_v13 }
 0x156   : > { %v845_v14 = vld [vmem:[#allocation2 + $0x8] sm:$0xff] }
 0x157   : > { %v854_v17 = vadd.f32 %v1074_v15, %v845_v14  ;;  %v859_v21 = vadd.f32 %v1083_v19, %v853_v16 }
 0x159   : > { %v860_v22 = vadd.f32 %v1084_v20, %v854_v17  ;;  %v861_v23 = vmax.f32 %v859_v21, 0.0 }
 0x15b   : > { %v862_v24 = vmax.f32 %v860_v22, 0.0 }
 0x15d   : > { %v1088_v25 = vpack.c.bf16 %v862_v24, %v861_v23 }
 0x15f   : > { %1089 = vst [vmem:[%s1434_s18] sm:$0xff] %v1088_v25  }
 0x160 PF: > { %s14_s21 = sadd.s32 1, %s1326_s21   ;;  %s1516_s15 = smov %s1306_s16 }
 0x161   : > { %p11_p0 = scmp.ge.s32.totalorder %s14_s21, 6   ;;  %s1517_s16 = smov %s1407_s28 }
 0x162   : > { %s1518_s17 = smov %s1318_s19  ;;  %s1519_s18 = smov %s1322_s20 }
 0x163   : > { %s1520_s19 = smov %s1523_s22  ;;  %s1521_s20 = smov %s1527_s23 }
 0x164   :  { %13 = sbr.rel (!%p11_p0) target bundleno = 4 (0x4), region = 120 }

// kernel: simple_dog_emotion_model.31
= control target key start
LH: loop header
LB: loop body
LE: loop exit
PB: predicated region body
PF: predicated region fallthrough
CT: control target
= control target key end

     0   :  { %s1264_s12 = smov 0   ;;  %s1266_s13 = smov 0   ;;  %s1413_s0 = inlined_call_operand.vmem [shape: bf16[32,1280], index: 0, kind: input, shape index: {}]   ;;  %s1414_s1 = inlined_call_operand.vmem [shape: bf16[1280,128], index: 1, kind: input, shape index: {}]   ;;  %s1415_s2 = inlined_call_operand.vmem [shape: f32[1,128], index: 2, kind: input, shape index: {}]   ;;  %s1416_s3 = inlined_call_operand.vmem [shape: bf16[32,128], index: 3, kind: output, shape index: {}]  }
   0x1   :  { %s1268_s14 = smov 0   ;;  %s1270_s15 = smov 0  }
   0x2   :  { %s1272_s16 = smov 0   ;;  %s1274_s17 = smov 0  }
   0x3   :  { %s1276_s18 = smov 0  }
   0x4 LB: > { %s25_s19 = sadd.s32 1, %s1231_s16  ;;  %s32_s20 = sadd.s32 1, %s1235_s17  ;;  %s1239_s18 = sphi %s1276_s18, %s13_s18   ;;  %s1235_s17 = sphi %s1274_s17, %s1422_s17   ;;  %s1231_s16 = sphi %s1272_s16, %s1421_s16   ;;  %s1227_s15 = sphi %s1270_s15, %s1420_s15   ;;  %s1223_s14 = sphi %s1268_s14, %s1419_s14   ;;  %s1219_s13 = sphi %s1266_s13, %s1418_s13   ;;  %s1215_s12 = sphi %s1264_s12, %s1417_s12  }
   0x5   : > { %p26_p0 = scmp.ge.s32.totalorder %s25_s19, 2  ;;  %p48_p1 = scmp.ne.s32.totalorder %s1219_s13, %s1215_s12 }
   0x6   : > { %p49_p2 = scmp.eq.s32.totalorder %s1239_s18, 0  ;;  %s41_s24 = sadd.s32 1, %s1219_s13 }
   0x7   : > { %s1424_s19 = smov (%p26_p0, %s25_s19), 0  ;;  %s1426_s20 = smov (!%p26_p0, %s32_s20), %s1235_s17 }
   0x8   : > { %p50_p3 = por %p49_p2, %p48_p1  ;;  %p34_p4 = scmp.ge.s32.totalorder %s1426_s20, 2 }
   0x9   : > { %s37_s21 = ssub.s32 %s1231_s16, %s1424_s19  ;;  %p932_p6 = scmp.ge.s32.totalorder %s1239_s18, 4 }
   0xa   : > { %s1428_s20 = smov (%p34_p4, %s1426_s20), 0 }
   0xb   : > { %s36_s22 = ssub.s32 %s1235_s17, %s1428_s20  ;;  %162 = sbr.rel (%p932_p6) target bundleno = 30 (0x1e), region = 20 }
   0xc   : > { %s38_s23 = sor.u32 %s37_s21, %s36_s22 }
   0xd   : > { %p39_p5 = scmp.eq.s32.totalorder %s38_s23, 0 }
   0xf   : > { %s1315_s25 = scalar_select %p39_p5, %s1219_s13, %s41_s24  }
  0x12   : > { %165 = sbr.rel (!%p50_p3) target bundleno = 30 (0x1e), region = 24  ;;  %s167_s26 = sand.u32 (%p50_p3), 1, %s1219_s13  }
  0x13   : > { %s171_s27 = smul.u32 (%p50_p3), 5, %s1231_s16 }
  0x14   : > { %s1076_s28 = smul.u32 (%p50_p3), 40, %s167_s26 }
  0x15   : > { %s1077_s29 = smul.u32 (%p50_p3), 20, %s1235_s17 }
  0x16   : > { %s169_s8 = scalar_lea.vmem (%p50_p3), [#allocation3], %s1076_s28 }
  0x17   : > { %s173_s30 = sadd.s32 (%p50_p3), %s1077_s29, %s171_s27 }
  0x18   : > { %s935_s4 = sshll.u32 (%p50_p3), %s173_s30, 2 }
  0x19   : > { %s175_s7 = scalar_lea.vmem %s1413_s0, %s935_s4 }
  0x1a   : > { %v190_v0 = vld [vmem:[%s175_s7] sm:$0xff]  ;;  %v192_v1 = vld [vmem:[%s175_s7 + $0x8] sm:$0xff]  ;;  %v196_v3 = vld [vmem:[%s175_s7 + $0x30] sm:$0xff] }
  0x1b   : > { %v194_v2 = vld [vmem:[%s175_s7 + $0x28] sm:$0xff]  ;;  %191 = vst [vmem:[%s169_s8] sm:$0xff] %v190_v0  ;;  %193 = vst [vmem:[%s169_s8 + $0x8] sm:$0xff] %v192_v1  ;;  %v936_v4 = vld [vmem:[%s175_s7 + $0x10] sm:$0xf] }
  0x1c   : > { %195 = vst [vmem:[%s169_s8 + $0x14] sm:$0xff] %v194_v2  ;;  %v938_v5 = vld [vmem:[%s175_s7 + $0x38] sm:$0xf]  ;;  %197 = vst [vmem:[%s169_s8 + $0x1c] sm:$0xff] %v196_v3 }
  0x1d   : > { %937 = vst [vmem:[%s169_s8 + $0x10] sm:$0xf] %v936_v4  ;;  %939 = vst [vmem:[%s169_s8 + $0x24] sm:$0xf] %v938_v5 }
  0x1e PF: > { %p940_p7 = scmp.ge.s32.totalorder %s1239_s18, 1  ;;  %p225_p8 = scmp.lt.s32.totalorder %s1239_s18, 5 }
  0x20   : > { %p226_p9 = pnand %p940_p7, %p225_p8 }
  0x21   : > { %s232_s9 = sand.u32 (!%p226_p9), 1, %s1215_s12   ;;  %s271_s10 = smul.u32 (!%p226_p9), 80, %s1223_s14 }
  0x22   : > { %229 = sbr.rel (%p226_p9) target bundleno = 350 (0x15e), region = 54  ;;  %s942_s21 = sshll.u32 (!%p226_p9), %s1227_s15, 1 }
  0x23   : > { %s1078_s11 = smul.u32 (!%p226_p9), 40, %s232_s9  ;;  %p272_p10 = scmp.lt.s32.totalorder (!%p226_p9), %s271_s10, 159 }
  0x24   : > { %p284_p11 = scmp.lt.s32.totalorder (!%p226_p9), %s942_s21, 3  ;;  %p944_p12 = scmp.ne.s32.totalorder (!%p226_p9), %s1223_s14, 0 }
  0x25   : > { %s1339_s12 = scalar_lea.vmem (!%p226_p9), [#allocation3], %s1078_s11 }
  0x29   : > { %s1430_s10 = smov (!%p272_p10, %s271_s10), 159  ;;  %s1432_s21 = smov (!%p284_p11, %s942_s21), 3 }
  0x2a   : > { %s941_s22 = sshll.u32 %s1430_s10, 2  ;;  %s943_s27 = sshll.u32 %s1432_s21, 2  ;;  %v1241_v6 = vmov (!%p944_p12), 0.0  }
  0x2b   : > { %s1332_s26 = scalar_lea.vmem %s1414_s1, %s941_s22  ;;  %s1337_s30 = scalar_lea.vmem %s1416_s3, %s943_s27  ;;  %297 = vst [vmem:[#allocation2] sm:$0xff] (!%p944_p12), %v1241_v6  ;;  %298 = vst [vmem:[#allocation2 + $0x8] sm:$0xff] (!%p944_p12), %v1241_v6 }
  0x2c   : > { %296 = sbr.rel (%p944_p12) target bundleno = 51 (0x33), region = 62 }
  0x33 PF: > { %v1138_v7 = vld [vmem:[%s1332_s26 + $0x40] sm:$0xff]   ;;  %v1142_v11 = vld [vmem:[%s1332_s26 + $0x48] sm:$0xff]   ;;  %v1146_v15 = vld [vmem:[%s1332_s26 + $0x50] sm:$0xff]   ;;  %v1242_v41 = vmov 0.0   ;;  %vm1243_vm0 = vmmov 0   ;;  %p990_p13 = scmp.ne.s32.totalorder %s1223_s14, 1 }
  0x34   : > { %v1139_v8 = vld [vmem:[%s1332_s26 + $0xc0] sm:$0xff]   ;;  %1003 = vmatprep.subr.bf16.mxu0 %v1138_v7  ;;  %v1143_v12 = vld [vmem:[%s1332_s26 + $0xc8] sm:$0xff]   ;;  %v1147_v16 = vld [vmem:[%s1332_s26 + $0xd0] sm:$0xff]  }
  0x35   : > { %v1140_v9 = vld [vmem:[%s1332_s26] sm:$0xff]   ;;  %1025 = vmatprep.subr.bf16.mxu1 %v1139_v8  ;;  %v1144_v13 = vld [vmem:[%s1332_s26 + $0x8] sm:$0xff]   ;;  %v1148_v17 = vld [vmem:[%s1332_s26 + $0x10] sm:$0xff]  }
  0x36   : > { %v1141_v10 = vld [vmem:[%s1332_s26 + $0x80] sm:$0xff]   ;;  %1004 = vmatpush3.bf16.msra.mxu0 %v1140_v9  ;;  %v1145_v14 = vld [vmem:[%s1332_s26 + $0x88] sm:$0xff]   ;;  %v1149_v18 = vld [vmem:[%s1332_s26 + $0x90] sm:$0xff]  }
  0x37   : > { %1026 = vmatpush3.bf16.msra.mxu1 %v1141_v10  ;;  %1005 = vmatprep.subr.bf16.mxu0 %v1142_v11  ;;  %v1150_v19 = vld [vmem:[%s1332_s26 + $0x58] sm:$0xff]   ;;  %v1154_v23 = vld [vmem:[%s1332_s26 + $0x60] sm:$0xff]   ;;  %v1158_v27 = vld [vmem:[%s1332_s26 + $0x68] sm:$0xff]  }
  0x38   : > { %1027 = vmatprep.subr.bf16.mxu1 %v1143_v12  ;;  %v1151_v20 = vld [vmem:[%s1332_s26 + $0xd8] sm:$0xff]   ;;  %v1155_v24 = vld [vmem:[%s1332_s26 + $0xe0] sm:$0xff]   ;;  %v1159_v28 = vld [vmem:[%s1332_s26 + $0xe8] sm:$0xff]  }
  0x39   : > { %v1152_v21 = vld [vmem:[%s1332_s26 + $0x18] sm:$0xff]   ;;  %v1156_v25 = vld [vmem:[%s1332_s26 + $0x20] sm:$0xff]   ;;  %v1160_v29 = vld [vmem:[%s1332_s26 + $0x28] sm:$0xff]  }
  0x3a   : > { %1006 = vmatpush3.bf16.msra.mxu0 %v1144_v13  ;;  %v1153_v22 = vld [vmem:[%s1332_s26 + $0x98] sm:$0xff]   ;;  %v1157_v26 = vld [vmem:[%s1332_s26 + $0xa0] sm:$0xff]   ;;  %v1161_v30 = vld [vmem:[%s1332_s26 + $0xa8] sm:$0xff]  }
  0x3b   : > { %1028 = vmatpush3.bf16.msra.mxu1 %v1145_v14  ;;  %1007 = vmatprep.subr.bf16.mxu0 %v1146_v15  ;;  %v1162_v31 = vld [vmem:[%s1332_s26 + $0x70] sm:$0xff]   ;;  %v1166_v35 = vld [vmem:[%s1332_s26 + $0x78] sm:$0xff]   ;;  %v1176_v44 = vld [vmem:[%s1332_s26 + $0x100] sm:$0xff]  }
  0x3c   : > { %1029 = vmatprep.subr.bf16.mxu1 %v1147_v16  ;;  %v1163_v32 = vld [vmem:[%s1332_s26 + $0xf0] sm:$0xff]   ;;  %v1167_v36 = vld [vmem:[%s1332_s26 + $0xf8] sm:$0xff]   ;;  %v1177_v45 = vld [vmem:[%s1332_s26 + $0x108] sm:$0xff]  }
  0x3d   : > { %v1164_v33 = vld [vmem:[%s1332_s26 + $0x30] sm:$0xff]   ;;  %v1168_v37 = vld [vmem:[%s1332_s26 + $0x38] sm:$0xff]   ;;  %v1180_v48 = vld [vmem:[%s1332_s26 + $0x120] sm:$0xff]  }
  0x3e   : > { %1008 = vmatpush3.bf16.msra.mxu0 %v1148_v17  ;;  %v1165_v34 = vld [vmem:[%s1332_s26 + $0xb0] sm:$0xff]   ;;  %v1169_v38 = vld [vmem:[%s1332_s26 + $0xb8] sm:$0xff]   ;;  %v1181_v49 = vld [vmem:[%s1332_s26 + $0x128] sm:$0xff]  }
  0x3f   : > { %1030 = vmatpush3.bf16.msra.mxu1 %v1149_v18  ;;  %1009 = vmatprep.subr.bf16.mxu0 %v1150_v19  ;;  %v1170_v39 = vld [vmem:[%s1339_s12] ss:$20 sps:$4 sm:$0xff]   ;;  %v1172_v40 = vld [vmem:[%s1339_s12 + $0x4] ss:$20 sps:$4 sm:$0xff]   ;;  %v1173_v42 = vld [vmem:[%s1339_s12 + $0x8] ss:$20 sps:$4 sm:$0xff]  }
  0x40   : > { %1031 = vmatprep.subr.bf16.mxu1 %v1151_v20  ;;  %v1175_v43 = vld [vmem:[%s1339_s12 + $0xc] ss:$20 sps:$4 sm:$0xff]   ;;  %685 = vmatprep.mubr.bf16.mxu0 %v1172_v40  ;;  %v1184_v52 = vld [vmem:[%s1339_s12 + $0x10] ss:$20 sps:$4 sm:$0xff]  }
  0x41   : > { %726 = vmatprep.mubr.bf16.mxu1 %v1175_v43  ;;  %v1178_v46 = vld [vmem:[%s1332_s26 + $0x110] sm:$0xff]   ;;  %v1179_v47 = vld [vmem:[%s1332_s26 + $0x118] sm:$0xff]   ;;  %v299_v3 = vld [vmem:[#allocation2] sm:$0xff] }
  0x42   : > { %1010 = vmatpush3.bf16.msra.mxu0 %v1152_v21  ;;  %v1182_v50 = vld [vmem:[%s1332_s26 + $0x130] sm:$0xff]   ;;  %v1183_v51 = vld [vmem:[%s1332_s26 + $0x138] sm:$0xff]   ;;  %v300_v7 = vld [vmem:[#allocation2 + $0x8] sm:$0xff] }
  0x43   : > { %1032 = vmatpush3.bf16.msra.mxu1 %v1153_v22  ;;  %1011 = vmatprep.subr.bf16.mxu0 %v1154_v23  ;;  %v991_v15 = vld [vmem:[%s1415_s2] ss:$0 sm:$0xff] (!%p990_p13) }
  0x44   : > { %1033 = vmatprep.subr.bf16.mxu1 %v1155_v24 }
  0x46   : > { %1012 = vmatpush3.bf16.msra.mxu0 %v1156_v25 }
  0x47   : > { %1034 = vmatpush3.bf16.msra.mxu1 %v1157_v26  ;;  %1013 = vmatprep.subr.bf16.mxu0 %v1158_v27 }
  0x48   : > { %1035 = vmatprep.subr.bf16.mxu1 %v1159_v28 }
  0x4a   : > { %1014 = vmatpush3.bf16.msra.mxu0 %v1160_v29 }
  0x4b   : > { %1036 = vmatpush3.bf16.msra.mxu1 %v1161_v30  ;;  %1015 = vmatprep.subr.bf16.mxu0 %v1162_v31 }
  0x4c   : > { %1037 = vmatprep.subr.bf16.mxu1 %v1163_v32 }
  0x4e   : > { %1016 = vmatpush3.bf16.msra.mxu0 %v1164_v33 }
  0x4f   : > { %1038 = vmatpush3.bf16.msra.mxu1 %v1165_v34  ;;  %1017 = vmatprep.subr.bf16.mxu0 %v1166_v35 }
  0x50   : > { %1039 = vmatprep.subr.bf16.mxu1 %v1167_v36 }
  0x52   : > { %1018 = vmatpush3.bf16.msra.mxu0 %v1168_v37 }
  0x53   : > { %1040 = vmatpush3.bf16.msra.mxu1 %v1169_v38  ;;  %1056 = vmatprep.subr.bf16.mxu0 %v1242_v41 }
  0x55   : > { %686 = vmatmul.mubr.bf16.vlgmr.msra.gmra.mrb[0].mxu0 %v1170_v39 }
  0x56   : > { %727 = vmatmul.mubr.bf16.vlgmr.msra.gmra.mrb[0].mxu1 %v1173_v42  ;;  %1057 = vmatpush3.bf16.msra.mxu0 %v1176_v44 }
  0x57   : > { %1058 = vmatprep.subr.bf16.mxu0 %v1242_v41  ;;  %1072 = vmatprep.mubr.msk.bf16.mxu0 %vm1243_vm0, %v1242_v41 }
  0x5a   : > { %1059 = vmatpush3.bf16.msra.mxu0 %v1177_v45 }
  0x5b   : > { %1060 = vmatprep.subr.bf16.mxu0 %v1242_v41 }
  0x5e   : > { %1061 = vmatpush3.bf16.msra.mxu0 %v1178_v46 }
  0x5f   : > { %1062 = vmatprep.subr.bf16.mxu0 %v1242_v41 }
  0x62   : > { %1063 = vmatpush3.bf16.msra.mxu0 %v1179_v47 }
  0x63   : > { %1064 = vmatprep.subr.bf16.mxu0 %v1242_v41 }
  0x66   : > { %1065 = vmatpush3.bf16.msra.mxu0 %v1180_v48 }
  0x67   : > { %1066 = vmatprep.subr.bf16.mxu0 %v1242_v41 }
  0x6a   : > { %1067 = vmatpush3.bf16.msra.mxu0 %v1181_v49 }
  0x6b   : > { %1068 = vmatprep.subr.bf16.mxu0 %v1242_v41 }
  0x6e   : > { %1069 = vmatpush3.bf16.msra.mxu0 %v1182_v50 }
  0x6f   : > { %1070 = vmatprep.subr.bf16.mxu0 %v1242_v41 }
  0x72   : > { %1071 = vmatpush3.bf16.msra.mxu0 %v1183_v51 }
  0x75   : > { %1073 = vmatmul.mubr.bf16.vlgmr.msra.gmra.mrb[4].mxu0 %v1184_v52 }
 0x128   : > { %v1019_v53 = vpop.f32.mrb[0].mxu0 }
 0x129   : > { %v1041_v54 = vpop.f32.mrb[0].mxu1  ;;  %v1020_v55 = vpop.f32.mrb[1].mxu0 }
 0x12a   : > { %v1021_v56 = vadd.f32 %v1020_v55, %v1019_v53  ;;  %v1042_v57 = vpop.f32.mrb[1].mxu1  ;;  %v1022_v58 = vpop.f32.mrb[2].mxu0 }
 0x12b   : > { %v1043_v59 = vadd.f32 %v1042_v57, %v1041_v54  ;;  %v1044_v60 = vpop.f32.mrb[2].mxu1  ;;  %v1023_v61 = vpop.f32.mrb[3].mxu0 }
 0x12c   : > { %v1024_v62 = vadd.f32 %v1023_v61, %v1022_v58  ;;  %v1045_v63 = vpop.f32.mrb[3].mxu1 }
 0x12d   : > { %v1046_v0 = vadd.f32 %v1045_v63, %v1044_v60  ;;  %v729_v1 = vadd.f32 %v1043_v59, %v1021_v56 }
 0x12f   : > { %v732_v2 = vadd.f32 %v1046_v0, %v1024_v62 }
 0x148   : > { %v769_v4 = vpop.f32.mrb[4].mxu0 }
 0x149   : > { %v770_v5 = vadd.f32 %v769_v4, %v729_v1  ;;  %v1074_v6 = vpop.f32.mrb[5].mxu0  ;;  %783 = sbr.rel (%p990_p13) target bundleno = 350 (0x15e), region = 66 }
 0x14a   : > { %v772_v8 = vpop.f32.mrb[6].mxu0 }
 0x14b   : > { %v776_v9 = vadd.f32 %v770_v5, %v299_v3  ;;  %v773_v10 = vadd.f32 %v772_v8, %v732_v2  ;;  %v1075_v11 = vpop.f32.mrb[7].mxu0 }
 0x14d   : > { %778 = vst [vmem:[#allocation2] sm:$0xff] %v776_v9  ;;  %v777_v12 = vadd.f32 %v773_v10, %v300_v7 }
 0x14f   : > { %779 = vst [vmem:[#allocation2 + $0x8] sm:$0xff] %v777_v12 }
 0x154   : > { %v784_v13 = vld [vmem:[#allocation2] sm:$0xff] }
 0x155   : > { %v793_v16 = vadd.f32 %v991_v15, %v784_v13 }
 0x156   : > { %v785_v14 = vld [vmem:[#allocation2 + $0x8] sm:$0xff] }
 0x157   : > { %v794_v17 = vadd.f32 %v991_v15, %v785_v14  ;;  %v795_v18 = vmax.f32 %v793_v16, 0.0 }
 0x159   : > { %v796_v19 = vmax.f32 %v794_v17, 0.0 }
 0x15b   : > { %v1001_v20 = vpack.c.bf16 %v796_v19, %v795_v18 }
 0x15d   : > { %1002 = vst [vmem:[%s1337_s30] sm:$0xff] %v1001_v20  }
 0x15e PF: > { %s13_s18 = sadd.s32 1, %s1239_s18   ;;  %s1417_s12 = smov %s1219_s13 }
 0x15f   : > { %p10_p0 = scmp.ge.s32.totalorder %s13_s18, 6   ;;  %s1418_s13 = smov %s1315_s25 }
 0x160   : > { %s1419_s14 = smov %s1231_s16  ;;  %s1420_s15 = smov %s1235_s17 }
 0x161   : > { %s1421_s16 = smov %s1424_s19  ;;  %s1422_s17 = smov %s1428_s20 }
 0x162   :  { %12 = sbr.rel (!%p10_p0) target bundleno = 4 (0x4), region = 113 }

// kernel: simple_dog_emotion_model.33
= control target key start
LH: loop header
LB: loop body
LE: loop exit
PB: predicated region body
PF: predicated region fallthrough
CT: control target
= control target key end

     0   :  { %s2102_s0 = inlined_call_operand.vmem [shape: bf16[16,1280], index: 0, kind: input, shape index: {}]   ;;  %s2103_s1 = inlined_call_operand.vmem [shape: bf16[1280,256], index: 1, kind: input, shape index: {}]   ;;  %s2104_s2 = inlined_call_operand.vmem [shape: f32[1,256], index: 2, kind: input, shape index: {}]   ;;  %s2105_s3 = inlined_call_operand.vmem [shape: bf16[16,256], index: 3, kind: output, shape index: {}]  }
   0x1   :  { %2107 = sst [smem:[#allocation7_spill]] %s2102_s0 }
   0x2   :  { %2108 = sst [smem:[#allocation8_spill]] %s2103_s1 }
   0x3   :  { %s1711_s12 = smov 0   ;;  %s1713_s13 = smov 0  }
   0x4   :  { %s1715_s14 = smov 0   ;;  %s1717_s15 = smov 0  }
   0x5   :  { %s1719_s16 = smov 0   ;;  %s1721_s17 = smov 0  }
   0x6   :  { %s1723_s18 = smov 0   ;;  %s1725_s19 = smov 0  }
   0x7   :  { %s1727_s20 = smov 0   ;;  %s1729_s21 = smov 0  }
   0x8   :  { %s1731_s22 = smov 0  }
   0x9 LB: > { %s1309_s23 = sadd.s32 4294967295, %s1686_s22   ;;  %s25_s24 = sadd.s32 1, %s1678_s20  ;;  %s1686_s22 = sphi %s1731_s22, %s13_s22   ;;  %s1682_s21 = sphi %s1729_s21, %s2125_s21   ;;  %s1678_s20 = sphi %s1727_s20, %s2124_s20   ;;  %s1674_s19 = sphi %s1725_s19, %s2123_s19   ;;  %s1670_s18 = sphi %s1723_s18, %s2122_s18   ;;  %s1666_s17 = sphi %s1721_s17, %s2121_s17   ;;  %s1662_s16 = sphi %s1719_s16, %s2120_s16   ;;  %s1658_s15 = sphi %s1717_s15, %s2119_s15   ;;  %s1654_s14 = sphi %s1715_s14, %s2118_s14   ;;  %s1650_s13 = sphi %s1713_s13, %s2117_s13   ;;  %s1646_s12 = sphi %s1711_s12, %s2116_s12  }
   0xa   : > { %p26_p0 = scmp.ge.s32.totalorder %s25_s24, 2  ;;  %s28_s25 = sadd.s32 1, %s1682_s21 }
   0xb   : > { %s41_s26 = sadd.s32 1, %s1666_s17  ;;  %p48_p1 = scmp.ne.s32.totalorder %s1666_s17, %s1662_s16 }
   0xc   : > { %s2127_s24 = smov (%p26_p0, %s25_s24), 0  ;;  %s2129_s25 = smov (!%p26_p0, %s28_s25), %s1682_s21 }
   0xd   : > { %s37_s27 = ssub.s32 %s1678_s20, %s2127_s24  ;;  %p49_p2 = scmp.eq.s32.totalorder %s1686_s22, 0 }
   0xe   : > { %p30_p3 = scmp.ge.s32.totalorder %s2129_s25, 2  ;;  %p39_p4 = scmp.eq.s32.totalorder %s37_s27, 0 }
   0xf   : > { %p1778_p5 = por %p49_p2, %p48_p1  ;;  %s69_s29 = sadd.s32 1, %s1658_s15 }
  0x10   : > { %s2131_s25 = smov (%p30_p3, %s2129_s25), 0  ;;  %p76_p6 = scmp.ne.s32.totalorder %s1658_s15, %s1654_s14 }
  0x11   : > { %2110 = sst [smem:[#allocation6_spill]] %s2131_s25  ;;  %s65_s4 = ssub.s32 %s1682_s21, %s2131_s25 }
  0x12   : > { %s1786_s30 = scalar_select %p39_p4, %s1666_s17, %s41_s26  }
  0x13   : > { %s66_s5 = sor.u32 %s65_s4, %s37_s27  ;;  %p121_p7 = scmp.eq.s32.totalorder %s65_s4, 0 }
  0x14   : > { %p67_p8 = scmp.eq.s32.totalorder %s66_s5, 0  ;;  %p1792_p9 = por %p76_p6, %p49_p2 }
  0x15   : > { %s123_s7 = sadd.s32 1, %s1650_s13  ;;  %p133_p10 = scmp.ne.s32.totalorder %s1650_s13, %s1646_s12 }
  0x16   : > { %s1800_s8 = scalar_select %p67_p8, %s1658_s15, %s69_s29  }
  0x17   : > { %s1803_s9 = scalar_select %p121_p7, %s1650_s13, %s123_s7  }
  0x18   : > { %p134_p11 = scmp.eq.s32.totalorder %s1309_s23, 3  ;;  %p1312_p13 = scmp.ge.s32.totalorder %s1686_s22, 4 }
  0x1a   : > { %p1805_p12 = por %p134_p11, %p133_p10  ;;  %156 = sbr.rel (%p1312_p13) target bundleno = 107 (0x6b), region = 16 }
  0x21   : > { %159 = sbr.rel (!%p1778_p5) target bundleno = 45 (0x2d), region = 20  ;;  %s161_s11 = sand.u32 (%p1778_p5), 1, %s1666_s17  }
  0x22   : > { %s1376_s26 = smul.u32 (%p1778_p5), 20, %s1678_s20  ;;  %s2113_s0 = sld [smem:[#allocation7_spill]] (%p1778_p5) }
  0x23   : > { %s1458_s27 = smul.u32 (%p1778_p5), 40, %s161_s11 }
  0x25   : > { %s163_s23 = scalar_lea.vmem (%p1778_p5), [#allocation3], %s1458_s27 }
  0x28   : > { %s169_s5 = scalar_lea.vmem %s2113_s0, %s1376_s26 }
  0x29   : > { %v184_v0 = vld [vmem:[%s169_s5] sm:$0xff]  ;;  %v186_v1 = vld [vmem:[%s169_s5 + $0x8] sm:$0xff]  ;;  %v190_v3 = vld [vmem:[%s169_s5 + $0x30] sm:$0xff] }
  0x2a   : > { %v188_v2 = vld [vmem:[%s169_s5 + $0x28] sm:$0xff]  ;;  %185 = vst [vmem:[%s163_s23] sm:$0xff] %v184_v0  ;;  %187 = vst [vmem:[%s163_s23 + $0x8] sm:$0xff] %v186_v1  ;;  %v1314_v4 = vld [vmem:[%s169_s5 + $0x10] sm:$0xf] }
  0x2b   : > { %189 = vst [vmem:[%s163_s23 + $0x14] sm:$0xff] %v188_v2  ;;  %v1316_v5 = vld [vmem:[%s169_s5 + $0x38] sm:$0xf]  ;;  %191 = vst [vmem:[%s163_s23 + $0x1c] sm:$0xff] %v190_v3 }
  0x2c   : > { %1315 = vst [vmem:[%s163_s23 + $0x10] sm:$0xf] %v1314_v4  ;;  %1317 = vst [vmem:[%s163_s23 + $0x24] sm:$0xf] %v1316_v5 }
  0x2d PF: > { %208 = sbr.rel (!%p1792_p9) target bundleno = 107 (0x6b), region = 46  ;;  %s210_s28 = sand.u32 (%p1792_p9), 1, %s1658_s15  }
  0x2e   : > { %s1377_s7 = smul.u32 (%p1792_p9), 160, %s1678_s20  ;;  %s2114_s1 = sld [smem:[#allocation8_spill]] (%p1792_p9) }
  0x2f   : > { %s1459_s11 = smul.u32 (%p1792_p9), 320, %s210_s28 }
  0x30   : > { %s215_s26 = sadd.s32 (%p1792_p9), %s1682_s21, %s1377_s7 }
  0x31   : > { %s1319_s27 = sshll.u32 (%p1792_p9), %s215_s26, 2  ;;  %s1830_s6 = scalar_lea.vmem (%p1792_p9), [#allocation4], %s1459_s11 }
  0x34   : > { %s1825_s0 = scalar_lea.vmem %s2114_s1, %s1319_s27 }
  0x35   : > { %v233_v6 = vld [vmem:[%s1825_s0] sm:$0xf]  ;;  %v235_v7 = vld [vmem:[%s1825_s0 + $0x8] sm:$0xf]  ;;  %v237_v8 = vld [vmem:[%s1825_s0 + $0x10] sm:$0xf] }
  0x36   : > { %234 = vst [vmem:[%s1830_s6] sm:$0xf] %v233_v6  ;;  %236 = vst [vmem:[%s1830_s6 + $0x4] sm:$0xf] %v235_v7  ;;  %v239_v9 = vld [vmem:[%s1825_s0 + $0x18] sm:$0xf] }
  0x37   : > { %238 = vst [vmem:[%s1830_s6 + $0x8] sm:$0xf] %v237_v8  ;;  %v241_v10 = vld [vmem:[%s1825_s0 + $0x20] sm:$0xf]  ;;  %v243_v11 = vld [vmem:[%s1825_s0 + $0x28] sm:$0xf] }
  0x38   : > { %240 = vst [vmem:[%s1830_s6 + $0xc] sm:$0xf] %v239_v9  ;;  %242 = vst [vmem:[%s1830_s6 + $0x10] sm:$0xf] %v241_v10  ;;  %v245_v12 = vld [vmem:[%s1825_s0 + $0x30] sm:$0xf] }
  0x39   : > { %244 = vst [vmem:[%s1830_s6 + $0x14] sm:$0xf] %v243_v11  ;;  %v247_v13 = vld [vmem:[%s1825_s0 + $0x38] sm:$0xf]  ;;  %v249_v14 = vld [vmem:[%s1825_s0 + $0x40] sm:$0xf] }
  0x3a   : > { %246 = vst [vmem:[%s1830_s6 + $0x18] sm:$0xf] %v245_v12  ;;  %248 = vst [vmem:[%s1830_s6 + $0x1c] sm:$0xf] %v247_v13  ;;  %v251_v15 = vld [vmem:[%s1825_s0 + $0x48] sm:$0xf] }
  0x3b   : > { %250 = vst [vmem:[%s1830_s6 + $0x20] sm:$0xf] %v249_v14  ;;  %v253_v16 = vld [vmem:[%s1825_s0 + $0x50] sm:$0xf]  ;;  %v255_v17 = vld [vmem:[%s1825_s0 + $0x58] sm:$0xf] }
  0x3c   : > { %252 = vst [vmem:[%s1830_s6 + $0x24] sm:$0xf] %v251_v15  ;;  %254 = vst [vmem:[%s1830_s6 + $0x28] sm:$0xf] %v253_v16  ;;  %v257_v18 = vld [vmem:[%s1825_s0 + $0x60] sm:$0xf] }
  0x3d   : > { %256 = vst [vmem:[%s1830_s6 + $0x2c] sm:$0xf] %v255_v17  ;;  %v259_v19 = vld [vmem:[%s1825_s0 + $0x68] sm:$0xf]  ;;  %v261_v20 = vld [vmem:[%s1825_s0 + $0x70] sm:$0xf] }
  0x3e   : > { %258 = vst [vmem:[%s1830_s6 + $0x30] sm:$0xf] %v257_v18  ;;  %260 = vst [vmem:[%s1830_s6 + $0x34] sm:$0xf] %v259_v19  ;;  %v263_v21 = vld [vmem:[%s1825_s0 + $0x78] sm:$0xf] }
  0x3f   : > { %262 = vst [vmem:[%s1830_s6 + $0x38] sm:$0xf] %v261_v20  ;;  %v265_v22 = vld [vmem:[%s1825_s0 + $0x80] sm:$0xf]  ;;  %v267_v23 = vld [vmem:[%s1825_s0 + $0x88] sm:$0xf] }
  0x40   : > { %264 = vst [vmem:[%s1830_s6 + $0x3c] sm:$0xf] %v263_v21  ;;  %266 = vst [vmem:[%s1830_s6 + $0x40] sm:$0xf] %v265_v22  ;;  %v269_v24 = vld [vmem:[%s1825_s0 + $0x90] sm:$0xf] }
  0x41   : > { %268 = vst [vmem:[%s1830_s6 + $0x44] sm:$0xf] %v267_v23  ;;  %v271_v25 = vld [vmem:[%s1825_s0 + $0x98] sm:$0xf]  ;;  %v273_v26 = vld [vmem:[%s1825_s0 + $0xa0] sm:$0xf] }
  0x42   : > { %270 = vst [vmem:[%s1830_s6 + $0x48] sm:$0xf] %v269_v24  ;;  %272 = vst [vmem:[%s1830_s6 + $0x4c] sm:$0xf] %v271_v25  ;;  %v275_v27 = vld [vmem:[%s1825_s0 + $0xa8] sm:$0xf] }
  0x43   : > { %274 = vst [vmem:[%s1830_s6 + $0x50] sm:$0xf] %v273_v26  ;;  %v277_v28 = vld [vmem:[%s1825_s0 + $0xb0] sm:$0xf]  ;;  %v279_v29 = vld [vmem:[%s1825_s0 + $0xb8] sm:$0xf] }
  0x44   : > { %276 = vst [vmem:[%s1830_s6 + $0x54] sm:$0xf] %v275_v27  ;;  %278 = vst [vmem:[%s1830_s6 + $0x58] sm:$0xf] %v277_v28  ;;  %v281_v30 = vld [vmem:[%s1825_s0 + $0xc0] sm:$0xf] }
  0x45   : > { %280 = vst [vmem:[%s1830_s6 + $0x5c] sm:$0xf] %v279_v29  ;;  %v283_v31 = vld [vmem:[%s1825_s0 + $0xc8] sm:$0xf]  ;;  %v285_v32 = vld [vmem:[%s1825_s0 + $0xd0] sm:$0xf] }
  0x46   : > { %282 = vst [vmem:[%s1830_s6 + $0x60] sm:$0xf] %v281_v30  ;;  %284 = vst [vmem:[%s1830_s6 + $0x64] sm:$0xf] %v283_v31  ;;  %v287_v33 = vld [vmem:[%s1825_s0 + $0xd8] sm:$0xf] }
  0x47   : > { %286 = vst [vmem:[%s1830_s6 + $0x68] sm:$0xf] %v285_v32  ;;  %v289_v34 = vld [vmem:[%s1825_s0 + $0xe0] sm:$0xf]  ;;  %v291_v35 = vld [vmem:[%s1825_s0 + $0xe8] sm:$0xf] }
  0x48   : > { %288 = vst [vmem:[%s1830_s6 + $0x6c] sm:$0xf] %v287_v33  ;;  %290 = vst [vmem:[%s1830_s6 + $0x70] sm:$0xf] %v289_v34  ;;  %v293_v36 = vld [vmem:[%s1825_s0 + $0xf0] sm:$0xf] }
  0x49   : > { %292 = vst [vmem:[%s1830_s6 + $0x74] sm:$0xf] %v291_v35  ;;  %v295_v37 = vld [vmem:[%s1825_s0 + $0xf8] sm:$0xf]  ;;  %v297_v38 = vld [vmem:[%s1825_s0 + $0x100] sm:$0xf] }
  0x4a   : > { %294 = vst [vmem:[%s1830_s6 + $0x78] sm:$0xf] %v293_v36  ;;  %296 = vst [vmem:[%s1830_s6 + $0x7c] sm:$0xf] %v295_v37  ;;  %v299_v39 = vld [vmem:[%s1825_s0 + $0x108] sm:$0xf] }
  0x4b   : > { %298 = vst [vmem:[%s1830_s6 + $0x80] sm:$0xf] %v297_v38  ;;  %v301_v40 = vld [vmem:[%s1825_s0 + $0x110] sm:$0xf]  ;;  %v303_v41 = vld [vmem:[%s1825_s0 + $0x118] sm:$0xf] }
  0x4c   : > { %300 = vst [vmem:[%s1830_s6 + $0x84] sm:$0xf] %v299_v39  ;;  %302 = vst [vmem:[%s1830_s6 + $0x88] sm:$0xf] %v301_v40  ;;  %v305_v42 = vld [vmem:[%s1825_s0 + $0x120] sm:$0xf] }
  0x4d   : > { %304 = vst [vmem:[%s1830_s6 + $0x8c] sm:$0xf] %v303_v41  ;;  %v307_v43 = vld [vmem:[%s1825_s0 + $0x128] sm:$0xf]  ;;  %v309_v44 = vld [vmem:[%s1825_s0 + $0x130] sm:$0xf] }
  0x4e   : > { %306 = vst [vmem:[%s1830_s6 + $0x90] sm:$0xf] %v305_v42  ;;  %308 = vst [vmem:[%s1830_s6 + $0x94] sm:$0xf] %v307_v43  ;;  %v311_v45 = vld [vmem:[%s1825_s0 + $0x138] sm:$0xf] }
  0x4f   : > { %310 = vst [vmem:[%s1830_s6 + $0x98] sm:$0xf] %v309_v44  ;;  %v313_v46 = vld [vmem:[%s1825_s0 + $0x140] sm:$0xf]  ;;  %v315_v47 = vld [vmem:[%s1825_s0 + $0x148] sm:$0xf] }
  0x50   : > { %312 = vst [vmem:[%s1830_s6 + $0x9c] sm:$0xf] %v311_v45  ;;  %314 = vst [vmem:[%s1830_s6 + $0xa0] sm:$0xf] %v313_v46  ;;  %v317_v48 = vld [vmem:[%s1825_s0 + $0x150] sm:$0xf] }
  0x51   : > { %316 = vst [vmem:[%s1830_s6 + $0xa4] sm:$0xf] %v315_v47  ;;  %v319_v49 = vld [vmem:[%s1825_s0 + $0x158] sm:$0xf]  ;;  %v321_v50 = vld [vmem:[%s1825_s0 + $0x160] sm:$0xf] }
  0x52   : > { %318 = vst [vmem:[%s1830_s6 + $0xa8] sm:$0xf] %v317_v48  ;;  %320 = vst [vmem:[%s1830_s6 + $0xac] sm:$0xf] %v319_v49  ;;  %v323_v51 = vld [vmem:[%s1825_s0 + $0x168] sm:$0xf] }
  0x53   : > { %322 = vst [vmem:[%s1830_s6 + $0xb0] sm:$0xf] %v321_v50  ;;  %v325_v52 = vld [vmem:[%s1825_s0 + $0x170] sm:$0xf]  ;;  %v327_v53 = vld [vmem:[%s1825_s0 + $0x178] sm:$0xf] }
  0x54   : > { %324 = vst [vmem:[%s1830_s6 + $0xb4] sm:$0xf] %v323_v51  ;;  %326 = vst [vmem:[%s1830_s6 + $0xb8] sm:$0xf] %v325_v52  ;;  %v329_v54 = vld [vmem:[%s1825_s0 + $0x180] sm:$0xf] }
  0x55   : > { %328 = vst [vmem:[%s1830_s6 + $0xbc] sm:$0xf] %v327_v53  ;;  %v331_v55 = vld [vmem:[%s1825_s0 + $0x188] sm:$0xf]  ;;  %v333_v56 = vld [vmem:[%s1825_s0 + $0x190] sm:$0xf] }
  0x56   : > { %330 = vst [vmem:[%s1830_s6 + $0xc0] sm:$0xf] %v329_v54  ;;  %332 = vst [vmem:[%s1830_s6 + $0xc4] sm:$0xf] %v331_v55  ;;  %v335_v57 = vld [vmem:[%s1825_s0 + $0x198] sm:$0xf] }
  0x57   : > { %334 = vst [vmem:[%s1830_s6 + $0xc8] sm:$0xf] %v333_v56  ;;  %v337_v58 = vld [vmem:[%s1825_s0 + $0x1a0] sm:$0xf]  ;;  %v339_v59 = vld [vmem:[%s1825_s0 + $0x1a8] sm:$0xf] }
  0x58   : > { %336 = vst [vmem:[%s1830_s6 + $0xcc] sm:$0xf] %v335_v57  ;;  %338 = vst [vmem:[%s1830_s6 + $0xd0] sm:$0xf] %v337_v58  ;;  %v341_v60 = vld [vmem:[%s1825_s0 + $0x1b0] sm:$0xf] }
  0x59   : > { %340 = vst [vmem:[%s1830_s6 + $0xd4] sm:$0xf] %v339_v59  ;;  %v343_v61 = vld [vmem:[%s1825_s0 + $0x1b8] sm:$0xf]  ;;  %v345_v62 = vld [vmem:[%s1825_s0 + $0x1c0] sm:$0xf] }
  0x5a   : > { %342 = vst [vmem:[%s1830_s6 + $0xd8] sm:$0xf] %v341_v60  ;;  %344 = vst [vmem:[%s1830_s6 + $0xdc] sm:$0xf] %v343_v61  ;;  %v347_v63 = vld [vmem:[%s1825_s0 + $0x1c8] sm:$0xf] }
  0x5b   : > { %346 = vst [vmem:[%s1830_s6 + $0xe0] sm:$0xf] %v345_v62  ;;  %v349_v0 = vld [vmem:[%s1825_s0 + $0x1d0] sm:$0xf]  ;;  %v351_v1 = vld [vmem:[%s1825_s0 + $0x1d8] sm:$0xf] }
  0x5c   : > { %348 = vst [vmem:[%s1830_s6 + $0xe4] sm:$0xf] %v347_v63  ;;  %350 = vst [vmem:[%s1830_s6 + $0xe8] sm:$0xf] %v349_v0  ;;  %v353_v2 = vld [vmem:[%s1825_s0 + $0x1e0] sm:$0xf] }
  0x5d   : > { %352 = vst [vmem:[%s1830_s6 + $0xec] sm:$0xf] %v351_v1  ;;  %v355_v3 = vld [vmem:[%s1825_s0 + $0x1e8] sm:$0xf]  ;;  %v357_v4 = vld [vmem:[%s1825_s0 + $0x1f0] sm:$0xf] }
  0x5e   : > { %354 = vst [vmem:[%s1830_s6 + $0xf0] sm:$0xf] %v353_v2  ;;  %356 = vst [vmem:[%s1830_s6 + $0xf4] sm:$0xf] %v355_v3  ;;  %v359_v5 = vld [vmem:[%s1825_s0 + $0x1f8] sm:$0xf] }
  0x5f   : > { %358 = vst [vmem:[%s1830_s6 + $0xf8] sm:$0xf] %v357_v4  ;;  %v361_v6 = vld [vmem:[%s1825_s0 + $0x200] sm:$0xf]  ;;  %v363_v7 = vld [vmem:[%s1825_s0 + $0x208] sm:$0xf] }
  0x60   : > { %360 = vst [vmem:[%s1830_s6 + $0xfc] sm:$0xf] %v359_v5  ;;  %362 = vst [vmem:[%s1830_s6 + $0x100] sm:$0xf] %v361_v6  ;;  %v365_v8 = vld [vmem:[%s1825_s0 + $0x210] sm:$0xf] }
  0x61   : > { %364 = vst [vmem:[%s1830_s6 + $0x104] sm:$0xf] %v363_v7  ;;  %v367_v9 = vld [vmem:[%s1825_s0 + $0x218] sm:$0xf]  ;;  %v369_v10 = vld [vmem:[%s1825_s0 + $0x220] sm:$0xf] }
  0x62   : > { %366 = vst [vmem:[%s1830_s6 + $0x108] sm:$0xf] %v365_v8  ;;  %368 = vst [vmem:[%s1830_s6 + $0x10c] sm:$0xf] %v367_v9  ;;  %v371_v11 = vld [vmem:[%s1825_s0 + $0x228] sm:$0xf] }
  0x63   : > { %370 = vst [vmem:[%s1830_s6 + $0x110] sm:$0xf] %v369_v10  ;;  %v373_v12 = vld [vmem:[%s1825_s0 + $0x230] sm:$0xf]  ;;  %v375_v13 = vld [vmem:[%s1825_s0 + $0x238] sm:$0xf] }
  0x64   : > { %372 = vst [vmem:[%s1830_s6 + $0x114] sm:$0xf] %v371_v11  ;;  %374 = vst [vmem:[%s1830_s6 + $0x118] sm:$0xf] %v373_v12  ;;  %v377_v14 = vld [vmem:[%s1825_s0 + $0x240] sm:$0xf] }
  0x65   : > { %376 = vst [vmem:[%s1830_s6 + $0x11c] sm:$0xf] %v375_v13  ;;  %v379_v15 = vld [vmem:[%s1825_s0 + $0x248] sm:$0xf]  ;;  %v381_v16 = vld [vmem:[%s1825_s0 + $0x250] sm:$0xf] }
  0x66   : > { %378 = vst [vmem:[%s1830_s6 + $0x120] sm:$0xf] %v377_v14  ;;  %380 = vst [vmem:[%s1830_s6 + $0x124] sm:$0xf] %v379_v15  ;;  %v383_v17 = vld [vmem:[%s1825_s0 + $0x258] sm:$0xf] }
  0x67   : > { %382 = vst [vmem:[%s1830_s6 + $0x128] sm:$0xf] %v381_v16  ;;  %v385_v18 = vld [vmem:[%s1825_s0 + $0x260] sm:$0xf]  ;;  %v387_v19 = vld [vmem:[%s1825_s0 + $0x268] sm:$0xf] }
  0x68   : > { %384 = vst [vmem:[%s1830_s6 + $0x12c] sm:$0xf] %v383_v17  ;;  %386 = vst [vmem:[%s1830_s6 + $0x130] sm:$0xf] %v385_v18  ;;  %v389_v20 = vld [vmem:[%s1825_s0 + $0x270] sm:$0xf] }
  0x69   : > { %388 = vst [vmem:[%s1830_s6 + $0x134] sm:$0xf] %v387_v19  ;;  %v391_v21 = vld [vmem:[%s1825_s0 + $0x278] sm:$0xf]  ;;  %390 = vst [vmem:[%s1830_s6 + $0x138] sm:$0xf] %v389_v20 }
  0x6a   : > { %392 = vst [vmem:[%s1830_s6 + $0x13c] sm:$0xf] %v391_v21 }
  0x6b PF: > { %p1320_p0 = scmp.ge.s32.totalorder %s1686_s22, 1  ;;  %p580_p1 = scmp.lt.s32.totalorder %s1686_s22, 5 }
  0x6d   : > { %p581_p2 = pnand %p1320_p0, %p580_p1 }
  0x6e   : > { %s587_s5 = sand.u32 (!%p581_p2), 1, %s1662_s16   ;;  %s594_s23 = sand.u32 (!%p581_p2), 1, %s1654_s14  }
  0x6f   : > { %584 = sbr.rel (%p581_p2) target bundleno = 433 (0x1b1), region = 91  ;;  %s620_s7 = sand.u32 (!%p581_p2), 1, %s1646_s12  }
  0x70   : > { %s1460_s28 = smul.u32 (!%p581_p2), 40, %s587_s5  ;;  %s1321_s11 = sshll.u32 (!%p581_p2), %s620_s7, 3 }
  0x71   : > { %s1461_s0 = smul.u32 (!%p581_p2), 320, %s594_s23  ;;  %p626_p3 = scmp.lt.s32.totalorder (!%p581_p2), %s1674_s19, 1 }
  0x72   : > { %s2002_s6 = scalar_lea.vmem (!%p581_p2), [#allocation3], %s1460_s28  ;;  %s2006_s25 = scalar_lea.vmem (!%p581_p2), [#allocation5], %s1321_s11 }
  0x73   : > { %s2004_s1 = scalar_lea.vmem (!%p581_p2), [#allocation4], %s1461_s0  ;;  %p1322_p4 = scmp.ne.s32.totalorder (!%p581_p2), %s1670_s18, 0 }
  0x76   : > { %s1996_s26 = scalar_select %p626_p3, %s1674_s19, 1 }
  0x77   : > { %634 = sbr.rel (%p1322_p4) target bundleno = 126 (0x7e), region = 103  ;;  %v1688_v22 = vmov (!%p1322_p4), 0.0  }
  0x78   : > { %s628_s4 = scalar_lea.vmem %s2104_s2, %s1996_s26  ;;  %635 = vst [vmem:[#allocation2] sm:$0xff] (!%p1322_p4), %v1688_v22  ;;  %636 = vst [vmem:[#allocation2 + $0x8] sm:$0xff] (!%p1322_p4), %v1688_v22 }
  0x7e PF: > { %v1553_v23 = vld [vmem:[%s2004_s1 + $0x40] sm:$0xff]   ;;  %v1557_v27 = vld [vmem:[%s2004_s1 + $0x48] sm:$0xff]   ;;  %v1561_v31 = vld [vmem:[%s2004_s1 + $0x50] sm:$0xff]   ;;  %v1689_v57 = vmov 0.0   ;;  %vm1690_vm0 = vmmov 0   ;;  %p1368_p5 = scmp.ne.s32.totalorder %s1670_s18, 1 }
  0x7f   : > { %v1554_v24 = vld [vmem:[%s2004_s1 + $0xc0] sm:$0xff]   ;;  %1385 = vmatprep.subr.bf16.mxu0 %v1553_v23  ;;  %v1558_v28 = vld [vmem:[%s2004_s1 + $0xc8] sm:$0xff]   ;;  %v1562_v32 = vld [vmem:[%s2004_s1 + $0xd0] sm:$0xff]  }
  0x80   : > { %v1555_v25 = vld [vmem:[%s2004_s1] sm:$0xff]   ;;  %1407 = vmatprep.subr.bf16.mxu1 %v1554_v24  ;;  %v1559_v29 = vld [vmem:[%s2004_s1 + $0x8] sm:$0xff]   ;;  %v1563_v33 = vld [vmem:[%s2004_s1 + $0x10] sm:$0xff]  }
  0x81   : > { %v1556_v26 = vld [vmem:[%s2004_s1 + $0x80] sm:$0xff]   ;;  %1386 = vmatpush3.bf16.msra.mxu0 %v1555_v25  ;;  %v1560_v30 = vld [vmem:[%s2004_s1 + $0x88] sm:$0xff]   ;;  %v1564_v34 = vld [vmem:[%s2004_s1 + $0x90] sm:$0xff]  }
  0x82   : > { %1408 = vmatpush3.bf16.msra.mxu1 %v1556_v26  ;;  %1387 = vmatprep.subr.bf16.mxu0 %v1557_v27  ;;  %v1565_v35 = vld [vmem:[%s2004_s1 + $0x58] sm:$0xff]   ;;  %v1569_v39 = vld [vmem:[%s2004_s1 + $0x60] sm:$0xff]   ;;  %v1573_v43 = vld [vmem:[%s2004_s1 + $0x68] sm:$0xff]  }
  0x83   : > { %1409 = vmatprep.subr.bf16.mxu1 %v1558_v28  ;;  %v1566_v36 = vld [vmem:[%s2004_s1 + $0xd8] sm:$0xff]   ;;  %v1570_v40 = vld [vmem:[%s2004_s1 + $0xe0] sm:$0xff]   ;;  %v1574_v44 = vld [vmem:[%s2004_s1 + $0xe8] sm:$0xff]  }
  0x84   : > { %v1567_v37 = vld [vmem:[%s2004_s1 + $0x18] sm:$0xff]   ;;  %v1571_v41 = vld [vmem:[%s2004_s1 + $0x20] sm:$0xff]   ;;  %v1575_v45 = vld [vmem:[%s2004_s1 + $0x28] sm:$0xff]  }
  0x85   : > { %1388 = vmatpush3.bf16.msra.mxu0 %v1559_v29  ;;  %v1568_v38 = vld [vmem:[%s2004_s1 + $0x98] sm:$0xff]   ;;  %v1572_v42 = vld [vmem:[%s2004_s1 + $0xa0] sm:$0xff]   ;;  %v1576_v46 = vld [vmem:[%s2004_s1 + $0xa8] sm:$0xff]  }
  0x86   : > { %1410 = vmatpush3.bf16.msra.mxu1 %v1560_v30  ;;  %1389 = vmatprep.subr.bf16.mxu0 %v1561_v31  ;;  %v1577_v47 = vld [vmem:[%s2004_s1 + $0x70] sm:$0xff]   ;;  %v1581_v51 = vld [vmem:[%s2004_s1 + $0x78] sm:$0xff]   ;;  %v1591_v60 = vld [vmem:[%s2004_s1 + $0x100] sm:$0xff]  }
  0x87   : > { %1411 = vmatprep.subr.bf16.mxu1 %v1562_v32  ;;  %v1578_v48 = vld [vmem:[%s2004_s1 + $0xf0] sm:$0xff]   ;;  %v1582_v52 = vld [vmem:[%s2004_s1 + $0xf8] sm:$0xff]   ;;  %v1592_v61 = vld [vmem:[%s2004_s1 + $0x108] sm:$0xff]  }
  0x88   : > { %v1579_v49 = vld [vmem:[%s2004_s1 + $0x30] sm:$0xff]   ;;  %v1583_v53 = vld [vmem:[%s2004_s1 + $0x38] sm:$0xff]   ;;  %v1595_v0 = vld [vmem:[%s2004_s1 + $0x120] sm:$0xff]  }
  0x89   : > { %1390 = vmatpush3.bf16.msra.mxu0 %v1563_v33  ;;  %v1580_v50 = vld [vmem:[%s2004_s1 + $0xb0] sm:$0xff]   ;;  %v1584_v54 = vld [vmem:[%s2004_s1 + $0xb8] sm:$0xff]   ;;  %v1596_v1 = vld [vmem:[%s2004_s1 + $0x128] sm:$0xff]  }
  0x8a   : > { %1412 = vmatpush3.bf16.msra.mxu1 %v1564_v34  ;;  %1391 = vmatprep.subr.bf16.mxu0 %v1565_v35  ;;  %v1585_v55 = vld [vmem:[%s2002_s6] ss:$20 sps:$4 sm:$0xff]   ;;  %v1587_v56 = vld [vmem:[%s2002_s6 + $0x4] ss:$20 sps:$4 sm:$0xff]   ;;  %v1588_v58 = vld [vmem:[%s2002_s6 + $0x8] ss:$20 sps:$4 sm:$0xff]  }
  0x8b   : > { %1413 = vmatprep.subr.bf16.mxu1 %v1566_v36  ;;  %v1590_v59 = vld [vmem:[%s2002_s6 + $0xc] ss:$20 sps:$4 sm:$0xff]   ;;  %1023 = vmatprep.mubr.bf16.mxu0 %v1587_v56  ;;  %v1599_v4 = vld [vmem:[%s2002_s6 + $0x10] ss:$20 sps:$4 sm:$0xff]  }
  0x8c   : > { %1064 = vmatprep.mubr.bf16.mxu1 %v1590_v59  ;;  %v1593_v62 = vld [vmem:[%s2004_s1 + $0x110] sm:$0xff]   ;;  %v1594_v63 = vld [vmem:[%s2004_s1 + $0x118] sm:$0xff]   ;;  %v637_v19 = vld [vmem:[#allocation2] sm:$0xff] }
  0x8d   : > { %1392 = vmatpush3.bf16.msra.mxu0 %v1567_v37  ;;  %v1597_v2 = vld [vmem:[%s2004_s1 + $0x130] sm:$0xff]   ;;  %v1598_v3 = vld [vmem:[%s2004_s1 + $0x138] sm:$0xff]   ;;  %v638_v23 = vld [vmem:[#allocation2 + $0x8] sm:$0xff] }
  0x8e   : > { %1414 = vmatpush3.bf16.msra.mxu1 %v1568_v38  ;;  %1393 = vmatprep.subr.bf16.mxu0 %v1569_v39  ;;  %v1369_v31 = vld [vmem:[%s628_s4] ss:$0 sm:$0xff] (!%p1368_p5) }
  0x8f   : > { %1415 = vmatprep.subr.bf16.mxu1 %v1570_v40 }
  0x91   : > { %1394 = vmatpush3.bf16.msra.mxu0 %v1571_v41 }
  0x92   : > { %1416 = vmatpush3.bf16.msra.mxu1 %v1572_v42  ;;  %1395 = vmatprep.subr.bf16.mxu0 %v1573_v43 }
  0x93   : > { %1417 = vmatprep.subr.bf16.mxu1 %v1574_v44 }
  0x95   : > { %1396 = vmatpush3.bf16.msra.mxu0 %v1575_v45 }
  0x96   : > { %1418 = vmatpush3.bf16.msra.mxu1 %v1576_v46  ;;  %1397 = vmatprep.subr.bf16.mxu0 %v1577_v47 }
  0x97   : > { %1419 = vmatprep.subr.bf16.mxu1 %v1578_v48 }
  0x99   : > { %1398 = vmatpush3.bf16.msra.mxu0 %v1579_v49 }
  0x9a   : > { %1420 = vmatpush3.bf16.msra.mxu1 %v1580_v50  ;;  %1399 = vmatprep.subr.bf16.mxu0 %v1581_v51 }
  0x9b   : > { %1421 = vmatprep.subr.bf16.mxu1 %v1582_v52 }
  0x9d   : > { %1400 = vmatpush3.bf16.msra.mxu0 %v1583_v53 }
  0x9e   : > { %1422 = vmatpush3.bf16.msra.mxu1 %v1584_v54  ;;  %1438 = vmatprep.subr.bf16.mxu0 %v1689_v57 }
  0xa0   : > { %1024 = vmatmul.mubr.bf16.vlgmr.msra.gmra.mrb[0].mxu0 %v1585_v55 }
  0xa1   : > { %1065 = vmatmul.mubr.bf16.vlgmr.msra.gmra.mrb[0].mxu1 %v1588_v58  ;;  %1439 = vmatpush3.bf16.msra.mxu0 %v1591_v60 }
  0xa2   : > { %1440 = vmatprep.subr.bf16.mxu0 %v1689_v57  ;;  %1454 = vmatprep.mubr.msk.bf16.mxu0 %vm1690_vm0, %v1689_v57 }
  0xa5   : > { %1441 = vmatpush3.bf16.msra.mxu0 %v1592_v61 }
  0xa6   : > { %1442 = vmatprep.subr.bf16.mxu0 %v1689_v57 }
  0xa9   : > { %1443 = vmatpush3.bf16.msra.mxu0 %v1593_v62 }
  0xaa   : > { %1444 = vmatprep.subr.bf16.mxu0 %v1689_v57 }
  0xad   : > { %1445 = vmatpush3.bf16.msra.mxu0 %v1594_v63 }
  0xae   : > { %1446 = vmatprep.subr.bf16.mxu0 %v1689_v57 }
  0xb1   : > { %1447 = vmatpush3.bf16.msra.mxu0 %v1595_v0 }
  0xb2   : > { %1448 = vmatprep.subr.bf16.mxu0 %v1689_v57 }
  0xb5   : > { %1449 = vmatpush3.bf16.msra.mxu0 %v1596_v1 }
  0xb6   : > { %1450 = vmatprep.subr.bf16.mxu0 %v1689_v57 }
  0xb9   : > { %1451 = vmatpush3.bf16.msra.mxu0 %v1597_v2 }
  0xba   : > { %1452 = vmatprep.subr.bf16.mxu0 %v1689_v57 }
  0xbd   : > { %1453 = vmatpush3.bf16.msra.mxu0 %v1598_v3 }
  0xc0   : > { %1455 = vmatmul.mubr.bf16.vlgmr.msra.gmra.mrb[4].mxu0 %v1599_v4 }
 0x173   : > { %v1401_v5 = vpop.f32.mrb[0].mxu0 }
 0x174   : > { %v1423_v6 = vpop.f32.mrb[0].mxu1  ;;  %v1402_v7 = vpop.f32.mrb[1].mxu0 }
 0x175   : > { %v1403_v8 = vadd.f32 %v1402_v7, %v1401_v5  ;;  %v1424_v9 = vpop.f32.mrb[1].mxu1  ;;  %v1404_v10 = vpop.f32.mrb[2].mxu0 }
 0x176   : > { %v1425_v11 = vadd.f32 %v1424_v9, %v1423_v6  ;;  %v1426_v12 = vpop.f32.mrb[2].mxu1  ;;  %v1405_v13 = vpop.f32.mrb[3].mxu0 }
 0x177   : > { %v1406_v14 = vadd.f32 %v1405_v13, %v1404_v10  ;;  %v1427_v15 = vpop.f32.mrb[3].mxu1 }
 0x178   : > { %v1428_v16 = vadd.f32 %v1427_v15, %v1426_v12  ;;  %v1067_v17 = vadd.f32 %v1425_v11, %v1403_v8 }
 0x17a   : > { %v1070_v18 = vadd.f32 %v1428_v16, %v1406_v14 }
 0x193   : > { %v1107_v20 = vpop.f32.mrb[4].mxu0 }
 0x194   : > { %v1108_v21 = vadd.f32 %v1107_v20, %v1067_v17  ;;  %v1456_v22 = vpop.f32.mrb[5].mxu0  ;;  %1121 = sbr.rel (%p1368_p5) target bundleno = 425 (0x1a9), region = 107 }
 0x195   : > { %v1110_v24 = vpop.f32.mrb[6].mxu0 }
 0x196   : > { %v1114_v25 = vadd.f32 %v1108_v21, %v637_v19  ;;  %v1111_v26 = vadd.f32 %v1110_v24, %v1070_v18  ;;  %v1457_v27 = vpop.f32.mrb[7].mxu0 }
 0x198   : > { %1116 = vst [vmem:[#allocation2] sm:$0xff] %v1114_v25  ;;  %v1115_v28 = vadd.f32 %v1111_v26, %v638_v23 }
 0x19a   : > { %1117 = vst [vmem:[#allocation2 + $0x8] sm:$0xff] %v1115_v28 }
 0x19f   : > { %v1122_v29 = vld [vmem:[#allocation2] sm:$0xff] }
 0x1a0   : > { %v1131_v32 = vadd.f32 %v1369_v31, %v1122_v29 }
 0x1a1   : > { %v1123_v30 = vld [vmem:[#allocation2 + $0x8] sm:$0xff] }
 0x1a2   : > { %v1132_v33 = vadd.f32 %v1369_v31, %v1123_v30  ;;  %v1133_v34 = vmax.f32 %v1131_v32, 0.0 }
 0x1a4   : > { %v1134_v35 = vmax.f32 %v1132_v33, 0.0 }
 0x1a6   : > { %v1383_v36 = vpack.c.bf16 %v1134_v35, %v1133_v34 }
 0x1a8   : > { %1384 = vst [vmem:[%s2006_s25] sm:$0xff] %v1383_v36  }
 0x1a9 PF: > { %1151 = sbr.rel (!%p1805_p12) target bundleno = 433 (0x1b1), region = 111  ;;  %s1373_s14 = sshll.u32 (%p1805_p12), %s1674_s19, 2 }
 0x1aa   : > { %s1156_s5 = scalar_lea.vmem (%p1805_p12), %s2105_s3, %s1373_s14 }
 0x1af   : > { %v1172_v37 = vld [vmem:[%s2006_s25] sm:$0xf] (%p1805_p12)  ;;  %v1174_v38 = vld [vmem:[%s2006_s25 + $0x4] sm:$0xf] (%p1805_p12) }
 0x1b0   : > { %1173 = vst [vmem:[%s1156_s5] sm:$0xf] %v1172_v37  ;;  %1175 = vst [vmem:[%s1156_s5 + $0x8] sm:$0xf] %v1174_v38 }
 0x1b1 PF: > { %s13_s22 = sadd.s32 1, %s1686_s22   ;;  %s2115_s25 = sld [smem:[#allocation6_spill]] }
 0x1b2   : > { %p10_p6 = scmp.ge.s32.totalorder %s13_s22, 6   ;;  %s2116_s12 = smov %s1650_s13 }
 0x1b3   : > { %s2117_s13 = smov %s1803_s9  ;;  %s2118_s14 = smov %s1658_s15 }
 0x1b4   : > { %s2119_s15 = smov %s1800_s8  ;;  %s2120_s16 = smov %s1666_s17 }
 0x1b5   : > { %s2121_s17 = smov %s1786_s30  ;;  %s2122_s18 = smov %s1678_s20 }
 0x1b6   : > { %s2123_s19 = smov %s1682_s21  ;;  %s2124_s20 = smov %s2127_s24 }
 0x1b7   : > { %s2125_s21 = smov %s2115_s25  ;;  %12 = sbr.rel (!%p10_p6) target bundleno = 9 (0x9), region = 200 }

// kernel: simple_dog_emotion_model.34
= control target key start
LH: loop header
LB: loop body
LE: loop exit
PB: predicated region body
PF: predicated region fallthrough
CT: control target
= control target key end

     0   :  { %s820_s12 = smov 0   ;;  %s822_s13 = smov 0   ;;  %s922_s0 = inlined_call_operand.vmem [shape: bf16[16,128], index: 0, kind: input, shape index: {}]   ;;  %s923_s1 = inlined_call_operand.vmem [shape: bf16[128,256], index: 1, kind: input, shape index: {}]   ;;  %s924_s2 = inlined_call_operand.vmem [shape: f32[1,256], index: 2, kind: input, shape index: {}]   ;;  %s925_s3 = inlined_call_operand.vmem [shape: bf16[16,256], index: 3, kind: output, shape index: {}]  }
   0x1   :  { %s824_s14 = smov 0   ;;  %s826_s15 = smov 0  }
   0x2   :  { %s828_s16 = smov 0  }
   0x3 LB: > { %s28_s17 = sadd.s32 1, %s792_s15  ;;  %s645_s18 = sadd.s32 4294967295, %s796_s16   ;;  %s796_s16 = sphi %s828_s16, %s13_s16   ;;  %s792_s15 = sphi %s826_s15, %s930_s15   ;;  %s788_s14 = sphi %s824_s14, %s929_s14   ;;  %s784_s13 = sphi %s822_s13, %s928_s13   ;;  %s780_s12 = sphi %s820_s12, %s927_s12  }
   0x4   : > { %p30_p0 = scmp.ge.s32.totalorder %s28_s17, 2  ;;  %p76_p1 = scmp.ne.s32.totalorder %s784_s13, %s780_s12 }
   0x5   : > { %p77_p2 = scmp.eq.s32.totalorder %s796_s16, 0  ;;  %p134_p4 = scmp.eq.s32.totalorder %s645_s18, 1 }
   0x6   : > { %s932_s17 = smov (%p30_p0, %s28_s17), 0  ;;  %s69_s20 = sadd.s32 1, %s784_s13 }
   0x7   : > { %p78_p3 = por %p77_p2, %p76_p1  ;;  %s65_s19 = ssub.s32 %s792_s15, %s932_s17 }
   0x8   : > { %p67_p5 = scmp.eq.s32.totalorder %s65_s19, 0  ;;  %p855_p6 = por %p134_p4, %p76_p1 }
   0x9   : > { %p649_p7 = scmp.ge.s32.totalorder %s796_s16, 2 }
   0xa   : > { %s860_s22 = scalar_select %p67_p5, %s784_s13, %s69_s20  }
   0xb   : > { %168 = sbr.rel (%p649_p7) target bundleno = 32 (0x20), region = 20 }
  0x12   : > { %171 = sbr.rel (!%p78_p3) target bundleno = 32 (0x20), region = 24  ;;  %s173_s23 = sand.u32 (%p78_p3), 1, %s784_s13  }
  0x13   : > { %s651_s24 = sshll.u32 (%p78_p3), %s792_s15, 2  ;;  %s650_s25 = sshll.u32 (%p78_p3), %s173_s23, 6 }
  0x14   : > { %s868_s28 = scalar_lea.vmem (%p78_p3), %s923_s1, %s651_s24  ;;  %s175_s29 = scalar_lea.vmem (%p78_p3), [#allocation3], %s650_s25 }
  0x15   : > { %v196_v0 = vld [vmem:[%s868_s28] sm:$0xf] (%p78_p3)  ;;  %v198_v1 = vld [vmem:[%s868_s28 + $0x8] sm:$0xf] (%p78_p3)  ;;  %v200_v2 = vld [vmem:[%s868_s28 + $0x10] sm:$0xf] (%p78_p3) }
  0x16   : > { %197 = vst [vmem:[%s175_s29] sm:$0xf] (%p78_p3), %v196_v0  ;;  %199 = vst [vmem:[%s175_s29 + $0x4] sm:$0xf] (%p78_p3), %v198_v1  ;;  %v202_v3 = vld [vmem:[%s868_s28 + $0x18] sm:$0xf] (%p78_p3) }
  0x17   : > { %v204_v4 = vld [vmem:[%s868_s28 + $0x20] sm:$0xf] (%p78_p3)  ;;  %201 = vst [vmem:[%s175_s29 + $0x8] sm:$0xf] (%p78_p3), %v200_v2  ;;  %203 = vst [vmem:[%s175_s29 + $0xc] sm:$0xf] (%p78_p3), %v202_v3 }
  0x18   : > { %205 = vst [vmem:[%s175_s29 + $0x10] sm:$0xf] (%p78_p3), %v204_v4  ;;  %v206_v5 = vld [vmem:[%s868_s28 + $0x28] sm:$0xf] (%p78_p3)  ;;  %v208_v6 = vld [vmem:[%s868_s28 + $0x30] sm:$0xf] (%p78_p3) }
  0x19   : > { %v210_v7 = vld [vmem:[%s868_s28 + $0x38] sm:$0xf]  ;;  %207 = vst [vmem:[%s175_s29 + $0x14] sm:$0xf] %v206_v5  ;;  %209 = vst [vmem:[%s175_s29 + $0x18] sm:$0xf] %v208_v6 }
  0x1a   : > { %211 = vst [vmem:[%s175_s29 + $0x1c] sm:$0xf] %v210_v7  ;;  %v212_v8 = vld [vmem:[%s868_s28 + $0x40] sm:$0xf]  ;;  %v214_v9 = vld [vmem:[%s868_s28 + $0x48] sm:$0xf] }
  0x1b   : > { %v216_v10 = vld [vmem:[%s868_s28 + $0x50] sm:$0xf]  ;;  %213 = vst [vmem:[%s175_s29 + $0x20] sm:$0xf] %v212_v8  ;;  %215 = vst [vmem:[%s175_s29 + $0x24] sm:$0xf] %v214_v9 }
  0x1c   : > { %217 = vst [vmem:[%s175_s29 + $0x28] sm:$0xf] %v216_v10  ;;  %v218_v11 = vld [vmem:[%s868_s28 + $0x58] sm:$0xf]  ;;  %v220_v12 = vld [vmem:[%s868_s28 + $0x60] sm:$0xf] }
  0x1d   : > { %v222_v13 = vld [vmem:[%s868_s28 + $0x68] sm:$0xf]  ;;  %219 = vst [vmem:[%s175_s29 + $0x2c] sm:$0xf] %v218_v11  ;;  %221 = vst [vmem:[%s175_s29 + $0x30] sm:$0xf] %v220_v12 }
  0x1e   : > { %223 = vst [vmem:[%s175_s29 + $0x34] sm:$0xf] %v222_v13  ;;  %v224_v14 = vld [vmem:[%s868_s28 + $0x70] sm:$0xf]  ;;  %v226_v15 = vld [vmem:[%s868_s28 + $0x78] sm:$0xf] }
  0x1f   : > { %225 = vst [vmem:[%s175_s29 + $0x38] sm:$0xf] %v224_v14  ;;  %227 = vst [vmem:[%s175_s29 + $0x3c] sm:$0xf] %v226_v15 }
  0x20 PF: > { %p652_p8 = scmp.ge.s32.totalorder %s796_s16, 1  ;;  %p287_p9 = scmp.lt.s32.totalorder %s796_s16, 3 }
  0x22   : > { %p288_p10 = pnand %p652_p8, %p287_p9 }
  0x23   : > { %s294_s30 = sand.u32 (!%p288_p10), 1, %s780_s12   ;;  %v798_v16 = vmov (!%p288_p10), 0.0   ;;  %vm799_vm0 = vmmov (!%p288_p10), 0   ;;  %v757_v25 = vld [vmem:[%s922_s0] sm:$0xff] (!%p288_p10)   ;;  %p337_p11 = scmp.lt.s32.totalorder (!%p288_p10), %s788_s14, 1 }
  0x24   : > { %291 = sbr.rel (%p288_p10) target bundleno = 297 (0x129), region = 69  ;;  %687 = vmatprep.subr.bf16.mxu0 (!%p288_p10), %v798_v16  ;;  %s653_s4 = sshll.u32 (!%p288_p10), %s294_s30, 6  ;;  %703 = vmatprep.mubr.msk.bf16.mxu0 (!%p288_p10), %vm799_vm0, %v798_v16 }
  0x25   : > { %s296_s5 = scalar_lea.vmem (!%p288_p10), [#allocation3], %s653_s4  ;;  %s654_s18 = sshll.u32 (!%p288_p10), %s294_s30, 3 }
  0x26   : > { %v749_v17 = vld [vmem:[%s296_s5] sm:$0xff] (!%p288_p10)   ;;  %v750_v18 = vld [vmem:[%s296_s5 + $0x8] sm:$0xff] (!%p288_p10)   ;;  %v751_v19 = vld [vmem:[%s296_s5 + $0x10] sm:$0xff] (!%p288_p10)   ;;  %s326_s19 = scalar_lea.vmem (!%p288_p10), [#allocation4], %s654_s18 }
  0x27   : > { %688 = vmatpush3.bf16.msra.mxu0 (!%p288_p10), %v749_v17  ;;  %v752_v20 = vld [vmem:[%s296_s5 + $0x18] sm:$0xff] (!%p288_p10)   ;;  %v753_v21 = vld [vmem:[%s296_s5 + $0x20] sm:$0xff] (!%p288_p10)   ;;  %v754_v22 = vld [vmem:[%s296_s5 + $0x28] sm:$0xff] (!%p288_p10)  }
  0x28   : > { %689 = vmatprep.subr.bf16.mxu0 (!%p288_p10), %v798_v16  ;;  %v755_v23 = vld [vmem:[%s296_s5 + $0x30] sm:$0xff] (!%p288_p10)   ;;  %v756_v24 = vld [vmem:[%s296_s5 + $0x38] sm:$0xff] (!%p288_p10)  }
  0x2b   : > { %690 = vmatpush3.bf16.msra.mxu0 %v750_v18  ;;  %s338_s8 = scalar_select %p337_p11, %s788_s14, 1 }
  0x2c   : > { %691 = vmatprep.subr.bf16.mxu0 %v798_v16  ;;  %s668_s20 = sshll.u32 (%p855_p6), %s788_s14, 2 }
  0x2d   : > { %s339_s11 = scalar_lea.vmem %s924_s2, %s338_s8  ;;  %s502_s25 = scalar_lea.vmem (%p855_p6), %s925_s3, %s668_s20 }
  0x2e   : > { %v664_v27 = vld [vmem:[%s339_s11] ss:$0 sm:$0xff] }
  0x2f   : > { %692 = vmatpush3.bf16.msra.mxu0 %v751_v19 }
  0x30   : > { %693 = vmatprep.subr.bf16.mxu0 %v798_v16 }
  0x33   : > { %694 = vmatpush3.bf16.msra.mxu0 %v752_v20 }
  0x34   : > { %695 = vmatprep.subr.bf16.mxu0 %v798_v16 }
  0x37   : > { %696 = vmatpush3.bf16.msra.mxu0 %v753_v21 }
  0x38   : > { %697 = vmatprep.subr.bf16.mxu0 %v798_v16 }
  0x3b   : > { %698 = vmatpush3.bf16.msra.mxu0 %v754_v22 }
  0x3c   : > { %699 = vmatprep.subr.bf16.mxu0 %v798_v16 }
  0x3f   : > { %700 = vmatpush3.bf16.msra.mxu0 %v755_v23 }
  0x40   : > { %701 = vmatprep.subr.bf16.mxu0 %v798_v16 }
  0x43   : > { %702 = vmatpush3.bf16.msra.mxu0 %v756_v24 }
  0x46   : > { %704 = vmatmul.mubr.bf16.vlgmr.msra.gmra.mrb[0].mxu0 %v757_v25 }
 0x119   : > { %v456_v26 = vpop.f32.mrb[0].mxu0 }
 0x11a   : > { %v705_v28 = vpop.f32.mrb[1].mxu0  ;;  %v479_v30 = vadd.f32 %v664_v27, %v456_v26  ;;  %497 = sbr.rel (!%p855_p6) target bundleno = 297 (0x129), region = 85 }
 0x11b   : > { %v459_v29 = vpop.f32.mrb[2].mxu0 }
 0x11c   : > { %v480_v31 = vadd.f32 %v664_v27, %v459_v29  ;;  %v706_v32 = vpop.f32.mrb[3].mxu0 }
 0x11e   : > { %v676_v33 = vpack.c.bf16 %v480_v31, %v479_v30 }
 0x120   : > { %677 = vst [vmem:[%s326_s19] sm:$0xff] %v676_v33  }
 0x127   : > { %v518_v34 = vld [vmem:[%s326_s19] sm:$0xf]  ;;  %v520_v35 = vld [vmem:[%s326_s19 + $0x4] sm:$0xf] }
 0x128   : > { %519 = vst [vmem:[%s502_s25] sm:$0xf] %v518_v34  ;;  %521 = vst [vmem:[%s502_s25 + $0x8] sm:$0xf] %v520_v35 }
 0x129 PF: > { %s13_s16 = sadd.s32 1, %s796_s16   ;;  %s927_s12 = smov %s784_s13 }
 0x12a   : > { %p10_p12 = scmp.ge.s32.totalorder %s13_s16, 4   ;;  %s928_s13 = smov %s860_s22 }
 0x12b   : > { %s929_s14 = smov %s792_s15  ;;  %s930_s15 = smov %s932_s17 }
 0x12c   :  { %12 = sbr.rel (!%p10_p12) target bundleno = 3 (0x3), region = 163 }

// kernel: simple_dog_emotion_model.35
= control target key start
LH: loop header
LB: loop body
LE: loop exit
PB: predicated region body
PF: predicated region fallthrough
CT: control target
= control target key end

     0   :  { %s2425_s0 = inlined_call_operand.vmem [shape: bf16[16,2304], index: 0, kind: input, shape index: {}]   ;;  %s2426_s1 = inlined_call_operand.vmem [shape: bf16[2304,256], index: 1, kind: input, shape index: {}]   ;;  %s2427_s2 = inlined_call_operand.vmem [shape: f32[1,256], index: 2, kind: input, shape index: {}]   ;;  %s2428_s3 = inlined_call_operand.vmem [shape: bf16[16,256], index: 3, kind: input, shape index: {}]   ;;  %s2429_s4 = inlined_call_operand.vmem [shape: bf16[16,256], index: 4, kind: output, shape index: {}]  }
   0x1   :  { %2432 = sst [smem:[#allocation9_spill]] %s2425_s0 }
   0x2   :  { %s1970_s15 = smov 0   ;;  %s1972_s16 = smov 0  }
   0x3   :  { %s1974_s17 = smov 0   ;;  %s1976_s18 = smov 0  }
   0x4   :  { %s1978_s19 = smov 0   ;;  %s1980_s20 = smov 0  }
   0x5   :  { %s1982_s21 = smov 0   ;;  %s1984_s22 = smov 0  }
   0x6   :  { %s1986_s23 = smov 0   ;;  %s1988_s24 = smov 0  }
   0x7   :  { %s1990_s25 = smov 0  }
   0x8 LB: > { %s1552_s26 = sadd.s32 4294967295, %s1942_s25   ;;  %s26_s27 = sadd.s32 1, %s1934_s23  ;;  %s1942_s25 = sphi %s1990_s25, %s14_s25   ;;  %s1938_s24 = sphi %s1988_s24, %s2451_s24   ;;  %s1934_s23 = sphi %s1986_s23, %s2450_s23   ;;  %s1930_s22 = sphi %s1984_s22, %s2449_s22   ;;  %s1926_s21 = sphi %s1982_s21, %s2448_s21   ;;  %s1922_s20 = sphi %s1980_s20, %s2447_s20   ;;  %s1918_s19 = sphi %s1978_s19, %s2446_s19   ;;  %s1914_s18 = sphi %s1976_s18, %s2445_s18   ;;  %s1910_s17 = sphi %s1974_s17, %s2444_s17   ;;  %s1906_s16 = sphi %s1972_s16, %s2443_s16   ;;  %s1902_s15 = sphi %s1970_s15, %s2442_s15  }
   0x9   : > { %p27_p0 = scmp.ge.s32.totalorder %s26_s27, 3  ;;  %s29_s28 = sadd.s32 1, %s1938_s24 }
   0xa   : > { %s42_s29 = sadd.s32 1, %s1922_s20  ;;  %p49_p1 = scmp.ne.s32.totalorder %s1922_s20, %s1918_s19 }
   0xb   : > { %s2453_s27 = smov (%p27_p0, %s26_s27), 0  ;;  %s2455_s28 = smov (!%p27_p0, %s29_s28), %s1938_s24 }
   0xc   : > { %2433 = sst [smem:[#allocation7_spill]] %s2453_s27  ;;  %s38_s30 = ssub.s32 %s1934_s23, %s2453_s27 }
   0xd   : > { %p50_p2 = scmp.eq.s32.totalorder %s1942_s25, 0  ;;  %p31_p3 = scmp.ge.s32.totalorder %s2455_s28, 2 }
   0xe   : > { %p40_p4 = scmp.eq.s32.totalorder %s38_s30, 0  ;;  %s70_s6 = sadd.s32 1, %s1914_s18 }
   0xf   : > { %p2039_p5 = por %p50_p2, %p49_p1  ;;  %s2457_s28 = smov (%p31_p3, %s2455_s28), 0 }
  0x10   : > { %2435 = sst [smem:[#allocation8_spill]] %s2457_s28  ;;  %s66_s8 = ssub.s32 %s1938_s24, %s2457_s28 }
  0x11   : > { %s2047_s7 = scalar_select %p40_p4, %s1922_s20, %s42_s29  }
  0x12   : > { %p77_p6 = scmp.ne.s32.totalorder %s1914_s18, %s1910_s17  ;;  %s67_s9 = sor.u32 %s66_s8, %s38_s30 }
  0x13   : > { %p122_p7 = scmp.eq.s32.totalorder %s66_s8, 0  ;;  %p68_p8 = scmp.eq.s32.totalorder %s67_s9, 0 }
  0x14   : > { %p2055_p9 = por %p77_p6, %p50_p2  ;;  %s124_s11 = sadd.s32 1, %s1906_s16 }
  0x15   : > { %p131_p10 = scmp.ne.s32.totalorder %s1906_s16, %s1902_s15  ;;  %p163_p12 = scmp.eq.s32.totalorder %s1552_s26, 5 }
  0x16   : > { %s2063_s12 = scalar_select %p68_p8, %s1914_s18, %s70_s6  }
  0x17   : > { %s2066_s13 = scalar_select %p122_p7, %s1906_s16, %s124_s11  }
  0x18   : > { %p2070_p11 = por %p131_p10, %p50_p2  ;;  %p2074_p13 = por %p163_p12, %p131_p10 }
  0x19   : > { %p1555_p0 = scmp.ge.s32.totalorder %s1942_s25, 6 }
  0x1b   : > { %185 = sbr.rel (%p1555_p0) target bundleno = 124 (0x7c), region = 16 }
  0x22   : > { %188 = sbr.rel (!%p2039_p5) target bundleno = 46 (0x2e), region = 20  ;;  %s190_s30 = sand.u32 (%p2039_p5), 1, %s1922_s20  }
  0x23   : > { %s1627_s6 = smul.u32 (%p2039_p5), 24, %s1934_s23  ;;  %s2439_s0 = sld [smem:[#allocation9_spill]] (%p2039_p5) }
  0x24   : > { %s1706_s8 = smul.u32 (%p2039_p5), 48, %s190_s30 }
  0x26   : > { %s192_s26 = scalar_lea.vmem (%p2039_p5), [#allocation3], %s1706_s8 }
  0x29   : > { %s198_s28 = scalar_lea.vmem %s2439_s0, %s1627_s6 }
  0x2a   : > { %v211_v0 = vld [vmem:[%s198_s28] sm:$0xff]  ;;  %v213_v1 = vld [vmem:[%s198_s28 + $0x8] sm:$0xff]  ;;  %v215_v2 = vld [vmem:[%s198_s28 + $0x10] sm:$0xff] }
  0x2b   : > { %212 = vst [vmem:[%s192_s26] sm:$0xff] %v211_v0  ;;  %214 = vst [vmem:[%s192_s26 + $0x8] sm:$0xff] %v213_v1  ;;  %v217_v3 = vld [vmem:[%s198_s28 + $0x48] sm:$0xff]  ;;  %v219_v4 = vld [vmem:[%s198_s28 + $0x50] sm:$0xff] }
  0x2c   : > { %216 = vst [vmem:[%s192_s26 + $0x10] sm:$0xff] %v215_v2  ;;  %v221_v5 = vld [vmem:[%s198_s28 + $0x58] sm:$0xff]  ;;  %218 = vst [vmem:[%s192_s26 + $0x18] sm:$0xff] %v217_v3 }
  0x2d   : > { %220 = vst [vmem:[%s192_s26 + $0x20] sm:$0xff] %v219_v4  ;;  %222 = vst [vmem:[%s192_s26 + $0x28] sm:$0xff] %v221_v5 }
  0x2e PF: > { %228 = sbr.rel (!%p2055_p9) target bundleno = 117 (0x75), region = 43  ;;  %s230_s5 = sand.u32 (%p2055_p9), 1, %s1914_s18  }
  0x2f   : > { %s1628_s30 = smul.u32 (%p2055_p9), 192, %s1934_s23 }
  0x30   : > { %s1707_s6 = smul.u32 (%p2055_p9), 384, %s230_s5 }
  0x31   : > { %s235_s8 = sadd.s32 (%p2055_p9), %s1938_s24, %s1628_s30 }
  0x32   : > { %s1558_s9 = sshll.u32 (%p2055_p9), %s235_s8, 2  ;;  %s2099_s28 = scalar_lea.vmem (%p2055_p9), [#allocation4], %s1707_s6 }
  0x33   : > { %s2094_s27 = scalar_lea.vmem (%p2055_p9), %s2426_s1, %s1558_s9 }
  0x34   : > { %v253_v6 = vld [vmem:[%s2094_s27] sm:$0xf] (%p2055_p9)  ;;  %v255_v7 = vld [vmem:[%s2094_s27 + $0x8] sm:$0xf] (%p2055_p9)  ;;  %v257_v8 = vld [vmem:[%s2094_s27 + $0x10] sm:$0xf] (%p2055_p9) }
  0x35   : > { %254 = vst [vmem:[%s2099_s28] sm:$0xf] %v253_v6  ;;  %256 = vst [vmem:[%s2099_s28 + $0x4] sm:$0xf] %v255_v7  ;;  %v259_v9 = vld [vmem:[%s2094_s27 + $0x18] sm:$0xf] }
  0x36   : > { %258 = vst [vmem:[%s2099_s28 + $0x8] sm:$0xf] %v257_v8  ;;  %v261_v10 = vld [vmem:[%s2094_s27 + $0x20] sm:$0xf]  ;;  %v263_v11 = vld [vmem:[%s2094_s27 + $0x28] sm:$0xf] }
  0x37   : > { %260 = vst [vmem:[%s2099_s28 + $0xc] sm:$0xf] %v259_v9  ;;  %262 = vst [vmem:[%s2099_s28 + $0x10] sm:$0xf] %v261_v10  ;;  %v265_v12 = vld [vmem:[%s2094_s27 + $0x30] sm:$0xf] }
  0x38   : > { %264 = vst [vmem:[%s2099_s28 + $0x14] sm:$0xf] %v263_v11  ;;  %v267_v13 = vld [vmem:[%s2094_s27 + $0x38] sm:$0xf]  ;;  %v269_v14 = vld [vmem:[%s2094_s27 + $0x40] sm:$0xf] }
  0x39   : > { %266 = vst [vmem:[%s2099_s28 + $0x18] sm:$0xf] %v265_v12  ;;  %268 = vst [vmem:[%s2099_s28 + $0x1c] sm:$0xf] %v267_v13  ;;  %v271_v15 = vld [vmem:[%s2094_s27 + $0x48] sm:$0xf] }
  0x3a   : > { %270 = vst [vmem:[%s2099_s28 + $0x20] sm:$0xf] %v269_v14  ;;  %v273_v16 = vld [vmem:[%s2094_s27 + $0x50] sm:$0xf]  ;;  %v275_v17 = vld [vmem:[%s2094_s27 + $0x58] sm:$0xf] }
  0x3b   : > { %272 = vst [vmem:[%s2099_s28 + $0x24] sm:$0xf] %v271_v15  ;;  %274 = vst [vmem:[%s2099_s28 + $0x28] sm:$0xf] %v273_v16  ;;  %v277_v18 = vld [vmem:[%s2094_s27 + $0x60] sm:$0xf] }
  0x3c   : > { %276 = vst [vmem:[%s2099_s28 + $0x2c] sm:$0xf] %v275_v17  ;;  %v279_v19 = vld [vmem:[%s2094_s27 + $0x68] sm:$0xf]  ;;  %v281_v20 = vld [vmem:[%s2094_s27 + $0x70] sm:$0xf] }
  0x3d   : > { %278 = vst [vmem:[%s2099_s28 + $0x30] sm:$0xf] %v277_v18  ;;  %280 = vst [vmem:[%s2099_s28 + $0x34] sm:$0xf] %v279_v19  ;;  %v283_v21 = vld [vmem:[%s2094_s27 + $0x78] sm:$0xf] }
  0x3e   : > { %282 = vst [vmem:[%s2099_s28 + $0x38] sm:$0xf] %v281_v20  ;;  %v285_v22 = vld [vmem:[%s2094_s27 + $0x80] sm:$0xf]  ;;  %v287_v23 = vld [vmem:[%s2094_s27 + $0x88] sm:$0xf] }
  0x3f   : > { %284 = vst [vmem:[%s2099_s28 + $0x3c] sm:$0xf] %v283_v21  ;;  %286 = vst [vmem:[%s2099_s28 + $0x40] sm:$0xf] %v285_v22  ;;  %v289_v24 = vld [vmem:[%s2094_s27 + $0x90] sm:$0xf] }
  0x40   : > { %288 = vst [vmem:[%s2099_s28 + $0x44] sm:$0xf] %v287_v23  ;;  %v291_v25 = vld [vmem:[%s2094_s27 + $0x98] sm:$0xf]  ;;  %v293_v26 = vld [vmem:[%s2094_s27 + $0xa0] sm:$0xf] }
  0x41   : > { %290 = vst [vmem:[%s2099_s28 + $0x48] sm:$0xf] %v289_v24  ;;  %292 = vst [vmem:[%s2099_s28 + $0x4c] sm:$0xf] %v291_v25  ;;  %v295_v27 = vld [vmem:[%s2094_s27 + $0xa8] sm:$0xf] }
  0x42   : > { %294 = vst [vmem:[%s2099_s28 + $0x50] sm:$0xf] %v293_v26  ;;  %v297_v28 = vld [vmem:[%s2094_s27 + $0xb0] sm:$0xf]  ;;  %v299_v29 = vld [vmem:[%s2094_s27 + $0xb8] sm:$0xf] }
  0x43   : > { %296 = vst [vmem:[%s2099_s28 + $0x54] sm:$0xf] %v295_v27  ;;  %298 = vst [vmem:[%s2099_s28 + $0x58] sm:$0xf] %v297_v28  ;;  %v301_v30 = vld [vmem:[%s2094_s27 + $0xc0] sm:$0xf] }
  0x44   : > { %300 = vst [vmem:[%s2099_s28 + $0x5c] sm:$0xf] %v299_v29  ;;  %v303_v31 = vld [vmem:[%s2094_s27 + $0xc8] sm:$0xf]  ;;  %v305_v32 = vld [vmem:[%s2094_s27 + $0xd0] sm:$0xf] }
  0x45   : > { %302 = vst [vmem:[%s2099_s28 + $0x60] sm:$0xf] %v301_v30  ;;  %304 = vst [vmem:[%s2099_s28 + $0x64] sm:$0xf] %v303_v31  ;;  %v307_v33 = vld [vmem:[%s2094_s27 + $0xd8] sm:$0xf] }
  0x46   : > { %306 = vst [vmem:[%s2099_s28 + $0x68] sm:$0xf] %v305_v32  ;;  %v309_v34 = vld [vmem:[%s2094_s27 + $0xe0] sm:$0xf]  ;;  %v311_v35 = vld [vmem:[%s2094_s27 + $0xe8] sm:$0xf] }
  0x47   : > { %308 = vst [vmem:[%s2099_s28 + $0x6c] sm:$0xf] %v307_v33  ;;  %310 = vst [vmem:[%s2099_s28 + $0x70] sm:$0xf] %v309_v34  ;;  %v313_v36 = vld [vmem:[%s2094_s27 + $0xf0] sm:$0xf] }
  0x48   : > { %312 = vst [vmem:[%s2099_s28 + $0x74] sm:$0xf] %v311_v35  ;;  %v315_v37 = vld [vmem:[%s2094_s27 + $0xf8] sm:$0xf]  ;;  %v317_v38 = vld [vmem:[%s2094_s27 + $0x100] sm:$0xf] }
  0x49   : > { %314 = vst [vmem:[%s2099_s28 + $0x78] sm:$0xf] %v313_v36  ;;  %316 = vst [vmem:[%s2099_s28 + $0x7c] sm:$0xf] %v315_v37  ;;  %v319_v39 = vld [vmem:[%s2094_s27 + $0x108] sm:$0xf] }
  0x4a   : > { %318 = vst [vmem:[%s2099_s28 + $0x80] sm:$0xf] %v317_v38  ;;  %v321_v40 = vld [vmem:[%s2094_s27 + $0x110] sm:$0xf]  ;;  %v323_v41 = vld [vmem:[%s2094_s27 + $0x118] sm:$0xf] }
  0x4b   : > { %320 = vst [vmem:[%s2099_s28 + $0x84] sm:$0xf] %v319_v39  ;;  %322 = vst [vmem:[%s2099_s28 + $0x88] sm:$0xf] %v321_v40  ;;  %v325_v42 = vld [vmem:[%s2094_s27 + $0x120] sm:$0xf] }
  0x4c   : > { %324 = vst [vmem:[%s2099_s28 + $0x8c] sm:$0xf] %v323_v41  ;;  %v327_v43 = vld [vmem:[%s2094_s27 + $0x128] sm:$0xf]  ;;  %v329_v44 = vld [vmem:[%s2094_s27 + $0x130] sm:$0xf] }
  0x4d   : > { %326 = vst [vmem:[%s2099_s28 + $0x90] sm:$0xf] %v325_v42  ;;  %328 = vst [vmem:[%s2099_s28 + $0x94] sm:$0xf] %v327_v43  ;;  %v331_v45 = vld [vmem:[%s2094_s27 + $0x138] sm:$0xf] }
  0x4e   : > { %330 = vst [vmem:[%s2099_s28 + $0x98] sm:$0xf] %v329_v44  ;;  %v333_v46 = vld [vmem:[%s2094_s27 + $0x140] sm:$0xf]  ;;  %v335_v47 = vld [vmem:[%s2094_s27 + $0x148] sm:$0xf] }
  0x4f   : > { %332 = vst [vmem:[%s2099_s28 + $0x9c] sm:$0xf] %v331_v45  ;;  %334 = vst [vmem:[%s2099_s28 + $0xa0] sm:$0xf] %v333_v46  ;;  %v337_v48 = vld [vmem:[%s2094_s27 + $0x150] sm:$0xf] }
  0x50   : > { %336 = vst [vmem:[%s2099_s28 + $0xa4] sm:$0xf] %v335_v47  ;;  %v339_v49 = vld [vmem:[%s2094_s27 + $0x158] sm:$0xf]  ;;  %v341_v50 = vld [vmem:[%s2094_s27 + $0x160] sm:$0xf] }
  0x51   : > { %338 = vst [vmem:[%s2099_s28 + $0xa8] sm:$0xf] %v337_v48  ;;  %340 = vst [vmem:[%s2099_s28 + $0xac] sm:$0xf] %v339_v49  ;;  %v343_v51 = vld [vmem:[%s2094_s27 + $0x168] sm:$0xf] }
  0x52   : > { %342 = vst [vmem:[%s2099_s28 + $0xb0] sm:$0xf] %v341_v50  ;;  %v345_v52 = vld [vmem:[%s2094_s27 + $0x170] sm:$0xf]  ;;  %v347_v53 = vld [vmem:[%s2094_s27 + $0x178] sm:$0xf] }
  0x53   : > { %344 = vst [vmem:[%s2099_s28 + $0xb4] sm:$0xf] %v343_v51  ;;  %346 = vst [vmem:[%s2099_s28 + $0xb8] sm:$0xf] %v345_v52  ;;  %v349_v54 = vld [vmem:[%s2094_s27 + $0x180] sm:$0xf] }
  0x54   : > { %348 = vst [vmem:[%s2099_s28 + $0xbc] sm:$0xf] %v347_v53  ;;  %v351_v55 = vld [vmem:[%s2094_s27 + $0x188] sm:$0xf]  ;;  %v353_v56 = vld [vmem:[%s2094_s27 + $0x190] sm:$0xf] }
  0x55   : > { %350 = vst [vmem:[%s2099_s28 + $0xc0] sm:$0xf] %v349_v54  ;;  %352 = vst [vmem:[%s2099_s28 + $0xc4] sm:$0xf] %v351_v55  ;;  %v355_v57 = vld [vmem:[%s2094_s27 + $0x198] sm:$0xf] }
  0x56   : > { %354 = vst [vmem:[%s2099_s28 + $0xc8] sm:$0xf] %v353_v56  ;;  %v357_v58 = vld [vmem:[%s2094_s27 + $0x1a0] sm:$0xf]  ;;  %v359_v59 = vld [vmem:[%s2094_s27 + $0x1a8] sm:$0xf] }
  0x57   : > { %356 = vst [vmem:[%s2099_s28 + $0xcc] sm:$0xf] %v355_v57  ;;  %358 = vst [vmem:[%s2099_s28 + $0xd0] sm:$0xf] %v357_v58  ;;  %v361_v60 = vld [vmem:[%s2094_s27 + $0x1b0] sm:$0xf] }
  0x58   : > { %360 = vst [vmem:[%s2099_s28 + $0xd4] sm:$0xf] %v359_v59  ;;  %v363_v61 = vld [vmem:[%s2094_s27 + $0x1b8] sm:$0xf]  ;;  %v365_v62 = vld [vmem:[%s2094_s27 + $0x1c0] sm:$0xf] }
  0x59   : > { %362 = vst [vmem:[%s2099_s28 + $0xd8] sm:$0xf] %v361_v60  ;;  %364 = vst [vmem:[%s2099_s28 + $0xdc] sm:$0xf] %v363_v61  ;;  %v367_v63 = vld [vmem:[%s2094_s27 + $0x1c8] sm:$0xf] }
  0x5a   : > { %366 = vst [vmem:[%s2099_s28 + $0xe0] sm:$0xf] %v365_v62  ;;  %v369_v0 = vld [vmem:[%s2094_s27 + $0x1d0] sm:$0xf]  ;;  %v371_v1 = vld [vmem:[%s2094_s27 + $0x1d8] sm:$0xf] }
  0x5b   : > { %368 = vst [vmem:[%s2099_s28 + $0xe4] sm:$0xf] %v367_v63  ;;  %370 = vst [vmem:[%s2099_s28 + $0xe8] sm:$0xf] %v369_v0  ;;  %v373_v2 = vld [vmem:[%s2094_s27 + $0x1e0] sm:$0xf] }
  0x5c   : > { %372 = vst [vmem:[%s2099_s28 + $0xec] sm:$0xf] %v371_v1  ;;  %v375_v3 = vld [vmem:[%s2094_s27 + $0x1e8] sm:$0xf]  ;;  %v377_v4 = vld [vmem:[%s2094_s27 + $0x1f0] sm:$0xf] }
  0x5d   : > { %374 = vst [vmem:[%s2099_s28 + $0xf0] sm:$0xf] %v373_v2  ;;  %376 = vst [vmem:[%s2099_s28 + $0xf4] sm:$0xf] %v375_v3  ;;  %v379_v5 = vld [vmem:[%s2094_s27 + $0x1f8] sm:$0xf] }
  0x5e   : > { %378 = vst [vmem:[%s2099_s28 + $0xf8] sm:$0xf] %v377_v4  ;;  %v381_v6 = vld [vmem:[%s2094_s27 + $0x200] sm:$0xf]  ;;  %v383_v7 = vld [vmem:[%s2094_s27 + $0x208] sm:$0xf] }
  0x5f   : > { %380 = vst [vmem:[%s2099_s28 + $0xfc] sm:$0xf] %v379_v5  ;;  %382 = vst [vmem:[%s2099_s28 + $0x100] sm:$0xf] %v381_v6  ;;  %v385_v8 = vld [vmem:[%s2094_s27 + $0x210] sm:$0xf] }
  0x60   : > { %384 = vst [vmem:[%s2099_s28 + $0x104] sm:$0xf] %v383_v7  ;;  %v387_v9 = vld [vmem:[%s2094_s27 + $0x218] sm:$0xf]  ;;  %v389_v10 = vld [vmem:[%s2094_s27 + $0x220] sm:$0xf] }
  0x61   : > { %386 = vst [vmem:[%s2099_s28 + $0x108] sm:$0xf] %v385_v8  ;;  %388 = vst [vmem:[%s2099_s28 + $0x10c] sm:$0xf] %v387_v9  ;;  %v391_v11 = vld [vmem:[%s2094_s27 + $0x228] sm:$0xf] }
  0x62   : > { %390 = vst [vmem:[%s2099_s28 + $0x110] sm:$0xf] %v389_v10  ;;  %v393_v12 = vld [vmem:[%s2094_s27 + $0x230] sm:$0xf]  ;;  %v395_v13 = vld [vmem:[%s2094_s27 + $0x238] sm:$0xf] }
  0x63   : > { %392 = vst [vmem:[%s2099_s28 + $0x114] sm:$0xf] %v391_v11  ;;  %394 = vst [vmem:[%s2099_s28 + $0x118] sm:$0xf] %v393_v12  ;;  %v397_v14 = vld [vmem:[%s2094_s27 + $0x240] sm:$0xf] }
  0x64   : > { %396 = vst [vmem:[%s2099_s28 + $0x11c] sm:$0xf] %v395_v13  ;;  %v399_v15 = vld [vmem:[%s2094_s27 + $0x248] sm:$0xf]  ;;  %v401_v16 = vld [vmem:[%s2094_s27 + $0x250] sm:$0xf] }
  0x65   : > { %398 = vst [vmem:[%s2099_s28 + $0x120] sm:$0xf] %v397_v14  ;;  %400 = vst [vmem:[%s2099_s28 + $0x124] sm:$0xf] %v399_v15  ;;  %v403_v17 = vld [vmem:[%s2094_s27 + $0x258] sm:$0xf] }
  0x66   : > { %402 = vst [vmem:[%s2099_s28 + $0x128] sm:$0xf] %v401_v16  ;;  %v405_v18 = vld [vmem:[%s2094_s27 + $0x260] sm:$0xf]  ;;  %v407_v19 = vld [vmem:[%s2094_s27 + $0x268] sm:$0xf] }
  0x67   : > { %404 = vst [vmem:[%s2099_s28 + $0x12c] sm:$0xf] %v403_v17  ;;  %406 = vst [vmem:[%s2099_s28 + $0x130] sm:$0xf] %v405_v18  ;;  %v409_v20 = vld [vmem:[%s2094_s27 + $0x270] sm:$0xf] }
  0x68   : > { %408 = vst [vmem:[%s2099_s28 + $0x134] sm:$0xf] %v407_v19  ;;  %v411_v21 = vld [vmem:[%s2094_s27 + $0x278] sm:$0xf]  ;;  %v413_v22 = vld [vmem:[%s2094_s27 + $0x280] sm:$0xf] }
  0x69   : > { %410 = vst [vmem:[%s2099_s28 + $0x138] sm:$0xf] %v409_v20  ;;  %412 = vst [vmem:[%s2099_s28 + $0x13c] sm:$0xf] %v411_v21  ;;  %v415_v23 = vld [vmem:[%s2094_s27 + $0x288] sm:$0xf] }
  0x6a   : > { %414 = vst [vmem:[%s2099_s28 + $0x140] sm:$0xf] %v413_v22  ;;  %v417_v24 = vld [vmem:[%s2094_s27 + $0x290] sm:$0xf]  ;;  %v419_v25 = vld [vmem:[%s2094_s27 + $0x298] sm:$0xf] }
  0x6b   : > { %416 = vst [vmem:[%s2099_s28 + $0x144] sm:$0xf] %v415_v23  ;;  %418 = vst [vmem:[%s2099_s28 + $0x148] sm:$0xf] %v417_v24  ;;  %v421_v26 = vld [vmem:[%s2094_s27 + $0x2a0] sm:$0xf] }
  0x6c   : > { %420 = vst [vmem:[%s2099_s28 + $0x14c] sm:$0xf] %v419_v25  ;;  %v423_v27 = vld [vmem:[%s2094_s27 + $0x2a8] sm:$0xf]  ;;  %v425_v28 = vld [vmem:[%s2094_s27 + $0x2b0] sm:$0xf] }
  0x6d   : > { %422 = vst [vmem:[%s2099_s28 + $0x150] sm:$0xf] %v421_v26  ;;  %424 = vst [vmem:[%s2099_s28 + $0x154] sm:$0xf] %v423_v27  ;;  %v427_v29 = vld [vmem:[%s2094_s27 + $0x2b8] sm:$0xf] }
  0x6e   : > { %426 = vst [vmem:[%s2099_s28 + $0x158] sm:$0xf] %v425_v28  ;;  %v429_v30 = vld [vmem:[%s2094_s27 + $0x2c0] sm:$0xf]  ;;  %v431_v31 = vld [vmem:[%s2094_s27 + $0x2c8] sm:$0xf] }
  0x6f   : > { %428 = vst [vmem:[%s2099_s28 + $0x15c] sm:$0xf] %v427_v29  ;;  %430 = vst [vmem:[%s2099_s28 + $0x160] sm:$0xf] %v429_v30  ;;  %v433_v32 = vld [vmem:[%s2094_s27 + $0x2d0] sm:$0xf] }
  0x70   : > { %432 = vst [vmem:[%s2099_s28 + $0x164] sm:$0xf] %v431_v31  ;;  %v435_v33 = vld [vmem:[%s2094_s27 + $0x2d8] sm:$0xf]  ;;  %v437_v34 = vld [vmem:[%s2094_s27 + $0x2e0] sm:$0xf] }
  0x71   : > { %434 = vst [vmem:[%s2099_s28 + $0x168] sm:$0xf] %v433_v32  ;;  %436 = vst [vmem:[%s2099_s28 + $0x16c] sm:$0xf] %v435_v33  ;;  %v439_v35 = vld [vmem:[%s2094_s27 + $0x2e8] sm:$0xf] }
  0x72   : > { %438 = vst [vmem:[%s2099_s28 + $0x170] sm:$0xf] %v437_v34  ;;  %v441_v36 = vld [vmem:[%s2094_s27 + $0x2f0] sm:$0xf]  ;;  %v443_v37 = vld [vmem:[%s2094_s27 + $0x2f8] sm:$0xf] }
  0x73   : > { %440 = vst [vmem:[%s2099_s28 + $0x174] sm:$0xf] %v439_v35  ;;  %442 = vst [vmem:[%s2099_s28 + $0x178] sm:$0xf] %v441_v36 }
  0x74   : > { %444 = vst [vmem:[%s2099_s28 + $0x17c] sm:$0xf] %v443_v37 }
  0x75 PF: > { %665 = sbr.rel (!%p2070_p11) target bundleno = 124 (0x7c), region = 88  ;;  %s667_s0 = sand.u32 (%p2070_p11), 1, %s1906_s16  }
  0x76   : > { %s1560_s10 = sshll.u32 (%p2070_p11), %s1938_s24, 2  ;;  %s1559_s26 = sshll.u32 (%p2070_p11), %s667_s0, 3 }
  0x77   : > { %s674_s6 = scalar_lea.vmem (%p2070_p11), %s2428_s3, %s1560_s10  ;;  %s669_s8 = scalar_lea.vmem (%p2070_p11), [#allocation5], %s1559_s26 }
  0x78   : > { %v690_v38 = vld [vmem:[%s674_s6] sm:$0xf] (%p2070_p11)  ;;  %v692_v39 = vld [vmem:[%s674_s6 + $0x8] sm:$0xf] (%p2070_p11) }
  0x79   : > { %691 = vst [vmem:[%s669_s8] sm:$0xf] (%p2070_p11), %v690_v38  ;;  %693 = vst [vmem:[%s669_s8 + $0x4] sm:$0xf] (%p2070_p11), %v692_v39 }
  0x7c PF: > { %p1561_p1 = scmp.ge.s32.totalorder %s1942_s25, 1  ;;  %p719_p2 = scmp.lt.s32.totalorder %s1942_s25, 7 }
  0x7e   : > { %p720_p3 = pnand %p1561_p1, %p719_p2 }
  0x7f   : > { %s726_s27 = sand.u32 (!%p720_p3), 1, %s1918_s19   ;;  %s733_s14 = sand.u32 (!%p720_p3), 1, %s1910_s17  }
  0x80   : > { %723 = sbr.rel (%p720_p3) target bundleno = 455 (0x1c7), region = 129  ;;  %s740_s11 = sand.u32 (!%p720_p3), 1, %s1902_s15  }
  0x81   : > { %s1708_s9 = smul.u32 (!%p720_p3), 48, %s726_s27  ;;  %s2302_s0 = sshll.u32 (!%p720_p3), %s740_s11, 3 }
  0x82   : > { %s1709_s28 = smul.u32 (!%p720_p3), 384, %s733_s14  ;;  %p778_p4 = scmp.lt.s32.totalorder (!%p720_p3), %s1930_s22, 1 }
  0x83   : > { %s2312_s6 = scalar_lea.vmem (!%p720_p3), [#allocation3], %s1708_s9  ;;  %s742_s17 = scalar_lea.vmem (!%p720_p3), [#allocation5], %s2302_s0 }
  0x84   : > { %s2314_s8 = scalar_lea.vmem (!%p720_p3), [#allocation4], %s1709_s28  ;;  %s2318_s19 = scalar_lea.vmem (!%p720_p3), [#allocation6], %s2302_s0 }
  0x85   : > { %p1564_p5 = scmp.ne.s32.totalorder (!%p720_p3), %s1926_s21, 0 }
  0x87   : > { %s2306_s10 = scalar_select %p778_p4, %s1930_s22, 1 }
  0x88   : > { %787 = sbr.rel (%p1564_p5) target bundleno = 143 (0x8f), region = 145  ;;  %v1944_v40 = vmov (!%p1564_p5), 0.0  }
  0x89   : > { %s780_s30 = scalar_lea.vmem %s2427_s2, %s2306_s10  ;;  %788 = vst [vmem:[#allocation2] sm:$0xff] (!%p1564_p5), %v1944_v40  ;;  %789 = vst [vmem:[#allocation2 + $0x8] sm:$0xff] (!%p1564_p5), %v1944_v40 }
  0x8f PF: > { %v1799_v41 = vld [vmem:[%s2314_s8 + $0x40] sm:$0xff]   ;;  %v1803_v45 = vld [vmem:[%s2314_s8 + $0x48] sm:$0xff]   ;;  %v1807_v49 = vld [vmem:[%s2314_s8 + $0x50] sm:$0xff]   ;;  %p1619_p6 = scmp.ne.s32.totalorder %s1926_s21, 2 }
  0x90   : > { %v1800_v42 = vld [vmem:[%s2314_s8 + $0xc0] sm:$0xff]   ;;  %1640 = vmatprep.subr.bf16.mxu0 %v1799_v41  ;;  %v1804_v46 = vld [vmem:[%s2314_s8 + $0xc8] sm:$0xff]   ;;  %v1808_v50 = vld [vmem:[%s2314_s8 + $0xd0] sm:$0xff]  }
  0x91   : > { %v1801_v43 = vld [vmem:[%s2314_s8] sm:$0xff]   ;;  %1662 = vmatprep.subr.bf16.mxu1 %v1800_v42  ;;  %v1805_v47 = vld [vmem:[%s2314_s8 + $0x8] sm:$0xff]   ;;  %v1809_v51 = vld [vmem:[%s2314_s8 + $0x10] sm:$0xff]  }
  0x92   : > { %v1802_v44 = vld [vmem:[%s2314_s8 + $0x80] sm:$0xff]   ;;  %1641 = vmatpush3.bf16.msra.mxu0 %v1801_v43  ;;  %v1806_v48 = vld [vmem:[%s2314_s8 + $0x88] sm:$0xff]   ;;  %v1810_v52 = vld [vmem:[%s2314_s8 + $0x90] sm:$0xff]  }
  0x93   : > { %1663 = vmatpush3.bf16.msra.mxu1 %v1802_v44  ;;  %1642 = vmatprep.subr.bf16.mxu0 %v1803_v45  ;;  %v1811_v53 = vld [vmem:[%s2314_s8 + $0x58] sm:$0xff]   ;;  %v1815_v57 = vld [vmem:[%s2314_s8 + $0x60] sm:$0xff]   ;;  %v1819_v61 = vld [vmem:[%s2314_s8 + $0x68] sm:$0xff]  }
  0x94   : > { %1664 = vmatprep.subr.bf16.mxu1 %v1804_v46  ;;  %v1812_v54 = vld [vmem:[%s2314_s8 + $0xd8] sm:$0xff]   ;;  %v1816_v58 = vld [vmem:[%s2314_s8 + $0xe0] sm:$0xff]   ;;  %v1820_v62 = vld [vmem:[%s2314_s8 + $0xe8] sm:$0xff]  }
  0x95   : > { %v1813_v55 = vld [vmem:[%s2314_s8 + $0x18] sm:$0xff]   ;;  %v1817_v59 = vld [vmem:[%s2314_s8 + $0x20] sm:$0xff]   ;;  %v1821_v63 = vld [vmem:[%s2314_s8 + $0x28] sm:$0xff]  }
  0x96   : > { %1643 = vmatpush3.bf16.msra.mxu0 %v1805_v47  ;;  %v1814_v56 = vld [vmem:[%s2314_s8 + $0x98] sm:$0xff]   ;;  %v1818_v60 = vld [vmem:[%s2314_s8 + $0xa0] sm:$0xff]   ;;  %v1822_v0 = vld [vmem:[%s2314_s8 + $0xa8] sm:$0xff]  }
  0x97   : > { %1665 = vmatpush3.bf16.msra.mxu1 %v1806_v48  ;;  %1644 = vmatprep.subr.bf16.mxu0 %v1807_v49  ;;  %v1823_v1 = vld [vmem:[%s2314_s8 + $0x70] sm:$0xff]   ;;  %v1827_v5 = vld [vmem:[%s2314_s8 + $0x78] sm:$0xff]   ;;  %v1837_v13 = vld [vmem:[%s2314_s8 + $0x140] sm:$0xff]  }
  0x98   : > { %1666 = vmatprep.subr.bf16.mxu1 %v1808_v50  ;;  %v1824_v2 = vld [vmem:[%s2314_s8 + $0xf0] sm:$0xff]   ;;  %v1828_v6 = vld [vmem:[%s2314_s8 + $0xf8] sm:$0xff]   ;;  %v1838_v14 = vld [vmem:[%s2314_s8 + $0x100] sm:$0xff]  }
  0x99   : > { %v1825_v3 = vld [vmem:[%s2314_s8 + $0x30] sm:$0xff]   ;;  %v1829_v7 = vld [vmem:[%s2314_s8 + $0x38] sm:$0xff]   ;;  %v1839_v15 = vld [vmem:[%s2314_s8 + $0x148] sm:$0xff]  }
  0x9a   : > { %1645 = vmatpush3.bf16.msra.mxu0 %v1809_v51  ;;  %v1826_v4 = vld [vmem:[%s2314_s8 + $0xb0] sm:$0xff]   ;;  %v1830_v8 = vld [vmem:[%s2314_s8 + $0xb8] sm:$0xff]   ;;  %v1840_v16 = vld [vmem:[%s2314_s8 + $0x108] sm:$0xff]  }
  0x9b   : > { %1667 = vmatpush3.bf16.msra.mxu1 %v1810_v52  ;;  %1646 = vmatprep.subr.bf16.mxu0 %v1811_v53  ;;  %v1831_v9 = vld [vmem:[%s2312_s6] ss:$24 sps:$4 sm:$0xff]   ;;  %v1833_v10 = vld [vmem:[%s2312_s6 + $0x4] ss:$24 sps:$4 sm:$0xff]   ;;  %v1855_v24 = vld [vmem:[%s2312_s6 + $0x14] ss:$24 sps:$4 sm:$0xff]  }
  0x9c   : > { %1668 = vmatprep.subr.bf16.mxu1 %v1812_v54  ;;  %v1834_v11 = vld [vmem:[%s2312_s6 + $0x8] ss:$24 sps:$4 sm:$0xff]   ;;  %v1836_v12 = vld [vmem:[%s2312_s6 + $0xc] ss:$24 sps:$4 sm:$0xff]   ;;  %1244 = vmatprep.mubr.bf16.mxu0 %v1833_v10 }
  0x9d   : > { %1285 = vmatprep.mubr.bf16.mxu1 %v1836_v12  ;;  %v1841_v17 = vld [vmem:[%s2314_s8 + $0x150] sm:$0xff]   ;;  %v1843_v19 = vld [vmem:[%s2314_s8 + $0x158] sm:$0xff]   ;;  %v1845_v21 = vld [vmem:[%s2314_s8 + $0x160] sm:$0xff]  }
  0x9e   : > { %1647 = vmatpush3.bf16.msra.mxu0 %v1813_v55  ;;  %v1842_v18 = vld [vmem:[%s2314_s8 + $0x110] sm:$0xff]   ;;  %v1844_v20 = vld [vmem:[%s2314_s8 + $0x118] sm:$0xff]   ;;  %v1846_v22 = vld [vmem:[%s2314_s8 + $0x120] sm:$0xff]  }
  0x9f   : > { %1669 = vmatpush3.bf16.msra.mxu1 %v1814_v56  ;;  %1648 = vmatprep.subr.bf16.mxu0 %v1815_v57  ;;  %v1847_v23 = vld [vmem:[%s2314_s8 + $0x168] sm:$0xff]   ;;  %v1849_v26 = vld [vmem:[%s2314_s8 + $0x170] sm:$0xff]   ;;  %v1851_v28 = vld [vmem:[%s2314_s8 + $0x178] sm:$0xff]  }
  0xa0   : > { %1670 = vmatprep.subr.bf16.mxu1 %v1816_v58  ;;  %v1848_v25 = vld [vmem:[%s2314_s8 + $0x128] sm:$0xff]   ;;  %v1850_v27 = vld [vmem:[%s2314_s8 + $0x130] sm:$0xff]   ;;  %v1852_v29 = vld [vmem:[%s2314_s8 + $0x138] sm:$0xff]  }
  0xa1   : > { %v1853_v30 = vld [vmem:[%s2312_s6 + $0x10] ss:$24 sps:$4 sm:$0xff]  }
  0xa2   : > { %1649 = vmatpush3.bf16.msra.mxu0 %v1817_v59  ;;  %v790_v49 = vld [vmem:[#allocation2] sm:$0xff]  ;;  %v791_v53 = vld [vmem:[#allocation2 + $0x8] sm:$0xff] }
  0xa3   : > { %1671 = vmatpush3.bf16.msra.mxu1 %v1818_v60  ;;  %1650 = vmatprep.subr.bf16.mxu0 %v1819_v61  ;;  %v1620_v59 = vld [vmem:[%s780_s30] ss:$0 sm:$0xff] (!%p1619_p6) }
  0xa4   : > { %1672 = vmatprep.subr.bf16.mxu1 %v1820_v62  ;;  %v1632_v62 = vld [vmem:[%s742_s17] sm:$0xff] (!%p1619_p6)  }
  0xa6   : > { %1651 = vmatpush3.bf16.msra.mxu0 %v1821_v63  ;;  %v1633_v63 = vunpack.c.l.bf16 (!%p1619_p6), %v1632_v62 }
  0xa7   : > { %1673 = vmatpush3.bf16.msra.mxu1 %v1822_v0  ;;  %1652 = vmatprep.subr.bf16.mxu0 %v1823_v1  ;;  %v1634_v0 = vunpack.c.h.bf16 (!%p1619_p6), %v1632_v62 }
  0xa8   : > { %1674 = vmatprep.subr.bf16.mxu1 %v1824_v2 }
  0xaa   : > { %1653 = vmatpush3.bf16.msra.mxu0 %v1825_v3 }
  0xab   : > { %1675 = vmatpush3.bf16.msra.mxu1 %v1826_v4  ;;  %1654 = vmatprep.subr.bf16.mxu0 %v1827_v5 }
  0xac   : > { %1676 = vmatprep.subr.bf16.mxu1 %v1828_v6 }
  0xae   : > { %1655 = vmatpush3.bf16.msra.mxu0 %v1829_v7 }
  0xaf   : > { %1677 = vmatpush3.bf16.msra.mxu1 %v1830_v8  ;;  %1684 = vmatprep.subr.bf16.mxu0 %v1837_v13 }
  0xb1   : > { %1245 = vmatmul.mubr.bf16.vlgmr.msra.gmra.mrb[0].mxu0 %v1831_v9 }
  0xb2   : > { %1286 = vmatmul.mubr.bf16.vlgmr.msra.gmra.mrb[0].mxu1 %v1834_v11  ;;  %1685 = vmatpush3.bf16.msra.mxu0 %v1838_v14 }
  0xb3   : > { %1686 = vmatprep.subr.bf16.mxu0 %v1839_v15  ;;  %1326 = vmatprep.mubr.bf16.mxu0 %v1855_v24 }
  0xb6   : > { %1687 = vmatpush3.bf16.msra.mxu0 %v1840_v16 }
  0xb7   : > { %1688 = vmatprep.subr.bf16.mxu0 %v1841_v17 }
  0xba   : > { %1689 = vmatpush3.bf16.msra.mxu0 %v1842_v18 }
  0xbb   : > { %1690 = vmatprep.subr.bf16.mxu0 %v1843_v19 }
  0xbe   : > { %1691 = vmatpush3.bf16.msra.mxu0 %v1844_v20 }
  0xbf   : > { %1692 = vmatprep.subr.bf16.mxu0 %v1845_v21 }
  0xc2   : > { %1693 = vmatpush3.bf16.msra.mxu0 %v1846_v22 }
  0xc3   : > { %1694 = vmatprep.subr.bf16.mxu0 %v1847_v23 }
  0xc6   : > { %1695 = vmatpush3.bf16.msra.mxu0 %v1848_v25 }
  0xc7   : > { %1696 = vmatprep.subr.bf16.mxu0 %v1849_v26 }
  0xca   : > { %1697 = vmatpush3.bf16.msra.mxu0 %v1850_v27 }
  0xcb   : > { %1698 = vmatprep.subr.bf16.mxu0 %v1851_v28 }
  0xce   : > { %1699 = vmatpush3.bf16.msra.mxu0 %v1852_v29 }
  0xd1   : > { %1327 = vmatmul.mubr.bf16.vlgmr.msra.gmra.mrb[4].mxu0 %v1853_v30 }
 0x184   : > { %v1656_v31 = vpop.f32.mrb[0].mxu0 }
 0x185   : > { %v1678_v32 = vpop.f32.mrb[0].mxu1  ;;  %v1657_v33 = vpop.f32.mrb[1].mxu0 }
 0x186   : > { %v1658_v34 = vadd.f32 %v1657_v33, %v1656_v31  ;;  %v1679_v35 = vpop.f32.mrb[1].mxu1  ;;  %v1659_v36 = vpop.f32.mrb[2].mxu0 }
 0x187   : > { %v1680_v37 = vadd.f32 %v1679_v35, %v1678_v32  ;;  %v1681_v38 = vpop.f32.mrb[2].mxu1  ;;  %v1660_v39 = vpop.f32.mrb[3].mxu0 }
 0x188   : > { %v1661_v40 = vadd.f32 %v1660_v39, %v1659_v36  ;;  %v1682_v41 = vpop.f32.mrb[3].mxu1 }
 0x189   : > { %v1288_v42 = vadd.f32 %v1680_v37, %v1658_v34  ;;  %v1683_v43 = vadd.f32 %v1682_v41, %v1681_v38 }
 0x18b   : > { %v1291_v44 = vadd.f32 %v1683_v43, %v1661_v40 }
 0x1a4   : > { %v1700_v45 = vpop.f32.mrb[4].mxu0 }
 0x1a5   : > { %v1701_v46 = vpop.f32.mrb[5].mxu0 }
 0x1a6   : > { %v1702_v47 = vadd.f32 %v1701_v46, %v1700_v45  ;;  %v1703_v48 = vpop.f32.mrb[6].mxu0 }
 0x1a7   : > { %v1704_v50 = vpop.f32.mrb[7].mxu0 }
 0x1a8   : > { %v1329_v51 = vadd.f32 %v1702_v47, %v1288_v42  ;;  %v1705_v52 = vadd.f32 %v1704_v50, %v1703_v48  ;;  %1342 = sbr.rel (%p1619_p6) target bundleno = 447 (0x1bf), region = 149 }
 0x1aa   : > { %v1335_v54 = vadd.f32 %v1329_v51, %v790_v49  ;;  %v1332_v55 = vadd.f32 %v1705_v52, %v1291_v44 }
 0x1ac   : > { %1337 = vst [vmem:[#allocation2] sm:$0xff] %v1335_v54  ;;  %v1336_v56 = vadd.f32 %v1332_v55, %v791_v53 }
 0x1ae   : > { %1338 = vst [vmem:[#allocation2 + $0x8] sm:$0xff] %v1336_v56 }
 0x1b3   : > { %v1343_v57 = vld [vmem:[#allocation2] sm:$0xff] }
 0x1b4   : > { %v1352_v60 = vadd.f32 %v1620_v59, %v1343_v57 }
 0x1b5   : > { %v1344_v58 = vld [vmem:[#allocation2 + $0x8] sm:$0xff] }
 0x1b6   : > { %v1353_v61 = vadd.f32 %v1620_v59, %v1344_v58  ;;  %v1358_v1 = vadd.f32 %v1633_v63, %v1352_v60 }
 0x1b8   : > { %v1359_v2 = vadd.f32 %v1634_v0, %v1353_v61  ;;  %v1360_v3 = vmax.f32 %v1358_v1, 0.0 }
 0x1ba   : > { %v1361_v4 = vmax.f32 %v1359_v2, 0.0 }
 0x1bc   : > { %v1638_v5 = vpack.c.bf16 %v1361_v4, %v1360_v3 }
 0x1be   : > { %1639 = vst [vmem:[%s2318_s19] sm:$0xff] %v1638_v5  }
 0x1bf PF: > { %1378 = sbr.rel (!%p2074_p13) target bundleno = 455 (0x1c7), region = 153  ;;  %s1624_s21 = sshll.u32 (%p2074_p13), %s1930_s22, 2 }
 0x1c0   : > { %s1383_s11 = scalar_lea.vmem (%p2074_p13), %s2429_s4, %s1624_s21 }
 0x1c5   : > { %v1399_v6 = vld [vmem:[%s2318_s19] sm:$0xf] (%p2074_p13)  ;;  %v1401_v7 = vld [vmem:[%s2318_s19 + $0x4] sm:$0xf] (%p2074_p13) }
 0x1c6   : > { %1400 = vst [vmem:[%s1383_s11] sm:$0xf] %v1399_v6  ;;  %1402 = vst [vmem:[%s1383_s11 + $0x8] sm:$0xf] %v1401_v7 }
 0x1c7 PF: > { %s14_s25 = sadd.s32 1, %s1942_s25   ;;  %s2440_s29 = sld [smem:[#allocation7_spill]] }
 0x1c8   : > { %p11_p7 = scmp.ge.s32.totalorder %s14_s25, 8   ;;  %s2441_s28 = sld [smem:[#allocation8_spill]] }
 0x1c9   : > { %s2442_s15 = smov %s1906_s16  ;;  %s2443_s16 = smov %s2066_s13 }
 0x1ca   : > { %s2444_s17 = smov %s1914_s18  ;;  %s2445_s18 = smov %s2063_s12 }
 0x1cb   : > { %s2446_s19 = smov %s1922_s20  ;;  %s2447_s20 = smov %s2047_s7 }
 0x1cc   : > { %s2448_s21 = smov %s1934_s23  ;;  %s2449_s22 = smov %s1938_s24 }
 0x1cd   : > { %s2450_s23 = smov %s2440_s29  ;;  %13 = sbr.rel (!%p11_p7) target bundleno = 8 (0x8), region = 244 }
 0x1ce   : > { %s2451_s24 = smov %s2441_s28 }

// kernel: simple_dog_emotion_model.36
= control target key start
LH: loop header
LB: loop body
LE: loop exit
PB: predicated region body
PF: predicated region fallthrough
CT: control target
= control target key end

     0   :  { %s2266_s0 = inlined_call_operand.vmem [shape: bf16[16,2304], index: 0, kind: input, shape index: {}]   ;;  %s2267_s1 = inlined_call_operand.vmem [shape: bf16[2304,256], index: 1, kind: input, shape index: {}]   ;;  %s2268_s2 = inlined_call_operand.vmem [shape: f32[1,256], index: 2, kind: input, shape index: {}]   ;;  %s2269_s3 = inlined_call_operand.vmem [shape: bf16[16,256], index: 3, kind: output, shape index: {}]  }
   0x1   :  { %2271 = sst [smem:[#allocation7_spill]] %s2266_s0 }
   0x2   :  { %2272 = sst [smem:[#allocation8_spill]] %s2267_s1 }
   0x3   :  { %s1834_s12 = smov 0   ;;  %s1836_s13 = smov 0  }
   0x4   :  { %s1838_s14 = smov 0   ;;  %s1840_s15 = smov 0  }
   0x5   :  { %s1842_s16 = smov 0   ;;  %s1844_s17 = smov 0  }
   0x6   :  { %s1846_s18 = smov 0   ;;  %s1848_s19 = smov 0  }
   0x7   :  { %s1850_s20 = smov 0   ;;  %s1852_s21 = smov 0  }
   0x8   :  { %s1854_s22 = smov 0  }
   0x9 LB: > { %s1428_s23 = sadd.s32 4294967295, %s1811_s22   ;;  %s25_s24 = sadd.s32 1, %s1803_s20  ;;  %s1811_s22 = sphi %s1854_s22, %s13_s22   ;;  %s1807_s21 = sphi %s1852_s21, %s2289_s21   ;;  %s1803_s20 = sphi %s1850_s20, %s2288_s20   ;;  %s1799_s19 = sphi %s1848_s19, %s2287_s19   ;;  %s1795_s18 = sphi %s1846_s18, %s2286_s18   ;;  %s1791_s17 = sphi %s1844_s17, %s2285_s17   ;;  %s1787_s16 = sphi %s1842_s16, %s2284_s16   ;;  %s1783_s15 = sphi %s1840_s15, %s2283_s15   ;;  %s1779_s14 = sphi %s1838_s14, %s2282_s14   ;;  %s1775_s13 = sphi %s1836_s13, %s2281_s13   ;;  %s1771_s12 = sphi %s1834_s12, %s2280_s12  }
   0xa   : > { %p26_p0 = scmp.ge.s32.totalorder %s25_s24, 3  ;;  %s28_s25 = sadd.s32 1, %s1807_s21 }
   0xb   : > { %s41_s26 = sadd.s32 1, %s1791_s17  ;;  %p48_p1 = scmp.ne.s32.totalorder %s1791_s17, %s1787_s16 }
   0xc   : > { %s2291_s24 = smov (%p26_p0, %s25_s24), 0  ;;  %s2293_s25 = smov (!%p26_p0, %s28_s25), %s1807_s21 }
   0xd   : > { %s37_s27 = ssub.s32 %s1803_s20, %s2291_s24  ;;  %p49_p2 = scmp.eq.s32.totalorder %s1811_s22, 0 }
   0xe   : > { %p30_p3 = scmp.ge.s32.totalorder %s2293_s25, 2  ;;  %p39_p4 = scmp.eq.s32.totalorder %s37_s27, 0 }
   0xf   : > { %p1901_p5 = por %p49_p2, %p48_p1  ;;  %s69_s29 = sadd.s32 1, %s1783_s15 }
  0x10   : > { %s2295_s25 = smov (%p30_p3, %s2293_s25), 0  ;;  %p76_p6 = scmp.ne.s32.totalorder %s1783_s15, %s1779_s14 }
  0x11   : > { %2274 = sst [smem:[#allocation6_spill]] %s2295_s25  ;;  %s65_s4 = ssub.s32 %s1807_s21, %s2295_s25 }
  0x12   : > { %s1909_s30 = scalar_select %p39_p4, %s1791_s17, %s41_s26  }
  0x13   : > { %s66_s5 = sor.u32 %s65_s4, %s37_s27  ;;  %p121_p7 = scmp.eq.s32.totalorder %s65_s4, 0 }
  0x14   : > { %p67_p8 = scmp.eq.s32.totalorder %s66_s5, 0  ;;  %p1915_p9 = por %p76_p6, %p49_p2 }
  0x15   : > { %s123_s7 = sadd.s32 1, %s1775_s13  ;;  %p133_p10 = scmp.ne.s32.totalorder %s1775_s13, %s1771_s12 }
  0x16   : > { %s1923_s8 = scalar_select %p67_p8, %s1783_s15, %s69_s29  }
  0x17   : > { %s1926_s9 = scalar_select %p121_p7, %s1775_s13, %s123_s7  }
  0x18   : > { %p134_p11 = scmp.eq.s32.totalorder %s1428_s23, 5  ;;  %p1431_p13 = scmp.ge.s32.totalorder %s1811_s22, 6 }
  0x1a   : > { %p1928_p12 = por %p134_p11, %p133_p10  ;;  %156 = sbr.rel (%p1431_p13) target bundleno = 118 (0x76), region = 16 }
  0x21   : > { %159 = sbr.rel (!%p1901_p5) target bundleno = 45 (0x2d), region = 20  ;;  %s161_s11 = sand.u32 (%p1901_p5), 1, %s1791_s17  }
  0x22   : > { %s1500_s26 = smul.u32 (%p1901_p5), 24, %s1803_s20  ;;  %s2277_s0 = sld [smem:[#allocation7_spill]] (%p1901_p5) }
  0x23   : > { %s1575_s27 = smul.u32 (%p1901_p5), 48, %s161_s11 }
  0x25   : > { %s163_s23 = scalar_lea.vmem (%p1901_p5), [#allocation3], %s1575_s27 }
  0x28   : > { %s169_s5 = scalar_lea.vmem %s2277_s0, %s1500_s26 }
  0x29   : > { %v182_v0 = vld [vmem:[%s169_s5] sm:$0xff]  ;;  %v184_v1 = vld [vmem:[%s169_s5 + $0x8] sm:$0xff]  ;;  %v186_v2 = vld [vmem:[%s169_s5 + $0x10] sm:$0xff] }
  0x2a   : > { %183 = vst [vmem:[%s163_s23] sm:$0xff] %v182_v0  ;;  %185 = vst [vmem:[%s163_s23 + $0x8] sm:$0xff] %v184_v1  ;;  %v188_v3 = vld [vmem:[%s169_s5 + $0x48] sm:$0xff]  ;;  %v190_v4 = vld [vmem:[%s169_s5 + $0x50] sm:$0xff] }
  0x2b   : > { %187 = vst [vmem:[%s163_s23 + $0x10] sm:$0xff] %v186_v2  ;;  %v192_v5 = vld [vmem:[%s169_s5 + $0x58] sm:$0xff]  ;;  %189 = vst [vmem:[%s163_s23 + $0x18] sm:$0xff] %v188_v3 }
  0x2c   : > { %191 = vst [vmem:[%s163_s23 + $0x20] sm:$0xff] %v190_v4  ;;  %193 = vst [vmem:[%s163_s23 + $0x28] sm:$0xff] %v192_v5 }
  0x2d PF: > { %199 = sbr.rel (!%p1915_p9) target bundleno = 118 (0x76), region = 43  ;;  %s201_s28 = sand.u32 (%p1915_p9), 1, %s1783_s15  }
  0x2e   : > { %s1501_s7 = smul.u32 (%p1915_p9), 192, %s1803_s20  ;;  %s2278_s1 = sld [smem:[#allocation8_spill]] (%p1915_p9) }
  0x2f   : > { %s1576_s11 = smul.u32 (%p1915_p9), 384, %s201_s28 }
  0x30   : > { %s206_s26 = sadd.s32 (%p1915_p9), %s1807_s21, %s1501_s7 }
  0x31   : > { %s1434_s27 = sshll.u32 (%p1915_p9), %s206_s26, 2  ;;  %s1953_s6 = scalar_lea.vmem (%p1915_p9), [#allocation4], %s1576_s11 }
  0x34   : > { %s1948_s0 = scalar_lea.vmem %s2278_s1, %s1434_s27 }
  0x35   : > { %v224_v6 = vld [vmem:[%s1948_s0] sm:$0xf]  ;;  %v226_v7 = vld [vmem:[%s1948_s0 + $0x8] sm:$0xf]  ;;  %v228_v8 = vld [vmem:[%s1948_s0 + $0x10] sm:$0xf] }
  0x36   : > { %225 = vst [vmem:[%s1953_s6] sm:$0xf] %v224_v6  ;;  %227 = vst [vmem:[%s1953_s6 + $0x4] sm:$0xf] %v226_v7  ;;  %v230_v9 = vld [vmem:[%s1948_s0 + $0x18] sm:$0xf] }
  0x37   : > { %229 = vst [vmem:[%s1953_s6 + $0x8] sm:$0xf] %v228_v8  ;;  %v232_v10 = vld [vmem:[%s1948_s0 + $0x20] sm:$0xf]  ;;  %v234_v11 = vld [vmem:[%s1948_s0 + $0x28] sm:$0xf] }
  0x38   : > { %231 = vst [vmem:[%s1953_s6 + $0xc] sm:$0xf] %v230_v9  ;;  %233 = vst [vmem:[%s1953_s6 + $0x10] sm:$0xf] %v232_v10  ;;  %v236_v12 = vld [vmem:[%s1948_s0 + $0x30] sm:$0xf] }
  0x39   : > { %235 = vst [vmem:[%s1953_s6 + $0x14] sm:$0xf] %v234_v11  ;;  %v238_v13 = vld [vmem:[%s1948_s0 + $0x38] sm:$0xf]  ;;  %v240_v14 = vld [vmem:[%s1948_s0 + $0x40] sm:$0xf] }
  0x3a   : > { %237 = vst [vmem:[%s1953_s6 + $0x18] sm:$0xf] %v236_v12  ;;  %239 = vst [vmem:[%s1953_s6 + $0x1c] sm:$0xf] %v238_v13  ;;  %v242_v15 = vld [vmem:[%s1948_s0 + $0x48] sm:$0xf] }
  0x3b   : > { %241 = vst [vmem:[%s1953_s6 + $0x20] sm:$0xf] %v240_v14  ;;  %v244_v16 = vld [vmem:[%s1948_s0 + $0x50] sm:$0xf]  ;;  %v246_v17 = vld [vmem:[%s1948_s0 + $0x58] sm:$0xf] }
  0x3c   : > { %243 = vst [vmem:[%s1953_s6 + $0x24] sm:$0xf] %v242_v15  ;;  %245 = vst [vmem:[%s1953_s6 + $0x28] sm:$0xf] %v244_v16  ;;  %v248_v18 = vld [vmem:[%s1948_s0 + $0x60] sm:$0xf] }
  0x3d   : > { %247 = vst [vmem:[%s1953_s6 + $0x2c] sm:$0xf] %v246_v17  ;;  %v250_v19 = vld [vmem:[%s1948_s0 + $0x68] sm:$0xf]  ;;  %v252_v20 = vld [vmem:[%s1948_s0 + $0x70] sm:$0xf] }
  0x3e   : > { %249 = vst [vmem:[%s1953_s6 + $0x30] sm:$0xf] %v248_v18  ;;  %251 = vst [vmem:[%s1953_s6 + $0x34] sm:$0xf] %v250_v19  ;;  %v254_v21 = vld [vmem:[%s1948_s0 + $0x78] sm:$0xf] }
  0x3f   : > { %253 = vst [vmem:[%s1953_s6 + $0x38] sm:$0xf] %v252_v20  ;;  %v256_v22 = vld [vmem:[%s1948_s0 + $0x80] sm:$0xf]  ;;  %v258_v23 = vld [vmem:[%s1948_s0 + $0x88] sm:$0xf] }
  0x40   : > { %255 = vst [vmem:[%s1953_s6 + $0x3c] sm:$0xf] %v254_v21  ;;  %257 = vst [vmem:[%s1953_s6 + $0x40] sm:$0xf] %v256_v22  ;;  %v260_v24 = vld [vmem:[%s1948_s0 + $0x90] sm:$0xf] }
  0x41   : > { %259 = vst [vmem:[%s1953_s6 + $0x44] sm:$0xf] %v258_v23  ;;  %v262_v25 = vld [vmem:[%s1948_s0 + $0x98] sm:$0xf]  ;;  %v264_v26 = vld [vmem:[%s1948_s0 + $0xa0] sm:$0xf] }
  0x42   : > { %261 = vst [vmem:[%s1953_s6 + $0x48] sm:$0xf] %v260_v24  ;;  %263 = vst [vmem:[%s1953_s6 + $0x4c] sm:$0xf] %v262_v25  ;;  %v266_v27 = vld [vmem:[%s1948_s0 + $0xa8] sm:$0xf] }
  0x43   : > { %265 = vst [vmem:[%s1953_s6 + $0x50] sm:$0xf] %v264_v26  ;;  %v268_v28 = vld [vmem:[%s1948_s0 + $0xb0] sm:$0xf]  ;;  %v270_v29 = vld [vmem:[%s1948_s0 + $0xb8] sm:$0xf] }
  0x44   : > { %267 = vst [vmem:[%s1953_s6 + $0x54] sm:$0xf] %v266_v27  ;;  %269 = vst [vmem:[%s1953_s6 + $0x58] sm:$0xf] %v268_v28  ;;  %v272_v30 = vld [vmem:[%s1948_s0 + $0xc0] sm:$0xf] }
  0x45   : > { %271 = vst [vmem:[%s1953_s6 + $0x5c] sm:$0xf] %v270_v29  ;;  %v274_v31 = vld [vmem:[%s1948_s0 + $0xc8] sm:$0xf]  ;;  %v276_v32 = vld [vmem:[%s1948_s0 + $0xd0] sm:$0xf] }
  0x46   : > { %273 = vst [vmem:[%s1953_s6 + $0x60] sm:$0xf] %v272_v30  ;;  %275 = vst [vmem:[%s1953_s6 + $0x64] sm:$0xf] %v274_v31  ;;  %v278_v33 = vld [vmem:[%s1948_s0 + $0xd8] sm:$0xf] }
  0x47   : > { %277 = vst [vmem:[%s1953_s6 + $0x68] sm:$0xf] %v276_v32  ;;  %v280_v34 = vld [vmem:[%s1948_s0 + $0xe0] sm:$0xf]  ;;  %v282_v35 = vld [vmem:[%s1948_s0 + $0xe8] sm:$0xf] }
  0x48   : > { %279 = vst [vmem:[%s1953_s6 + $0x6c] sm:$0xf] %v278_v33  ;;  %281 = vst [vmem:[%s1953_s6 + $0x70] sm:$0xf] %v280_v34  ;;  %v284_v36 = vld [vmem:[%s1948_s0 + $0xf0] sm:$0xf] }
  0x49   : > { %283 = vst [vmem:[%s1953_s6 + $0x74] sm:$0xf] %v282_v35  ;;  %v286_v37 = vld [vmem:[%s1948_s0 + $0xf8] sm:$0xf]  ;;  %v288_v38 = vld [vmem:[%s1948_s0 + $0x100] sm:$0xf] }
  0x4a   : > { %285 = vst [vmem:[%s1953_s6 + $0x78] sm:$0xf] %v284_v36  ;;  %287 = vst [vmem:[%s1953_s6 + $0x7c] sm:$0xf] %v286_v37  ;;  %v290_v39 = vld [vmem:[%s1948_s0 + $0x108] sm:$0xf] }
  0x4b   : > { %289 = vst [vmem:[%s1953_s6 + $0x80] sm:$0xf] %v288_v38  ;;  %v292_v40 = vld [vmem:[%s1948_s0 + $0x110] sm:$0xf]  ;;  %v294_v41 = vld [vmem:[%s1948_s0 + $0x118] sm:$0xf] }
  0x4c   : > { %291 = vst [vmem:[%s1953_s6 + $0x84] sm:$0xf] %v290_v39  ;;  %293 = vst [vmem:[%s1953_s6 + $0x88] sm:$0xf] %v292_v40  ;;  %v296_v42 = vld [vmem:[%s1948_s0 + $0x120] sm:$0xf] }
  0x4d   : > { %295 = vst [vmem:[%s1953_s6 + $0x8c] sm:$0xf] %v294_v41  ;;  %v298_v43 = vld [vmem:[%s1948_s0 + $0x128] sm:$0xf]  ;;  %v300_v44 = vld [vmem:[%s1948_s0 + $0x130] sm:$0xf] }
  0x4e   : > { %297 = vst [vmem:[%s1953_s6 + $0x90] sm:$0xf] %v296_v42  ;;  %299 = vst [vmem:[%s1953_s6 + $0x94] sm:$0xf] %v298_v43  ;;  %v302_v45 = vld [vmem:[%s1948_s0 + $0x138] sm:$0xf] }
  0x4f   : > { %301 = vst [vmem:[%s1953_s6 + $0x98] sm:$0xf] %v300_v44  ;;  %v304_v46 = vld [vmem:[%s1948_s0 + $0x140] sm:$0xf]  ;;  %v306_v47 = vld [vmem:[%s1948_s0 + $0x148] sm:$0xf] }
  0x50   : > { %303 = vst [vmem:[%s1953_s6 + $0x9c] sm:$0xf] %v302_v45  ;;  %305 = vst [vmem:[%s1953_s6 + $0xa0] sm:$0xf] %v304_v46  ;;  %v308_v48 = vld [vmem:[%s1948_s0 + $0x150] sm:$0xf] }
  0x51   : > { %307 = vst [vmem:[%s1953_s6 + $0xa4] sm:$0xf] %v306_v47  ;;  %v310_v49 = vld [vmem:[%s1948_s0 + $0x158] sm:$0xf]  ;;  %v312_v50 = vld [vmem:[%s1948_s0 + $0x160] sm:$0xf] }
  0x52   : > { %309 = vst [vmem:[%s1953_s6 + $0xa8] sm:$0xf] %v308_v48  ;;  %311 = vst [vmem:[%s1953_s6 + $0xac] sm:$0xf] %v310_v49  ;;  %v314_v51 = vld [vmem:[%s1948_s0 + $0x168] sm:$0xf] }
  0x53   : > { %313 = vst [vmem:[%s1953_s6 + $0xb0] sm:$0xf] %v312_v50  ;;  %v316_v52 = vld [vmem:[%s1948_s0 + $0x170] sm:$0xf]  ;;  %v318_v53 = vld [vmem:[%s1948_s0 + $0x178] sm:$0xf] }
  0x54   : > { %315 = vst [vmem:[%s1953_s6 + $0xb4] sm:$0xf] %v314_v51  ;;  %317 = vst [vmem:[%s1953_s6 + $0xb8] sm:$0xf] %v316_v52  ;;  %v320_v54 = vld [vmem:[%s1948_s0 + $0x180] sm:$0xf] }
  0x55   : > { %319 = vst [vmem:[%s1953_s6 + $0xbc] sm:$0xf] %v318_v53  ;;  %v322_v55 = vld [vmem:[%s1948_s0 + $0x188] sm:$0xf]  ;;  %v324_v56 = vld [vmem:[%s1948_s0 + $0x190] sm:$0xf] }
  0x56   : > { %321 = vst [vmem:[%s1953_s6 + $0xc0] sm:$0xf] %v320_v54  ;;  %323 = vst [vmem:[%s1953_s6 + $0xc4] sm:$0xf] %v322_v55  ;;  %v326_v57 = vld [vmem:[%s1948_s0 + $0x198] sm:$0xf] }
  0x57   : > { %325 = vst [vmem:[%s1953_s6 + $0xc8] sm:$0xf] %v324_v56  ;;  %v328_v58 = vld [vmem:[%s1948_s0 + $0x1a0] sm:$0xf]  ;;  %v330_v59 = vld [vmem:[%s1948_s0 + $0x1a8] sm:$0xf] }
  0x58   : > { %327 = vst [vmem:[%s1953_s6 + $0xcc] sm:$0xf] %v326_v57  ;;  %329 = vst [vmem:[%s1953_s6 + $0xd0] sm:$0xf] %v328_v58  ;;  %v332_v60 = vld [vmem:[%s1948_s0 + $0x1b0] sm:$0xf] }
  0x59   : > { %331 = vst [vmem:[%s1953_s6 + $0xd4] sm:$0xf] %v330_v59  ;;  %v334_v61 = vld [vmem:[%s1948_s0 + $0x1b8] sm:$0xf]  ;;  %v336_v62 = vld [vmem:[%s1948_s0 + $0x1c0] sm:$0xf] }
  0x5a   : > { %333 = vst [vmem:[%s1953_s6 + $0xd8] sm:$0xf] %v332_v60  ;;  %335 = vst [vmem:[%s1953_s6 + $0xdc] sm:$0xf] %v334_v61  ;;  %v338_v63 = vld [vmem:[%s1948_s0 + $0x1c8] sm:$0xf] }
  0x5b   : > { %337 = vst [vmem:[%s1953_s6 + $0xe0] sm:$0xf] %v336_v62  ;;  %v340_v0 = vld [vmem:[%s1948_s0 + $0x1d0] sm:$0xf]  ;;  %v342_v1 = vld [vmem:[%s1948_s0 + $0x1d8] sm:$0xf] }
  0x5c   : > { %339 = vst [vmem:[%s1953_s6 + $0xe4] sm:$0xf] %v338_v63  ;;  %341 = vst [vmem:[%s1953_s6 + $0xe8] sm:$0xf] %v340_v0  ;;  %v344_v2 = vld [vmem:[%s1948_s0 + $0x1e0] sm:$0xf] }
  0x5d   : > { %343 = vst [vmem:[%s1953_s6 + $0xec] sm:$0xf] %v342_v1  ;;  %v346_v3 = vld [vmem:[%s1948_s0 + $0x1e8] sm:$0xf]  ;;  %v348_v4 = vld [vmem:[%s1948_s0 + $0x1f0] sm:$0xf] }
  0x5e   : > { %345 = vst [vmem:[%s1953_s6 + $0xf0] sm:$0xf] %v344_v2  ;;  %347 = vst [vmem:[%s1953_s6 + $0xf4] sm:$0xf] %v346_v3  ;;  %v350_v5 = vld [vmem:[%s1948_s0 + $0x1f8] sm:$0xf] }
  0x5f   : > { %349 = vst [vmem:[%s1953_s6 + $0xf8] sm:$0xf] %v348_v4  ;;  %v352_v6 = vld [vmem:[%s1948_s0 + $0x200] sm:$0xf]  ;;  %v354_v7 = vld [vmem:[%s1948_s0 + $0x208] sm:$0xf] }
  0x60   : > { %351 = vst [vmem:[%s1953_s6 + $0xfc] sm:$0xf] %v350_v5  ;;  %353 = vst [vmem:[%s1953_s6 + $0x100] sm:$0xf] %v352_v6  ;;  %v356_v8 = vld [vmem:[%s1948_s0 + $0x210] sm:$0xf] }
  0x61   : > { %355 = vst [vmem:[%s1953_s6 + $0x104] sm:$0xf] %v354_v7  ;;  %v358_v9 = vld [vmem:[%s1948_s0 + $0x218] sm:$0xf]  ;;  %v360_v10 = vld [vmem:[%s1948_s0 + $0x220] sm:$0xf] }
  0x62   : > { %357 = vst [vmem:[%s1953_s6 + $0x108] sm:$0xf] %v356_v8  ;;  %359 = vst [vmem:[%s1953_s6 + $0x10c] sm:$0xf] %v358_v9  ;;  %v362_v11 = vld [vmem:[%s1948_s0 + $0x228] sm:$0xf] }
  0x63   : > { %361 = vst [vmem:[%s1953_s6 + $0x110] sm:$0xf] %v360_v10  ;;  %v364_v12 = vld [vmem:[%s1948_s0 + $0x230] sm:$0xf]  ;;  %v366_v13 = vld [vmem:[%s1948_s0 + $0x238] sm:$0xf] }
  0x64   : > { %363 = vst [vmem:[%s1953_s6 + $0x114] sm:$0xf] %v362_v11  ;;  %365 = vst [vmem:[%s1953_s6 + $0x118] sm:$0xf] %v364_v12  ;;  %v368_v14 = vld [vmem:[%s1948_s0 + $0x240] sm:$0xf] }
  0x65   : > { %367 = vst [vmem:[%s1953_s6 + $0x11c] sm:$0xf] %v366_v13  ;;  %v370_v15 = vld [vmem:[%s1948_s0 + $0x248] sm:$0xf]  ;;  %v372_v16 = vld [vmem:[%s1948_s0 + $0x250] sm:$0xf] }
  0x66   : > { %369 = vst [vmem:[%s1953_s6 + $0x120] sm:$0xf] %v368_v14  ;;  %371 = vst [vmem:[%s1953_s6 + $0x124] sm:$0xf] %v370_v15  ;;  %v374_v17 = vld [vmem:[%s1948_s0 + $0x258] sm:$0xf] }
  0x67   : > { %373 = vst [vmem:[%s1953_s6 + $0x128] sm:$0xf] %v372_v16  ;;  %v376_v18 = vld [vmem:[%s1948_s0 + $0x260] sm:$0xf]  ;;  %v378_v19 = vld [vmem:[%s1948_s0 + $0x268] sm:$0xf] }
  0x68   : > { %375 = vst [vmem:[%s1953_s6 + $0x12c] sm:$0xf] %v374_v17  ;;  %377 = vst [vmem:[%s1953_s6 + $0x130] sm:$0xf] %v376_v18  ;;  %v380_v20 = vld [vmem:[%s1948_s0 + $0x270] sm:$0xf] }
  0x69   : > { %379 = vst [vmem:[%s1953_s6 + $0x134] sm:$0xf] %v378_v19  ;;  %v382_v21 = vld [vmem:[%s1948_s0 + $0x278] sm:$0xf]  ;;  %v384_v22 = vld [vmem:[%s1948_s0 + $0x280] sm:$0xf] }
  0x6a   : > { %381 = vst [vmem:[%s1953_s6 + $0x138] sm:$0xf] %v380_v20  ;;  %383 = vst [vmem:[%s1953_s6 + $0x13c] sm:$0xf] %v382_v21  ;;  %v386_v23 = vld [vmem:[%s1948_s0 + $0x288] sm:$0xf] }
  0x6b   : > { %385 = vst [vmem:[%s1953_s6 + $0x140] sm:$0xf] %v384_v22  ;;  %v388_v24 = vld [vmem:[%s1948_s0 + $0x290] sm:$0xf]  ;;  %v390_v25 = vld [vmem:[%s1948_s0 + $0x298] sm:$0xf] }
  0x6c   : > { %387 = vst [vmem:[%s1953_s6 + $0x144] sm:$0xf] %v386_v23  ;;  %389 = vst [vmem:[%s1953_s6 + $0x148] sm:$0xf] %v388_v24  ;;  %v392_v26 = vld [vmem:[%s1948_s0 + $0x2a0] sm:$0xf] }
  0x6d   : > { %391 = vst [vmem:[%s1953_s6 + $0x14c] sm:$0xf] %v390_v25  ;;  %v394_v27 = vld [vmem:[%s1948_s0 + $0x2a8] sm:$0xf]  ;;  %v396_v28 = vld [vmem:[%s1948_s0 + $0x2b0] sm:$0xf] }
  0x6e   : > { %393 = vst [vmem:[%s1953_s6 + $0x150] sm:$0xf] %v392_v26  ;;  %395 = vst [vmem:[%s1953_s6 + $0x154] sm:$0xf] %v394_v27  ;;  %v398_v29 = vld [vmem:[%s1948_s0 + $0x2b8] sm:$0xf] }
  0x6f   : > { %397 = vst [vmem:[%s1953_s6 + $0x158] sm:$0xf] %v396_v28  ;;  %v400_v30 = vld [vmem:[%s1948_s0 + $0x2c0] sm:$0xf]  ;;  %v402_v31 = vld [vmem:[%s1948_s0 + $0x2c8] sm:$0xf] }
  0x70   : > { %399 = vst [vmem:[%s1953_s6 + $0x15c] sm:$0xf] %v398_v29  ;;  %401 = vst [vmem:[%s1953_s6 + $0x160] sm:$0xf] %v400_v30  ;;  %v404_v32 = vld [vmem:[%s1948_s0 + $0x2d0] sm:$0xf] }
  0x71   : > { %403 = vst [vmem:[%s1953_s6 + $0x164] sm:$0xf] %v402_v31  ;;  %v406_v33 = vld [vmem:[%s1948_s0 + $0x2d8] sm:$0xf]  ;;  %v408_v34 = vld [vmem:[%s1948_s0 + $0x2e0] sm:$0xf] }
  0x72   : > { %405 = vst [vmem:[%s1953_s6 + $0x168] sm:$0xf] %v404_v32  ;;  %407 = vst [vmem:[%s1953_s6 + $0x16c] sm:$0xf] %v406_v33  ;;  %v410_v35 = vld [vmem:[%s1948_s0 + $0x2e8] sm:$0xf] }
  0x73   : > { %409 = vst [vmem:[%s1953_s6 + $0x170] sm:$0xf] %v408_v34  ;;  %v412_v36 = vld [vmem:[%s1948_s0 + $0x2f0] sm:$0xf]  ;;  %v414_v37 = vld [vmem:[%s1948_s0 + $0x2f8] sm:$0xf] }
  0x74   : > { %411 = vst [vmem:[%s1953_s6 + $0x174] sm:$0xf] %v410_v35  ;;  %413 = vst [vmem:[%s1953_s6 + $0x178] sm:$0xf] %v412_v36 }
  0x75   : > { %415 = vst [vmem:[%s1953_s6 + $0x17c] sm:$0xf] %v414_v37 }
  0x76 PF: > { %p1435_p0 = scmp.ge.s32.totalorder %s1811_s22, 1  ;;  %p635_p1 = scmp.lt.s32.totalorder %s1811_s22, 7 }
  0x78   : > { %p636_p2 = pnand %p1435_p0, %p635_p1 }
  0x79   : > { %s642_s5 = sand.u32 (!%p636_p2), 1, %s1787_s16   ;;  %s649_s23 = sand.u32 (!%p636_p2), 1, %s1779_s14  }
  0x7a   : > { %639 = sbr.rel (%p636_p2) target bundleno = 447 (0x1bf), region = 88  ;;  %s675_s0 = sand.u32 (!%p636_p2), 1, %s1771_s12  }
  0x7b   : > { %s1577_s28 = smul.u32 (!%p636_p2), 48, %s642_s5  ;;  %s1436_s11 = sshll.u32 (!%p636_p2), %s675_s0, 3 }
  0x7c   : > { %s1578_s7 = smul.u32 (!%p636_p2), 384, %s649_s23  ;;  %p681_p3 = scmp.lt.s32.totalorder (!%p636_p2), %s1799_s19, 1 }
  0x7d   : > { %s2157_s6 = scalar_lea.vmem (!%p636_p2), [#allocation3], %s1577_s28  ;;  %s2161_s25 = scalar_lea.vmem (!%p636_p2), [#allocation5], %s1436_s11 }
  0x7e   : > { %s2159_s1 = scalar_lea.vmem (!%p636_p2), [#allocation4], %s1578_s7  ;;  %p1437_p4 = scmp.ne.s32.totalorder (!%p636_p2), %s1795_s18, 0 }
  0x81   : > { %s2151_s26 = scalar_select %p681_p3, %s1799_s19, 1 }
  0x82   : > { %689 = sbr.rel (%p1437_p4) target bundleno = 137 (0x89), region = 100  ;;  %v1813_v38 = vmov (!%p1437_p4), 0.0  }
  0x83   : > { %s683_s4 = scalar_lea.vmem %s2268_s2, %s2151_s26  ;;  %690 = vst [vmem:[#allocation2] sm:$0xff] (!%p1437_p4), %v1813_v38  ;;  %691 = vst [vmem:[#allocation2 + $0x8] sm:$0xff] (!%p1437_p4), %v1813_v38 }
  0x89 PF: > { %v1668_v39 = vld [vmem:[%s2159_s1 + $0x40] sm:$0xff]   ;;  %v1672_v43 = vld [vmem:[%s2159_s1 + $0x48] sm:$0xff]   ;;  %v1676_v47 = vld [vmem:[%s2159_s1 + $0x50] sm:$0xff]   ;;  %p1492_p5 = scmp.ne.s32.totalorder %s1795_s18, 2 }
  0x8a   : > { %v1669_v40 = vld [vmem:[%s2159_s1 + $0xc0] sm:$0xff]   ;;  %1509 = vmatprep.subr.bf16.mxu0 %v1668_v39  ;;  %v1673_v44 = vld [vmem:[%s2159_s1 + $0xc8] sm:$0xff]   ;;  %v1677_v48 = vld [vmem:[%s2159_s1 + $0xd0] sm:$0xff]  }
  0x8b   : > { %v1670_v41 = vld [vmem:[%s2159_s1] sm:$0xff]   ;;  %1531 = vmatprep.subr.bf16.mxu1 %v1669_v40  ;;  %v1674_v45 = vld [vmem:[%s2159_s1 + $0x8] sm:$0xff]   ;;  %v1678_v49 = vld [vmem:[%s2159_s1 + $0x10] sm:$0xff]  }
  0x8c   : > { %v1671_v42 = vld [vmem:[%s2159_s1 + $0x80] sm:$0xff]   ;;  %1510 = vmatpush3.bf16.msra.mxu0 %v1670_v41  ;;  %v1675_v46 = vld [vmem:[%s2159_s1 + $0x88] sm:$0xff]   ;;  %v1679_v50 = vld [vmem:[%s2159_s1 + $0x90] sm:$0xff]  }
  0x8d   : > { %1532 = vmatpush3.bf16.msra.mxu1 %v1671_v42  ;;  %1511 = vmatprep.subr.bf16.mxu0 %v1672_v43  ;;  %v1680_v51 = vld [vmem:[%s2159_s1 + $0x58] sm:$0xff]   ;;  %v1684_v55 = vld [vmem:[%s2159_s1 + $0x60] sm:$0xff]   ;;  %v1688_v59 = vld [vmem:[%s2159_s1 + $0x68] sm:$0xff]  }
  0x8e   : > { %1533 = vmatprep.subr.bf16.mxu1 %v1673_v44  ;;  %v1681_v52 = vld [vmem:[%s2159_s1 + $0xd8] sm:$0xff]   ;;  %v1685_v56 = vld [vmem:[%s2159_s1 + $0xe0] sm:$0xff]   ;;  %v1689_v60 = vld [vmem:[%s2159_s1 + $0xe8] sm:$0xff]  }
  0x8f   : > { %v1682_v53 = vld [vmem:[%s2159_s1 + $0x18] sm:$0xff]   ;;  %v1686_v57 = vld [vmem:[%s2159_s1 + $0x20] sm:$0xff]   ;;  %v1690_v61 = vld [vmem:[%s2159_s1 + $0x28] sm:$0xff]  }
  0x90   : > { %1512 = vmatpush3.bf16.msra.mxu0 %v1674_v45  ;;  %v1683_v54 = vld [vmem:[%s2159_s1 + $0x98] sm:$0xff]   ;;  %v1687_v58 = vld [vmem:[%s2159_s1 + $0xa0] sm:$0xff]   ;;  %v1691_v62 = vld [vmem:[%s2159_s1 + $0xa8] sm:$0xff]  }
  0x91   : > { %1534 = vmatpush3.bf16.msra.mxu1 %v1675_v46  ;;  %1513 = vmatprep.subr.bf16.mxu0 %v1676_v47  ;;  %v1692_v63 = vld [vmem:[%s2159_s1 + $0x70] sm:$0xff]   ;;  %v1696_v3 = vld [vmem:[%s2159_s1 + $0x78] sm:$0xff]   ;;  %v1706_v11 = vld [vmem:[%s2159_s1 + $0x140] sm:$0xff]  }
  0x92   : > { %1535 = vmatprep.subr.bf16.mxu1 %v1677_v48  ;;  %v1693_v0 = vld [vmem:[%s2159_s1 + $0xf0] sm:$0xff]   ;;  %v1697_v4 = vld [vmem:[%s2159_s1 + $0xf8] sm:$0xff]   ;;  %v1707_v12 = vld [vmem:[%s2159_s1 + $0x100] sm:$0xff]  }
  0x93   : > { %v1694_v1 = vld [vmem:[%s2159_s1 + $0x30] sm:$0xff]   ;;  %v1698_v5 = vld [vmem:[%s2159_s1 + $0x38] sm:$0xff]   ;;  %v1708_v13 = vld [vmem:[%s2159_s1 + $0x148] sm:$0xff]  }
  0x94   : > { %1514 = vmatpush3.bf16.msra.mxu0 %v1678_v49  ;;  %v1695_v2 = vld [vmem:[%s2159_s1 + $0xb0] sm:$0xff]   ;;  %v1699_v6 = vld [vmem:[%s2159_s1 + $0xb8] sm:$0xff]   ;;  %v1709_v14 = vld [vmem:[%s2159_s1 + $0x108] sm:$0xff]  }
  0x95   : > { %1536 = vmatpush3.bf16.msra.mxu1 %v1679_v50  ;;  %1515 = vmatprep.subr.bf16.mxu0 %v1680_v51  ;;  %v1700_v7 = vld [vmem:[%s2157_s6] ss:$24 sps:$4 sm:$0xff]   ;;  %v1702_v8 = vld [vmem:[%s2157_s6 + $0x4] ss:$24 sps:$4 sm:$0xff]   ;;  %v1724_v22 = vld [vmem:[%s2157_s6 + $0x14] ss:$24 sps:$4 sm:$0xff]  }
  0x96   : > { %1537 = vmatprep.subr.bf16.mxu1 %v1681_v52  ;;  %v1703_v9 = vld [vmem:[%s2157_s6 + $0x8] ss:$24 sps:$4 sm:$0xff]   ;;  %v1705_v10 = vld [vmem:[%s2157_s6 + $0xc] ss:$24 sps:$4 sm:$0xff]   ;;  %1146 = vmatprep.mubr.bf16.mxu0 %v1702_v8 }
  0x97   : > { %1187 = vmatprep.mubr.bf16.mxu1 %v1705_v10  ;;  %v1710_v15 = vld [vmem:[%s2159_s1 + $0x150] sm:$0xff]   ;;  %v1712_v17 = vld [vmem:[%s2159_s1 + $0x158] sm:$0xff]   ;;  %v1714_v19 = vld [vmem:[%s2159_s1 + $0x160] sm:$0xff]  }
  0x98   : > { %1516 = vmatpush3.bf16.msra.mxu0 %v1682_v53  ;;  %v1711_v16 = vld [vmem:[%s2159_s1 + $0x110] sm:$0xff]   ;;  %v1713_v18 = vld [vmem:[%s2159_s1 + $0x118] sm:$0xff]   ;;  %v1715_v20 = vld [vmem:[%s2159_s1 + $0x120] sm:$0xff]  }
  0x99   : > { %1538 = vmatpush3.bf16.msra.mxu1 %v1683_v54  ;;  %1517 = vmatprep.subr.bf16.mxu0 %v1684_v55  ;;  %v1716_v21 = vld [vmem:[%s2159_s1 + $0x168] sm:$0xff]   ;;  %v1718_v24 = vld [vmem:[%s2159_s1 + $0x170] sm:$0xff]   ;;  %v1720_v26 = vld [vmem:[%s2159_s1 + $0x178] sm:$0xff]  }
  0x9a   : > { %1539 = vmatprep.subr.bf16.mxu1 %v1685_v56  ;;  %v1717_v23 = vld [vmem:[%s2159_s1 + $0x128] sm:$0xff]   ;;  %v1719_v25 = vld [vmem:[%s2159_s1 + $0x130] sm:$0xff]   ;;  %v1721_v27 = vld [vmem:[%s2159_s1 + $0x138] sm:$0xff]  }
  0x9b   : > { %v1722_v28 = vld [vmem:[%s2157_s6 + $0x10] ss:$24 sps:$4 sm:$0xff]  }
  0x9c   : > { %1518 = vmatpush3.bf16.msra.mxu0 %v1686_v57  ;;  %v692_v47 = vld [vmem:[#allocation2] sm:$0xff]  ;;  %v693_v51 = vld [vmem:[#allocation2 + $0x8] sm:$0xff] }
  0x9d   : > { %1540 = vmatpush3.bf16.msra.mxu1 %v1687_v58  ;;  %1519 = vmatprep.subr.bf16.mxu0 %v1688_v59  ;;  %v1493_v57 = vld [vmem:[%s683_s4] ss:$0 sm:$0xff] (!%p1492_p5) }
  0x9e   : > { %1541 = vmatprep.subr.bf16.mxu1 %v1689_v60 }
  0xa0   : > { %1520 = vmatpush3.bf16.msra.mxu0 %v1690_v61 }
  0xa1   : > { %1542 = vmatpush3.bf16.msra.mxu1 %v1691_v62  ;;  %1521 = vmatprep.subr.bf16.mxu0 %v1692_v63 }
  0xa2   : > { %1543 = vmatprep.subr.bf16.mxu1 %v1693_v0 }
  0xa4   : > { %1522 = vmatpush3.bf16.msra.mxu0 %v1694_v1 }
  0xa5   : > { %1544 = vmatpush3.bf16.msra.mxu1 %v1695_v2  ;;  %1523 = vmatprep.subr.bf16.mxu0 %v1696_v3 }
  0xa6   : > { %1545 = vmatprep.subr.bf16.mxu1 %v1697_v4 }
  0xa8   : > { %1524 = vmatpush3.bf16.msra.mxu0 %v1698_v5 }
  0xa9   : > { %1546 = vmatpush3.bf16.msra.mxu1 %v1699_v6  ;;  %1553 = vmatprep.subr.bf16.mxu0 %v1706_v11 }
  0xab   : > { %1147 = vmatmul.mubr.bf16.vlgmr.msra.gmra.mrb[0].mxu0 %v1700_v7 }
  0xac   : > { %1188 = vmatmul.mubr.bf16.vlgmr.msra.gmra.mrb[0].mxu1 %v1703_v9  ;;  %1554 = vmatpush3.bf16.msra.mxu0 %v1707_v12 }
  0xad   : > { %1555 = vmatprep.subr.bf16.mxu0 %v1708_v13  ;;  %1228 = vmatprep.mubr.bf16.mxu0 %v1724_v22 }
  0xb0   : > { %1556 = vmatpush3.bf16.msra.mxu0 %v1709_v14 }
  0xb1   : > { %1557 = vmatprep.subr.bf16.mxu0 %v1710_v15 }
  0xb4   : > { %1558 = vmatpush3.bf16.msra.mxu0 %v1711_v16 }
  0xb5   : > { %1559 = vmatprep.subr.bf16.mxu0 %v1712_v17 }
  0xb8   : > { %1560 = vmatpush3.bf16.msra.mxu0 %v1713_v18 }
  0xb9   : > { %1561 = vmatprep.subr.bf16.mxu0 %v1714_v19 }
  0xbc   : > { %1562 = vmatpush3.bf16.msra.mxu0 %v1715_v20 }
  0xbd   : > { %1563 = vmatprep.subr.bf16.mxu0 %v1716_v21 }
  0xc0   : > { %1564 = vmatpush3.bf16.msra.mxu0 %v1717_v23 }
  0xc1   : > { %1565 = vmatprep.subr.bf16.mxu0 %v1718_v24 }
  0xc4   : > { %1566 = vmatpush3.bf16.msra.mxu0 %v1719_v25 }
  0xc5   : > { %1567 = vmatprep.subr.bf16.mxu0 %v1720_v26 }
  0xc8   : > { %1568 = vmatpush3.bf16.msra.mxu0 %v1721_v27 }
  0xcb   : > { %1229 = vmatmul.mubr.bf16.vlgmr.msra.gmra.mrb[4].mxu0 %v1722_v28 }
 0x17e   : > { %v1525_v29 = vpop.f32.mrb[0].mxu0 }
 0x17f   : > { %v1547_v30 = vpop.f32.mrb[0].mxu1  ;;  %v1526_v31 = vpop.f32.mrb[1].mxu0 }
 0x180   : > { %v1527_v32 = vadd.f32 %v1526_v31, %v1525_v29  ;;  %v1548_v33 = vpop.f32.mrb[1].mxu1  ;;  %v1528_v34 = vpop.f32.mrb[2].mxu0 }
 0x181   : > { %v1549_v35 = vadd.f32 %v1548_v33, %v1547_v30  ;;  %v1550_v36 = vpop.f32.mrb[2].mxu1  ;;  %v1529_v37 = vpop.f32.mrb[3].mxu0 }
 0x182   : > { %v1530_v38 = vadd.f32 %v1529_v37, %v1528_v34  ;;  %v1551_v39 = vpop.f32.mrb[3].mxu1 }
 0x183   : > { %v1190_v40 = vadd.f32 %v1549_v35, %v1527_v32  ;;  %v1552_v41 = vadd.f32 %v1551_v39, %v1550_v36 }
 0x185   : > { %v1193_v42 = vadd.f32 %v1552_v41, %v1530_v38 }
 0x19e   : > { %v1569_v43 = vpop.f32.mrb[4].mxu0 }
 0x19f   : > { %v1570_v44 = vpop.f32.mrb[5].mxu0 }
 0x1a0   : > { %v1571_v45 = vadd.f32 %v1570_v44, %v1569_v43  ;;  %v1572_v46 = vpop.f32.mrb[6].mxu0 }
 0x1a1   : > { %v1573_v48 = vpop.f32.mrb[7].mxu0 }
 0x1a2   : > { %v1231_v49 = vadd.f32 %v1571_v45, %v1190_v40  ;;  %v1574_v50 = vadd.f32 %v1573_v48, %v1572_v46  ;;  %1244 = sbr.rel (%p1492_p5) target bundleno = 439 (0x1b7), region = 104 }
 0x1a4   : > { %v1237_v52 = vadd.f32 %v1231_v49, %v692_v47  ;;  %v1234_v53 = vadd.f32 %v1574_v50, %v1193_v42 }
 0x1a6   : > { %1239 = vst [vmem:[#allocation2] sm:$0xff] %v1237_v52  ;;  %v1238_v54 = vadd.f32 %v1234_v53, %v693_v51 }
 0x1a8   : > { %1240 = vst [vmem:[#allocation2 + $0x8] sm:$0xff] %v1238_v54 }
 0x1ad   : > { %v1245_v55 = vld [vmem:[#allocation2] sm:$0xff] }
 0x1ae   : > { %v1254_v58 = vadd.f32 %v1493_v57, %v1245_v55 }
 0x1af   : > { %v1246_v56 = vld [vmem:[#allocation2 + $0x8] sm:$0xff] }
 0x1b0   : > { %v1255_v59 = vadd.f32 %v1493_v57, %v1246_v56  ;;  %v1256_v60 = vmax.f32 %v1254_v58, 0.0 }
 0x1b2   : > { %v1257_v61 = vmax.f32 %v1255_v59, 0.0 }
 0x1b4   : > { %v1507_v62 = vpack.c.bf16 %v1257_v61, %v1256_v60 }
 0x1b6   : > { %1508 = vst [vmem:[%s2161_s25] sm:$0xff] %v1507_v62  }
 0x1b7 PF: > { %1274 = sbr.rel (!%p1928_p12) target bundleno = 447 (0x1bf), region = 108  ;;  %s1497_s14 = sshll.u32 (%p1928_p12), %s1799_s19, 2 }
 0x1b8   : > { %s1279_s5 = scalar_lea.vmem (%p1928_p12), %s2269_s3, %s1497_s14 }
 0x1bd   : > { %v1295_v63 = vld [vmem:[%s2161_s25] sm:$0xf] (%p1928_p12)  ;;  %v1297_v0 = vld [vmem:[%s2161_s25 + $0x4] sm:$0xf] (%p1928_p12) }
 0x1be   : > { %1296 = vst [vmem:[%s1279_s5] sm:$0xf] %v1295_v63  ;;  %1298 = vst [vmem:[%s1279_s5 + $0x8] sm:$0xf] %v1297_v0 }
 0x1bf PF: > { %s13_s22 = sadd.s32 1, %s1811_s22   ;;  %s2279_s25 = sld [smem:[#allocation6_spill]] }
 0x1c0   : > { %p10_p6 = scmp.ge.s32.totalorder %s13_s22, 8   ;;  %s2280_s12 = smov %s1775_s13 }
 0x1c1   : > { %s2281_s13 = smov %s1926_s9  ;;  %s2282_s14 = smov %s1783_s15 }
 0x1c2   : > { %s2283_s15 = smov %s1923_s8  ;;  %s2284_s16 = smov %s1791_s17 }
 0x1c3   : > { %s2285_s17 = smov %s1909_s30  ;;  %s2286_s18 = smov %s1803_s20 }
 0x1c4   : > { %s2287_s19 = smov %s1807_s21  ;;  %s2288_s20 = smov %s2291_s24 }
 0x1c5   : > { %s2289_s21 = smov %s2279_s25  ;;  %12 = sbr.rel (!%p10_p6) target bundleno = 9 (0x9), region = 191 }

// kernel: simple_dog_emotion_model.39
= control target key start
LH: loop header
LB: loop body
LE: loop exit
PB: predicated region body
PF: predicated region fallthrough
CT: control target
= control target key end

     0   :  { %s1079_s12 = smov 0   ;;  %s1081_s13 = smov 0   ;;  %s1267_s0 = inlined_call_operand.vmem [shape: bf16[16,256], index: 0, kind: input, shape index: {}]   ;;  %s1268_s1 = inlined_call_operand.vmem [shape: bf16[256,512], index: 1, kind: input, shape index: {}]   ;;  %s1269_s2 = inlined_call_operand.vmem [shape: f32[1,512], index: 2, kind: input, shape index: {}]   ;;  %s1270_s3 = inlined_call_operand.vmem [shape: bf16[16,512], index: 3, kind: output, shape index: {}]  }
   0x1   :  { %s1083_s14 = smov 0   ;;  %s1085_s15 = smov 0  }
   0x2   :  { %s1087_s16 = smov 0  }
   0x3 LB: > { %s28_s17 = sadd.s32 1, %s1053_s15  ;;  %s871_s18 = sadd.s32 4294967295, %s1057_s16   ;;  %s1057_s16 = sphi %s1087_s16, %s13_s16   ;;  %s1053_s15 = sphi %s1085_s15, %s1275_s15   ;;  %s1049_s14 = sphi %s1083_s14, %s1274_s14   ;;  %s1045_s13 = sphi %s1081_s13, %s1273_s13   ;;  %s1041_s12 = sphi %s1079_s12, %s1272_s12  }
   0x4   : > { %p30_p0 = scmp.ge.s32.totalorder %s28_s17, 2  ;;  %p76_p1 = scmp.ne.s32.totalorder %s1045_s13, %s1041_s12 }
   0x5   : > { %p77_p2 = scmp.eq.s32.totalorder %s1057_s16, 0  ;;  %p134_p4 = scmp.eq.s32.totalorder %s871_s18, 1 }
   0x6   : > { %s1277_s17 = smov (%p30_p0, %s28_s17), 0  ;;  %s69_s20 = sadd.s32 1, %s1045_s13 }
   0x7   : > { %p78_p3 = por %p77_p2, %p76_p1  ;;  %s65_s19 = ssub.s32 %s1053_s15, %s1277_s17 }
   0x8   : > { %p67_p5 = scmp.eq.s32.totalorder %s65_s19, 0  ;;  %p1114_p6 = por %p134_p4, %p76_p1 }
   0x9   : > { %p875_p7 = scmp.ge.s32.totalorder %s1057_s16, 2 }
   0xa   : > { %s1119_s22 = scalar_select %p67_p5, %s1045_s13, %s69_s20  }
   0xb   : > { %171 = sbr.rel (%p875_p7) target bundleno = 38 (0x26), region = 20 }
  0x12   : > { %174 = sbr.rel (!%p78_p3) target bundleno = 38 (0x26), region = 24  ;;  %s176_s23 = sand.u32 (%p78_p3), 1, %s1045_s13  }
  0x13   : > { %s924_s24 = sshll.u32 (%p78_p3), %s1053_s15, 3  ;;  %s876_s25 = sshll.u32 (%p78_p3), %s176_s23, 8 }
  0x14   : > { %s1127_s28 = scalar_lea.vmem (%p78_p3), %s1268_s1, %s924_s24  ;;  %s1132_s29 = scalar_lea.vmem (%p78_p3), [#allocation3], %s876_s25 }
  0x15   : > { %v274_v0 = vld [vmem:[%s1127_s28] sm:$0xff] (%p78_p3)  ;;  %v276_v1 = vld [vmem:[%s1127_s28 + $0x10] sm:$0xff] (%p78_p3) }
  0x16   : > { %v278_v2 = vld [vmem:[%s1127_s28 + $0x20] sm:$0xff] (%p78_p3)  ;;  %275 = vst [vmem:[%s1132_s29] sm:$0xff] (%p78_p3), %v274_v0  ;;  %277 = vst [vmem:[%s1132_s29 + $0x8] sm:$0xff] (%p78_p3), %v276_v1  ;;  %v280_v3 = vld [vmem:[%s1127_s28 + $0x30] sm:$0xff] (%p78_p3) }
  0x17   : > { %279 = vst [vmem:[%s1132_s29 + $0x10] sm:$0xff] (%p78_p3), %v278_v2  ;;  %v282_v4 = vld [vmem:[%s1127_s28 + $0x40] sm:$0xff] (%p78_p3)  ;;  %v284_v5 = vld [vmem:[%s1127_s28 + $0x50] sm:$0xff] (%p78_p3)  ;;  %281 = vst [vmem:[%s1132_s29 + $0x18] sm:$0xff] (%p78_p3), %v280_v3 }
  0x18   : > { %283 = vst [vmem:[%s1132_s29 + $0x20] sm:$0xff] (%p78_p3), %v282_v4  ;;  %285 = vst [vmem:[%s1132_s29 + $0x28] sm:$0xff] (%p78_p3), %v284_v5  ;;  %v286_v6 = vld [vmem:[%s1127_s28 + $0x60] sm:$0xff] (%p78_p3)  ;;  %v288_v7 = vld [vmem:[%s1127_s28 + $0x70] sm:$0xff] (%p78_p3) }
  0x19   : > { %v290_v8 = vld [vmem:[%s1127_s28 + $0x80] sm:$0xff]  ;;  %287 = vst [vmem:[%s1132_s29 + $0x30] sm:$0xff] %v286_v6  ;;  %289 = vst [vmem:[%s1132_s29 + $0x38] sm:$0xff] %v288_v7  ;;  %v292_v9 = vld [vmem:[%s1127_s28 + $0x90] sm:$0xff] }
  0x1a   : > { %291 = vst [vmem:[%s1132_s29 + $0x40] sm:$0xff] %v290_v8  ;;  %v294_v10 = vld [vmem:[%s1127_s28 + $0xa0] sm:$0xff]  ;;  %v296_v11 = vld [vmem:[%s1127_s28 + $0xb0] sm:$0xff]  ;;  %293 = vst [vmem:[%s1132_s29 + $0x48] sm:$0xff] %v292_v9 }
  0x1b   : > { %295 = vst [vmem:[%s1132_s29 + $0x50] sm:$0xff] %v294_v10  ;;  %297 = vst [vmem:[%s1132_s29 + $0x58] sm:$0xff] %v296_v11  ;;  %v298_v12 = vld [vmem:[%s1127_s28 + $0xc0] sm:$0xff]  ;;  %v300_v13 = vld [vmem:[%s1127_s28 + $0xd0] sm:$0xff] }
  0x1c   : > { %v302_v14 = vld [vmem:[%s1127_s28 + $0xe0] sm:$0xff]  ;;  %299 = vst [vmem:[%s1132_s29 + $0x60] sm:$0xff] %v298_v12  ;;  %301 = vst [vmem:[%s1132_s29 + $0x68] sm:$0xff] %v300_v13  ;;  %v304_v15 = vld [vmem:[%s1127_s28 + $0xf0] sm:$0xff] }
  0x1d   : > { %303 = vst [vmem:[%s1132_s29 + $0x70] sm:$0xff] %v302_v14  ;;  %v306_v16 = vld [vmem:[%s1127_s28 + $0x100] sm:$0xff]  ;;  %v308_v17 = vld [vmem:[%s1127_s28 + $0x110] sm:$0xff]  ;;  %305 = vst [vmem:[%s1132_s29 + $0x78] sm:$0xff] %v304_v15 }
  0x1e   : > { %307 = vst [vmem:[%s1132_s29 + $0x80] sm:$0xff] %v306_v16  ;;  %309 = vst [vmem:[%s1132_s29 + $0x88] sm:$0xff] %v308_v17  ;;  %v310_v18 = vld [vmem:[%s1127_s28 + $0x120] sm:$0xff]  ;;  %v312_v19 = vld [vmem:[%s1127_s28 + $0x130] sm:$0xff] }
  0x1f   : > { %v314_v20 = vld [vmem:[%s1127_s28 + $0x140] sm:$0xff]  ;;  %311 = vst [vmem:[%s1132_s29 + $0x90] sm:$0xff] %v310_v18  ;;  %313 = vst [vmem:[%s1132_s29 + $0x98] sm:$0xff] %v312_v19  ;;  %v316_v21 = vld [vmem:[%s1127_s28 + $0x150] sm:$0xff] }
  0x20   : > { %315 = vst [vmem:[%s1132_s29 + $0xa0] sm:$0xff] %v314_v20  ;;  %v318_v22 = vld [vmem:[%s1127_s28 + $0x160] sm:$0xff]  ;;  %v320_v23 = vld [vmem:[%s1127_s28 + $0x170] sm:$0xff]  ;;  %317 = vst [vmem:[%s1132_s29 + $0xa8] sm:$0xff] %v316_v21 }
  0x21   : > { %319 = vst [vmem:[%s1132_s29 + $0xb0] sm:$0xff] %v318_v22  ;;  %321 = vst [vmem:[%s1132_s29 + $0xb8] sm:$0xff] %v320_v23  ;;  %v322_v24 = vld [vmem:[%s1127_s28 + $0x180] sm:$0xff]  ;;  %v324_v25 = vld [vmem:[%s1127_s28 + $0x190] sm:$0xff] }
  0x22   : > { %v326_v26 = vld [vmem:[%s1127_s28 + $0x1a0] sm:$0xff]  ;;  %323 = vst [vmem:[%s1132_s29 + $0xc0] sm:$0xff] %v322_v24  ;;  %325 = vst [vmem:[%s1132_s29 + $0xc8] sm:$0xff] %v324_v25  ;;  %v328_v27 = vld [vmem:[%s1127_s28 + $0x1b0] sm:$0xff] }
  0x23   : > { %327 = vst [vmem:[%s1132_s29 + $0xd0] sm:$0xff] %v326_v26  ;;  %v330_v28 = vld [vmem:[%s1127_s28 + $0x1c0] sm:$0xff]  ;;  %v332_v29 = vld [vmem:[%s1127_s28 + $0x1d0] sm:$0xff]  ;;  %329 = vst [vmem:[%s1132_s29 + $0xd8] sm:$0xff] %v328_v27 }
  0x24   : > { %331 = vst [vmem:[%s1132_s29 + $0xe0] sm:$0xff] %v330_v28  ;;  %333 = vst [vmem:[%s1132_s29 + $0xe8] sm:$0xff] %v332_v29  ;;  %v334_v30 = vld [vmem:[%s1127_s28 + $0x1e0] sm:$0xff]  ;;  %v336_v31 = vld [vmem:[%s1127_s28 + $0x1f0] sm:$0xff] }
  0x25   : > { %335 = vst [vmem:[%s1132_s29 + $0xf0] sm:$0xff] %v334_v30  ;;  %337 = vst [vmem:[%s1132_s29 + $0xf8] sm:$0xff] %v336_v31 }
  0x26 PF: > { %p879_p8 = scmp.ge.s32.totalorder %s1057_s16, 1  ;;  %p350_p9 = scmp.lt.s32.totalorder %s1057_s16, 3 }
  0x28   : > { %p351_p10 = pnand %p879_p8, %p350_p9 }
  0x29   : > { %s357_s30 = sand.u32 (!%p351_p10), 1, %s1041_s12   ;;  %v1018_v32 = vld [vmem:[%s1267_s0 + $0x4] ss:$8 sps:$4 sm:$0xff] (!%p351_p10)   ;;  %v1016_v1 = vld [vmem:[%s1267_s0] ss:$8 sps:$4 sm:$0xff] (!%p351_p10)   ;;  %s882_s10 = sshll.u32 (!%p351_p10), %s1049_s14, 1  ;;  %v690_v2 = vlaneseq (!%p351_p10) }
  0x2a   : > { %354 = sbr.rel (%p351_p10) target bundleno = 337 (0x151), region = 66  ;;  %s880_s4 = sshll.u32 (!%p351_p10), %s357_s30, 8  ;;  %662 = vmatprep.mubr.bf16.mxu0 (!%p351_p10), %v1018_v32 }
  0x2b   : > { %s1203_s7 = scalar_lea.vmem (!%p351_p10), [#allocation3], %s880_s4  ;;  %p408_p11 = scmp.lt.s32.totalorder (!%p351_p10), %s882_s10, 3  ;;  %v691_v3 = vshrl.u32 (!%p351_p10), %v690_v2, 7 }
  0x2c   : > { %v968_v33 = vld [vmem:[%s1203_s7 + $0x4] ss:$8 sps:$4 sm:$0xff] (!%p351_p10)   ;;  %v970_v34 = vld [vmem:[%s1203_s7] ss:$8 sps:$4 sm:$0xff] (!%p351_p10)   ;;  %v971_v35 = vld [vmem:[%s1203_s7 + $0x14] ss:$8 sps:$4 sm:$0xff] (!%p351_p10)  }
  0x2d   : > { %630 = vmatprep.subr.bf16.mxu0 (!%p351_p10), %v968_v33  ;;  %v973_v36 = vld [vmem:[%s1203_s7 + $0x10] ss:$8 sps:$4 sm:$0xff] (!%p351_p10)   ;;  %v974_v37 = vld [vmem:[%s1203_s7 + $0x24] ss:$8 sps:$4 sm:$0xff] (!%p351_p10)   ;;  %v976_v38 = vld [vmem:[%s1203_s7 + $0x20] ss:$8 sps:$4 sm:$0xff] (!%p351_p10)  }
  0x2e   : > { %631 = vmatpush1.bf16.msra.mxu0 (!%p351_p10), %v970_v34  ;;  %v977_v39 = vld [vmem:[%s1203_s7 + $0x34] ss:$8 sps:$4 sm:$0xff] (!%p351_p10)   ;;  %v979_v40 = vld [vmem:[%s1203_s7 + $0x30] ss:$8 sps:$4 sm:$0xff] (!%p351_p10)   ;;  %v980_v41 = vld [vmem:[%s1203_s7 + $0x44] ss:$8 sps:$4 sm:$0xff] (!%p351_p10)  }
  0x2f   : > { %632 = vmatprep.subr.bf16.mxu0 (!%p351_p10), %v971_v35  ;;  %v982_v42 = vld [vmem:[%s1203_s7 + $0x40] ss:$8 sps:$4 sm:$0xff] (!%p351_p10)   ;;  %v983_v43 = vld [vmem:[%s1203_s7 + $0x54] ss:$8 sps:$4 sm:$0xff] (!%p351_p10)   ;;  %v985_v44 = vld [vmem:[%s1203_s7 + $0x50] ss:$8 sps:$4 sm:$0xff] (!%p351_p10)  }
  0x30   : > { %v986_v45 = vld [vmem:[%s1203_s7 + $0x64] ss:$8 sps:$4 sm:$0xff] (!%p351_p10)   ;;  %v988_v46 = vld [vmem:[%s1203_s7 + $0x60] ss:$8 sps:$4 sm:$0xff] (!%p351_p10)   ;;  %v989_v47 = vld [vmem:[%s1203_s7 + $0x74] ss:$8 sps:$4 sm:$0xff] (!%p351_p10)  }
  0x31   : > { %v991_v48 = vld [vmem:[%s1203_s7 + $0x70] ss:$8 sps:$4 sm:$0xff]   ;;  %v992_v49 = vld [vmem:[%s1203_s7 + $0x84] ss:$8 sps:$4 sm:$0xff]   ;;  %v994_v50 = vld [vmem:[%s1203_s7 + $0x80] ss:$8 sps:$4 sm:$0xff]  }
  0x32   : > { %633 = vmatpush1.bf16.msra.mxu0 %v973_v36  ;;  %v995_v51 = vld [vmem:[%s1203_s7 + $0x94] ss:$8 sps:$4 sm:$0xff]   ;;  %v997_v52 = vld [vmem:[%s1203_s7 + $0x90] ss:$8 sps:$4 sm:$0xff]   ;;  %v998_v53 = vld [vmem:[%s1203_s7 + $0xa4] ss:$8 sps:$4 sm:$0xff]  }
  0x33   : > { %634 = vmatprep.subr.bf16.mxu0 %v974_v37  ;;  %v1000_v54 = vld [vmem:[%s1203_s7 + $0xa0] ss:$8 sps:$4 sm:$0xff]   ;;  %v1001_v55 = vld [vmem:[%s1203_s7 + $0xb4] ss:$8 sps:$4 sm:$0xff]   ;;  %v1003_v56 = vld [vmem:[%s1203_s7 + $0xb0] ss:$8 sps:$4 sm:$0xff]  }
  0x34   : > { %v1004_v57 = vld [vmem:[%s1203_s7 + $0xc4] ss:$8 sps:$4 sm:$0xff]   ;;  %v1006_v58 = vld [vmem:[%s1203_s7 + $0xc0] ss:$8 sps:$4 sm:$0xff]   ;;  %v1007_v59 = vld [vmem:[%s1203_s7 + $0xd4] ss:$8 sps:$4 sm:$0xff]  }
  0x35   : > { %v1009_v60 = vld [vmem:[%s1203_s7 + $0xd0] ss:$8 sps:$4 sm:$0xff]   ;;  %v1010_v61 = vld [vmem:[%s1203_s7 + $0xe4] ss:$8 sps:$4 sm:$0xff]   ;;  %v1012_v62 = vld [vmem:[%s1203_s7 + $0xe0] ss:$8 sps:$4 sm:$0xff]  }
  0x36   : > { %635 = vmatpush1.bf16.msra.mxu0 %v976_v38  ;;  %v1013_v63 = vld [vmem:[%s1203_s7 + $0xf4] ss:$8 sps:$4 sm:$0xff]   ;;  %v1015_v0 = vld [vmem:[%s1203_s7 + $0xf0] ss:$8 sps:$4 sm:$0xff]   ;;  %s1279_s10 = smov (!%p408_p11, %s882_s10), 3  ;;  %v692_v4 = vsub.s32 0, %v691_v3 }
  0x37   : > { %636 = vmatprep.subr.bf16.mxu0 %v977_v39  ;;  %s410_s19 = scalar_lea.vmem %s1269_s2, %s1279_s10  ;;  %v696_v6 = vsub.s32 1, %v691_v3  ;;  %s881_s20 = sshll.u32 %s357_s30, 4 }
  0x38   : > { %v688_v5 = vld [vmem:[%s410_s19] sm:$0x3]  ;;  %s392_s23 = scalar_lea.vmem [#allocation4], %s881_s20  ;;  %s927_s24 = sshll.u32 (%p1114_p6), %s1049_s14, 3 }
  0x39   : > { %v693_v7 = vrot.slane %v688_v5, %v692_v4  ;;  %v697_v8 = vrot.slane %v688_v5, %v696_v6  ;;  %s730_s26 = scalar_lea.vmem (%p1114_p6), %s1270_s3, %s927_s24 }
  0x3a   : > { %637 = vmatpush1.bf16.msra.mxu0 %v979_v40 }
  0x3b   : > { %638 = vmatprep.subr.bf16.mxu0 %v980_v41 }
  0x3e   : > { %639 = vmatpush1.bf16.msra.mxu0 %v982_v42 }
  0x3f   : > { %640 = vmatprep.subr.bf16.mxu0 %v983_v43 }
  0x42   : > { %641 = vmatpush1.bf16.msra.mxu0 %v985_v44 }
  0x43   : > { %642 = vmatprep.subr.bf16.mxu0 %v986_v45 }
  0x46   : > { %643 = vmatpush1.bf16.msra.mxu0 %v988_v46 }
  0x47   : > { %644 = vmatprep.subr.bf16.mxu0 %v989_v47 }
  0x4a   : > { %645 = vmatpush1.bf16.msra.mxu0 %v991_v48 }
  0x4b   : > { %646 = vmatprep.subr.bf16.mxu0 %v992_v49 }
  0x4e   : > { %647 = vmatpush1.bf16.msra.mxu0 %v994_v50 }
  0x4f   : > { %648 = vmatprep.subr.bf16.mxu0 %v995_v51 }
  0x52   : > { %649 = vmatpush1.bf16.msra.mxu0 %v997_v52 }
  0x53   : > { %650 = vmatprep.subr.bf16.mxu0 %v998_v53 }
  0x56   : > { %651 = vmatpush1.bf16.msra.mxu0 %v1000_v54 }
  0x57   : > { %652 = vmatprep.subr.bf16.mxu0 %v1001_v55 }
  0x5a   : > { %653 = vmatpush1.bf16.msra.mxu0 %v1003_v56 }
  0x5b   : > { %654 = vmatprep.subr.bf16.mxu0 %v1004_v57 }
  0x5e   : > { %655 = vmatpush1.bf16.msra.mxu0 %v1006_v58 }
  0x5f   : > { %656 = vmatprep.subr.bf16.mxu0 %v1007_v59 }
  0x62   : > { %657 = vmatpush1.bf16.msra.mxu0 %v1009_v60 }
  0x63   : > { %658 = vmatprep.subr.bf16.mxu0 %v1010_v61 }
  0x66   : > { %659 = vmatpush1.bf16.msra.mxu0 %v1012_v62 }
  0x67   : > { %660 = vmatprep.subr.bf16.mxu0 %v1013_v63 }
  0x6a   : > { %661 = vmatpush1.bf16.msra.mxu0 %v1015_v0 }
  0x6d   : > { %663 = vmatmul.mubr.bf16.vlgmr.msra.gmra.mrb[0].mxu0 %v1016_v1 }
 0x140   : > { %v664_v9 = vpop.f32.mrb[0].mxu0 }
 0x141   : > { %v700_v10 = vadd.f32 %v693_v7, %v664_v9  ;;  %v666_v11 = vpop.f32.mrb[1].mxu0 }
 0x142   : > { %v701_v12 = vadd.f32 %v697_v8, %v666_v11  ;;  %v668_v13 = vpop.f32.mrb[2].mxu0  ;;  %724 = sbr.rel (!%p1114_p6) target bundleno = 337 (0x151), region = 82 }
 0x143   : > { %v702_v14 = vadd.f32 %v693_v7, %v668_v13  ;;  %v670_v15 = vpop.f32.mrb[3].mxu0 }
 0x144   : > { %v925_v16 = vpack.c.bf16 %v701_v12, %v700_v10  ;;  %v703_v17 = vadd.f32 %v697_v8, %v670_v15 }
 0x146   : > { %716 = vst [vmem:[%s392_s23] sm:$0xff] %v925_v16  ;;  %v926_v18 = vpack.c.bf16 %v703_v17, %v702_v14 }
 0x148   : > { %717 = vst [vmem:[%s392_s23 + $0x8] sm:$0xff] %v926_v18 }
 0x14d   : > { %v760_v19 = vld [vmem:[%s392_s23] sm:$0xff] }
 0x14e   : > { %761 = vst [vmem:[%s730_s26] sm:$0xff] %v760_v19 }
 0x14f   : > { %v762_v20 = vld [vmem:[%s392_s23 + $0x8] sm:$0xff] }
 0x150   : > { %763 = vst [vmem:[%s730_s26 + $0x10] sm:$0xff] %v762_v20 }
 0x151 PF: > { %s13_s16 = sadd.s32 1, %s1057_s16   ;;  %s1272_s12 = smov %s1045_s13 }
 0x152   : > { %p10_p12 = scmp.ge.s32.totalorder %s13_s16, 4   ;;  %s1273_s13 = smov %s1119_s22 }
 0x153   : > { %s1274_s14 = smov %s1053_s15  ;;  %s1275_s15 = smov %s1277_s17 }
 0x154   :  { %12 = sbr.rel (!%p10_p12) target bundleno = 3 (0x3), region = 157 }

// kernel: simple_dog_emotion_model.38
= control target key start
LH: loop header
LB: loop body
LE: loop exit
PB: predicated region body
PF: predicated region fallthrough
CT: control target
= control target key end

     0   :  { %s2615_s0 = inlined_call_operand.vmem [shape: bf16[16,2304], index: 0, kind: input, shape index: {}]   ;;  %s2616_s1 = inlined_call_operand.vmem [shape: bf16[2304,512], index: 1, kind: input, shape index: {}]   ;;  %s2617_s2 = inlined_call_operand.vmem [shape: f32[1,512], index: 2, kind: input, shape index: {}]   ;;  %s2618_s3 = inlined_call_operand.vmem [shape: bf16[16,512], index: 3, kind: output, shape index: {}]  }
   0x1   :  { %2620 = sst [smem:[#allocation7_spill]] %s2615_s0 }
   0x2   :  { %2621 = sst [smem:[#allocation8_spill]] %s2616_s1 }
   0x3   :  { %s2135_s12 = smov 0   ;;  %s2137_s13 = smov 0  }
   0x4   :  { %s2139_s14 = smov 0   ;;  %s2141_s15 = smov 0  }
   0x5   :  { %s2143_s16 = smov 0   ;;  %s2145_s17 = smov 0  }
   0x6   :  { %s2147_s18 = smov 0   ;;  %s2149_s19 = smov 0  }
   0x7   :  { %s2151_s20 = smov 0   ;;  %s2153_s21 = smov 0  }
   0x8   :  { %s2155_s22 = smov 0  }
   0x9 LB: > { %s1645_s23 = sadd.s32 4294967295, %s2112_s22   ;;  %s25_s24 = sadd.s32 1, %s2104_s20  ;;  %s2112_s22 = sphi %s2155_s22, %s13_s22   ;;  %s2108_s21 = sphi %s2153_s21, %s2638_s21   ;;  %s2104_s20 = sphi %s2151_s20, %s2637_s20   ;;  %s2100_s19 = sphi %s2149_s19, %s2636_s19   ;;  %s2096_s18 = sphi %s2147_s18, %s2635_s18   ;;  %s2092_s17 = sphi %s2145_s17, %s2634_s17   ;;  %s2088_s16 = sphi %s2143_s16, %s2633_s16   ;;  %s2084_s15 = sphi %s2141_s15, %s2632_s15   ;;  %s2080_s14 = sphi %s2139_s14, %s2631_s14   ;;  %s2076_s13 = sphi %s2137_s13, %s2630_s13   ;;  %s2072_s12 = sphi %s2135_s12, %s2629_s12  }
   0xa   : > { %p26_p0 = scmp.ge.s32.totalorder %s25_s24, 3  ;;  %s28_s25 = sadd.s32 1, %s2108_s21 }
   0xb   : > { %s41_s26 = sadd.s32 1, %s2092_s17  ;;  %p48_p1 = scmp.ne.s32.totalorder %s2092_s17, %s2088_s16 }
   0xc   : > { %s2640_s24 = smov (%p26_p0, %s25_s24), 0  ;;  %s2642_s25 = smov (!%p26_p0, %s28_s25), %s2108_s21 }
   0xd   : > { %s37_s27 = ssub.s32 %s2104_s20, %s2640_s24  ;;  %p49_p2 = scmp.eq.s32.totalorder %s2112_s22, 0 }
   0xe   : > { %p30_p3 = scmp.ge.s32.totalorder %s2642_s25, 2  ;;  %p39_p4 = scmp.eq.s32.totalorder %s37_s27, 0 }
   0xf   : > { %p2202_p5 = por %p49_p2, %p48_p1  ;;  %s69_s29 = sadd.s32 1, %s2084_s15 }
  0x10   : > { %s2644_s25 = smov (%p30_p3, %s2642_s25), 0  ;;  %p76_p6 = scmp.ne.s32.totalorder %s2084_s15, %s2080_s14 }
  0x11   : > { %2623 = sst [smem:[#allocation6_spill]] %s2644_s25  ;;  %s65_s4 = ssub.s32 %s2108_s21, %s2644_s25 }
  0x12   : > { %s2210_s30 = scalar_select %p39_p4, %s2092_s17, %s41_s26  }
  0x13   : > { %s66_s5 = sor.u32 %s65_s4, %s37_s27  ;;  %p121_p7 = scmp.eq.s32.totalorder %s65_s4, 0 }
  0x14   : > { %p67_p8 = scmp.eq.s32.totalorder %s66_s5, 0  ;;  %p2216_p9 = por %p76_p6, %p49_p2 }
  0x15   : > { %s123_s7 = sadd.s32 1, %s2076_s13  ;;  %p133_p10 = scmp.ne.s32.totalorder %s2076_s13, %s2072_s12 }
  0x16   : > { %s2224_s8 = scalar_select %p67_p8, %s2084_s15, %s69_s29  }
  0x17   : > { %s2227_s9 = scalar_select %p121_p7, %s2076_s13, %s123_s7  }
  0x18   : > { %p134_p11 = scmp.eq.s32.totalorder %s1645_s23, 5  ;;  %p1648_p13 = scmp.ge.s32.totalorder %s2112_s22, 6 }
  0x1a   : > { %p2229_p12 = por %p134_p11, %p133_p10  ;;  %156 = sbr.rel (%p1648_p13) target bundleno = 103 (0x67), region = 16 }
  0x21   : > { %159 = sbr.rel (!%p2202_p5) target bundleno = 45 (0x2d), region = 20  ;;  %s161_s11 = sand.u32 (%p2202_p5), 1, %s2092_s17  }
  0x22   : > { %s1767_s26 = smul.u32 (%p2202_p5), 24, %s2104_s20  ;;  %s2626_s0 = sld [smem:[#allocation7_spill]] (%p2202_p5) }
  0x23   : > { %s1780_s27 = smul.u32 (%p2202_p5), 48, %s161_s11 }
  0x25   : > { %s163_s23 = scalar_lea.vmem (%p2202_p5), [#allocation3], %s1780_s27 }
  0x28   : > { %s169_s5 = scalar_lea.vmem %s2626_s0, %s1767_s26 }
  0x29   : > { %v182_v0 = vld [vmem:[%s169_s5] sm:$0xff]  ;;  %v184_v1 = vld [vmem:[%s169_s5 + $0x8] sm:$0xff]  ;;  %v186_v2 = vld [vmem:[%s169_s5 + $0x10] sm:$0xff] }
  0x2a   : > { %183 = vst [vmem:[%s163_s23] sm:$0xff] %v182_v0  ;;  %185 = vst [vmem:[%s163_s23 + $0x8] sm:$0xff] %v184_v1  ;;  %v188_v3 = vld [vmem:[%s169_s5 + $0x48] sm:$0xff]  ;;  %v190_v4 = vld [vmem:[%s169_s5 + $0x50] sm:$0xff] }
  0x2b   : > { %187 = vst [vmem:[%s163_s23 + $0x10] sm:$0xff] %v186_v2  ;;  %v192_v5 = vld [vmem:[%s169_s5 + $0x58] sm:$0xff]  ;;  %189 = vst [vmem:[%s163_s23 + $0x18] sm:$0xff] %v188_v3 }
  0x2c   : > { %191 = vst [vmem:[%s163_s23 + $0x20] sm:$0xff] %v190_v4  ;;  %193 = vst [vmem:[%s163_s23 + $0x28] sm:$0xff] %v192_v5 }
  0x2d PF: > { %199 = sbr.rel (!%p2216_p9) target bundleno = 103 (0x67), region = 43  ;;  %s201_s28 = sand.u32 (%p2216_p9), 1, %s2084_s15  }
  0x2e   : > { %s1781_s7 = smul.u32 (%p2216_p9), 768, %s201_s28  ;;  %s1650_s11 = sshll.u32 (%p2216_p9), %s2108_s21, 1 }
  0x2f   : > { %s1768_s26 = smul.u32 (%p2216_p9), 384, %s2104_s20  ;;  %s2627_s1 = sld [smem:[#allocation8_spill]] (%p2216_p9) }
  0x30   : > { %s2254_s6 = scalar_lea.vmem (%p2216_p9), [#allocation4], %s1781_s7 }
  0x31   : > { %s207_s27 = sadd.s32 (%p2216_p9), %s1768_s26, %s1650_s11 }
  0x32   : > { %s1652_s29 = sshll.u32 (%p2216_p9), %s207_s27, 2 }
  0x35   : > { %s2249_s5 = scalar_lea.vmem %s2627_s1, %s1652_s29 }
  0x36   : > { %v427_v6 = vld [vmem:[%s2249_s5] sm:$0xff]  ;;  %v429_v7 = vld [vmem:[%s2249_s5 + $0x10] sm:$0xff] }
  0x37   : > { %v431_v8 = vld [vmem:[%s2249_s5 + $0x20] sm:$0xff]  ;;  %428 = vst [vmem:[%s2254_s6] sm:$0xff] %v427_v6  ;;  %430 = vst [vmem:[%s2254_s6 + $0x8] sm:$0xff] %v429_v7  ;;  %v433_v9 = vld [vmem:[%s2249_s5 + $0x30] sm:$0xff] }
  0x38   : > { %432 = vst [vmem:[%s2254_s6 + $0x10] sm:$0xff] %v431_v8  ;;  %v435_v10 = vld [vmem:[%s2249_s5 + $0x40] sm:$0xff]  ;;  %v437_v11 = vld [vmem:[%s2249_s5 + $0x50] sm:$0xff]  ;;  %434 = vst [vmem:[%s2254_s6 + $0x18] sm:$0xff] %v433_v9 }
  0x39   : > { %436 = vst [vmem:[%s2254_s6 + $0x20] sm:$0xff] %v435_v10  ;;  %438 = vst [vmem:[%s2254_s6 + $0x28] sm:$0xff] %v437_v11  ;;  %v439_v12 = vld [vmem:[%s2249_s5 + $0x60] sm:$0xff]  ;;  %v441_v13 = vld [vmem:[%s2249_s5 + $0x70] sm:$0xff] }
  0x3a   : > { %v443_v14 = vld [vmem:[%s2249_s5 + $0x80] sm:$0xff]  ;;  %440 = vst [vmem:[%s2254_s6 + $0x30] sm:$0xff] %v439_v12  ;;  %442 = vst [vmem:[%s2254_s6 + $0x38] sm:$0xff] %v441_v13  ;;  %v445_v15 = vld [vmem:[%s2249_s5 + $0x90] sm:$0xff] }
  0x3b   : > { %444 = vst [vmem:[%s2254_s6 + $0x40] sm:$0xff] %v443_v14  ;;  %v447_v16 = vld [vmem:[%s2249_s5 + $0xa0] sm:$0xff]  ;;  %v449_v17 = vld [vmem:[%s2249_s5 + $0xb0] sm:$0xff]  ;;  %446 = vst [vmem:[%s2254_s6 + $0x48] sm:$0xff] %v445_v15 }
  0x3c   : > { %448 = vst [vmem:[%s2254_s6 + $0x50] sm:$0xff] %v447_v16  ;;  %450 = vst [vmem:[%s2254_s6 + $0x58] sm:$0xff] %v449_v17  ;;  %v451_v18 = vld [vmem:[%s2249_s5 + $0xc0] sm:$0xff]  ;;  %v453_v19 = vld [vmem:[%s2249_s5 + $0xd0] sm:$0xff] }
  0x3d   : > { %v455_v20 = vld [vmem:[%s2249_s5 + $0xe0] sm:$0xff]  ;;  %452 = vst [vmem:[%s2254_s6 + $0x60] sm:$0xff] %v451_v18  ;;  %454 = vst [vmem:[%s2254_s6 + $0x68] sm:$0xff] %v453_v19  ;;  %v457_v21 = vld [vmem:[%s2249_s5 + $0xf0] sm:$0xff] }
  0x3e   : > { %456 = vst [vmem:[%s2254_s6 + $0x70] sm:$0xff] %v455_v20  ;;  %v459_v22 = vld [vmem:[%s2249_s5 + $0x100] sm:$0xff]  ;;  %v461_v23 = vld [vmem:[%s2249_s5 + $0x110] sm:$0xff]  ;;  %458 = vst [vmem:[%s2254_s6 + $0x78] sm:$0xff] %v457_v21 }
  0x3f   : > { %460 = vst [vmem:[%s2254_s6 + $0x80] sm:$0xff] %v459_v22  ;;  %462 = vst [vmem:[%s2254_s6 + $0x88] sm:$0xff] %v461_v23  ;;  %v463_v24 = vld [vmem:[%s2249_s5 + $0x120] sm:$0xff]  ;;  %v465_v25 = vld [vmem:[%s2249_s5 + $0x130] sm:$0xff] }
  0x40   : > { %v467_v26 = vld [vmem:[%s2249_s5 + $0x140] sm:$0xff]  ;;  %464 = vst [vmem:[%s2254_s6 + $0x90] sm:$0xff] %v463_v24  ;;  %466 = vst [vmem:[%s2254_s6 + $0x98] sm:$0xff] %v465_v25  ;;  %v469_v27 = vld [vmem:[%s2249_s5 + $0x150] sm:$0xff] }
  0x41   : > { %468 = vst [vmem:[%s2254_s6 + $0xa0] sm:$0xff] %v467_v26  ;;  %v471_v28 = vld [vmem:[%s2249_s5 + $0x160] sm:$0xff]  ;;  %v473_v29 = vld [vmem:[%s2249_s5 + $0x170] sm:$0xff]  ;;  %470 = vst [vmem:[%s2254_s6 + $0xa8] sm:$0xff] %v469_v27 }
  0x42   : > { %472 = vst [vmem:[%s2254_s6 + $0xb0] sm:$0xff] %v471_v28  ;;  %474 = vst [vmem:[%s2254_s6 + $0xb8] sm:$0xff] %v473_v29  ;;  %v475_v30 = vld [vmem:[%s2249_s5 + $0x180] sm:$0xff]  ;;  %v477_v31 = vld [vmem:[%s2249_s5 + $0x190] sm:$0xff] }
  0x43   : > { %v479_v32 = vld [vmem:[%s2249_s5 + $0x1a0] sm:$0xff]  ;;  %476 = vst [vmem:[%s2254_s6 + $0xc0] sm:$0xff] %v475_v30  ;;  %478 = vst [vmem:[%s2254_s6 + $0xc8] sm:$0xff] %v477_v31  ;;  %v481_v33 = vld [vmem:[%s2249_s5 + $0x1b0] sm:$0xff] }
  0x44   : > { %480 = vst [vmem:[%s2254_s6 + $0xd0] sm:$0xff] %v479_v32  ;;  %v483_v34 = vld [vmem:[%s2249_s5 + $0x1c0] sm:$0xff]  ;;  %v485_v35 = vld [vmem:[%s2249_s5 + $0x1d0] sm:$0xff]  ;;  %482 = vst [vmem:[%s2254_s6 + $0xd8] sm:$0xff] %v481_v33 }
  0x45   : > { %484 = vst [vmem:[%s2254_s6 + $0xe0] sm:$0xff] %v483_v34  ;;  %486 = vst [vmem:[%s2254_s6 + $0xe8] sm:$0xff] %v485_v35  ;;  %v487_v36 = vld [vmem:[%s2249_s5 + $0x1e0] sm:$0xff]  ;;  %v489_v37 = vld [vmem:[%s2249_s5 + $0x1f0] sm:$0xff] }
  0x46   : > { %v491_v38 = vld [vmem:[%s2249_s5 + $0x200] sm:$0xff]  ;;  %488 = vst [vmem:[%s2254_s6 + $0xf0] sm:$0xff] %v487_v36  ;;  %490 = vst [vmem:[%s2254_s6 + $0xf8] sm:$0xff] %v489_v37  ;;  %v493_v39 = vld [vmem:[%s2249_s5 + $0x210] sm:$0xff] }
  0x47   : > { %492 = vst [vmem:[%s2254_s6 + $0x100] sm:$0xff] %v491_v38  ;;  %v495_v40 = vld [vmem:[%s2249_s5 + $0x220] sm:$0xff]  ;;  %v497_v41 = vld [vmem:[%s2249_s5 + $0x230] sm:$0xff]  ;;  %494 = vst [vmem:[%s2254_s6 + $0x108] sm:$0xff] %v493_v39 }
  0x48   : > { %496 = vst [vmem:[%s2254_s6 + $0x110] sm:$0xff] %v495_v40  ;;  %498 = vst [vmem:[%s2254_s6 + $0x118] sm:$0xff] %v497_v41  ;;  %v499_v42 = vld [vmem:[%s2249_s5 + $0x240] sm:$0xff]  ;;  %v501_v43 = vld [vmem:[%s2249_s5 + $0x250] sm:$0xff] }
  0x49   : > { %v503_v44 = vld [vmem:[%s2249_s5 + $0x260] sm:$0xff]  ;;  %500 = vst [vmem:[%s2254_s6 + $0x120] sm:$0xff] %v499_v42  ;;  %502 = vst [vmem:[%s2254_s6 + $0x128] sm:$0xff] %v501_v43  ;;  %v505_v45 = vld [vmem:[%s2249_s5 + $0x270] sm:$0xff] }
  0x4a   : > { %504 = vst [vmem:[%s2254_s6 + $0x130] sm:$0xff] %v503_v44  ;;  %v507_v46 = vld [vmem:[%s2249_s5 + $0x280] sm:$0xff]  ;;  %v509_v47 = vld [vmem:[%s2249_s5 + $0x290] sm:$0xff]  ;;  %506 = vst [vmem:[%s2254_s6 + $0x138] sm:$0xff] %v505_v45 }
  0x4b   : > { %508 = vst [vmem:[%s2254_s6 + $0x140] sm:$0xff] %v507_v46  ;;  %510 = vst [vmem:[%s2254_s6 + $0x148] sm:$0xff] %v509_v47  ;;  %v511_v48 = vld [vmem:[%s2249_s5 + $0x2a0] sm:$0xff]  ;;  %v513_v49 = vld [vmem:[%s2249_s5 + $0x2b0] sm:$0xff] }
  0x4c   : > { %v515_v50 = vld [vmem:[%s2249_s5 + $0x2c0] sm:$0xff]  ;;  %512 = vst [vmem:[%s2254_s6 + $0x150] sm:$0xff] %v511_v48  ;;  %514 = vst [vmem:[%s2254_s6 + $0x158] sm:$0xff] %v513_v49  ;;  %v517_v51 = vld [vmem:[%s2249_s5 + $0x2d0] sm:$0xff] }
  0x4d   : > { %516 = vst [vmem:[%s2254_s6 + $0x160] sm:$0xff] %v515_v50  ;;  %v519_v52 = vld [vmem:[%s2249_s5 + $0x2e0] sm:$0xff]  ;;  %v521_v53 = vld [vmem:[%s2249_s5 + $0x2f0] sm:$0xff]  ;;  %518 = vst [vmem:[%s2254_s6 + $0x168] sm:$0xff] %v517_v51 }
  0x4e   : > { %520 = vst [vmem:[%s2254_s6 + $0x170] sm:$0xff] %v519_v52  ;;  %522 = vst [vmem:[%s2254_s6 + $0x178] sm:$0xff] %v521_v53  ;;  %v523_v54 = vld [vmem:[%s2249_s5 + $0x300] sm:$0xff]  ;;  %v525_v55 = vld [vmem:[%s2249_s5 + $0x310] sm:$0xff] }
  0x4f   : > { %v527_v56 = vld [vmem:[%s2249_s5 + $0x320] sm:$0xff]  ;;  %524 = vst [vmem:[%s2254_s6 + $0x180] sm:$0xff] %v523_v54  ;;  %526 = vst [vmem:[%s2254_s6 + $0x188] sm:$0xff] %v525_v55  ;;  %v529_v57 = vld [vmem:[%s2249_s5 + $0x330] sm:$0xff] }
  0x50   : > { %528 = vst [vmem:[%s2254_s6 + $0x190] sm:$0xff] %v527_v56  ;;  %v531_v58 = vld [vmem:[%s2249_s5 + $0x340] sm:$0xff]  ;;  %v533_v59 = vld [vmem:[%s2249_s5 + $0x350] sm:$0xff]  ;;  %530 = vst [vmem:[%s2254_s6 + $0x198] sm:$0xff] %v529_v57 }
  0x51   : > { %532 = vst [vmem:[%s2254_s6 + $0x1a0] sm:$0xff] %v531_v58  ;;  %534 = vst [vmem:[%s2254_s6 + $0x1a8] sm:$0xff] %v533_v59  ;;  %v535_v60 = vld [vmem:[%s2249_s5 + $0x360] sm:$0xff]  ;;  %v537_v61 = vld [vmem:[%s2249_s5 + $0x370] sm:$0xff] }
  0x52   : > { %v539_v62 = vld [vmem:[%s2249_s5 + $0x380] sm:$0xff]  ;;  %536 = vst [vmem:[%s2254_s6 + $0x1b0] sm:$0xff] %v535_v60  ;;  %538 = vst [vmem:[%s2254_s6 + $0x1b8] sm:$0xff] %v537_v61  ;;  %v541_v63 = vld [vmem:[%s2249_s5 + $0x390] sm:$0xff] }
  0x53   : > { %540 = vst [vmem:[%s2254_s6 + $0x1c0] sm:$0xff] %v539_v62  ;;  %v543_v0 = vld [vmem:[%s2249_s5 + $0x3a0] sm:$0xff]  ;;  %v545_v1 = vld [vmem:[%s2249_s5 + $0x3b0] sm:$0xff]  ;;  %542 = vst [vmem:[%s2254_s6 + $0x1c8] sm:$0xff] %v541_v63 }
  0x54   : > { %544 = vst [vmem:[%s2254_s6 + $0x1d0] sm:$0xff] %v543_v0  ;;  %546 = vst [vmem:[%s2254_s6 + $0x1d8] sm:$0xff] %v545_v1  ;;  %v547_v2 = vld [vmem:[%s2249_s5 + $0x3c0] sm:$0xff]  ;;  %v549_v3 = vld [vmem:[%s2249_s5 + $0x3d0] sm:$0xff] }
  0x55   : > { %v551_v4 = vld [vmem:[%s2249_s5 + $0x3e0] sm:$0xff]  ;;  %548 = vst [vmem:[%s2254_s6 + $0x1e0] sm:$0xff] %v547_v2  ;;  %550 = vst [vmem:[%s2254_s6 + $0x1e8] sm:$0xff] %v549_v3  ;;  %v553_v5 = vld [vmem:[%s2249_s5 + $0x3f0] sm:$0xff] }
  0x56   : > { %552 = vst [vmem:[%s2254_s6 + $0x1f0] sm:$0xff] %v551_v4  ;;  %v555_v6 = vld [vmem:[%s2249_s5 + $0x400] sm:$0xff]  ;;  %v557_v7 = vld [vmem:[%s2249_s5 + $0x410] sm:$0xff]  ;;  %554 = vst [vmem:[%s2254_s6 + $0x1f8] sm:$0xff] %v553_v5 }
  0x57   : > { %556 = vst [vmem:[%s2254_s6 + $0x200] sm:$0xff] %v555_v6  ;;  %558 = vst [vmem:[%s2254_s6 + $0x208] sm:$0xff] %v557_v7  ;;  %v559_v8 = vld [vmem:[%s2249_s5 + $0x420] sm:$0xff]  ;;  %v561_v9 = vld [vmem:[%s2249_s5 + $0x430] sm:$0xff] }
  0x58   : > { %v563_v10 = vld [vmem:[%s2249_s5 + $0x440] sm:$0xff]  ;;  %560 = vst [vmem:[%s2254_s6 + $0x210] sm:$0xff] %v559_v8  ;;  %562 = vst [vmem:[%s2254_s6 + $0x218] sm:$0xff] %v561_v9  ;;  %v565_v11 = vld [vmem:[%s2249_s5 + $0x450] sm:$0xff] }
  0x59   : > { %564 = vst [vmem:[%s2254_s6 + $0x220] sm:$0xff] %v563_v10  ;;  %v567_v12 = vld [vmem:[%s2249_s5 + $0x460] sm:$0xff]  ;;  %v569_v13 = vld [vmem:[%s2249_s5 + $0x470] sm:$0xff]  ;;  %566 = vst [vmem:[%s2254_s6 + $0x228] sm:$0xff] %v565_v11 }
  0x5a   : > { %568 = vst [vmem:[%s2254_s6 + $0x230] sm:$0xff] %v567_v12  ;;  %570 = vst [vmem:[%s2254_s6 + $0x238] sm:$0xff] %v569_v13  ;;  %v571_v14 = vld [vmem:[%s2249_s5 + $0x480] sm:$0xff]  ;;  %v573_v15 = vld [vmem:[%s2249_s5 + $0x490] sm:$0xff] }
  0x5b   : > { %v575_v16 = vld [vmem:[%s2249_s5 + $0x4a0] sm:$0xff]  ;;  %572 = vst [vmem:[%s2254_s6 + $0x240] sm:$0xff] %v571_v14  ;;  %574 = vst [vmem:[%s2254_s6 + $0x248] sm:$0xff] %v573_v15  ;;  %v577_v17 = vld [vmem:[%s2249_s5 + $0x4b0] sm:$0xff] }
  0x5c   : > { %576 = vst [vmem:[%s2254_s6 + $0x250] sm:$0xff] %v575_v16  ;;  %v579_v18 = vld [vmem:[%s2249_s5 + $0x4c0] sm:$0xff]  ;;  %v581_v19 = vld [vmem:[%s2249_s5 + $0x4d0] sm:$0xff]  ;;  %578 = vst [vmem:[%s2254_s6 + $0x258] sm:$0xff] %v577_v17 }
  0x5d   : > { %580 = vst [vmem:[%s2254_s6 + $0x260] sm:$0xff] %v579_v18  ;;  %582 = vst [vmem:[%s2254_s6 + $0x268] sm:$0xff] %v581_v19  ;;  %v583_v20 = vld [vmem:[%s2249_s5 + $0x4e0] sm:$0xff]  ;;  %v585_v21 = vld [vmem:[%s2249_s5 + $0x4f0] sm:$0xff] }
  0x5e   : > { %v587_v22 = vld [vmem:[%s2249_s5 + $0x500] sm:$0xff]  ;;  %584 = vst [vmem:[%s2254_s6 + $0x270] sm:$0xff] %v583_v20  ;;  %586 = vst [vmem:[%s2254_s6 + $0x278] sm:$0xff] %v585_v21  ;;  %v589_v23 = vld [vmem:[%s2249_s5 + $0x510] sm:$0xff] }
  0x5f   : > { %588 = vst [vmem:[%s2254_s6 + $0x280] sm:$0xff] %v587_v22  ;;  %v591_v24 = vld [vmem:[%s2249_s5 + $0x520] sm:$0xff]  ;;  %v593_v25 = vld [vmem:[%s2249_s5 + $0x530] sm:$0xff]  ;;  %590 = vst [vmem:[%s2254_s6 + $0x288] sm:$0xff] %v589_v23 }
  0x60   : > { %592 = vst [vmem:[%s2254_s6 + $0x290] sm:$0xff] %v591_v24  ;;  %594 = vst [vmem:[%s2254_s6 + $0x298] sm:$0xff] %v593_v25  ;;  %v595_v26 = vld [vmem:[%s2249_s5 + $0x540] sm:$0xff]  ;;  %v597_v27 = vld [vmem:[%s2249_s5 + $0x550] sm:$0xff] }
  0x61   : > { %v599_v28 = vld [vmem:[%s2249_s5 + $0x560] sm:$0xff]  ;;  %596 = vst [vmem:[%s2254_s6 + $0x2a0] sm:$0xff] %v595_v26  ;;  %598 = vst [vmem:[%s2254_s6 + $0x2a8] sm:$0xff] %v597_v27  ;;  %v601_v29 = vld [vmem:[%s2249_s5 + $0x570] sm:$0xff] }
  0x62   : > { %600 = vst [vmem:[%s2254_s6 + $0x2b0] sm:$0xff] %v599_v28  ;;  %v603_v30 = vld [vmem:[%s2249_s5 + $0x580] sm:$0xff]  ;;  %v605_v31 = vld [vmem:[%s2249_s5 + $0x590] sm:$0xff]  ;;  %602 = vst [vmem:[%s2254_s6 + $0x2b8] sm:$0xff] %v601_v29 }
  0x63   : > { %604 = vst [vmem:[%s2254_s6 + $0x2c0] sm:$0xff] %v603_v30  ;;  %606 = vst [vmem:[%s2254_s6 + $0x2c8] sm:$0xff] %v605_v31  ;;  %v607_v32 = vld [vmem:[%s2249_s5 + $0x5a0] sm:$0xff]  ;;  %v609_v33 = vld [vmem:[%s2249_s5 + $0x5b0] sm:$0xff] }
  0x64   : > { %v611_v34 = vld [vmem:[%s2249_s5 + $0x5c0] sm:$0xff]  ;;  %608 = vst [vmem:[%s2254_s6 + $0x2d0] sm:$0xff] %v607_v32  ;;  %610 = vst [vmem:[%s2254_s6 + $0x2d8] sm:$0xff] %v609_v33  ;;  %v613_v35 = vld [vmem:[%s2249_s5 + $0x5d0] sm:$0xff] }
  0x65   : > { %612 = vst [vmem:[%s2254_s6 + $0x2e0] sm:$0xff] %v611_v34  ;;  %v615_v36 = vld [vmem:[%s2249_s5 + $0x5e0] sm:$0xff]  ;;  %v617_v37 = vld [vmem:[%s2249_s5 + $0x5f0] sm:$0xff]  ;;  %614 = vst [vmem:[%s2254_s6 + $0x2e8] sm:$0xff] %v613_v35 }
  0x66   : > { %616 = vst [vmem:[%s2254_s6 + $0x2f0] sm:$0xff] %v615_v36  ;;  %618 = vst [vmem:[%s2254_s6 + $0x2f8] sm:$0xff] %v617_v37 }
  0x67 PF: > { %p1653_p0 = scmp.ge.s32.totalorder %s2112_s22, 1  ;;  %p631_p1 = scmp.lt.s32.totalorder %s2112_s22, 7 }
  0x69   : > { %p632_p2 = pnand %p1653_p0, %p631_p1 }
  0x6a   : > { %s638_s0 = sand.u32 (!%p632_p2), 1, %s2088_s16   ;;  %s645_s23 = sand.u32 (!%p632_p2), 1, %s2080_s14  }
  0x6b   : > { %635 = sbr.rel (%p632_p2) target bundleno = 492 (0x1ec), region = 85  ;;  %s672_s7 = sand.u32 (!%p632_p2), 1, %s2072_s12  }
  0x6c   : > { %s1782_s28 = smul.u32 (!%p632_p2), 48, %s638_s0  ;;  %s1654_s26 = sshll.u32 (!%p632_p2), %s672_s7, 4 }
  0x6d   : > { %s1783_s11 = smul.u32 (!%p632_p2), 768, %s645_s23  ;;  %s1655_s27 = sshll.u32 (!%p632_p2), %s2100_s19, 1 }
  0x6e   : > { %p680_p3 = scmp.lt.s32.totalorder (!%p632_p2), %s1655_s27, 3  ;;  %s2457_s6 = scalar_lea.vmem (!%p632_p2), [#allocation3], %s1782_s28 }
  0x6f   : > { %s2459_s1 = scalar_lea.vmem (!%p632_p2), [#allocation4], %s1783_s11  ;;  %s2461_s25 = scalar_lea.vmem (!%p632_p2), [#allocation5], %s1654_s26 }
  0x70   : > { %p1656_p4 = scmp.ne.s32.totalorder (!%p632_p2), %s2096_s18, 0 }
  0x72   : > { %s2646_s27 = smov (!%p680_p3, %s1655_s27), 3  ;;  %689 = sbr.rel (%p1656_p4) target bundleno = 121 (0x79), region = 97 }
  0x73   : > { %s682_s5 = scalar_lea.vmem %s2617_s2, %s2646_s27  ;;  %v2114_v38 = vmov (!%p1656_p4), 0.0  }
  0x74   : > { %690 = vst [vmem:[#allocation2] sm:$0xff] (!%p1656_p4), %v2114_v38  ;;  %691 = vst [vmem:[#allocation2 + $0x8] sm:$0xff] (!%p1656_p4), %v2114_v38 }
  0x75   : > { %692 = vst [vmem:[#allocation2 + $0x10] sm:$0xff] (!%p1656_p4), %v2114_v38  ;;  %693 = vst [vmem:[#allocation2 + $0x18] sm:$0xff] (!%p1656_p4), %v2114_v38 }
  0x79 PF: > { %v1873_v39 = vld [vmem:[%s2459_s1 + $0x104] ss:$8 sps:$4 sm:$0xff]   ;;  %v1875_v40 = vld [vmem:[%s2459_s1 + $0x100] ss:$8 sps:$4 sm:$0xff]   ;;  %v1876_v41 = vld [vmem:[%s2459_s1 + $0x114] ss:$8 sps:$4 sm:$0xff]  }
  0x7a   : > { %1353 = vmatprep.subr.bf16.mxu0 %v1873_v39  ;;  %v1878_v42 = vld [vmem:[%s2459_s1 + $0x110] ss:$8 sps:$4 sm:$0xff]   ;;  %v1879_v43 = vld [vmem:[%s2459_s1 + $0x124] ss:$8 sps:$4 sm:$0xff]   ;;  %v1881_v44 = vld [vmem:[%s2459_s1 + $0x120] ss:$8 sps:$4 sm:$0xff]  }
  0x7b   : > { %1354 = vmatpush1.bf16.msra.mxu0 %v1875_v40  ;;  %v1882_v45 = vld [vmem:[%s2459_s1 + $0x134] ss:$8 sps:$4 sm:$0xff]   ;;  %v1884_v46 = vld [vmem:[%s2459_s1 + $0x130] ss:$8 sps:$4 sm:$0xff]   ;;  %v1885_v47 = vld [vmem:[%s2459_s1 + $0x144] ss:$8 sps:$4 sm:$0xff]  }
  0x7c   : > { %1355 = vmatprep.subr.bf16.mxu0 %v1876_v41  ;;  %v1887_v48 = vld [vmem:[%s2459_s1 + $0x140] ss:$8 sps:$4 sm:$0xff]   ;;  %v1888_v49 = vld [vmem:[%s2459_s1 + $0x154] ss:$8 sps:$4 sm:$0xff]   ;;  %v1890_v50 = vld [vmem:[%s2459_s1 + $0x150] ss:$8 sps:$4 sm:$0xff]  }
  0x7d   : > { %v1891_v51 = vld [vmem:[%s2459_s1 + $0x164] ss:$8 sps:$4 sm:$0xff]   ;;  %v1923_v53 = vld [vmem:[%s2459_s1] ss:$8 sps:$4 sm:$0xff]   ;;  %v1894_v56 = vld [vmem:[%s2459_s1 + $0x174] ss:$8 sps:$4 sm:$0xff]  }
  0x7e   : > { %v1920_v52 = vld [vmem:[%s2459_s1 + $0x4] ss:$8 sps:$4 sm:$0xff]   ;;  %v1893_v54 = vld [vmem:[%s2459_s1 + $0x160] ss:$8 sps:$4 sm:$0xff]   ;;  %v1930_v57 = vld [vmem:[%s2459_s1 + $0x14] ss:$8 sps:$4 sm:$0xff]  }
  0x7f   : > { %1356 = vmatpush1.bf16.msra.mxu0 %v1878_v42  ;;  %1310 = vmatprep.subr.bf16.mxu1 %v1920_v52  ;;  %v1926_v55 = vld [vmem:[%s2457_s6 + $0xc] ss:$24 sps:$4 sm:$0xff]   ;;  %v1932_v58 = vld [vmem:[%s2459_s1 + $0x10] ss:$8 sps:$4 sm:$0xff]   ;;  %v1938_v62 = vld [vmem:[%s2459_s1 + $0x20] ss:$8 sps:$4 sm:$0xff]  }
  0x80   : > { %1357 = vmatprep.subr.bf16.mxu0 %v1879_v43  ;;  %1311 = vmatpush1.bf16.msra.mxu1 %v1923_v53  ;;  %v1896_v59 = vld [vmem:[%s2459_s1 + $0x170] ss:$8 sps:$4 sm:$0xff]   ;;  %v1897_v60 = vld [vmem:[%s2459_s1 + $0x184] ss:$8 sps:$4 sm:$0xff]   ;;  %v1899_v63 = vld [vmem:[%s2459_s1 + $0x180] ss:$8 sps:$4 sm:$0xff]  }
  0x81   : > { %1385 = vmatprep.mubr.bf16.mxu0 %v1926_v55  ;;  %1312 = vmatprep.subr.bf16.mxu1 %v1930_v57  ;;  %v1936_v61 = vld [vmem:[%s2459_s1 + $0x24] ss:$8 sps:$4 sm:$0xff]   ;;  %v1942_v0 = vld [vmem:[%s2459_s1 + $0x34] ss:$8 sps:$4 sm:$0xff]   ;;  %v1944_v2 = vld [vmem:[%s2459_s1 + $0x30] ss:$8 sps:$4 sm:$0xff]  }
  0x82   : > { %v1900_v1 = vld [vmem:[%s2459_s1 + $0x194] ss:$8 sps:$4 sm:$0xff]   ;;  %v1948_v3 = vld [vmem:[%s2459_s1 + $0x44] ss:$8 sps:$4 sm:$0xff]   ;;  %v1902_v4 = vld [vmem:[%s2459_s1 + $0x190] ss:$8 sps:$4 sm:$0xff]  }
  0x83   : > { %1358 = vmatpush1.bf16.msra.mxu0 %v1881_v44  ;;  %v1903_v5 = vld [vmem:[%s2459_s1 + $0x1a4] ss:$8 sps:$4 sm:$0xff]   ;;  %v1950_v6 = vld [vmem:[%s2459_s1 + $0x40] ss:$8 sps:$4 sm:$0xff]   ;;  %v1954_v7 = vld [vmem:[%s2459_s1 + $0x54] ss:$8 sps:$4 sm:$0xff]  }
  0x84   : > { %1359 = vmatprep.subr.bf16.mxu0 %v1882_v45  ;;  %1313 = vmatpush1.bf16.msra.mxu1 %v1932_v58  ;;  %v1905_v8 = vld [vmem:[%s2459_s1 + $0x1a0] ss:$8 sps:$4 sm:$0xff]   ;;  %v1906_v9 = vld [vmem:[%s2459_s1 + $0x1b4] ss:$8 sps:$4 sm:$0xff]   ;;  %v1956_v10 = vld [vmem:[%s2459_s1 + $0x50] ss:$8 sps:$4 sm:$0xff]  }
  0x85   : > { %1314 = vmatprep.subr.bf16.mxu1 %v1936_v61  ;;  %v1960_v11 = vld [vmem:[%s2459_s1 + $0x64] ss:$8 sps:$4 sm:$0xff]   ;;  %v1908_v12 = vld [vmem:[%s2459_s1 + $0x1b0] ss:$8 sps:$4 sm:$0xff]   ;;  %v1962_v14 = vld [vmem:[%s2459_s1 + $0x60] ss:$8 sps:$4 sm:$0xff]  }
  0x86   : > { %v1909_v13 = vld [vmem:[%s2459_s1 + $0x1c4] ss:$8 sps:$4 sm:$0xff]   ;;  %v1966_v15 = vld [vmem:[%s2459_s1 + $0x74] ss:$8 sps:$4 sm:$0xff]   ;;  %v1911_v16 = vld [vmem:[%s2459_s1 + $0x1c0] ss:$8 sps:$4 sm:$0xff]  }
  0x87   : > { %1360 = vmatpush1.bf16.msra.mxu0 %v1884_v46  ;;  %v1912_v17 = vld [vmem:[%s2459_s1 + $0x1d4] ss:$8 sps:$4 sm:$0xff]   ;;  %v1968_v18 = vld [vmem:[%s2459_s1 + $0x70] ss:$8 sps:$4 sm:$0xff]   ;;  %v1972_v19 = vld [vmem:[%s2459_s1 + $0x84] ss:$8 sps:$4 sm:$0xff]  }
  0x88   : > { %1361 = vmatprep.subr.bf16.mxu0 %v1885_v47  ;;  %1315 = vmatpush1.bf16.msra.mxu1 %v1938_v62  ;;  %v1914_v20 = vld [vmem:[%s2459_s1 + $0x1d0] ss:$8 sps:$4 sm:$0xff]   ;;  %v1915_v21 = vld [vmem:[%s2459_s1 + $0x1e4] ss:$8 sps:$4 sm:$0xff]   ;;  %v1974_v22 = vld [vmem:[%s2459_s1 + $0x80] ss:$8 sps:$4 sm:$0xff]  }
  0x89   : > { %1316 = vmatprep.subr.bf16.mxu1 %v1942_v0  ;;  %v1978_v23 = vld [vmem:[%s2459_s1 + $0x94] ss:$8 sps:$4 sm:$0xff]   ;;  %v1917_v24 = vld [vmem:[%s2459_s1 + $0x1e0] ss:$8 sps:$4 sm:$0xff]   ;;  %v1980_v26 = vld [vmem:[%s2459_s1 + $0x90] ss:$8 sps:$4 sm:$0xff]  }
  0x8a   : > { %v1918_v25 = vld [vmem:[%s2459_s1 + $0x1f4] ss:$8 sps:$4 sm:$0xff]   ;;  %v1984_v27 = vld [vmem:[%s2459_s1 + $0xa4] ss:$8 sps:$4 sm:$0xff]   ;;  %v1922_v28 = vld [vmem:[%s2459_s1 + $0x1f0] ss:$8 sps:$4 sm:$0xff]  }
  0x8b   : > { %1362 = vmatpush1.bf16.msra.mxu0 %v1887_v48  ;;  %v1929_v29 = vld [vmem:[%s2459_s1 + $0x204] ss:$8 sps:$4 sm:$0xff]   ;;  %v1986_v30 = vld [vmem:[%s2459_s1 + $0xa0] ss:$8 sps:$4 sm:$0xff]   ;;  %v1990_v32 = vld [vmem:[%s2459_s1 + $0xb4] ss:$8 sps:$4 sm:$0xff]  }
  0x8c   : > { %1363 = vmatprep.subr.bf16.mxu0 %v1888_v49  ;;  %1317 = vmatpush1.bf16.msra.mxu1 %v1944_v2  ;;  %v1924_v31 = vld [vmem:[%s2457_s6 + $0x8] ss:$24 sps:$4 sm:$0xff]   ;;  %v1935_v34 = vld [vmem:[%s2459_s1 + $0x214] ss:$8 sps:$4 sm:$0xff]   ;;  %v1996_v37 = vld [vmem:[%s2459_s1 + $0xc4] ss:$8 sps:$4 sm:$0xff]  }
  0x8d   : > { %1318 = vmatprep.subr.bf16.mxu1 %v1948_v3  ;;  %v1927_v33 = vld [vmem:[%s2459_s1 + $0x200] ss:$8 sps:$4 sm:$0xff]   ;;  %v1992_v35 = vld [vmem:[%s2459_s1 + $0xb0] ss:$8 sps:$4 sm:$0xff]   ;;  %v2019_v36 = vld [vmem:[%s2457_s6 + $0x4] ss:$24 sps:$4 sm:$0xff]  }
  0x8e   : > { %v1933_v38 = vld [vmem:[%s2459_s1 + $0x210] ss:$8 sps:$4 sm:$0xff]   ;;  %1342 = vmatprep.mubr.bf16.mxu1 %v2019_v36  ;;  %v2025_v39 = vld [vmem:[%s2457_s6 + $0x14] ss:$24 sps:$4 sm:$0xff]   ;;  %v1998_v41 = vld [vmem:[%s2459_s1 + $0xc0] ss:$8 sps:$4 sm:$0xff]  }
  0x8f   : > { %1364 = vmatpush1.bf16.msra.mxu0 %v1890_v50  ;;  %v1941_v40 = vld [vmem:[%s2459_s1 + $0x224] ss:$8 sps:$4 sm:$0xff]   ;;  %v2002_v42 = vld [vmem:[%s2459_s1 + $0xd4] ss:$8 sps:$4 sm:$0xff]   ;;  %v1939_v43 = vld [vmem:[%s2459_s1 + $0x220] ss:$8 sps:$4 sm:$0xff]  }
  0x90   : > { %1365 = vmatprep.subr.bf16.mxu0 %v1891_v51  ;;  %1319 = vmatpush1.bf16.msra.mxu1 %v1950_v6  ;;  %v1947_v44 = vld [vmem:[%s2459_s1 + $0x234] ss:$8 sps:$4 sm:$0xff]   ;;  %v2004_v45 = vld [vmem:[%s2459_s1 + $0xd0] ss:$8 sps:$4 sm:$0xff]   ;;  %v2008_v46 = vld [vmem:[%s2459_s1 + $0xe4] ss:$8 sps:$4 sm:$0xff]  }
  0x91   : > { %1320 = vmatprep.subr.bf16.mxu1 %v1954_v7  ;;  %v1945_v47 = vld [vmem:[%s2459_s1 + $0x230] ss:$8 sps:$4 sm:$0xff]   ;;  %v1953_v48 = vld [vmem:[%s2459_s1 + $0x244] ss:$8 sps:$4 sm:$0xff]   ;;  %v2010_v49 = vld [vmem:[%s2459_s1 + $0xe0] ss:$8 sps:$4 sm:$0xff]  }
  0x92   : > { %v2014_v50 = vld [vmem:[%s2459_s1 + $0xf4] ss:$8 sps:$4 sm:$0xff]   ;;  %v1951_v51 = vld [vmem:[%s2459_s1 + $0x240] ss:$8 sps:$4 sm:$0xff]   ;;  %v2016_v53 = vld [vmem:[%s2459_s1 + $0xf0] ss:$8 sps:$4 sm:$0xff]  }
  0x93   : > { %1366 = vmatpush1.bf16.msra.mxu0 %v1893_v54  ;;  %v1959_v52 = vld [vmem:[%s2459_s1 + $0x254] ss:$8 sps:$4 sm:$0xff]   ;;  %v1957_v54 = vld [vmem:[%s2459_s1 + $0x250] ss:$8 sps:$4 sm:$0xff]   ;;  %v1965_v55 = vld [vmem:[%s2459_s1 + $0x264] ss:$8 sps:$4 sm:$0xff]  }
  0x94   : > { %1367 = vmatprep.subr.bf16.mxu0 %v1894_v56  ;;  %1321 = vmatpush1.bf16.msra.mxu1 %v1956_v10  ;;  %v2017_v56 = vld [vmem:[%s2457_s6] ss:$24 sps:$4 sm:$0xff]   ;;  %v1971_v58 = vld [vmem:[%s2459_s1 + $0x274] ss:$8 sps:$4 sm:$0xff]   ;;  %v1989_v0 = vld [vmem:[%s2459_s1 + $0x2a4] ss:$8 sps:$4 sm:$0xff]  }
  0x95   : > { %1322 = vmatprep.subr.bf16.mxu1 %v1960_v11  ;;  %v1963_v57 = vld [vmem:[%s2459_s1 + $0x260] ss:$8 sps:$4 sm:$0xff]   ;;  %v1983_v62 = vld [vmem:[%s2459_s1 + $0x294] ss:$8 sps:$4 sm:$0xff]   ;;  %v1993_v3 = vld [vmem:[%s2459_s1 + $0x2b0] ss:$8 sps:$4 sm:$0xff]  }
  0x96   : > { %v1975_v61 = vld [vmem:[%s2459_s1 + $0x280] ss:$8 sps:$4 sm:$0xff]   ;;  %v1995_v2 = vld [vmem:[%s2459_s1 + $0x2b4] ss:$8 sps:$4 sm:$0xff]   ;;  %v2005_v7 = vld [vmem:[%s2459_s1 + $0x2d0] ss:$8 sps:$4 sm:$0xff]  }
  0x97   : > { %1368 = vmatpush1.bf16.msra.mxu0 %v1896_v59  ;;  %v1969_v59 = vld [vmem:[%s2459_s1 + $0x270] ss:$8 sps:$4 sm:$0xff]   ;;  %v2007_v6 = vld [vmem:[%s2459_s1 + $0x2d4] ss:$8 sps:$4 sm:$0xff]   ;;  %p1759_p5 = scmp.ne.s32.totalorder %s2096_s18, 2 }
  0x98   : > { %1369 = vmatprep.subr.bf16.mxu0 %v1897_v60  ;;  %1323 = vmatpush1.bf16.msra.mxu1 %v1962_v14  ;;  %v1977_v60 = vld [vmem:[%s2459_s1 + $0x284] ss:$8 sps:$4 sm:$0xff]   ;;  %v2022_v10 = vld [vmem:[%s2459_s1 + $0x2f4] ss:$8 sps:$4 sm:$0xff]   ;;  %v2020_v11 = vld [vmem:[%s2459_s1 + $0x2f0] ss:$8 sps:$4 sm:$0xff]  }
  0x99   : > { %1324 = vmatprep.subr.bf16.mxu1 %v1966_v15 }
  0x9b   : > { %1370 = vmatpush1.bf16.msra.mxu0 %v1899_v63  ;;  %v1981_v63 = vld [vmem:[%s2459_s1 + $0x290] ss:$8 sps:$4 sm:$0xff]  }
  0x9c   : > { %1371 = vmatprep.subr.bf16.mxu0 %v1900_v1  ;;  %1325 = vmatpush1.bf16.msra.mxu1 %v1968_v18  ;;  %v1987_v1 = vld [vmem:[%s2459_s1 + $0x2a0] ss:$8 sps:$4 sm:$0xff]  }
  0x9d   : > { %1326 = vmatprep.subr.bf16.mxu1 %v1972_v19 }
  0x9f   : > { %1372 = vmatpush1.bf16.msra.mxu0 %v1902_v4  ;;  %v2001_v4 = vld [vmem:[%s2459_s1 + $0x2c4] ss:$8 sps:$4 sm:$0xff]  }
  0xa0   : > { %1373 = vmatprep.subr.bf16.mxu0 %v1903_v5  ;;  %1327 = vmatpush1.bf16.msra.mxu1 %v1974_v22  ;;  %v1999_v5 = vld [vmem:[%s2459_s1 + $0x2c0] ss:$8 sps:$4 sm:$0xff]  }
  0xa1   : > { %1328 = vmatprep.subr.bf16.mxu1 %v1978_v23  ;;  %v696_v23 = vld [vmem:[#allocation2 + $0x10] sm:$0xff] }
  0xa3   : > { %1374 = vmatpush1.bf16.msra.mxu0 %v1905_v8  ;;  %v2013_v8 = vld [vmem:[%s2459_s1 + $0x2e4] ss:$8 sps:$4 sm:$0xff]  }
  0xa4   : > { %1375 = vmatprep.subr.bf16.mxu0 %v1906_v9  ;;  %1329 = vmatpush1.bf16.msra.mxu1 %v1980_v26  ;;  %v2011_v9 = vld [vmem:[%s2459_s1 + $0x2e0] ss:$8 sps:$4 sm:$0xff]  }
  0xa5   : > { %1330 = vmatprep.subr.bf16.mxu1 %v1984_v27  ;;  %v697_v27 = vld [vmem:[#allocation2 + $0x18] sm:$0xff] }
  0xa7   : > { %1376 = vmatpush1.bf16.msra.mxu0 %v1908_v12  ;;  %v2023_v12 = vld [vmem:[%s2457_s6 + $0x10] ss:$24 sps:$4 sm:$0xff]  }
  0xa8   : > { %1377 = vmatprep.subr.bf16.mxu0 %v1909_v13  ;;  %1331 = vmatpush1.bf16.msra.mxu1 %v1986_v30 }
  0xa9   : > { %1332 = vmatprep.subr.bf16.mxu1 %v1990_v32 }
  0xab   : > { %1378 = vmatpush1.bf16.msra.mxu0 %v1911_v16 }
  0xac   : > { %1379 = vmatprep.subr.bf16.mxu0 %v1912_v17  ;;  %1333 = vmatpush1.bf16.msra.mxu1 %v1992_v35  ;;  %v694_v17 = vld [vmem:[#allocation2] sm:$0xff] }
  0xad   : > { %1334 = vmatprep.subr.bf16.mxu1 %v1996_v37  ;;  %v1455_v35 = vld [vmem:[%s682_s5] sm:$0x3] (!%p1759_p5) }
  0xaf   : > { %1380 = vmatpush1.bf16.msra.mxu0 %v1914_v20  ;;  %v695_v20 = vld [vmem:[#allocation2 + $0x8] sm:$0xff] }
  0xb0   : > { %1381 = vmatprep.subr.bf16.mxu0 %v1915_v21  ;;  %1335 = vmatpush1.bf16.msra.mxu1 %v1998_v41 }
  0xb1   : > { %1336 = vmatprep.subr.bf16.mxu1 %v2002_v42 }
  0xb3   : > { %1382 = vmatpush1.bf16.msra.mxu0 %v1917_v24 }
  0xb4   : > { %1383 = vmatprep.subr.bf16.mxu0 %v1918_v25  ;;  %1337 = vmatpush1.bf16.msra.mxu1 %v2004_v45 }
  0xb5   : > { %1338 = vmatprep.subr.bf16.mxu1 %v2008_v46 }
  0xb7   : > { %1384 = vmatpush1.bf16.msra.mxu0 %v1922_v28 }
  0xb8   : > { %1396 = vmatprep.subr.bf16.mxu0 %v1929_v29  ;;  %1339 = vmatpush1.bf16.msra.mxu1 %v2010_v49 }
  0xb9   : > { %1340 = vmatprep.subr.bf16.mxu1 %v2014_v50 }
  0xba   : > { %1386 = vmatmul.mubr.bf16.vlgmr.msra.gmra.mrb[0].mxu0 %v1924_v31 }
  0xbb   : > { %1397 = vmatpush1.bf16.msra.mxu0 %v1927_v33  ;;  %1428 = vmatprep.mubr.bf16.mxu0 %v2025_v39  ;;  %v1457_v33 = vlaneseq (!%p1759_p5) }
  0xbc   : > { %1398 = vmatprep.subr.bf16.mxu0 %v1935_v34  ;;  %1341 = vmatpush1.bf16.msra.mxu1 %v2016_v53 }
  0xbd   : > { %v1458_v34 = vshrl.u32 (!%p1759_p5), %v1457_v33, 7 }
  0xbf   : > { %1399 = vmatpush1.bf16.msra.mxu0 %v1933_v38  ;;  %1343 = vmatmul.mubr.bf16.vlgmr.msra.gmra.mrb[0].mxu1 %v2017_v56  ;;  %v1459_v37 = vsub.s32 (!%p1759_p5), 0, %v1458_v34  ;;  %v1463_v38 = vsub.s32 (!%p1759_p5), 1, %v1458_v34 }
  0xc0   : > { %1400 = vmatprep.subr.bf16.mxu0 %v1941_v40 }
  0xc1   : > { %v1460_v42 = vrot.slane (!%p1759_p5), %v1455_v35, %v1459_v37 }
  0xc3   : > { %1401 = vmatpush1.bf16.msra.mxu0 %v1939_v43  ;;  %v1464_v43 = vrot.slane (!%p1759_p5), %v1455_v35, %v1463_v38 }
  0xc4   : > { %1402 = vmatprep.subr.bf16.mxu0 %v1947_v44 }
  0xc7   : > { %1403 = vmatpush1.bf16.msra.mxu0 %v1945_v47 }
  0xc8   : > { %1404 = vmatprep.subr.bf16.mxu0 %v1953_v48 }
  0xcb   : > { %1405 = vmatpush1.bf16.msra.mxu0 %v1951_v51 }
  0xcc   : > { %1406 = vmatprep.subr.bf16.mxu0 %v1959_v52 }
  0xcf   : > { %1407 = vmatpush1.bf16.msra.mxu0 %v1957_v54 }
  0xd0   : > { %1408 = vmatprep.subr.bf16.mxu0 %v1965_v55 }
  0xd3   : > { %1409 = vmatpush1.bf16.msra.mxu0 %v1963_v57 }
  0xd4   : > { %1410 = vmatprep.subr.bf16.mxu0 %v1971_v58 }
  0xd7   : > { %1411 = vmatpush1.bf16.msra.mxu0 %v1969_v59 }
  0xd8   : > { %1412 = vmatprep.subr.bf16.mxu0 %v1977_v60 }
  0xdb   : > { %1413 = vmatpush1.bf16.msra.mxu0 %v1975_v61 }
  0xdc   : > { %1414 = vmatprep.subr.bf16.mxu0 %v1983_v62 }
  0xdf   : > { %1415 = vmatpush1.bf16.msra.mxu0 %v1981_v63 }
  0xe0   : > { %1416 = vmatprep.subr.bf16.mxu0 %v1989_v0 }
  0xe3   : > { %1417 = vmatpush1.bf16.msra.mxu0 %v1987_v1 }
  0xe4   : > { %1418 = vmatprep.subr.bf16.mxu0 %v1995_v2 }
  0xe7   : > { %1419 = vmatpush1.bf16.msra.mxu0 %v1993_v3 }
  0xe8   : > { %1420 = vmatprep.subr.bf16.mxu0 %v2001_v4 }
  0xeb   : > { %1421 = vmatpush1.bf16.msra.mxu0 %v1999_v5 }
  0xec   : > { %1422 = vmatprep.subr.bf16.mxu0 %v2007_v6 }
  0xef   : > { %1423 = vmatpush1.bf16.msra.mxu0 %v2005_v7 }
  0xf0   : > { %1424 = vmatprep.subr.bf16.mxu0 %v2013_v8 }
  0xf3   : > { %1425 = vmatpush1.bf16.msra.mxu0 %v2011_v9 }
  0xf4   : > { %1426 = vmatprep.subr.bf16.mxu0 %v2022_v10 }
  0xf7   : > { %1427 = vmatpush1.bf16.msra.mxu0 %v2020_v11 }
  0xfa   : > { %1429 = vmatmul.mubr.bf16.vlgmr.msra.gmra.mrb[0].mxu0 %v2023_v12 }
 0x192   : > { %v1344_v13 = vpop.f32.mrb[0].mxu1 }
 0x193   : > { %v1346_v14 = vpop.f32.mrb[1].mxu1 }
 0x194   : > { %v1348_v15 = vpop.f32.mrb[2].mxu1 }
 0x195   : > { %v1350_v16 = vpop.f32.mrb[3].mxu1 }
 0x1cd   : > { %v1430_v18 = vpop.f32.mrb[0].mxu0 }
 0x1ce   : > { %v1772_v19 = vadd.f32 %v1430_v18, %v1344_v13  ;;  %v1432_v21 = vpop.f32.mrb[1].mxu0 }
 0x1cf   : > { %v1773_v22 = vadd.f32 %v1432_v21, %v1346_v14  ;;  %v1434_v24 = vpop.f32.mrb[2].mxu0  ;;  %1450 = sbr.rel (%p1759_p5) target bundleno = 484 (0x1e4), region = 101 }
 0x1d0   : > { %v1439_v25 = vadd.f32 %v1772_v19, %v694_v17  ;;  %v1774_v26 = vadd.f32 %v1434_v24, %v1348_v15  ;;  %v1436_v28 = vpop.f32.mrb[3].mxu0 }
 0x1d1   : > { %v1440_v29 = vadd.f32 %v1773_v22, %v695_v20  ;;  %v1775_v30 = vadd.f32 %v1436_v28, %v1350_v16 }
 0x1d2   : > { %1443 = vst [vmem:[#allocation2] sm:$0xff] %v1439_v25  ;;  %v1441_v31 = vadd.f32 %v1774_v26, %v696_v23 }
 0x1d3   : > { %1444 = vst [vmem:[#allocation2 + $0x8] sm:$0xff] %v1440_v29  ;;  %v1442_v32 = vadd.f32 %v1775_v30, %v697_v27 }
 0x1d4   : > { %1445 = vst [vmem:[#allocation2 + $0x10] sm:$0xff] %v1441_v31 }
 0x1d5   : > { %1446 = vst [vmem:[#allocation2 + $0x18] sm:$0xff] %v1442_v32 }
 0x1d9   : > { %v1451_v36 = vld [vmem:[#allocation2] sm:$0xff] }
 0x1da   : > { %v1452_v39 = vld [vmem:[#allocation2 + $0x8] sm:$0xff]  ;;  %v1467_v44 = vadd.f32 %v1460_v42, %v1451_v36 }
 0x1db   : > { %v1453_v40 = vld [vmem:[#allocation2 + $0x10] sm:$0xff]  ;;  %v1468_v45 = vadd.f32 %v1464_v43, %v1452_v39 }
 0x1dc   : > { %v1454_v41 = vld [vmem:[#allocation2 + $0x18] sm:$0xff]  ;;  %v1469_v46 = vadd.f32 %v1460_v42, %v1453_v40  ;;  %v1471_v48 = vmax.f32 %v1467_v44, 0.0 }
 0x1dd   : > { %v1470_v47 = vadd.f32 %v1464_v43, %v1454_v41  ;;  %v1472_v49 = vmax.f32 %v1468_v45, 0.0 }
 0x1de   : > { %v1473_v50 = vmax.f32 %v1469_v46, 0.0 }
 0x1df   : > { %v1474_v51 = vmax.f32 %v1470_v47, 0.0  ;;  %v1769_v52 = vpack.c.bf16 %v1472_v49, %v1471_v48 }
 0x1e1   : > { %v1770_v53 = vpack.c.bf16 %v1474_v51, %v1473_v50  ;;  %1487 = vst [vmem:[%s2461_s25] sm:$0xff] %v1769_v52 }
 0x1e3   : > { %1488 = vst [vmem:[%s2461_s25 + $0x8] sm:$0xff] %v1770_v53 }
 0x1e4 PF: > { %1495 = sbr.rel (!%p2229_p12) target bundleno = 492 (0x1ec), region = 105  ;;  %s1771_s14 = sshll.u32 (%p2229_p12), %s2100_s19, 3 }
 0x1e5   : > { %s1501_s0 = scalar_lea.vmem (%p2229_p12), %s2618_s3, %s1771_s14 }
 0x1e8   : > { %v1531_v54 = vld [vmem:[%s2461_s25] sm:$0xff] (%p2229_p12) }
 0x1e9   : > { %1532 = vst [vmem:[%s1501_s0] sm:$0xff] (%p2229_p12), %v1531_v54 }
 0x1ea   : > { %v1533_v55 = vld [vmem:[%s2461_s25 + $0x8] sm:$0xff] (%p2229_p12) }
 0x1eb   : > { %1534 = vst [vmem:[%s1501_s0 + $0x10] sm:$0xff] %v1533_v55 }
 0x1ec PF: > { %s13_s22 = sadd.s32 1, %s2112_s22   ;;  %s2628_s25 = sld [smem:[#allocation6_spill]] }
 0x1ed   : > { %p10_p6 = scmp.ge.s32.totalorder %s13_s22, 8   ;;  %s2629_s12 = smov %s2076_s13 }
 0x1ee   : > { %s2630_s13 = smov %s2227_s9  ;;  %s2631_s14 = smov %s2084_s15 }
 0x1ef   : > { %s2632_s15 = smov %s2224_s8  ;;  %s2633_s16 = smov %s2092_s17 }
 0x1f0   : > { %s2634_s17 = smov %s2210_s30  ;;  %s2635_s18 = smov %s2104_s20 }
 0x1f1   : > { %s2636_s19 = smov %s2108_s21  ;;  %s2637_s20 = smov %s2640_s24 }
 0x1f2   : > { %s2638_s21 = smov %s2628_s25  ;;  %12 = sbr.rel (!%p10_p6) target bundleno = 9 (0x9), region = 185 }

// kernel: simple_dog_emotion_model.40
= control target key start
LH: loop header
LB: loop body
LE: loop exit
PB: predicated region body
PF: predicated region fallthrough
CT: control target
= control target key end

     0   :  { %s3346_s0 = inlined_call_operand.vmem [shape: bf16[16,5120], index: 0, kind: input, shape index: {}]   ;;  %s3347_s1 = inlined_call_operand.vmem [shape: bf16[5120,512], index: 1, kind: input, shape index: {}]   ;;  %s3348_s2 = inlined_call_operand.vmem [shape: f32[1,512], index: 2, kind: input, shape index: {}]   ;;  %s3349_s3 = inlined_call_operand.vmem [shape: bf16[16,512], index: 3, kind: input, shape index: {}]   ;;  %s3350_s4 = inlined_call_operand.vmem [shape: bf16[16,512], index: 4, kind: output, shape index: {}]  }
   0x1   :  { %3353 = sst [smem:[#allocation10_spill]] %s3346_s0 }
   0x2   :  { %s2727_s15 = smov 0   ;;  %s2729_s16 = smov 0  }
   0x3   :  { %s2731_s17 = smov 0   ;;  %s2733_s18 = smov 0  }
   0x4   :  { %s2735_s19 = smov 0   ;;  %s2737_s20 = smov 0  }
   0x5   :  { %s2739_s21 = smov 0   ;;  %s2741_s22 = smov 0  }
   0x6   :  { %s2743_s23 = smov 0   ;;  %s2745_s24 = smov 0  }
   0x7   :  { %s2747_s25 = smov 0  }
   0x8 LB: > { %s2148_s26 = sadd.s32 4294967295, %s2699_s25   ;;  %s26_s27 = sadd.s32 1, %s2691_s23  ;;  %s2699_s25 = sphi %s2747_s25, %s14_s25   ;;  %s2695_s24 = sphi %s2745_s24, %s3374_s24   ;;  %s2691_s23 = sphi %s2743_s23, %s3373_s23   ;;  %s2687_s22 = sphi %s2741_s22, %s3372_s22   ;;  %s2683_s21 = sphi %s2739_s21, %s3371_s21   ;;  %s2679_s20 = sphi %s2737_s20, %s3370_s20   ;;  %s2675_s19 = sphi %s2735_s19, %s3369_s19   ;;  %s2671_s18 = sphi %s2733_s18, %s3368_s18   ;;  %s2667_s17 = sphi %s2731_s17, %s3367_s17   ;;  %s2663_s16 = sphi %s2729_s16, %s3366_s16   ;;  %s2659_s15 = sphi %s2727_s15, %s3365_s15  }
   0x9   : > { %p27_p0 = scmp.ge.s32.totalorder %s26_s27, 5  ;;  %s29_s28 = sadd.s32 1, %s2695_s24 }
   0xa   : > { %s42_s29 = sadd.s32 1, %s2679_s20  ;;  %p49_p1 = scmp.ne.s32.totalorder %s2679_s20, %s2675_s19 }
   0xb   : > { %s3376_s27 = smov (%p27_p0, %s26_s27), 0  ;;  %s3378_s28 = smov (!%p27_p0, %s29_s28), %s2695_s24 }
   0xc   : > { %3354 = sst [smem:[#allocation7_spill]] %s3376_s27  ;;  %s38_s30 = ssub.s32 %s2691_s23, %s3376_s27 }
   0xd   : > { %p50_p2 = scmp.eq.s32.totalorder %s2699_s25, 0  ;;  %p31_p3 = scmp.ge.s32.totalorder %s3378_s28, 2 }
   0xe   : > { %p40_p4 = scmp.eq.s32.totalorder %s38_s30, 0  ;;  %s70_s6 = sadd.s32 1, %s2671_s18 }
   0xf   : > { %p2796_p5 = por %p50_p2, %p49_p1  ;;  %s3380_s28 = smov (%p31_p3, %s3378_s28), 0 }
  0x10   : > { %3356 = sst [smem:[#allocation8_spill]] %s3380_s28  ;;  %s66_s8 = ssub.s32 %s2695_s24, %s3380_s28 }
  0x11   : > { %s2804_s7 = scalar_select %p40_p4, %s2679_s20, %s42_s29  }
  0x12   : > { %p77_p6 = scmp.ne.s32.totalorder %s2671_s18, %s2667_s17  ;;  %s67_s9 = sor.u32 %s66_s8, %s38_s30 }
  0x13   : > { %3357 = sst [smem:[#allocation9_spill]] %s2804_s7  ;;  %p122_p7 = scmp.eq.s32.totalorder %s66_s8, 0 }
  0x14   : > { %p68_p8 = scmp.eq.s32.totalorder %s67_s9, 0  ;;  %p2812_p9 = por %p77_p6, %p50_p2 }
  0x15   : > { %s124_s11 = sadd.s32 1, %s2663_s16  ;;  %p131_p10 = scmp.ne.s32.totalorder %s2663_s16, %s2659_s15 }
  0x16   : > { %s2820_s12 = scalar_select %p68_p8, %s2671_s18, %s70_s6  }
  0x17   : > { %s2823_s13 = scalar_select %p122_p7, %s2663_s16, %s124_s11  }
  0x18   : > { %p2827_p11 = por %p131_p10, %p50_p2  ;;  %p163_p12 = scmp.eq.s32.totalorder %s2148_s26, 9 }
  0x19   : > { %p2151_p0 = scmp.ge.s32.totalorder %s2699_s25, 10 }
  0x1a   : > { %p2831_p13 = por %p163_p12, %p131_p10 }
  0x1b   : > { %185 = sbr.rel (%p2151_p0) target bundleno = 126 (0x7e), region = 16 }
  0x22   : > { %188 = sbr.rel (!%p2796_p5) target bundleno = 48 (0x30), region = 20  ;;  %s190_s30 = sand.u32 (%p2796_p5), 1, %s2679_s20  }
  0x23   : > { %s2314_s6 = sshll.u32 (%p2796_p5), %s2691_s23, 5  ;;  %s2152_s8 = sshll.u32 (%p2796_p5), %s190_s30, 6 }
  0x24   : > { %s3361_s0 = sld [smem:[#allocation10_spill]] (%p2796_p5)  ;;  %s192_s26 = scalar_lea.vmem (%p2796_p5), [#allocation3], %s2152_s8 }
  0x2a   : > { %s198_s28 = scalar_lea.vmem %s3361_s0, %s2314_s6 }
  0x2b   : > { %v211_v0 = vld [vmem:[%s198_s28] sm:$0xff]  ;;  %v213_v1 = vld [vmem:[%s198_s28 + $0x8] sm:$0xff]  ;;  %v215_v2 = vld [vmem:[%s198_s28 + $0x10] sm:$0xff] }
  0x2c   : > { %212 = vst [vmem:[%s192_s26] sm:$0xff] %v211_v0  ;;  %214 = vst [vmem:[%s192_s26 + $0x8] sm:$0xff] %v213_v1  ;;  %v217_v3 = vld [vmem:[%s198_s28 + $0x18] sm:$0xff]  ;;  %v219_v4 = vld [vmem:[%s198_s28 + $0xa0] sm:$0xff] }
  0x2d   : > { %216 = vst [vmem:[%s192_s26 + $0x10] sm:$0xff] %v215_v2  ;;  %v221_v5 = vld [vmem:[%s198_s28 + $0xa8] sm:$0xff]  ;;  %218 = vst [vmem:[%s192_s26 + $0x18] sm:$0xff] %v217_v3  ;;  %v223_v6 = vld [vmem:[%s198_s28 + $0xb0] sm:$0xff] }
  0x2e   : > { %220 = vst [vmem:[%s192_s26 + $0x20] sm:$0xff] %v219_v4  ;;  %222 = vst [vmem:[%s192_s26 + $0x28] sm:$0xff] %v221_v5  ;;  %v225_v7 = vld [vmem:[%s198_s28 + $0xb8] sm:$0xff] }
  0x2f   : > { %224 = vst [vmem:[%s192_s26 + $0x30] sm:$0xff] %v223_v6  ;;  %226 = vst [vmem:[%s192_s26 + $0x38] sm:$0xff] %v225_v7 }
  0x30 PF: > { %232 = sbr.rel (!%p2812_p9) target bundleno = 119 (0x77), region = 43  ;;  %s234_s5 = sand.u32 (%p2812_p9), 1, %s2671_s18  }
  0x31   : > { %s2157_s30 = sshll.u32 (%p2812_p9), %s2695_s24, 1  ;;  %s2155_s6 = sshll.u32 (%p2812_p9), %s234_s5, 10 }
  0x32   : > { %s2315_s8 = sshll.u32 (%p2812_p9), %s2691_s23, 9  ;;  %s2856_s28 = scalar_lea.vmem (%p2812_p9), [#allocation4], %s2155_s6 }
  0x33   : > { %s240_s9 = sadd.s32 (%p2812_p9), %s2315_s8, %s2157_s30 }
  0x34   : > { %s2159_s11 = sshll.u32 (%p2812_p9), %s240_s9, 2 }
  0x35   : > { %s2851_s7 = scalar_lea.vmem (%p2812_p9), %s3347_s1, %s2159_s11 }
  0x36   : > { %v524_v8 = vld [vmem:[%s2851_s7] sm:$0xff] (%p2812_p9)  ;;  %v526_v9 = vld [vmem:[%s2851_s7 + $0x10] sm:$0xff] (%p2812_p9) }
  0x37   : > { %v528_v10 = vld [vmem:[%s2851_s7 + $0x20] sm:$0xff]  ;;  %525 = vst [vmem:[%s2856_s28] sm:$0xff] %v524_v8  ;;  %527 = vst [vmem:[%s2856_s28 + $0x8] sm:$0xff] %v526_v9  ;;  %v530_v11 = vld [vmem:[%s2851_s7 + $0x30] sm:$0xff] }
  0x38   : > { %529 = vst [vmem:[%s2856_s28 + $0x10] sm:$0xff] %v528_v10  ;;  %v532_v12 = vld [vmem:[%s2851_s7 + $0x40] sm:$0xff]  ;;  %v534_v13 = vld [vmem:[%s2851_s7 + $0x50] sm:$0xff]  ;;  %531 = vst [vmem:[%s2856_s28 + $0x18] sm:$0xff] %v530_v11 }
  0x39   : > { %533 = vst [vmem:[%s2856_s28 + $0x20] sm:$0xff] %v532_v12  ;;  %535 = vst [vmem:[%s2856_s28 + $0x28] sm:$0xff] %v534_v13  ;;  %v536_v14 = vld [vmem:[%s2851_s7 + $0x60] sm:$0xff]  ;;  %v538_v15 = vld [vmem:[%s2851_s7 + $0x70] sm:$0xff] }
  0x3a   : > { %v540_v16 = vld [vmem:[%s2851_s7 + $0x80] sm:$0xff]  ;;  %537 = vst [vmem:[%s2856_s28 + $0x30] sm:$0xff] %v536_v14  ;;  %539 = vst [vmem:[%s2856_s28 + $0x38] sm:$0xff] %v538_v15  ;;  %v542_v17 = vld [vmem:[%s2851_s7 + $0x90] sm:$0xff] }
  0x3b   : > { %541 = vst [vmem:[%s2856_s28 + $0x40] sm:$0xff] %v540_v16  ;;  %v544_v18 = vld [vmem:[%s2851_s7 + $0xa0] sm:$0xff]  ;;  %v546_v19 = vld [vmem:[%s2851_s7 + $0xb0] sm:$0xff]  ;;  %543 = vst [vmem:[%s2856_s28 + $0x48] sm:$0xff] %v542_v17 }
  0x3c   : > { %545 = vst [vmem:[%s2856_s28 + $0x50] sm:$0xff] %v544_v18  ;;  %547 = vst [vmem:[%s2856_s28 + $0x58] sm:$0xff] %v546_v19  ;;  %v548_v20 = vld [vmem:[%s2851_s7 + $0xc0] sm:$0xff]  ;;  %v550_v21 = vld [vmem:[%s2851_s7 + $0xd0] sm:$0xff] }
  0x3d   : > { %v552_v22 = vld [vmem:[%s2851_s7 + $0xe0] sm:$0xff]  ;;  %549 = vst [vmem:[%s2856_s28 + $0x60] sm:$0xff] %v548_v20  ;;  %551 = vst [vmem:[%s2856_s28 + $0x68] sm:$0xff] %v550_v21  ;;  %v554_v23 = vld [vmem:[%s2851_s7 + $0xf0] sm:$0xff] }
  0x3e   : > { %553 = vst [vmem:[%s2856_s28 + $0x70] sm:$0xff] %v552_v22  ;;  %v556_v24 = vld [vmem:[%s2851_s7 + $0x100] sm:$0xff]  ;;  %v558_v25 = vld [vmem:[%s2851_s7 + $0x110] sm:$0xff]  ;;  %555 = vst [vmem:[%s2856_s28 + $0x78] sm:$0xff] %v554_v23 }
  0x3f   : > { %557 = vst [vmem:[%s2856_s28 + $0x80] sm:$0xff] %v556_v24  ;;  %559 = vst [vmem:[%s2856_s28 + $0x88] sm:$0xff] %v558_v25  ;;  %v560_v26 = vld [vmem:[%s2851_s7 + $0x120] sm:$0xff]  ;;  %v562_v27 = vld [vmem:[%s2851_s7 + $0x130] sm:$0xff] }
  0x40   : > { %v564_v28 = vld [vmem:[%s2851_s7 + $0x140] sm:$0xff]  ;;  %561 = vst [vmem:[%s2856_s28 + $0x90] sm:$0xff] %v560_v26  ;;  %563 = vst [vmem:[%s2856_s28 + $0x98] sm:$0xff] %v562_v27  ;;  %v566_v29 = vld [vmem:[%s2851_s7 + $0x150] sm:$0xff] }
  0x41   : > { %565 = vst [vmem:[%s2856_s28 + $0xa0] sm:$0xff] %v564_v28  ;;  %v568_v30 = vld [vmem:[%s2851_s7 + $0x160] sm:$0xff]  ;;  %v570_v31 = vld [vmem:[%s2851_s7 + $0x170] sm:$0xff]  ;;  %567 = vst [vmem:[%s2856_s28 + $0xa8] sm:$0xff] %v566_v29 }
  0x42   : > { %569 = vst [vmem:[%s2856_s28 + $0xb0] sm:$0xff] %v568_v30  ;;  %571 = vst [vmem:[%s2856_s28 + $0xb8] sm:$0xff] %v570_v31  ;;  %v572_v32 = vld [vmem:[%s2851_s7 + $0x180] sm:$0xff]  ;;  %v574_v33 = vld [vmem:[%s2851_s7 + $0x190] sm:$0xff] }
  0x43   : > { %v576_v34 = vld [vmem:[%s2851_s7 + $0x1a0] sm:$0xff]  ;;  %573 = vst [vmem:[%s2856_s28 + $0xc0] sm:$0xff] %v572_v32  ;;  %575 = vst [vmem:[%s2856_s28 + $0xc8] sm:$0xff] %v574_v33  ;;  %v578_v35 = vld [vmem:[%s2851_s7 + $0x1b0] sm:$0xff] }
  0x44   : > { %577 = vst [vmem:[%s2856_s28 + $0xd0] sm:$0xff] %v576_v34  ;;  %v580_v36 = vld [vmem:[%s2851_s7 + $0x1c0] sm:$0xff]  ;;  %v582_v37 = vld [vmem:[%s2851_s7 + $0x1d0] sm:$0xff]  ;;  %579 = vst [vmem:[%s2856_s28 + $0xd8] sm:$0xff] %v578_v35 }
  0x45   : > { %581 = vst [vmem:[%s2856_s28 + $0xe0] sm:$0xff] %v580_v36  ;;  %583 = vst [vmem:[%s2856_s28 + $0xe8] sm:$0xff] %v582_v37  ;;  %v584_v38 = vld [vmem:[%s2851_s7 + $0x1e0] sm:$0xff]  ;;  %v586_v39 = vld [vmem:[%s2851_s7 + $0x1f0] sm:$0xff] }
  0x46   : > { %v588_v40 = vld [vmem:[%s2851_s7 + $0x200] sm:$0xff]  ;;  %585 = vst [vmem:[%s2856_s28 + $0xf0] sm:$0xff] %v584_v38  ;;  %587 = vst [vmem:[%s2856_s28 + $0xf8] sm:$0xff] %v586_v39  ;;  %v590_v41 = vld [vmem:[%s2851_s7 + $0x210] sm:$0xff] }
  0x47   : > { %589 = vst [vmem:[%s2856_s28 + $0x100] sm:$0xff] %v588_v40  ;;  %v592_v42 = vld [vmem:[%s2851_s7 + $0x220] sm:$0xff]  ;;  %v594_v43 = vld [vmem:[%s2851_s7 + $0x230] sm:$0xff]  ;;  %591 = vst [vmem:[%s2856_s28 + $0x108] sm:$0xff] %v590_v41 }
  0x48   : > { %593 = vst [vmem:[%s2856_s28 + $0x110] sm:$0xff] %v592_v42  ;;  %595 = vst [vmem:[%s2856_s28 + $0x118] sm:$0xff] %v594_v43  ;;  %v596_v44 = vld [vmem:[%s2851_s7 + $0x240] sm:$0xff]  ;;  %v598_v45 = vld [vmem:[%s2851_s7 + $0x250] sm:$0xff] }
  0x49   : > { %v600_v46 = vld [vmem:[%s2851_s7 + $0x260] sm:$0xff]  ;;  %597 = vst [vmem:[%s2856_s28 + $0x120] sm:$0xff] %v596_v44  ;;  %599 = vst [vmem:[%s2856_s28 + $0x128] sm:$0xff] %v598_v45  ;;  %v602_v47 = vld [vmem:[%s2851_s7 + $0x270] sm:$0xff] }
  0x4a   : > { %601 = vst [vmem:[%s2856_s28 + $0x130] sm:$0xff] %v600_v46  ;;  %v604_v48 = vld [vmem:[%s2851_s7 + $0x280] sm:$0xff]  ;;  %v606_v49 = vld [vmem:[%s2851_s7 + $0x290] sm:$0xff]  ;;  %603 = vst [vmem:[%s2856_s28 + $0x138] sm:$0xff] %v602_v47 }
  0x4b   : > { %605 = vst [vmem:[%s2856_s28 + $0x140] sm:$0xff] %v604_v48  ;;  %607 = vst [vmem:[%s2856_s28 + $0x148] sm:$0xff] %v606_v49  ;;  %v608_v50 = vld [vmem:[%s2851_s7 + $0x2a0] sm:$0xff]  ;;  %v610_v51 = vld [vmem:[%s2851_s7 + $0x2b0] sm:$0xff] }
  0x4c   : > { %v612_v52 = vld [vmem:[%s2851_s7 + $0x2c0] sm:$0xff]  ;;  %609 = vst [vmem:[%s2856_s28 + $0x150] sm:$0xff] %v608_v50  ;;  %611 = vst [vmem:[%s2856_s28 + $0x158] sm:$0xff] %v610_v51  ;;  %v614_v53 = vld [vmem:[%s2851_s7 + $0x2d0] sm:$0xff] }
  0x4d   : > { %613 = vst [vmem:[%s2856_s28 + $0x160] sm:$0xff] %v612_v52  ;;  %v616_v54 = vld [vmem:[%s2851_s7 + $0x2e0] sm:$0xff]  ;;  %v618_v55 = vld [vmem:[%s2851_s7 + $0x2f0] sm:$0xff]  ;;  %615 = vst [vmem:[%s2856_s28 + $0x168] sm:$0xff] %v614_v53 }
  0x4e   : > { %617 = vst [vmem:[%s2856_s28 + $0x170] sm:$0xff] %v616_v54  ;;  %619 = vst [vmem:[%s2856_s28 + $0x178] sm:$0xff] %v618_v55  ;;  %v620_v56 = vld [vmem:[%s2851_s7 + $0x300] sm:$0xff]  ;;  %v622_v57 = vld [vmem:[%s2851_s7 + $0x310] sm:$0xff] }
  0x4f   : > { %v624_v58 = vld [vmem:[%s2851_s7 + $0x320] sm:$0xff]  ;;  %621 = vst [vmem:[%s2856_s28 + $0x180] sm:$0xff] %v620_v56  ;;  %623 = vst [vmem:[%s2856_s28 + $0x188] sm:$0xff] %v622_v57  ;;  %v626_v59 = vld [vmem:[%s2851_s7 + $0x330] sm:$0xff] }
  0x50   : > { %625 = vst [vmem:[%s2856_s28 + $0x190] sm:$0xff] %v624_v58  ;;  %v628_v60 = vld [vmem:[%s2851_s7 + $0x340] sm:$0xff]  ;;  %v630_v61 = vld [vmem:[%s2851_s7 + $0x350] sm:$0xff]  ;;  %627 = vst [vmem:[%s2856_s28 + $0x198] sm:$0xff] %v626_v59 }
  0x51   : > { %629 = vst [vmem:[%s2856_s28 + $0x1a0] sm:$0xff] %v628_v60  ;;  %631 = vst [vmem:[%s2856_s28 + $0x1a8] sm:$0xff] %v630_v61  ;;  %v632_v62 = vld [vmem:[%s2851_s7 + $0x360] sm:$0xff]  ;;  %v634_v63 = vld [vmem:[%s2851_s7 + $0x370] sm:$0xff] }
  0x52   : > { %v636_v0 = vld [vmem:[%s2851_s7 + $0x380] sm:$0xff]  ;;  %633 = vst [vmem:[%s2856_s28 + $0x1b0] sm:$0xff] %v632_v62  ;;  %635 = vst [vmem:[%s2856_s28 + $0x1b8] sm:$0xff] %v634_v63  ;;  %v638_v1 = vld [vmem:[%s2851_s7 + $0x390] sm:$0xff] }
  0x53   : > { %637 = vst [vmem:[%s2856_s28 + $0x1c0] sm:$0xff] %v636_v0  ;;  %v640_v2 = vld [vmem:[%s2851_s7 + $0x3a0] sm:$0xff]  ;;  %v642_v3 = vld [vmem:[%s2851_s7 + $0x3b0] sm:$0xff]  ;;  %639 = vst [vmem:[%s2856_s28 + $0x1c8] sm:$0xff] %v638_v1 }
  0x54   : > { %641 = vst [vmem:[%s2856_s28 + $0x1d0] sm:$0xff] %v640_v2  ;;  %643 = vst [vmem:[%s2856_s28 + $0x1d8] sm:$0xff] %v642_v3  ;;  %v644_v4 = vld [vmem:[%s2851_s7 + $0x3c0] sm:$0xff]  ;;  %v646_v5 = vld [vmem:[%s2851_s7 + $0x3d0] sm:$0xff] }
  0x55   : > { %v648_v6 = vld [vmem:[%s2851_s7 + $0x3e0] sm:$0xff]  ;;  %645 = vst [vmem:[%s2856_s28 + $0x1e0] sm:$0xff] %v644_v4  ;;  %647 = vst [vmem:[%s2856_s28 + $0x1e8] sm:$0xff] %v646_v5  ;;  %v650_v7 = vld [vmem:[%s2851_s7 + $0x3f0] sm:$0xff] }
  0x56   : > { %649 = vst [vmem:[%s2856_s28 + $0x1f0] sm:$0xff] %v648_v6  ;;  %v652_v8 = vld [vmem:[%s2851_s7 + $0x400] sm:$0xff]  ;;  %v654_v9 = vld [vmem:[%s2851_s7 + $0x410] sm:$0xff]  ;;  %651 = vst [vmem:[%s2856_s28 + $0x1f8] sm:$0xff] %v650_v7 }
  0x57   : > { %653 = vst [vmem:[%s2856_s28 + $0x200] sm:$0xff] %v652_v8  ;;  %655 = vst [vmem:[%s2856_s28 + $0x208] sm:$0xff] %v654_v9  ;;  %v656_v10 = vld [vmem:[%s2851_s7 + $0x420] sm:$0xff]  ;;  %v658_v11 = vld [vmem:[%s2851_s7 + $0x430] sm:$0xff] }
  0x58   : > { %v660_v12 = vld [vmem:[%s2851_s7 + $0x440] sm:$0xff]  ;;  %657 = vst [vmem:[%s2856_s28 + $0x210] sm:$0xff] %v656_v10  ;;  %659 = vst [vmem:[%s2856_s28 + $0x218] sm:$0xff] %v658_v11  ;;  %v662_v13 = vld [vmem:[%s2851_s7 + $0x450] sm:$0xff] }
  0x59   : > { %661 = vst [vmem:[%s2856_s28 + $0x220] sm:$0xff] %v660_v12  ;;  %v664_v14 = vld [vmem:[%s2851_s7 + $0x460] sm:$0xff]  ;;  %v666_v15 = vld [vmem:[%s2851_s7 + $0x470] sm:$0xff]  ;;  %663 = vst [vmem:[%s2856_s28 + $0x228] sm:$0xff] %v662_v13 }
  0x5a   : > { %665 = vst [vmem:[%s2856_s28 + $0x230] sm:$0xff] %v664_v14  ;;  %667 = vst [vmem:[%s2856_s28 + $0x238] sm:$0xff] %v666_v15  ;;  %v668_v16 = vld [vmem:[%s2851_s7 + $0x480] sm:$0xff]  ;;  %v670_v17 = vld [vmem:[%s2851_s7 + $0x490] sm:$0xff] }
  0x5b   : > { %v672_v18 = vld [vmem:[%s2851_s7 + $0x4a0] sm:$0xff]  ;;  %669 = vst [vmem:[%s2856_s28 + $0x240] sm:$0xff] %v668_v16  ;;  %671 = vst [vmem:[%s2856_s28 + $0x248] sm:$0xff] %v670_v17  ;;  %v674_v19 = vld [vmem:[%s2851_s7 + $0x4b0] sm:$0xff] }
  0x5c   : > { %673 = vst [vmem:[%s2856_s28 + $0x250] sm:$0xff] %v672_v18  ;;  %v676_v20 = vld [vmem:[%s2851_s7 + $0x4c0] sm:$0xff]  ;;  %v678_v21 = vld [vmem:[%s2851_s7 + $0x4d0] sm:$0xff]  ;;  %675 = vst [vmem:[%s2856_s28 + $0x258] sm:$0xff] %v674_v19 }
  0x5d   : > { %677 = vst [vmem:[%s2856_s28 + $0x260] sm:$0xff] %v676_v20  ;;  %679 = vst [vmem:[%s2856_s28 + $0x268] sm:$0xff] %v678_v21  ;;  %v680_v22 = vld [vmem:[%s2851_s7 + $0x4e0] sm:$0xff]  ;;  %v682_v23 = vld [vmem:[%s2851_s7 + $0x4f0] sm:$0xff] }
  0x5e   : > { %v684_v24 = vld [vmem:[%s2851_s7 + $0x500] sm:$0xff]  ;;  %681 = vst [vmem:[%s2856_s28 + $0x270] sm:$0xff] %v680_v22  ;;  %683 = vst [vmem:[%s2856_s28 + $0x278] sm:$0xff] %v682_v23  ;;  %v686_v25 = vld [vmem:[%s2851_s7 + $0x510] sm:$0xff] }
  0x5f   : > { %685 = vst [vmem:[%s2856_s28 + $0x280] sm:$0xff] %v684_v24  ;;  %v688_v26 = vld [vmem:[%s2851_s7 + $0x520] sm:$0xff]  ;;  %v690_v27 = vld [vmem:[%s2851_s7 + $0x530] sm:$0xff]  ;;  %687 = vst [vmem:[%s2856_s28 + $0x288] sm:$0xff] %v686_v25 }
  0x60   : > { %689 = vst [vmem:[%s2856_s28 + $0x290] sm:$0xff] %v688_v26  ;;  %691 = vst [vmem:[%s2856_s28 + $0x298] sm:$0xff] %v690_v27  ;;  %v692_v28 = vld [vmem:[%s2851_s7 + $0x540] sm:$0xff]  ;;  %v694_v29 = vld [vmem:[%s2851_s7 + $0x550] sm:$0xff] }
  0x61   : > { %v696_v30 = vld [vmem:[%s2851_s7 + $0x560] sm:$0xff]  ;;  %693 = vst [vmem:[%s2856_s28 + $0x2a0] sm:$0xff] %v692_v28  ;;  %695 = vst [vmem:[%s2856_s28 + $0x2a8] sm:$0xff] %v694_v29  ;;  %v698_v31 = vld [vmem:[%s2851_s7 + $0x570] sm:$0xff] }
  0x62   : > { %697 = vst [vmem:[%s2856_s28 + $0x2b0] sm:$0xff] %v696_v30  ;;  %v700_v32 = vld [vmem:[%s2851_s7 + $0x580] sm:$0xff]  ;;  %v702_v33 = vld [vmem:[%s2851_s7 + $0x590] sm:$0xff]  ;;  %699 = vst [vmem:[%s2856_s28 + $0x2b8] sm:$0xff] %v698_v31 }
  0x63   : > { %701 = vst [vmem:[%s2856_s28 + $0x2c0] sm:$0xff] %v700_v32  ;;  %703 = vst [vmem:[%s2856_s28 + $0x2c8] sm:$0xff] %v702_v33  ;;  %v704_v34 = vld [vmem:[%s2851_s7 + $0x5a0] sm:$0xff]  ;;  %v706_v35 = vld [vmem:[%s2851_s7 + $0x5b0] sm:$0xff] }
  0x64   : > { %v708_v36 = vld [vmem:[%s2851_s7 + $0x5c0] sm:$0xff]  ;;  %705 = vst [vmem:[%s2856_s28 + $0x2d0] sm:$0xff] %v704_v34  ;;  %707 = vst [vmem:[%s2856_s28 + $0x2d8] sm:$0xff] %v706_v35  ;;  %v710_v37 = vld [vmem:[%s2851_s7 + $0x5d0] sm:$0xff] }
  0x65   : > { %709 = vst [vmem:[%s2856_s28 + $0x2e0] sm:$0xff] %v708_v36  ;;  %v712_v38 = vld [vmem:[%s2851_s7 + $0x5e0] sm:$0xff]  ;;  %v714_v39 = vld [vmem:[%s2851_s7 + $0x5f0] sm:$0xff]  ;;  %711 = vst [vmem:[%s2856_s28 + $0x2e8] sm:$0xff] %v710_v37 }
  0x66   : > { %713 = vst [vmem:[%s2856_s28 + $0x2f0] sm:$0xff] %v712_v38  ;;  %715 = vst [vmem:[%s2856_s28 + $0x2f8] sm:$0xff] %v714_v39  ;;  %v716_v40 = vld [vmem:[%s2851_s7 + $0x600] sm:$0xff]  ;;  %v718_v41 = vld [vmem:[%s2851_s7 + $0x610] sm:$0xff] }
  0x67   : > { %v720_v42 = vld [vmem:[%s2851_s7 + $0x620] sm:$0xff]  ;;  %717 = vst [vmem:[%s2856_s28 + $0x300] sm:$0xff] %v716_v40  ;;  %719 = vst [vmem:[%s2856_s28 + $0x308] sm:$0xff] %v718_v41  ;;  %v722_v43 = vld [vmem:[%s2851_s7 + $0x630] sm:$0xff] }
  0x68   : > { %721 = vst [vmem:[%s2856_s28 + $0x310] sm:$0xff] %v720_v42  ;;  %v724_v44 = vld [vmem:[%s2851_s7 + $0x640] sm:$0xff]  ;;  %v726_v45 = vld [vmem:[%s2851_s7 + $0x650] sm:$0xff]  ;;  %723 = vst [vmem:[%s2856_s28 + $0x318] sm:$0xff] %v722_v43 }
  0x69   : > { %725 = vst [vmem:[%s2856_s28 + $0x320] sm:$0xff] %v724_v44  ;;  %727 = vst [vmem:[%s2856_s28 + $0x328] sm:$0xff] %v726_v45  ;;  %v728_v46 = vld [vmem:[%s2851_s7 + $0x660] sm:$0xff]  ;;  %v730_v47 = vld [vmem:[%s2851_s7 + $0x670] sm:$0xff] }
  0x6a   : > { %v732_v48 = vld [vmem:[%s2851_s7 + $0x680] sm:$0xff]  ;;  %729 = vst [vmem:[%s2856_s28 + $0x330] sm:$0xff] %v728_v46  ;;  %731 = vst [vmem:[%s2856_s28 + $0x338] sm:$0xff] %v730_v47  ;;  %v734_v49 = vld [vmem:[%s2851_s7 + $0x690] sm:$0xff] }
  0x6b   : > { %733 = vst [vmem:[%s2856_s28 + $0x340] sm:$0xff] %v732_v48  ;;  %v736_v50 = vld [vmem:[%s2851_s7 + $0x6a0] sm:$0xff]  ;;  %v738_v51 = vld [vmem:[%s2851_s7 + $0x6b0] sm:$0xff]  ;;  %735 = vst [vmem:[%s2856_s28 + $0x348] sm:$0xff] %v734_v49 }
  0x6c   : > { %737 = vst [vmem:[%s2856_s28 + $0x350] sm:$0xff] %v736_v50  ;;  %739 = vst [vmem:[%s2856_s28 + $0x358] sm:$0xff] %v738_v51  ;;  %v740_v52 = vld [vmem:[%s2851_s7 + $0x6c0] sm:$0xff]  ;;  %v742_v53 = vld [vmem:[%s2851_s7 + $0x6d0] sm:$0xff] }
  0x6d   : > { %v744_v54 = vld [vmem:[%s2851_s7 + $0x6e0] sm:$0xff]  ;;  %741 = vst [vmem:[%s2856_s28 + $0x360] sm:$0xff] %v740_v52  ;;  %743 = vst [vmem:[%s2856_s28 + $0x368] sm:$0xff] %v742_v53  ;;  %v746_v55 = vld [vmem:[%s2851_s7 + $0x6f0] sm:$0xff] }
  0x6e   : > { %745 = vst [vmem:[%s2856_s28 + $0x370] sm:$0xff] %v744_v54  ;;  %v748_v56 = vld [vmem:[%s2851_s7 + $0x700] sm:$0xff]  ;;  %v750_v57 = vld [vmem:[%s2851_s7 + $0x710] sm:$0xff]  ;;  %747 = vst [vmem:[%s2856_s28 + $0x378] sm:$0xff] %v746_v55 }
  0x6f   : > { %749 = vst [vmem:[%s2856_s28 + $0x380] sm:$0xff] %v748_v56  ;;  %751 = vst [vmem:[%s2856_s28 + $0x388] sm:$0xff] %v750_v57  ;;  %v752_v58 = vld [vmem:[%s2851_s7 + $0x720] sm:$0xff]  ;;  %v754_v59 = vld [vmem:[%s2851_s7 + $0x730] sm:$0xff] }
  0x70   : > { %v756_v60 = vld [vmem:[%s2851_s7 + $0x740] sm:$0xff]  ;;  %753 = vst [vmem:[%s2856_s28 + $0x390] sm:$0xff] %v752_v58  ;;  %755 = vst [vmem:[%s2856_s28 + $0x398] sm:$0xff] %v754_v59  ;;  %v758_v61 = vld [vmem:[%s2851_s7 + $0x750] sm:$0xff] }
  0x71   : > { %757 = vst [vmem:[%s2856_s28 + $0x3a0] sm:$0xff] %v756_v60  ;;  %v760_v62 = vld [vmem:[%s2851_s7 + $0x760] sm:$0xff]  ;;  %v762_v63 = vld [vmem:[%s2851_s7 + $0x770] sm:$0xff]  ;;  %759 = vst [vmem:[%s2856_s28 + $0x3a8] sm:$0xff] %v758_v61 }
  0x72   : > { %761 = vst [vmem:[%s2856_s28 + $0x3b0] sm:$0xff] %v760_v62  ;;  %763 = vst [vmem:[%s2856_s28 + $0x3b8] sm:$0xff] %v762_v63  ;;  %v764_v0 = vld [vmem:[%s2851_s7 + $0x780] sm:$0xff]  ;;  %v766_v1 = vld [vmem:[%s2851_s7 + $0x790] sm:$0xff] }
  0x73   : > { %v768_v2 = vld [vmem:[%s2851_s7 + $0x7a0] sm:$0xff]  ;;  %765 = vst [vmem:[%s2856_s28 + $0x3c0] sm:$0xff] %v764_v0  ;;  %767 = vst [vmem:[%s2856_s28 + $0x3c8] sm:$0xff] %v766_v1  ;;  %v770_v3 = vld [vmem:[%s2851_s7 + $0x7b0] sm:$0xff] }
  0x74   : > { %769 = vst [vmem:[%s2856_s28 + $0x3d0] sm:$0xff] %v768_v2  ;;  %v772_v4 = vld [vmem:[%s2851_s7 + $0x7c0] sm:$0xff]  ;;  %v774_v5 = vld [vmem:[%s2851_s7 + $0x7d0] sm:$0xff]  ;;  %771 = vst [vmem:[%s2856_s28 + $0x3d8] sm:$0xff] %v770_v3 }
  0x75   : > { %773 = vst [vmem:[%s2856_s28 + $0x3e0] sm:$0xff] %v772_v4  ;;  %775 = vst [vmem:[%s2856_s28 + $0x3e8] sm:$0xff] %v774_v5  ;;  %v776_v6 = vld [vmem:[%s2851_s7 + $0x7e0] sm:$0xff]  ;;  %v778_v7 = vld [vmem:[%s2851_s7 + $0x7f0] sm:$0xff] }
  0x76   : > { %777 = vst [vmem:[%s2856_s28 + $0x3f0] sm:$0xff] %v776_v6  ;;  %779 = vst [vmem:[%s2856_s28 + $0x3f8] sm:$0xff] %v778_v7 }
  0x77 PF: > { %793 = sbr.rel (!%p2827_p11) target bundleno = 126 (0x7e), region = 85  ;;  %s795_s0 = sand.u32 (%p2827_p11), 1, %s2663_s16  }
  0x78   : > { %s2316_s27 = sshll.u32 (%p2827_p11), %s2695_s24, 3  ;;  %s2160_s10 = sshll.u32 (%p2827_p11), %s795_s0, 4 }
  0x79   : > { %s803_s30 = scalar_lea.vmem (%p2827_p11), %s3349_s3, %s2316_s27  ;;  %s797_s6 = scalar_lea.vmem (%p2827_p11), [#allocation5], %s2160_s10 }
  0x7a   : > { %v833_v8 = vld [vmem:[%s803_s30] sm:$0xff] (%p2827_p11)  ;;  %v835_v9 = vld [vmem:[%s803_s30 + $0x10] sm:$0xff] (%p2827_p11) }
  0x7b   : > { %834 = vst [vmem:[%s797_s6] sm:$0xff] (%p2827_p11), %v833_v8  ;;  %836 = vst [vmem:[%s797_s6 + $0x8] sm:$0xff] (%p2827_p11), %v835_v9 }
  0x7e PF: > { %p2163_p1 = scmp.ge.s32.totalorder %s2699_s25, 1  ;;  %p841_p2 = scmp.lt.s32.totalorder %s2699_s25, 11 }
  0x80   : > { %p842_p3 = pnand %p2163_p1, %p841_p2 }
  0x81   : > { %s848_s7 = sand.u32 (!%p842_p3), 1, %s2675_s19   ;;  %s855_s14 = sand.u32 (!%p842_p3), 1, %s2667_s17  }
  0x82   : > { %845 = sbr.rel (%p842_p3) target bundleno = 518 (0x206), region = 123  ;;  %s2164_s8 = sshll.u32 (!%p842_p3), %s848_s7, 6 }
  0x83   : > { %s2165_s9 = sshll.u32 (!%p842_p3), %s855_s14, 10  ;;  %s862_s11 = sand.u32 (!%p842_p3), 1, %s2659_s15  }
  0x84   : > { %s2168_s28 = sshll.u32 (!%p842_p3), %s2687_s22, 1  ;;  %s3124_s0 = sshll.u32 (!%p842_p3), %s862_s11, 4 }
  0x85   : > { %p903_p4 = scmp.lt.s32.totalorder (!%p842_p3), %s2168_s28, 3  ;;  %s3132_s5 = scalar_lea.vmem (!%p842_p3), [#allocation3], %s2164_s8 }
  0x86   : > { %s3134_s19 = scalar_lea.vmem (!%p842_p3), [#allocation4], %s2165_s9  ;;  %s864_s17 = scalar_lea.vmem (!%p842_p3), [#allocation5], %s3124_s0 }
  0x87   : > { %s3138_s30 = scalar_lea.vmem (!%p842_p3), [#allocation6], %s3124_s0  ;;  %p2169_p5 = scmp.ne.s32.totalorder (!%p842_p3), %s2683_s21, 0 }
  0x89   : > { %s3382_s28 = smov (!%p903_p4, %s2168_s28), 3  ;;  %914 = sbr.rel (%p2169_p5) target bundleno = 144 (0x90), region = 139 }
  0x8a   : > { %s905_s26 = scalar_lea.vmem %s3348_s2, %s3382_s28  ;;  %v2701_v10 = vmov (!%p2169_p5), 0.0  }
  0x8b   : > { %915 = vst [vmem:[#allocation2] sm:$0xff] (!%p2169_p5), %v2701_v10  ;;  %916 = vst [vmem:[#allocation2 + $0x8] sm:$0xff] (!%p2169_p5), %v2701_v10 }
  0x8c   : > { %917 = vst [vmem:[#allocation2 + $0x10] sm:$0xff] (!%p2169_p5), %v2701_v10  ;;  %918 = vst [vmem:[#allocation2 + $0x18] sm:$0xff] (!%p2169_p5), %v2701_v10 }
  0x90 PF: > { %v2421_v11 = vld [vmem:[%s3134_s19 + $0x4] ss:$8 sps:$4 sm:$0xff]   ;;  %v2425_v13 = vld [vmem:[%s3134_s19] ss:$8 sps:$4 sm:$0xff]   ;;  %v2427_v15 = vld [vmem:[%s3134_s19 + $0x14] ss:$8 sps:$4 sm:$0xff]  }
  0x91   : > { %v2423_v12 = vld [vmem:[%s3134_s19 + $0x204] ss:$8 sps:$4 sm:$0xff]   ;;  %1739 = vmatprep.subr.bf16.mxu1 %v2421_v11  ;;  %v2426_v14 = vld [vmem:[%s3134_s19 + $0x200] ss:$8 sps:$4 sm:$0xff]   ;;  %v2429_v16 = vld [vmem:[%s3134_s19 + $0x214] ss:$8 sps:$4 sm:$0xff]  }
  0x92   : > { %1825 = vmatprep.subr.bf16.mxu0 %v2423_v12  ;;  %1740 = vmatpush1.bf16.msra.mxu1 %v2425_v13  ;;  %v2431_v17 = vld [vmem:[%s3134_s19 + $0x10] ss:$8 sps:$4 sm:$0xff]   ;;  %v2433_v19 = vld [vmem:[%s3134_s19 + $0x24] ss:$8 sps:$4 sm:$0xff]   ;;  %v2437_v21 = vld [vmem:[%s3134_s19 + $0x20] ss:$8 sps:$4 sm:$0xff]  }
  0x93   : > { %1826 = vmatpush1.bf16.msra.mxu0 %v2426_v14  ;;  %1741 = vmatprep.subr.bf16.mxu1 %v2427_v15  ;;  %v2432_v18 = vld [vmem:[%s3134_s19 + $0x210] ss:$8 sps:$4 sm:$0xff]   ;;  %v2435_v20 = vld [vmem:[%s3134_s19 + $0x224] ss:$8 sps:$4 sm:$0xff]   ;;  %v2438_v22 = vld [vmem:[%s3134_s19 + $0x220] ss:$8 sps:$4 sm:$0xff]  }
  0x94   : > { %1827 = vmatprep.subr.bf16.mxu0 %v2429_v16  ;;  %v2439_v23 = vld [vmem:[%s3134_s19 + $0x34] ss:$8 sps:$4 sm:$0xff]   ;;  %v2443_v25 = vld [vmem:[%s3134_s19 + $0x30] ss:$8 sps:$4 sm:$0xff]   ;;  %v2445_v27 = vld [vmem:[%s3134_s19 + $0x44] ss:$8 sps:$4 sm:$0xff]  }
  0x95   : > { %v2441_v24 = vld [vmem:[%s3134_s19 + $0x234] ss:$8 sps:$4 sm:$0xff]   ;;  %v2444_v26 = vld [vmem:[%s3134_s19 + $0x230] ss:$8 sps:$4 sm:$0xff]   ;;  %v2447_v28 = vld [vmem:[%s3134_s19 + $0x244] ss:$8 sps:$4 sm:$0xff]  }
  0x96   : > { %1742 = vmatpush1.bf16.msra.mxu1 %v2431_v17  ;;  %v2449_v29 = vld [vmem:[%s3134_s19 + $0x40] ss:$8 sps:$4 sm:$0xff]   ;;  %v2451_v31 = vld [vmem:[%s3134_s19 + $0x54] ss:$8 sps:$4 sm:$0xff]   ;;  %v2455_v33 = vld [vmem:[%s3134_s19 + $0x50] ss:$8 sps:$4 sm:$0xff]  }
  0x97   : > { %1828 = vmatpush1.bf16.msra.mxu0 %v2432_v18  ;;  %1743 = vmatprep.subr.bf16.mxu1 %v2433_v19  ;;  %v2450_v30 = vld [vmem:[%s3134_s19 + $0x240] ss:$8 sps:$4 sm:$0xff]   ;;  %v2453_v32 = vld [vmem:[%s3134_s19 + $0x254] ss:$8 sps:$4 sm:$0xff]   ;;  %v2456_v34 = vld [vmem:[%s3134_s19 + $0x250] ss:$8 sps:$4 sm:$0xff]  }
  0x98   : > { %1829 = vmatprep.subr.bf16.mxu0 %v2435_v20  ;;  %v2457_v35 = vld [vmem:[%s3134_s19 + $0x64] ss:$8 sps:$4 sm:$0xff]   ;;  %v2461_v37 = vld [vmem:[%s3134_s19 + $0x60] ss:$8 sps:$4 sm:$0xff]   ;;  %v2463_v39 = vld [vmem:[%s3134_s19 + $0x74] ss:$8 sps:$4 sm:$0xff]  }
  0x99   : > { %v2459_v36 = vld [vmem:[%s3134_s19 + $0x264] ss:$8 sps:$4 sm:$0xff]   ;;  %v2462_v38 = vld [vmem:[%s3134_s19 + $0x260] ss:$8 sps:$4 sm:$0xff]   ;;  %v2465_v40 = vld [vmem:[%s3134_s19 + $0x274] ss:$8 sps:$4 sm:$0xff]  }
  0x9a   : > { %1744 = vmatpush1.bf16.msra.mxu1 %v2437_v21  ;;  %v2467_v41 = vld [vmem:[%s3134_s19 + $0x70] ss:$8 sps:$4 sm:$0xff]   ;;  %v2469_v43 = vld [vmem:[%s3134_s19 + $0x84] ss:$8 sps:$4 sm:$0xff]   ;;  %v2473_v45 = vld [vmem:[%s3134_s19 + $0x80] ss:$8 sps:$4 sm:$0xff]  }
  0x9b   : > { %1830 = vmatpush1.bf16.msra.mxu0 %v2438_v22  ;;  %1745 = vmatprep.subr.bf16.mxu1 %v2439_v23  ;;  %v2468_v42 = vld [vmem:[%s3134_s19 + $0x270] ss:$8 sps:$4 sm:$0xff]   ;;  %v2471_v44 = vld [vmem:[%s3134_s19 + $0x284] ss:$8 sps:$4 sm:$0xff]   ;;  %v2474_v46 = vld [vmem:[%s3134_s19 + $0x280] ss:$8 sps:$4 sm:$0xff]  }
  0x9c   : > { %1831 = vmatprep.subr.bf16.mxu0 %v2441_v24  ;;  %v2475_v47 = vld [vmem:[%s3134_s19 + $0x94] ss:$8 sps:$4 sm:$0xff]   ;;  %v2479_v49 = vld [vmem:[%s3134_s19 + $0x90] ss:$8 sps:$4 sm:$0xff]   ;;  %v2481_v51 = vld [vmem:[%s3134_s19 + $0xa4] ss:$8 sps:$4 sm:$0xff]  }
  0x9d   : > { %v2477_v48 = vld [vmem:[%s3134_s19 + $0x294] ss:$8 sps:$4 sm:$0xff]   ;;  %v2480_v50 = vld [vmem:[%s3134_s19 + $0x290] ss:$8 sps:$4 sm:$0xff]   ;;  %v2483_v52 = vld [vmem:[%s3134_s19 + $0x2a4] ss:$8 sps:$4 sm:$0xff]  }
  0x9e   : > { %1746 = vmatpush1.bf16.msra.mxu1 %v2443_v25  ;;  %v2485_v53 = vld [vmem:[%s3134_s19 + $0xa0] ss:$8 sps:$4 sm:$0xff]   ;;  %v2487_v55 = vld [vmem:[%s3134_s19 + $0xb4] ss:$8 sps:$4 sm:$0xff]   ;;  %v2491_v57 = vld [vmem:[%s3134_s19 + $0xb0] ss:$8 sps:$4 sm:$0xff]  }
  0x9f   : > { %1832 = vmatpush1.bf16.msra.mxu0 %v2444_v26  ;;  %1747 = vmatprep.subr.bf16.mxu1 %v2445_v27  ;;  %v2486_v54 = vld [vmem:[%s3134_s19 + $0x2a0] ss:$8 sps:$4 sm:$0xff]   ;;  %v2489_v56 = vld [vmem:[%s3134_s19 + $0x2b4] ss:$8 sps:$4 sm:$0xff]   ;;  %v2492_v58 = vld [vmem:[%s3134_s19 + $0x2b0] ss:$8 sps:$4 sm:$0xff]  }
  0xa0   : > { %1833 = vmatprep.subr.bf16.mxu0 %v2447_v28  ;;  %v923_v59 = vld [vmem:[%s3132_s5] sm:$0xff]  ;;  %v925_v0 = vld [vmem:[%s3132_s5 + $0x10] sm:$0xff]  ;;  %p2306_p6 = scmp.ne.s32.totalorder %s2683_s21, 4 }
  0xa1   : > { %v927_v60 = vld [vmem:[%s3132_s5 + $0x20] sm:$0xff]  ;;  %v929_v1 = vld [vmem:[%s3132_s5 + $0x30] sm:$0xff] }
  0xa2   : > { %1748 = vmatpush1.bf16.msra.mxu1 %v2449_v29  ;;  %v2493_v61 = vld [vmem:[%s3134_s19 + $0xc4] ss:$8 sps:$4 sm:$0xff]   ;;  %v2171_v63 = vcombine.high %v923_v59, %v927_v60  ;;  %v2175_v2 = vcombine.high %v925_v0, %v929_v1  ;;  %v2497_v3 = vld [vmem:[%s3134_s19 + $0xc0] ss:$8 sps:$4 sm:$0xff]   ;;  %v2499_v5 = vld [vmem:[%s3134_s19 + $0xd4] ss:$8 sps:$4 sm:$0xff]   ;;  %v2170_v19 = vcombine.low %v923_v59, %v927_v60  ;;  %v2174_v21 = vcombine.low %v925_v0, %v929_v1 }
  0xa3   : > { %1834 = vmatpush1.bf16.msra.mxu0 %v2450_v30  ;;  %1749 = vmatprep.subr.bf16.mxu1 %v2451_v31  ;;  %v2495_v62 = vld [vmem:[%s3134_s19 + $0x2c4] ss:$8 sps:$4 sm:$0xff]   ;;  %v2498_v4 = vld [vmem:[%s3134_s19 + $0x2c0] ss:$8 sps:$4 sm:$0xff]   ;;  %v2501_v6 = vld [vmem:[%s3134_s19 + $0x2d4] ss:$8 sps:$4 sm:$0xff]  }
  0xa4   : > { %1835 = vmatprep.subr.bf16.mxu0 %v2453_v32  ;;  %1771 = vmatprep.mubr.bf16.mxu1 %v2171_v63  ;;  %v2503_v7 = vld [vmem:[%s3134_s19 + $0xd0] ss:$8 sps:$4 sm:$0xff]   ;;  %v2505_v9 = vld [vmem:[%s3134_s19 + $0xe4] ss:$8 sps:$4 sm:$0xff]   ;;  %v2509_v11 = vld [vmem:[%s3134_s19 + $0xe0] ss:$8 sps:$4 sm:$0xff]  }
  0xa5   : > { %1857 = vmatprep.mubr.bf16.mxu0 %v2175_v2  ;;  %v2504_v8 = vld [vmem:[%s3134_s19 + $0x2d0] ss:$8 sps:$4 sm:$0xff]   ;;  %v2507_v10 = vld [vmem:[%s3134_s19 + $0x2e4] ss:$8 sps:$4 sm:$0xff]   ;;  %v2510_v12 = vld [vmem:[%s3134_s19 + $0x2e0] ss:$8 sps:$4 sm:$0xff]  }
  0xa6   : > { %1750 = vmatpush1.bf16.msra.mxu1 %v2455_v33  ;;  %v2511_v13 = vld [vmem:[%s3134_s19 + $0xf4] ss:$8 sps:$4 sm:$0xff]   ;;  %v2515_v15 = vld [vmem:[%s3134_s19 + $0xf0] ss:$8 sps:$4 sm:$0xff]   ;;  %v2519_v17 = vld [vmem:[%s3134_s19 + $0x104] ss:$8 sps:$4 sm:$0xff]  }
  0xa7   : > { %1836 = vmatpush1.bf16.msra.mxu0 %v2456_v34  ;;  %1751 = vmatprep.subr.bf16.mxu1 %v2457_v35  ;;  %v2513_v14 = vld [vmem:[%s3134_s19 + $0x2f4] ss:$8 sps:$4 sm:$0xff]   ;;  %v2516_v16 = vld [vmem:[%s3134_s19 + $0x2f0] ss:$8 sps:$4 sm:$0xff]   ;;  %v2522_v18 = vld [vmem:[%s3134_s19 + $0x304] ss:$8 sps:$4 sm:$0xff]  }
  0xa8   : > { %1837 = vmatprep.subr.bf16.mxu0 %v2459_v36  ;;  %v2517_v20 = vld [vmem:[%s3134_s19 + $0x100] ss:$8 sps:$4 sm:$0xff]   ;;  %v2525_v23 = vld [vmem:[%s3134_s19 + $0x114] ss:$8 sps:$4 sm:$0xff]   ;;  %v2523_v25 = vld [vmem:[%s3134_s19 + $0x110] ss:$8 sps:$4 sm:$0xff]  }
  0xa9   : > { %v2520_v22 = vld [vmem:[%s3134_s19 + $0x300] ss:$8 sps:$4 sm:$0xff]   ;;  %v2528_v24 = vld [vmem:[%s3134_s19 + $0x314] ss:$8 sps:$4 sm:$0xff]   ;;  %v2526_v26 = vld [vmem:[%s3134_s19 + $0x310] ss:$8 sps:$4 sm:$0xff]  }
  0xaa   : > { %1752 = vmatpush1.bf16.msra.mxu1 %v2461_v37  ;;  %v2531_v27 = vld [vmem:[%s3134_s19 + $0x124] ss:$8 sps:$4 sm:$0xff]   ;;  %v2529_v29 = vld [vmem:[%s3134_s19 + $0x120] ss:$8 sps:$4 sm:$0xff]   ;;  %v2537_v31 = vld [vmem:[%s3134_s19 + $0x134] ss:$8 sps:$4 sm:$0xff]  }
  0xab   : > { %1838 = vmatpush1.bf16.msra.mxu0 %v2462_v38  ;;  %1753 = vmatprep.subr.bf16.mxu1 %v2463_v39  ;;  %v2534_v28 = vld [vmem:[%s3134_s19 + $0x324] ss:$8 sps:$4 sm:$0xff]   ;;  %v2532_v30 = vld [vmem:[%s3134_s19 + $0x320] ss:$8 sps:$4 sm:$0xff]   ;;  %v2540_v32 = vld [vmem:[%s3134_s19 + $0x334] ss:$8 sps:$4 sm:$0xff]  }
  0xac   : > { %1839 = vmatprep.subr.bf16.mxu0 %v2465_v40  ;;  %v2535_v33 = vld [vmem:[%s3134_s19 + $0x130] ss:$8 sps:$4 sm:$0xff]   ;;  %v2543_v35 = vld [vmem:[%s3134_s19 + $0x144] ss:$8 sps:$4 sm:$0xff]   ;;  %v2541_v37 = vld [vmem:[%s3134_s19 + $0x140] ss:$8 sps:$4 sm:$0xff]  }
  0xad   : > { %v2538_v34 = vld [vmem:[%s3134_s19 + $0x330] ss:$8 sps:$4 sm:$0xff]   ;;  %v2546_v36 = vld [vmem:[%s3134_s19 + $0x344] ss:$8 sps:$4 sm:$0xff]   ;;  %v2544_v38 = vld [vmem:[%s3134_s19 + $0x340] ss:$8 sps:$4 sm:$0xff]  }
  0xae   : > { %1754 = vmatpush1.bf16.msra.mxu1 %v2467_v41  ;;  %v2549_v39 = vld [vmem:[%s3134_s19 + $0x154] ss:$8 sps:$4 sm:$0xff]   ;;  %v2547_v41 = vld [vmem:[%s3134_s19 + $0x150] ss:$8 sps:$4 sm:$0xff]   ;;  %v2565_v59 = vld [vmem:[%s3134_s19 + $0x180] ss:$8 sps:$4 sm:$0xff]  }
  0xaf   : > { %1840 = vmatpush1.bf16.msra.mxu0 %v2468_v42  ;;  %1755 = vmatprep.subr.bf16.mxu1 %v2469_v43  ;;  %v2552_v40 = vld [vmem:[%s3134_s19 + $0x354] ss:$8 sps:$4 sm:$0xff]   ;;  %v2550_v42 = vld [vmem:[%s3134_s19 + $0x350] ss:$8 sps:$4 sm:$0xff]   ;;  %v2555_v43 = vld [vmem:[%s3134_s19 + $0x164] ss:$8 sps:$4 sm:$0xff]  }
  0xb0   : > { %1841 = vmatprep.subr.bf16.mxu0 %v2471_v44  ;;  %v2558_v44 = vld [vmem:[%s3134_s19 + $0x364] ss:$8 sps:$4 sm:$0xff]   ;;  %v2568_v60 = vld [vmem:[%s3134_s19 + $0x380] ss:$8 sps:$4 sm:$0xff]   ;;  %v2571_v63 = vld [vmem:[%s3134_s19 + $0x190] ss:$8 sps:$4 sm:$0xff]  }
  0xb1   : > { %v2574_v0 = vld [vmem:[%s3134_s19 + $0x390] ss:$8 sps:$4 sm:$0xff]   ;;  %v2579_v1 = vld [vmem:[%s3134_s19 + $0x1a4] ss:$8 sps:$4 sm:$0xff]  }
  0xb2   : > { %1756 = vmatpush1.bf16.msra.mxu1 %v2473_v45  ;;  %v3236_v45 = vld [vmem:[%s3132_s5 + $0x8] sm:$0xff] }
  0xb3   : > { %1842 = vmatpush1.bf16.msra.mxu0 %v2474_v46  ;;  %1757 = vmatprep.subr.bf16.mxu1 %v2475_v47  ;;  %v3239_v46 = vld [vmem:[%s3132_s5 + $0x28] sm:$0xff]  ;;  %v3242_v47 = vld [vmem:[%s3132_s5 + $0x18] sm:$0xff] }
  0xb4   : > { %1843 = vmatprep.subr.bf16.mxu0 %v2477_v48  ;;  %v3245_v48 = vld [vmem:[%s3132_s5 + $0x38] sm:$0xff]  ;;  %v2582_v2 = vld [vmem:[%s3134_s19 + $0x3a4] ss:$8 sps:$4 sm:$0xff]  }
  0xb6   : > { %1758 = vmatpush1.bf16.msra.mxu1 %v2479_v49  ;;  %v2553_v49 = vld [vmem:[%s3134_s19 + $0x160] ss:$8 sps:$4 sm:$0xff]  }
  0xb7   : > { %1844 = vmatpush1.bf16.msra.mxu0 %v2480_v50  ;;  %1759 = vmatprep.subr.bf16.mxu1 %v2481_v51  ;;  %v2556_v50 = vld [vmem:[%s3134_s19 + $0x360] ss:$8 sps:$4 sm:$0xff]   ;;  %v2173_v51 = vcombine.high %v3236_v45, %v3239_v46 }
  0xb8   : > { %1845 = vmatprep.subr.bf16.mxu0 %v2483_v52  ;;  %v2561_v52 = vld [vmem:[%s3134_s19 + $0x174] ss:$8 sps:$4 sm:$0xff]  }
  0xba   : > { %1760 = vmatpush1.bf16.msra.mxu1 %v2485_v53  ;;  %v2564_v53 = vld [vmem:[%s3134_s19 + $0x374] ss:$8 sps:$4 sm:$0xff]  }
  0xbb   : > { %1846 = vmatpush1.bf16.msra.mxu0 %v2486_v54  ;;  %1761 = vmatprep.subr.bf16.mxu1 %v2487_v55  ;;  %v2177_v54 = vcombine.high %v3242_v47, %v3245_v48  ;;  %v2559_v55 = vld [vmem:[%s3134_s19 + $0x170] ss:$8 sps:$4 sm:$0xff]  }
  0xbc   : > { %1847 = vmatprep.subr.bf16.mxu0 %v2489_v56  ;;  %v2562_v56 = vld [vmem:[%s3134_s19 + $0x370] ss:$8 sps:$4 sm:$0xff]  }
  0xbe   : > { %1762 = vmatpush1.bf16.msra.mxu1 %v2491_v57  ;;  %v2567_v57 = vld [vmem:[%s3134_s19 + $0x184] ss:$8 sps:$4 sm:$0xff]  }
  0xbf   : > { %1848 = vmatpush1.bf16.msra.mxu0 %v2492_v58  ;;  %1763 = vmatprep.subr.bf16.mxu1 %v2493_v61  ;;  %v2570_v58 = vld [vmem:[%s3134_s19 + $0x384] ss:$8 sps:$4 sm:$0xff]   ;;  %v2573_v61 = vld [vmem:[%s3134_s19 + $0x194] ss:$8 sps:$4 sm:$0xff]  }
  0xc0   : > { %1849 = vmatprep.subr.bf16.mxu0 %v2495_v62  ;;  %v2576_v62 = vld [vmem:[%s3134_s19 + $0x394] ss:$8 sps:$4 sm:$0xff]  }
  0xc2   : > { %1764 = vmatpush1.bf16.msra.mxu1 %v2497_v3  ;;  %v2577_v3 = vld [vmem:[%s3134_s19 + $0x1a0] ss:$8 sps:$4 sm:$0xff]  }
  0xc3   : > { %1850 = vmatpush1.bf16.msra.mxu0 %v2498_v4  ;;  %1765 = vmatprep.subr.bf16.mxu1 %v2499_v5  ;;  %v2580_v4 = vld [vmem:[%s3134_s19 + $0x3a0] ss:$8 sps:$4 sm:$0xff]   ;;  %v2585_v5 = vld [vmem:[%s3134_s19 + $0x1b4] ss:$8 sps:$4 sm:$0xff]  }
  0xc4   : > { %1851 = vmatprep.subr.bf16.mxu0 %v2501_v6  ;;  %v2588_v6 = vld [vmem:[%s3134_s19 + $0x3b4] ss:$8 sps:$4 sm:$0xff]  }
  0xc6   : > { %1766 = vmatpush1.bf16.msra.mxu1 %v2503_v7  ;;  %v2583_v7 = vld [vmem:[%s3134_s19 + $0x1b0] ss:$8 sps:$4 sm:$0xff]  }
  0xc7   : > { %1852 = vmatpush1.bf16.msra.mxu0 %v2504_v8  ;;  %1767 = vmatprep.subr.bf16.mxu1 %v2505_v9  ;;  %v2586_v8 = vld [vmem:[%s3134_s19 + $0x3b0] ss:$8 sps:$4 sm:$0xff]   ;;  %v2591_v9 = vld [vmem:[%s3134_s19 + $0x1c4] ss:$8 sps:$4 sm:$0xff]  }
  0xc8   : > { %1853 = vmatprep.subr.bf16.mxu0 %v2507_v10  ;;  %v2594_v10 = vld [vmem:[%s3134_s19 + $0x3c4] ss:$8 sps:$4 sm:$0xff]  }
  0xca   : > { %1768 = vmatpush1.bf16.msra.mxu1 %v2509_v11  ;;  %v2589_v11 = vld [vmem:[%s3134_s19 + $0x1c0] ss:$8 sps:$4 sm:$0xff]  }
  0xcb   : > { %1854 = vmatpush1.bf16.msra.mxu0 %v2510_v12  ;;  %1769 = vmatprep.subr.bf16.mxu1 %v2511_v13  ;;  %v2592_v12 = vld [vmem:[%s3134_s19 + $0x3c0] ss:$8 sps:$4 sm:$0xff]   ;;  %v2597_v13 = vld [vmem:[%s3134_s19 + $0x1d4] ss:$8 sps:$4 sm:$0xff]  }
  0xcc   : > { %1855 = vmatprep.subr.bf16.mxu0 %v2513_v14  ;;  %v2600_v14 = vld [vmem:[%s3134_s19 + $0x3d4] ss:$8 sps:$4 sm:$0xff]  }
  0xce   : > { %1770 = vmatpush1.bf16.msra.mxu1 %v2515_v15  ;;  %v2595_v15 = vld [vmem:[%s3134_s19 + $0x1d0] ss:$8 sps:$4 sm:$0xff]  }
  0xcf   : > { %1856 = vmatpush1.bf16.msra.mxu0 %v2516_v16  ;;  %1782 = vmatprep.subr.bf16.mxu1 %v2519_v17  ;;  %v2598_v16 = vld [vmem:[%s3134_s19 + $0x3d0] ss:$8 sps:$4 sm:$0xff]   ;;  %v2603_v17 = vld [vmem:[%s3134_s19 + $0x1e4] ss:$8 sps:$4 sm:$0xff]  }
  0xd0   : > { %1868 = vmatprep.subr.bf16.mxu0 %v2522_v18  ;;  %v2606_v18 = vld [vmem:[%s3134_s19 + $0x3e4] ss:$8 sps:$4 sm:$0xff]  }
  0xd1   : > { %1772 = vmatmul.mubr.bf16.vlgmr.msra.gmra.mrb[0].mxu1 %v2170_v19  ;;  %v2601_v19 = vld [vmem:[%s3134_s19 + $0x1e0] ss:$8 sps:$4 sm:$0xff]  }
  0xd2   : > { %1858 = vmatmul.mubr.bf16.vlgmr.msra.gmra.mrb[0].mxu0 %v2174_v21  ;;  %1783 = vmatpush1.bf16.msra.mxu1 %v2517_v20  ;;  %v2604_v20 = vld [vmem:[%s3134_s19 + $0x3e0] ss:$8 sps:$4 sm:$0xff]   ;;  %v2609_v21 = vld [vmem:[%s3134_s19 + $0x1f4] ss:$8 sps:$4 sm:$0xff]  }
  0xd3   : > { %1869 = vmatpush1.bf16.msra.mxu0 %v2520_v22  ;;  %1784 = vmatprep.subr.bf16.mxu1 %v2525_v23  ;;  %v2612_v22 = vld [vmem:[%s3134_s19 + $0x3f4] ss:$8 sps:$4 sm:$0xff]   ;;  %v2607_v23 = vld [vmem:[%s3134_s19 + $0x1f0] ss:$8 sps:$4 sm:$0xff]  }
  0xd4   : > { %1870 = vmatprep.subr.bf16.mxu0 %v2528_v24  ;;  %1814 = vmatprep.mubr.bf16.mxu1 %v2173_v51  ;;  %v2610_v24 = vld [vmem:[%s3134_s19 + $0x3f0] ss:$8 sps:$4 sm:$0xff]  }
  0xd5   : > { %1900 = vmatprep.mubr.bf16.mxu0 %v2177_v54  ;;  %v1944_v51 = vld [vmem:[%s864_s17 + $0x8] sm:$0xff] (!%p2306_p6) }
  0xd6   : > { %1785 = vmatpush1.bf16.msra.mxu1 %v2523_v25  ;;  %v2172_v25 = vcombine.low %v3236_v45, %v3239_v46 }
  0xd7   : > { %1871 = vmatpush1.bf16.msra.mxu0 %v2526_v26  ;;  %1786 = vmatprep.subr.bf16.mxu1 %v2531_v27  ;;  %v2176_v26 = vcombine.low %v3242_v47, %v3245_v48  ;;  %v1929_v47 = vlaneseq (!%p2306_p6) }
  0xd8   : > { %1872 = vmatprep.subr.bf16.mxu0 %v2534_v28  ;;  %v919_v28 = vld [vmem:[#allocation2] sm:$0xff] }
  0xd9   : > { %v1930_v48 = vshrl.u32 (!%p2306_p6), %v1929_v47, 7 }
  0xda   : > { %1787 = vmatpush1.bf16.msra.mxu1 %v2529_v29 }
  0xdb   : > { %1873 = vmatpush1.bf16.msra.mxu0 %v2532_v30  ;;  %1788 = vmatprep.subr.bf16.mxu1 %v2537_v31  ;;  %v1935_v54 = vsub.s32 (!%p2306_p6), 1, %v1930_v48 }
  0xdc   : > { %1874 = vmatprep.subr.bf16.mxu0 %v2540_v32  ;;  %v920_v32 = vld [vmem:[#allocation2 + $0x8] sm:$0xff] }
  0xde   : > { %1789 = vmatpush1.bf16.msra.mxu1 %v2535_v33 }
  0xdf   : > { %1875 = vmatpush1.bf16.msra.mxu0 %v2538_v34  ;;  %1790 = vmatprep.subr.bf16.mxu1 %v2543_v35 }
  0xe0   : > { %1876 = vmatprep.subr.bf16.mxu0 %v2546_v36  ;;  %v921_v36 = vld [vmem:[#allocation2 + $0x10] sm:$0xff] }
  0xe2   : > { %1791 = vmatpush1.bf16.msra.mxu1 %v2541_v37 }
  0xe3   : > { %1877 = vmatpush1.bf16.msra.mxu0 %v2544_v38  ;;  %1792 = vmatprep.subr.bf16.mxu1 %v2549_v39 }
  0xe4   : > { %1878 = vmatprep.subr.bf16.mxu0 %v2552_v40 }
  0xe6   : > { %1793 = vmatpush1.bf16.msra.mxu1 %v2547_v41  ;;  %v922_v41 = vld [vmem:[#allocation2 + $0x18] sm:$0xff] }
  0xe7   : > { %1879 = vmatpush1.bf16.msra.mxu0 %v2550_v42  ;;  %1794 = vmatprep.subr.bf16.mxu1 %v2555_v43 }
  0xe8   : > { %1880 = vmatprep.subr.bf16.mxu0 %v2558_v44 }
  0xea   : > { %1795 = vmatpush1.bf16.msra.mxu1 %v2553_v49  ;;  %v1943_v49 = vld [vmem:[%s864_s17] sm:$0xff] (!%p2306_p6) }
  0xeb   : > { %1881 = vmatpush1.bf16.msra.mxu0 %v2556_v50  ;;  %1796 = vmatprep.subr.bf16.mxu1 %v2561_v52  ;;  %v1927_v50 = vld [vmem:[%s905_s26] sm:$0x3] (!%p2306_p6) }
  0xec   : > { %1882 = vmatprep.subr.bf16.mxu0 %v2564_v53  ;;  %v1931_v53 = vsub.s32 (!%p2306_p6), 0, %v1930_v48 }
  0xee   : > { %1797 = vmatpush1.bf16.msra.mxu1 %v2559_v55 }
  0xef   : > { %1883 = vmatpush1.bf16.msra.mxu0 %v2562_v56  ;;  %1798 = vmatprep.subr.bf16.mxu1 %v2567_v57  ;;  %v1945_v56 = vunpack.c.l.bf16 (!%p2306_p6), %v1943_v49  ;;  %v1946_v57 = vunpack.c.h.bf16 (!%p2306_p6), %v1943_v49 }
  0xf0   : > { %1884 = vmatprep.subr.bf16.mxu0 %v2570_v58 }
  0xf2   : > { %1799 = vmatpush1.bf16.msra.mxu1 %v2565_v59 }
  0xf3   : > { %1885 = vmatpush1.bf16.msra.mxu0 %v2568_v60  ;;  %1800 = vmatprep.subr.bf16.mxu1 %v2573_v61  ;;  %v1932_v60 = vrot.slane (!%p2306_p6), %v1927_v50, %v1931_v53  ;;  %v1936_v61 = vrot.slane (!%p2306_p6), %v1927_v50, %v1935_v54 }
  0xf4   : > { %1886 = vmatprep.subr.bf16.mxu0 %v2576_v62  ;;  %v1947_v62 = vunpack.c.l.bf16 (!%p2306_p6), %v1944_v51 }
  0xf6   : > { %1801 = vmatpush1.bf16.msra.mxu1 %v2571_v63  ;;  %v1948_v63 = vunpack.c.h.bf16 (!%p2306_p6), %v1944_v51 }
  0xf7   : > { %1887 = vmatpush1.bf16.msra.mxu0 %v2574_v0  ;;  %1802 = vmatprep.subr.bf16.mxu1 %v2579_v1 }
  0xf8   : > { %1888 = vmatprep.subr.bf16.mxu0 %v2582_v2 }
  0xfa   : > { %1803 = vmatpush1.bf16.msra.mxu1 %v2577_v3 }
  0xfb   : > { %1889 = vmatpush1.bf16.msra.mxu0 %v2580_v4  ;;  %1804 = vmatprep.subr.bf16.mxu1 %v2585_v5 }
  0xfc   : > { %1890 = vmatprep.subr.bf16.mxu0 %v2588_v6 }
  0xfe   : > { %1805 = vmatpush1.bf16.msra.mxu1 %v2583_v7 }
  0xff   : > { %1891 = vmatpush1.bf16.msra.mxu0 %v2586_v8  ;;  %1806 = vmatprep.subr.bf16.mxu1 %v2591_v9 }
 0x100   : > { %1892 = vmatprep.subr.bf16.mxu0 %v2594_v10 }
 0x102   : > { %1807 = vmatpush1.bf16.msra.mxu1 %v2589_v11 }
 0x103   : > { %1893 = vmatpush1.bf16.msra.mxu0 %v2592_v12  ;;  %1808 = vmatprep.subr.bf16.mxu1 %v2597_v13 }
 0x104   : > { %1894 = vmatprep.subr.bf16.mxu0 %v2600_v14 }
 0x106   : > { %1809 = vmatpush1.bf16.msra.mxu1 %v2595_v15 }
 0x107   : > { %1895 = vmatpush1.bf16.msra.mxu0 %v2598_v16  ;;  %1810 = vmatprep.subr.bf16.mxu1 %v2603_v17 }
 0x108   : > { %1896 = vmatprep.subr.bf16.mxu0 %v2606_v18 }
 0x10a   : > { %1811 = vmatpush1.bf16.msra.mxu1 %v2601_v19 }
 0x10b   : > { %1897 = vmatpush1.bf16.msra.mxu0 %v2604_v20  ;;  %1812 = vmatprep.subr.bf16.mxu1 %v2609_v21 }
 0x10c   : > { %1898 = vmatprep.subr.bf16.mxu0 %v2612_v22 }
 0x10e   : > { %1813 = vmatpush1.bf16.msra.mxu1 %v2607_v23 }
 0x10f   : > { %1899 = vmatpush1.bf16.msra.mxu0 %v2610_v24 }
 0x111   : > { %1815 = vmatmul.mubr.bf16.vlgmr.msra.gmra.mrb[0].mxu1 %v2172_v25 }
 0x112   : > { %1901 = vmatmul.mubr.bf16.vlgmr.msra.gmra.mrb[0].mxu0 %v2176_v26 }
 0x1e4   : > { %v1816_v27 = vpop.f32.mrb[0].mxu1 }
 0x1e5   : > { %v1902_v29 = vpop.f32.mrb[0].mxu0  ;;  %v1818_v31 = vpop.f32.mrb[1].mxu1 }
 0x1e6   : > { %v2320_v30 = vadd.f32 %v1902_v29, %v1816_v27  ;;  %v1904_v33 = vpop.f32.mrb[1].mxu0  ;;  %v1820_v35 = vpop.f32.mrb[2].mxu1 }
 0x1e7   : > { %v2321_v34 = vadd.f32 %v1904_v33, %v1818_v31  ;;  %v1906_v37 = vpop.f32.mrb[2].mxu0  ;;  %v1822_v40 = vpop.f32.mrb[3].mxu1  ;;  %1922 = sbr.rel (%p2306_p6) target bundleno = 510 (0x1fe), region = 143 }
 0x1e8   : > { %v1911_v38 = vadd.f32 %v2320_v30, %v919_v28  ;;  %v2322_v39 = vadd.f32 %v1906_v37, %v1820_v35  ;;  %v1908_v42 = vpop.f32.mrb[3].mxu0 }
 0x1e9   : > { %v1912_v43 = vadd.f32 %v2321_v34, %v920_v32  ;;  %v2323_v44 = vadd.f32 %v1908_v42, %v1822_v40 }
 0x1ea   : > { %1915 = vst [vmem:[#allocation2] sm:$0xff] %v1911_v38  ;;  %v1913_v45 = vadd.f32 %v2322_v39, %v921_v36 }
 0x1eb   : > { %1916 = vst [vmem:[#allocation2 + $0x8] sm:$0xff] %v1912_v43  ;;  %v1914_v46 = vadd.f32 %v2323_v44, %v922_v41 }
 0x1ec   : > { %1917 = vst [vmem:[#allocation2 + $0x10] sm:$0xff] %v1913_v45 }
 0x1ed   : > { %1918 = vst [vmem:[#allocation2 + $0x18] sm:$0xff] %v1914_v46 }
 0x1f1   : > { %v1923_v52 = vld [vmem:[#allocation2] sm:$0xff] }
 0x1f2   : > { %v1924_v55 = vld [vmem:[#allocation2 + $0x8] sm:$0xff]  ;;  %v1939_v0 = vadd.f32 %v1932_v60, %v1923_v52 }
 0x1f3   : > { %v1925_v58 = vld [vmem:[#allocation2 + $0x10] sm:$0xff]  ;;  %v1940_v1 = vadd.f32 %v1936_v61, %v1924_v55 }
 0x1f4   : > { %v1926_v59 = vld [vmem:[#allocation2 + $0x18] sm:$0xff]  ;;  %v1941_v2 = vadd.f32 %v1932_v60, %v1925_v58  ;;  %v1949_v4 = vadd.f32 %v1945_v56, %v1939_v0 }
 0x1f5   : > { %v1942_v3 = vadd.f32 %v1936_v61, %v1926_v59  ;;  %v1950_v5 = vadd.f32 %v1946_v57, %v1940_v1 }
 0x1f6   : > { %v1951_v6 = vadd.f32 %v1947_v62, %v1941_v2  ;;  %v1953_v8 = vmax.f32 %v1949_v4, 0.0 }
 0x1f7   : > { %v1952_v7 = vadd.f32 %v1948_v63, %v1942_v3  ;;  %v1954_v9 = vmax.f32 %v1950_v5, 0.0 }
 0x1f8   : > { %v1955_v10 = vmax.f32 %v1951_v6, 0.0 }
 0x1f9   : > { %v1956_v11 = vmax.f32 %v1952_v7, 0.0  ;;  %v2317_v12 = vpack.c.bf16 %v1954_v9, %v1953_v8 }
 0x1fb   : > { %v2318_v13 = vpack.c.bf16 %v1956_v11, %v1955_v10  ;;  %1969 = vst [vmem:[%s3138_s30] sm:$0xff] %v2317_v12 }
 0x1fd   : > { %1970 = vst [vmem:[%s3138_s30 + $0x8] sm:$0xff] %v2318_v13 }
 0x1fe PF: > { %1977 = sbr.rel (!%p2831_p13) target bundleno = 518 (0x206), region = 147  ;;  %s2319_s21 = sshll.u32 (%p2831_p13), %s2687_s22, 3 }
 0x1ff   : > { %s1983_s8 = scalar_lea.vmem (%p2831_p13), %s3350_s4, %s2319_s21 }
 0x202   : > { %v2013_v14 = vld [vmem:[%s3138_s30] sm:$0xff] (%p2831_p13) }
 0x203   : > { %2014 = vst [vmem:[%s1983_s8] sm:$0xff] (%p2831_p13), %v2013_v14 }
 0x204   : > { %v2015_v15 = vld [vmem:[%s3138_s30 + $0x8] sm:$0xff] (%p2831_p13) }
 0x205   : > { %2016 = vst [vmem:[%s1983_s8 + $0x10] sm:$0xff] %v2015_v15 }
 0x206 PF: > { %s14_s25 = sadd.s32 1, %s2699_s25   ;;  %s3362_s29 = sld [smem:[#allocation9_spill]] }
 0x207   : > { %p11_p7 = scmp.ge.s32.totalorder %s14_s25, 12   ;;  %s3363_s9 = sld [smem:[#allocation7_spill]] }
 0x208   : > { %s3364_s11 = sld [smem:[#allocation8_spill]]  ;;  %s3365_s15 = smov %s2663_s16 }
 0x209   : > { %s3366_s16 = smov %s2823_s13  ;;  %s3367_s17 = smov %s2671_s18 }
 0x20a   : > { %s3368_s18 = smov %s2820_s12  ;;  %s3369_s19 = smov %s2679_s20 }
 0x20b   : > { %s3371_s21 = smov %s2691_s23  ;;  %s3372_s22 = smov %s2695_s24 }
 0x20c   : > { %s3370_s20 = smov %s3362_s29  ;;  %13 = sbr.rel (!%p11_p7) target bundleno = 8 (0x8), region = 235 }
 0x20d   : > { %s3373_s23 = smov %s3363_s9 }
 0x20e   : > { %s3374_s24 = smov %s3364_s11 }

// kernel: simple_dog_emotion_model.41
= control target key start
LH: loop header
LB: loop body
LE: loop exit
PB: predicated region body
PF: predicated region fallthrough
CT: control target
= control target key end

     0   :  { %s3187_s0 = inlined_call_operand.vmem [shape: bf16[16,5120], index: 0, kind: input, shape index: {}]   ;;  %s3188_s1 = inlined_call_operand.vmem [shape: bf16[5120,512], index: 1, kind: input, shape index: {}]   ;;  %s3189_s2 = inlined_call_operand.vmem [shape: f32[1,512], index: 2, kind: input, shape index: {}]   ;;  %s3190_s3 = inlined_call_operand.vmem [shape: bf16[16,512], index: 3, kind: output, shape index: {}]  }
   0x1   :  { %3192 = sst [smem:[#allocation7_spill]] %s3187_s0 }
   0x2   :  { %3193 = sst [smem:[#allocation8_spill]] %s3188_s1 }
   0x3   :  { %s2593_s12 = smov 0   ;;  %s2595_s13 = smov 0  }
   0x4   :  { %s2597_s14 = smov 0   ;;  %s2599_s15 = smov 0  }
   0x5   :  { %s2601_s16 = smov 0   ;;  %s2603_s17 = smov 0  }
   0x6   :  { %s2605_s18 = smov 0   ;;  %s2607_s19 = smov 0  }
   0x7   :  { %s2609_s20 = smov 0   ;;  %s2611_s21 = smov 0  }
   0x8   :  { %s2613_s22 = smov 0  }
   0x9 LB: > { %s2024_s23 = sadd.s32 4294967295, %s2570_s22   ;;  %s25_s24 = sadd.s32 1, %s2562_s20  ;;  %s2570_s22 = sphi %s2613_s22, %s13_s22   ;;  %s2566_s21 = sphi %s2611_s21, %s3210_s21   ;;  %s2562_s20 = sphi %s2609_s20, %s3209_s20   ;;  %s2558_s19 = sphi %s2607_s19, %s3208_s19   ;;  %s2554_s18 = sphi %s2605_s18, %s3207_s18   ;;  %s2550_s17 = sphi %s2603_s17, %s3206_s17   ;;  %s2546_s16 = sphi %s2601_s16, %s3205_s16   ;;  %s2542_s15 = sphi %s2599_s15, %s3204_s15   ;;  %s2538_s14 = sphi %s2597_s14, %s3203_s14   ;;  %s2534_s13 = sphi %s2595_s13, %s3202_s13   ;;  %s2530_s12 = sphi %s2593_s12, %s3201_s12  }
   0xa   : > { %p26_p0 = scmp.ge.s32.totalorder %s25_s24, 5  ;;  %s28_s25 = sadd.s32 1, %s2566_s21 }
   0xb   : > { %s41_s26 = sadd.s32 1, %s2550_s17  ;;  %p48_p1 = scmp.ne.s32.totalorder %s2550_s17, %s2546_s16 }
   0xc   : > { %s3212_s24 = smov (%p26_p0, %s25_s24), 0  ;;  %s3214_s25 = smov (!%p26_p0, %s28_s25), %s2566_s21 }
   0xd   : > { %s37_s27 = ssub.s32 %s2562_s20, %s3212_s24  ;;  %p49_p2 = scmp.eq.s32.totalorder %s2570_s22, 0 }
   0xe   : > { %p30_p3 = scmp.ge.s32.totalorder %s3214_s25, 2  ;;  %p39_p4 = scmp.eq.s32.totalorder %s37_s27, 0 }
   0xf   : > { %p2660_p5 = por %p49_p2, %p48_p1  ;;  %s69_s29 = sadd.s32 1, %s2542_s15 }
  0x10   : > { %s3216_s25 = smov (%p30_p3, %s3214_s25), 0  ;;  %p76_p6 = scmp.ne.s32.totalorder %s2542_s15, %s2538_s14 }
  0x11   : > { %3195 = sst [smem:[#allocation6_spill]] %s3216_s25  ;;  %s65_s4 = ssub.s32 %s2566_s21, %s3216_s25 }
  0x12   : > { %s2668_s30 = scalar_select %p39_p4, %s2550_s17, %s41_s26  }
  0x13   : > { %s66_s5 = sor.u32 %s65_s4, %s37_s27  ;;  %p121_p7 = scmp.eq.s32.totalorder %s65_s4, 0 }
  0x14   : > { %p67_p8 = scmp.eq.s32.totalorder %s66_s5, 0  ;;  %p2674_p9 = por %p76_p6, %p49_p2 }
  0x15   : > { %s123_s7 = sadd.s32 1, %s2534_s13  ;;  %p133_p10 = scmp.ne.s32.totalorder %s2534_s13, %s2530_s12 }
  0x16   : > { %s2682_s8 = scalar_select %p67_p8, %s2542_s15, %s69_s29  }
  0x17   : > { %s2685_s9 = scalar_select %p121_p7, %s2534_s13, %s123_s7  }
  0x18   : > { %p134_p11 = scmp.eq.s32.totalorder %s2024_s23, 9  ;;  %p2027_p13 = scmp.ge.s32.totalorder %s2570_s22, 10 }
  0x1a   : > { %p2687_p12 = por %p134_p11, %p133_p10  ;;  %156 = sbr.rel (%p2027_p13) target bundleno = 121 (0x79), region = 16 }
  0x21   : > { %159 = sbr.rel (!%p2660_p5) target bundleno = 47 (0x2f), region = 20  ;;  %s161_s11 = sand.u32 (%p2660_p5), 1, %s2550_s17  }
  0x22   : > { %s2186_s26 = sshll.u32 (%p2660_p5), %s2562_s20, 5  ;;  %s2028_s27 = sshll.u32 (%p2660_p5), %s161_s11, 6 }
  0x23   : > { %s3198_s0 = sld [smem:[#allocation7_spill]] (%p2660_p5)  ;;  %s163_s23 = scalar_lea.vmem (%p2660_p5), [#allocation3], %s2028_s27 }
  0x29   : > { %s169_s5 = scalar_lea.vmem %s3198_s0, %s2186_s26 }
  0x2a   : > { %v182_v0 = vld [vmem:[%s169_s5] sm:$0xff]  ;;  %v184_v1 = vld [vmem:[%s169_s5 + $0x8] sm:$0xff]  ;;  %v186_v2 = vld [vmem:[%s169_s5 + $0x10] sm:$0xff] }
  0x2b   : > { %183 = vst [vmem:[%s163_s23] sm:$0xff] %v182_v0  ;;  %185 = vst [vmem:[%s163_s23 + $0x8] sm:$0xff] %v184_v1  ;;  %v188_v3 = vld [vmem:[%s169_s5 + $0x18] sm:$0xff]  ;;  %v190_v4 = vld [vmem:[%s169_s5 + $0xa0] sm:$0xff] }
  0x2c   : > { %187 = vst [vmem:[%s163_s23 + $0x10] sm:$0xff] %v186_v2  ;;  %v192_v5 = vld [vmem:[%s169_s5 + $0xa8] sm:$0xff]  ;;  %189 = vst [vmem:[%s163_s23 + $0x18] sm:$0xff] %v188_v3  ;;  %v194_v6 = vld [vmem:[%s169_s5 + $0xb0] sm:$0xff] }
  0x2d   : > { %191 = vst [vmem:[%s163_s23 + $0x20] sm:$0xff] %v190_v4  ;;  %193 = vst [vmem:[%s163_s23 + $0x28] sm:$0xff] %v192_v5  ;;  %v196_v7 = vld [vmem:[%s169_s5 + $0xb8] sm:$0xff] }
  0x2e   : > { %195 = vst [vmem:[%s163_s23 + $0x30] sm:$0xff] %v194_v6  ;;  %197 = vst [vmem:[%s163_s23 + $0x38] sm:$0xff] %v196_v7 }
  0x2f PF: > { %203 = sbr.rel (!%p2674_p9) target bundleno = 121 (0x79), region = 43  ;;  %s205_s28 = sand.u32 (%p2674_p9), 1, %s2542_s15  }
  0x30   : > { %s2033_s7 = sshll.u32 (%p2674_p9), %s2566_s21, 1  ;;  %s2031_s11 = sshll.u32 (%p2674_p9), %s205_s28, 10 }
  0x31   : > { %s2187_s26 = sshll.u32 (%p2674_p9), %s2562_s20, 9  ;;  %s3199_s1 = sld [smem:[#allocation8_spill]] (%p2674_p9) }
  0x32   : > { %s211_s27 = sadd.s32 (%p2674_p9), %s2187_s26, %s2033_s7  ;;  %s2712_s6 = scalar_lea.vmem (%p2674_p9), [#allocation4], %s2031_s11 }
  0x33   : > { %s2035_s29 = sshll.u32 (%p2674_p9), %s211_s27, 2 }
  0x37   : > { %s2707_s25 = scalar_lea.vmem %s3199_s1, %s2035_s29 }
  0x38   : > { %v495_v8 = vld [vmem:[%s2707_s25] sm:$0xff]  ;;  %v497_v9 = vld [vmem:[%s2707_s25 + $0x10] sm:$0xff] }
  0x39   : > { %v499_v10 = vld [vmem:[%s2707_s25 + $0x20] sm:$0xff]  ;;  %496 = vst [vmem:[%s2712_s6] sm:$0xff] %v495_v8  ;;  %498 = vst [vmem:[%s2712_s6 + $0x8] sm:$0xff] %v497_v9  ;;  %v501_v11 = vld [vmem:[%s2707_s25 + $0x30] sm:$0xff] }
  0x3a   : > { %500 = vst [vmem:[%s2712_s6 + $0x10] sm:$0xff] %v499_v10  ;;  %v503_v12 = vld [vmem:[%s2707_s25 + $0x40] sm:$0xff]  ;;  %v505_v13 = vld [vmem:[%s2707_s25 + $0x50] sm:$0xff]  ;;  %502 = vst [vmem:[%s2712_s6 + $0x18] sm:$0xff] %v501_v11 }
  0x3b   : > { %504 = vst [vmem:[%s2712_s6 + $0x20] sm:$0xff] %v503_v12  ;;  %506 = vst [vmem:[%s2712_s6 + $0x28] sm:$0xff] %v505_v13  ;;  %v507_v14 = vld [vmem:[%s2707_s25 + $0x60] sm:$0xff]  ;;  %v509_v15 = vld [vmem:[%s2707_s25 + $0x70] sm:$0xff] }
  0x3c   : > { %v511_v16 = vld [vmem:[%s2707_s25 + $0x80] sm:$0xff]  ;;  %508 = vst [vmem:[%s2712_s6 + $0x30] sm:$0xff] %v507_v14  ;;  %510 = vst [vmem:[%s2712_s6 + $0x38] sm:$0xff] %v509_v15  ;;  %v513_v17 = vld [vmem:[%s2707_s25 + $0x90] sm:$0xff] }
  0x3d   : > { %512 = vst [vmem:[%s2712_s6 + $0x40] sm:$0xff] %v511_v16  ;;  %v515_v18 = vld [vmem:[%s2707_s25 + $0xa0] sm:$0xff]  ;;  %v517_v19 = vld [vmem:[%s2707_s25 + $0xb0] sm:$0xff]  ;;  %514 = vst [vmem:[%s2712_s6 + $0x48] sm:$0xff] %v513_v17 }
  0x3e   : > { %516 = vst [vmem:[%s2712_s6 + $0x50] sm:$0xff] %v515_v18  ;;  %518 = vst [vmem:[%s2712_s6 + $0x58] sm:$0xff] %v517_v19  ;;  %v519_v20 = vld [vmem:[%s2707_s25 + $0xc0] sm:$0xff]  ;;  %v521_v21 = vld [vmem:[%s2707_s25 + $0xd0] sm:$0xff] }
  0x3f   : > { %v523_v22 = vld [vmem:[%s2707_s25 + $0xe0] sm:$0xff]  ;;  %520 = vst [vmem:[%s2712_s6 + $0x60] sm:$0xff] %v519_v20  ;;  %522 = vst [vmem:[%s2712_s6 + $0x68] sm:$0xff] %v521_v21  ;;  %v525_v23 = vld [vmem:[%s2707_s25 + $0xf0] sm:$0xff] }
  0x40   : > { %524 = vst [vmem:[%s2712_s6 + $0x70] sm:$0xff] %v523_v22  ;;  %v527_v24 = vld [vmem:[%s2707_s25 + $0x100] sm:$0xff]  ;;  %v529_v25 = vld [vmem:[%s2707_s25 + $0x110] sm:$0xff]  ;;  %526 = vst [vmem:[%s2712_s6 + $0x78] sm:$0xff] %v525_v23 }
  0x41   : > { %528 = vst [vmem:[%s2712_s6 + $0x80] sm:$0xff] %v527_v24  ;;  %530 = vst [vmem:[%s2712_s6 + $0x88] sm:$0xff] %v529_v25  ;;  %v531_v26 = vld [vmem:[%s2707_s25 + $0x120] sm:$0xff]  ;;  %v533_v27 = vld [vmem:[%s2707_s25 + $0x130] sm:$0xff] }
  0x42   : > { %v535_v28 = vld [vmem:[%s2707_s25 + $0x140] sm:$0xff]  ;;  %532 = vst [vmem:[%s2712_s6 + $0x90] sm:$0xff] %v531_v26  ;;  %534 = vst [vmem:[%s2712_s6 + $0x98] sm:$0xff] %v533_v27  ;;  %v537_v29 = vld [vmem:[%s2707_s25 + $0x150] sm:$0xff] }
  0x43   : > { %536 = vst [vmem:[%s2712_s6 + $0xa0] sm:$0xff] %v535_v28  ;;  %v539_v30 = vld [vmem:[%s2707_s25 + $0x160] sm:$0xff]  ;;  %v541_v31 = vld [vmem:[%s2707_s25 + $0x170] sm:$0xff]  ;;  %538 = vst [vmem:[%s2712_s6 + $0xa8] sm:$0xff] %v537_v29 }
  0x44   : > { %540 = vst [vmem:[%s2712_s6 + $0xb0] sm:$0xff] %v539_v30  ;;  %542 = vst [vmem:[%s2712_s6 + $0xb8] sm:$0xff] %v541_v31  ;;  %v543_v32 = vld [vmem:[%s2707_s25 + $0x180] sm:$0xff]  ;;  %v545_v33 = vld [vmem:[%s2707_s25 + $0x190] sm:$0xff] }
  0x45   : > { %v547_v34 = vld [vmem:[%s2707_s25 + $0x1a0] sm:$0xff]  ;;  %544 = vst [vmem:[%s2712_s6 + $0xc0] sm:$0xff] %v543_v32  ;;  %546 = vst [vmem:[%s2712_s6 + $0xc8] sm:$0xff] %v545_v33  ;;  %v549_v35 = vld [vmem:[%s2707_s25 + $0x1b0] sm:$0xff] }
  0x46   : > { %548 = vst [vmem:[%s2712_s6 + $0xd0] sm:$0xff] %v547_v34  ;;  %v551_v36 = vld [vmem:[%s2707_s25 + $0x1c0] sm:$0xff]  ;;  %v553_v37 = vld [vmem:[%s2707_s25 + $0x1d0] sm:$0xff]  ;;  %550 = vst [vmem:[%s2712_s6 + $0xd8] sm:$0xff] %v549_v35 }
  0x47   : > { %552 = vst [vmem:[%s2712_s6 + $0xe0] sm:$0xff] %v551_v36  ;;  %554 = vst [vmem:[%s2712_s6 + $0xe8] sm:$0xff] %v553_v37  ;;  %v555_v38 = vld [vmem:[%s2707_s25 + $0x1e0] sm:$0xff]  ;;  %v557_v39 = vld [vmem:[%s2707_s25 + $0x1f0] sm:$0xff] }
  0x48   : > { %v559_v40 = vld [vmem:[%s2707_s25 + $0x200] sm:$0xff]  ;;  %556 = vst [vmem:[%s2712_s6 + $0xf0] sm:$0xff] %v555_v38  ;;  %558 = vst [vmem:[%s2712_s6 + $0xf8] sm:$0xff] %v557_v39  ;;  %v561_v41 = vld [vmem:[%s2707_s25 + $0x210] sm:$0xff] }
  0x49   : > { %560 = vst [vmem:[%s2712_s6 + $0x100] sm:$0xff] %v559_v40  ;;  %v563_v42 = vld [vmem:[%s2707_s25 + $0x220] sm:$0xff]  ;;  %v565_v43 = vld [vmem:[%s2707_s25 + $0x230] sm:$0xff]  ;;  %562 = vst [vmem:[%s2712_s6 + $0x108] sm:$0xff] %v561_v41 }
  0x4a   : > { %564 = vst [vmem:[%s2712_s6 + $0x110] sm:$0xff] %v563_v42  ;;  %566 = vst [vmem:[%s2712_s6 + $0x118] sm:$0xff] %v565_v43  ;;  %v567_v44 = vld [vmem:[%s2707_s25 + $0x240] sm:$0xff]  ;;  %v569_v45 = vld [vmem:[%s2707_s25 + $0x250] sm:$0xff] }
  0x4b   : > { %v571_v46 = vld [vmem:[%s2707_s25 + $0x260] sm:$0xff]  ;;  %568 = vst [vmem:[%s2712_s6 + $0x120] sm:$0xff] %v567_v44  ;;  %570 = vst [vmem:[%s2712_s6 + $0x128] sm:$0xff] %v569_v45  ;;  %v573_v47 = vld [vmem:[%s2707_s25 + $0x270] sm:$0xff] }
  0x4c   : > { %572 = vst [vmem:[%s2712_s6 + $0x130] sm:$0xff] %v571_v46  ;;  %v575_v48 = vld [vmem:[%s2707_s25 + $0x280] sm:$0xff]  ;;  %v577_v49 = vld [vmem:[%s2707_s25 + $0x290] sm:$0xff]  ;;  %574 = vst [vmem:[%s2712_s6 + $0x138] sm:$0xff] %v573_v47 }
  0x4d   : > { %576 = vst [vmem:[%s2712_s6 + $0x140] sm:$0xff] %v575_v48  ;;  %578 = vst [vmem:[%s2712_s6 + $0x148] sm:$0xff] %v577_v49  ;;  %v579_v50 = vld [vmem:[%s2707_s25 + $0x2a0] sm:$0xff]  ;;  %v581_v51 = vld [vmem:[%s2707_s25 + $0x2b0] sm:$0xff] }
  0x4e   : > { %v583_v52 = vld [vmem:[%s2707_s25 + $0x2c0] sm:$0xff]  ;;  %580 = vst [vmem:[%s2712_s6 + $0x150] sm:$0xff] %v579_v50  ;;  %582 = vst [vmem:[%s2712_s6 + $0x158] sm:$0xff] %v581_v51  ;;  %v585_v53 = vld [vmem:[%s2707_s25 + $0x2d0] sm:$0xff] }
  0x4f   : > { %584 = vst [vmem:[%s2712_s6 + $0x160] sm:$0xff] %v583_v52  ;;  %v587_v54 = vld [vmem:[%s2707_s25 + $0x2e0] sm:$0xff]  ;;  %v589_v55 = vld [vmem:[%s2707_s25 + $0x2f0] sm:$0xff]  ;;  %586 = vst [vmem:[%s2712_s6 + $0x168] sm:$0xff] %v585_v53 }
  0x50   : > { %588 = vst [vmem:[%s2712_s6 + $0x170] sm:$0xff] %v587_v54  ;;  %590 = vst [vmem:[%s2712_s6 + $0x178] sm:$0xff] %v589_v55  ;;  %v591_v56 = vld [vmem:[%s2707_s25 + $0x300] sm:$0xff]  ;;  %v593_v57 = vld [vmem:[%s2707_s25 + $0x310] sm:$0xff] }
  0x51   : > { %v595_v58 = vld [vmem:[%s2707_s25 + $0x320] sm:$0xff]  ;;  %592 = vst [vmem:[%s2712_s6 + $0x180] sm:$0xff] %v591_v56  ;;  %594 = vst [vmem:[%s2712_s6 + $0x188] sm:$0xff] %v593_v57  ;;  %v597_v59 = vld [vmem:[%s2707_s25 + $0x330] sm:$0xff] }
  0x52   : > { %596 = vst [vmem:[%s2712_s6 + $0x190] sm:$0xff] %v595_v58  ;;  %v599_v60 = vld [vmem:[%s2707_s25 + $0x340] sm:$0xff]  ;;  %v601_v61 = vld [vmem:[%s2707_s25 + $0x350] sm:$0xff]  ;;  %598 = vst [vmem:[%s2712_s6 + $0x198] sm:$0xff] %v597_v59 }
  0x53   : > { %600 = vst [vmem:[%s2712_s6 + $0x1a0] sm:$0xff] %v599_v60  ;;  %602 = vst [vmem:[%s2712_s6 + $0x1a8] sm:$0xff] %v601_v61  ;;  %v603_v62 = vld [vmem:[%s2707_s25 + $0x360] sm:$0xff]  ;;  %v605_v63 = vld [vmem:[%s2707_s25 + $0x370] sm:$0xff] }
  0x54   : > { %v607_v0 = vld [vmem:[%s2707_s25 + $0x380] sm:$0xff]  ;;  %604 = vst [vmem:[%s2712_s6 + $0x1b0] sm:$0xff] %v603_v62  ;;  %606 = vst [vmem:[%s2712_s6 + $0x1b8] sm:$0xff] %v605_v63  ;;  %v609_v1 = vld [vmem:[%s2707_s25 + $0x390] sm:$0xff] }
  0x55   : > { %608 = vst [vmem:[%s2712_s6 + $0x1c0] sm:$0xff] %v607_v0  ;;  %v611_v2 = vld [vmem:[%s2707_s25 + $0x3a0] sm:$0xff]  ;;  %v613_v3 = vld [vmem:[%s2707_s25 + $0x3b0] sm:$0xff]  ;;  %610 = vst [vmem:[%s2712_s6 + $0x1c8] sm:$0xff] %v609_v1 }
  0x56   : > { %612 = vst [vmem:[%s2712_s6 + $0x1d0] sm:$0xff] %v611_v2  ;;  %614 = vst [vmem:[%s2712_s6 + $0x1d8] sm:$0xff] %v613_v3  ;;  %v615_v4 = vld [vmem:[%s2707_s25 + $0x3c0] sm:$0xff]  ;;  %v617_v5 = vld [vmem:[%s2707_s25 + $0x3d0] sm:$0xff] }
  0x57   : > { %v619_v6 = vld [vmem:[%s2707_s25 + $0x3e0] sm:$0xff]  ;;  %616 = vst [vmem:[%s2712_s6 + $0x1e0] sm:$0xff] %v615_v4  ;;  %618 = vst [vmem:[%s2712_s6 + $0x1e8] sm:$0xff] %v617_v5  ;;  %v621_v7 = vld [vmem:[%s2707_s25 + $0x3f0] sm:$0xff] }
  0x58   : > { %620 = vst [vmem:[%s2712_s6 + $0x1f0] sm:$0xff] %v619_v6  ;;  %v623_v8 = vld [vmem:[%s2707_s25 + $0x400] sm:$0xff]  ;;  %v625_v9 = vld [vmem:[%s2707_s25 + $0x410] sm:$0xff]  ;;  %622 = vst [vmem:[%s2712_s6 + $0x1f8] sm:$0xff] %v621_v7 }
  0x59   : > { %624 = vst [vmem:[%s2712_s6 + $0x200] sm:$0xff] %v623_v8  ;;  %626 = vst [vmem:[%s2712_s6 + $0x208] sm:$0xff] %v625_v9  ;;  %v627_v10 = vld [vmem:[%s2707_s25 + $0x420] sm:$0xff]  ;;  %v629_v11 = vld [vmem:[%s2707_s25 + $0x430] sm:$0xff] }
  0x5a   : > { %v631_v12 = vld [vmem:[%s2707_s25 + $0x440] sm:$0xff]  ;;  %628 = vst [vmem:[%s2712_s6 + $0x210] sm:$0xff] %v627_v10  ;;  %630 = vst [vmem:[%s2712_s6 + $0x218] sm:$0xff] %v629_v11  ;;  %v633_v13 = vld [vmem:[%s2707_s25 + $0x450] sm:$0xff] }
  0x5b   : > { %632 = vst [vmem:[%s2712_s6 + $0x220] sm:$0xff] %v631_v12  ;;  %v635_v14 = vld [vmem:[%s2707_s25 + $0x460] sm:$0xff]  ;;  %v637_v15 = vld [vmem:[%s2707_s25 + $0x470] sm:$0xff]  ;;  %634 = vst [vmem:[%s2712_s6 + $0x228] sm:$0xff] %v633_v13 }
  0x5c   : > { %636 = vst [vmem:[%s2712_s6 + $0x230] sm:$0xff] %v635_v14  ;;  %638 = vst [vmem:[%s2712_s6 + $0x238] sm:$0xff] %v637_v15  ;;  %v639_v16 = vld [vmem:[%s2707_s25 + $0x480] sm:$0xff]  ;;  %v641_v17 = vld [vmem:[%s2707_s25 + $0x490] sm:$0xff] }
  0x5d   : > { %v643_v18 = vld [vmem:[%s2707_s25 + $0x4a0] sm:$0xff]  ;;  %640 = vst [vmem:[%s2712_s6 + $0x240] sm:$0xff] %v639_v16  ;;  %642 = vst [vmem:[%s2712_s6 + $0x248] sm:$0xff] %v641_v17  ;;  %v645_v19 = vld [vmem:[%s2707_s25 + $0x4b0] sm:$0xff] }
  0x5e   : > { %644 = vst [vmem:[%s2712_s6 + $0x250] sm:$0xff] %v643_v18  ;;  %v647_v20 = vld [vmem:[%s2707_s25 + $0x4c0] sm:$0xff]  ;;  %v649_v21 = vld [vmem:[%s2707_s25 + $0x4d0] sm:$0xff]  ;;  %646 = vst [vmem:[%s2712_s6 + $0x258] sm:$0xff] %v645_v19 }
  0x5f   : > { %648 = vst [vmem:[%s2712_s6 + $0x260] sm:$0xff] %v647_v20  ;;  %650 = vst [vmem:[%s2712_s6 + $0x268] sm:$0xff] %v649_v21  ;;  %v651_v22 = vld [vmem:[%s2707_s25 + $0x4e0] sm:$0xff]  ;;  %v653_v23 = vld [vmem:[%s2707_s25 + $0x4f0] sm:$0xff] }
  0x60   : > { %v655_v24 = vld [vmem:[%s2707_s25 + $0x500] sm:$0xff]  ;;  %652 = vst [vmem:[%s2712_s6 + $0x270] sm:$0xff] %v651_v22  ;;  %654 = vst [vmem:[%s2712_s6 + $0x278] sm:$0xff] %v653_v23  ;;  %v657_v25 = vld [vmem:[%s2707_s25 + $0x510] sm:$0xff] }
  0x61   : > { %656 = vst [vmem:[%s2712_s6 + $0x280] sm:$0xff] %v655_v24  ;;  %v659_v26 = vld [vmem:[%s2707_s25 + $0x520] sm:$0xff]  ;;  %v661_v27 = vld [vmem:[%s2707_s25 + $0x530] sm:$0xff]  ;;  %658 = vst [vmem:[%s2712_s6 + $0x288] sm:$0xff] %v657_v25 }
  0x62   : > { %660 = vst [vmem:[%s2712_s6 + $0x290] sm:$0xff] %v659_v26  ;;  %662 = vst [vmem:[%s2712_s6 + $0x298] sm:$0xff] %v661_v27  ;;  %v663_v28 = vld [vmem:[%s2707_s25 + $0x540] sm:$0xff]  ;;  %v665_v29 = vld [vmem:[%s2707_s25 + $0x550] sm:$0xff] }
  0x63   : > { %v667_v30 = vld [vmem:[%s2707_s25 + $0x560] sm:$0xff]  ;;  %664 = vst [vmem:[%s2712_s6 + $0x2a0] sm:$0xff] %v663_v28  ;;  %666 = vst [vmem:[%s2712_s6 + $0x2a8] sm:$0xff] %v665_v29  ;;  %v669_v31 = vld [vmem:[%s2707_s25 + $0x570] sm:$0xff] }
  0x64   : > { %668 = vst [vmem:[%s2712_s6 + $0x2b0] sm:$0xff] %v667_v30  ;;  %v671_v32 = vld [vmem:[%s2707_s25 + $0x580] sm:$0xff]  ;;  %v673_v33 = vld [vmem:[%s2707_s25 + $0x590] sm:$0xff]  ;;  %670 = vst [vmem:[%s2712_s6 + $0x2b8] sm:$0xff] %v669_v31 }
  0x65   : > { %672 = vst [vmem:[%s2712_s6 + $0x2c0] sm:$0xff] %v671_v32  ;;  %674 = vst [vmem:[%s2712_s6 + $0x2c8] sm:$0xff] %v673_v33  ;;  %v675_v34 = vld [vmem:[%s2707_s25 + $0x5a0] sm:$0xff]  ;;  %v677_v35 = vld [vmem:[%s2707_s25 + $0x5b0] sm:$0xff] }
  0x66   : > { %v679_v36 = vld [vmem:[%s2707_s25 + $0x5c0] sm:$0xff]  ;;  %676 = vst [vmem:[%s2712_s6 + $0x2d0] sm:$0xff] %v675_v34  ;;  %678 = vst [vmem:[%s2712_s6 + $0x2d8] sm:$0xff] %v677_v35  ;;  %v681_v37 = vld [vmem:[%s2707_s25 + $0x5d0] sm:$0xff] }
  0x67   : > { %680 = vst [vmem:[%s2712_s6 + $0x2e0] sm:$0xff] %v679_v36  ;;  %v683_v38 = vld [vmem:[%s2707_s25 + $0x5e0] sm:$0xff]  ;;  %v685_v39 = vld [vmem:[%s2707_s25 + $0x5f0] sm:$0xff]  ;;  %682 = vst [vmem:[%s2712_s6 + $0x2e8] sm:$0xff] %v681_v37 }
  0x68   : > { %684 = vst [vmem:[%s2712_s6 + $0x2f0] sm:$0xff] %v683_v38  ;;  %686 = vst [vmem:[%s2712_s6 + $0x2f8] sm:$0xff] %v685_v39  ;;  %v687_v40 = vld [vmem:[%s2707_s25 + $0x600] sm:$0xff]  ;;  %v689_v41 = vld [vmem:[%s2707_s25 + $0x610] sm:$0xff] }
  0x69   : > { %v691_v42 = vld [vmem:[%s2707_s25 + $0x620] sm:$0xff]  ;;  %688 = vst [vmem:[%s2712_s6 + $0x300] sm:$0xff] %v687_v40  ;;  %690 = vst [vmem:[%s2712_s6 + $0x308] sm:$0xff] %v689_v41  ;;  %v693_v43 = vld [vmem:[%s2707_s25 + $0x630] sm:$0xff] }
  0x6a   : > { %692 = vst [vmem:[%s2712_s6 + $0x310] sm:$0xff] %v691_v42  ;;  %v695_v44 = vld [vmem:[%s2707_s25 + $0x640] sm:$0xff]  ;;  %v697_v45 = vld [vmem:[%s2707_s25 + $0x650] sm:$0xff]  ;;  %694 = vst [vmem:[%s2712_s6 + $0x318] sm:$0xff] %v693_v43 }
  0x6b   : > { %696 = vst [vmem:[%s2712_s6 + $0x320] sm:$0xff] %v695_v44  ;;  %698 = vst [vmem:[%s2712_s6 + $0x328] sm:$0xff] %v697_v45  ;;  %v699_v46 = vld [vmem:[%s2707_s25 + $0x660] sm:$0xff]  ;;  %v701_v47 = vld [vmem:[%s2707_s25 + $0x670] sm:$0xff] }
  0x6c   : > { %v703_v48 = vld [vmem:[%s2707_s25 + $0x680] sm:$0xff]  ;;  %700 = vst [vmem:[%s2712_s6 + $0x330] sm:$0xff] %v699_v46  ;;  %702 = vst [vmem:[%s2712_s6 + $0x338] sm:$0xff] %v701_v47  ;;  %v705_v49 = vld [vmem:[%s2707_s25 + $0x690] sm:$0xff] }
  0x6d   : > { %704 = vst [vmem:[%s2712_s6 + $0x340] sm:$0xff] %v703_v48  ;;  %v707_v50 = vld [vmem:[%s2707_s25 + $0x6a0] sm:$0xff]  ;;  %v709_v51 = vld [vmem:[%s2707_s25 + $0x6b0] sm:$0xff]  ;;  %706 = vst [vmem:[%s2712_s6 + $0x348] sm:$0xff] %v705_v49 }
  0x6e   : > { %708 = vst [vmem:[%s2712_s6 + $0x350] sm:$0xff] %v707_v50  ;;  %710 = vst [vmem:[%s2712_s6 + $0x358] sm:$0xff] %v709_v51  ;;  %v711_v52 = vld [vmem:[%s2707_s25 + $0x6c0] sm:$0xff]  ;;  %v713_v53 = vld [vmem:[%s2707_s25 + $0x6d0] sm:$0xff] }
  0x6f   : > { %v715_v54 = vld [vmem:[%s2707_s25 + $0x6e0] sm:$0xff]  ;;  %712 = vst [vmem:[%s2712_s6 + $0x360] sm:$0xff] %v711_v52  ;;  %714 = vst [vmem:[%s2712_s6 + $0x368] sm:$0xff] %v713_v53  ;;  %v717_v55 = vld [vmem:[%s2707_s25 + $0x6f0] sm:$0xff] }
  0x70   : > { %716 = vst [vmem:[%s2712_s6 + $0x370] sm:$0xff] %v715_v54  ;;  %v719_v56 = vld [vmem:[%s2707_s25 + $0x700] sm:$0xff]  ;;  %v721_v57 = vld [vmem:[%s2707_s25 + $0x710] sm:$0xff]  ;;  %718 = vst [vmem:[%s2712_s6 + $0x378] sm:$0xff] %v717_v55 }
  0x71   : > { %720 = vst [vmem:[%s2712_s6 + $0x380] sm:$0xff] %v719_v56  ;;  %722 = vst [vmem:[%s2712_s6 + $0x388] sm:$0xff] %v721_v57  ;;  %v723_v58 = vld [vmem:[%s2707_s25 + $0x720] sm:$0xff]  ;;  %v725_v59 = vld [vmem:[%s2707_s25 + $0x730] sm:$0xff] }
  0x72   : > { %v727_v60 = vld [vmem:[%s2707_s25 + $0x740] sm:$0xff]  ;;  %724 = vst [vmem:[%s2712_s6 + $0x390] sm:$0xff] %v723_v58  ;;  %726 = vst [vmem:[%s2712_s6 + $0x398] sm:$0xff] %v725_v59  ;;  %v729_v61 = vld [vmem:[%s2707_s25 + $0x750] sm:$0xff] }
  0x73   : > { %728 = vst [vmem:[%s2712_s6 + $0x3a0] sm:$0xff] %v727_v60  ;;  %v731_v62 = vld [vmem:[%s2707_s25 + $0x760] sm:$0xff]  ;;  %v733_v63 = vld [vmem:[%s2707_s25 + $0x770] sm:$0xff]  ;;  %730 = vst [vmem:[%s2712_s6 + $0x3a8] sm:$0xff] %v729_v61 }
  0x74   : > { %732 = vst [vmem:[%s2712_s6 + $0x3b0] sm:$0xff] %v731_v62  ;;  %734 = vst [vmem:[%s2712_s6 + $0x3b8] sm:$0xff] %v733_v63  ;;  %v735_v0 = vld [vmem:[%s2707_s25 + $0x780] sm:$0xff]  ;;  %v737_v1 = vld [vmem:[%s2707_s25 + $0x790] sm:$0xff] }
  0x75   : > { %v739_v2 = vld [vmem:[%s2707_s25 + $0x7a0] sm:$0xff]  ;;  %736 = vst [vmem:[%s2712_s6 + $0x3c0] sm:$0xff] %v735_v0  ;;  %738 = vst [vmem:[%s2712_s6 + $0x3c8] sm:$0xff] %v737_v1  ;;  %v741_v3 = vld [vmem:[%s2707_s25 + $0x7b0] sm:$0xff] }
  0x76   : > { %740 = vst [vmem:[%s2712_s6 + $0x3d0] sm:$0xff] %v739_v2  ;;  %v743_v4 = vld [vmem:[%s2707_s25 + $0x7c0] sm:$0xff]  ;;  %v745_v5 = vld [vmem:[%s2707_s25 + $0x7d0] sm:$0xff]  ;;  %742 = vst [vmem:[%s2712_s6 + $0x3d8] sm:$0xff] %v741_v3 }
  0x77   : > { %744 = vst [vmem:[%s2712_s6 + $0x3e0] sm:$0xff] %v743_v4  ;;  %746 = vst [vmem:[%s2712_s6 + $0x3e8] sm:$0xff] %v745_v5  ;;  %v747_v6 = vld [vmem:[%s2707_s25 + $0x7e0] sm:$0xff]  ;;  %v749_v7 = vld [vmem:[%s2707_s25 + $0x7f0] sm:$0xff] }
  0x78   : > { %748 = vst [vmem:[%s2712_s6 + $0x3f0] sm:$0xff] %v747_v6  ;;  %750 = vst [vmem:[%s2712_s6 + $0x3f8] sm:$0xff] %v749_v7 }
  0x79 PF: > { %p2036_p0 = scmp.ge.s32.totalorder %s2570_s22, 1  ;;  %p763_p1 = scmp.lt.s32.totalorder %s2570_s22, 11 }
  0x7b   : > { %p764_p2 = pnand %p2036_p0, %p763_p1 }
  0x7c   : > { %s770_s0 = sand.u32 (!%p764_p2), 1, %s2546_s16   ;;  %s777_s5 = sand.u32 (!%p764_p2), 1, %s2538_s14  }
  0x7d   : > { %767 = sbr.rel (%p764_p2) target bundleno = 511 (0x1ff), region = 85  ;;  %s2037_s23 = sshll.u32 (!%p764_p2), %s770_s0, 6 }
  0x7e   : > { %s2038_s28 = sshll.u32 (!%p764_p2), %s777_s5, 10  ;;  %s804_s7 = sand.u32 (!%p764_p2), 1, %s2530_s12  }
  0x7f   : > { %s2040_s25 = sshll.u32 (!%p764_p2), %s2558_s19, 1  ;;  %s2039_s11 = sshll.u32 (!%p764_p2), %s804_s7, 4 }
  0x80   : > { %p812_p3 = scmp.lt.s32.totalorder (!%p764_p2), %s2040_s25, 3  ;;  %s2979_s4 = scalar_lea.vmem (!%p764_p2), [#allocation3], %s2037_s23 }
  0x81   : > { %s2981_s6 = scalar_lea.vmem (!%p764_p2), [#allocation4], %s2038_s28  ;;  %s2983_s1 = scalar_lea.vmem (!%p764_p2), [#allocation5], %s2039_s11 }
  0x82   : > { %p2041_p4 = scmp.ne.s32.totalorder (!%p764_p2), %s2554_s18, 0 }
  0x84   : > { %s3218_s25 = smov (!%p812_p3, %s2040_s25), 3  ;;  %821 = sbr.rel (%p2041_p4) target bundleno = 139 (0x8b), region = 97 }
  0x85   : > { %s814_s29 = scalar_lea.vmem %s3189_s2, %s3218_s25  ;;  %v2572_v8 = vmov (!%p2041_p4), 0.0  }
  0x86   : > { %822 = vst [vmem:[#allocation2] sm:$0xff] (!%p2041_p4), %v2572_v8  ;;  %823 = vst [vmem:[#allocation2 + $0x8] sm:$0xff] (!%p2041_p4), %v2572_v8 }
  0x87   : > { %824 = vst [vmem:[#allocation2 + $0x10] sm:$0xff] (!%p2041_p4), %v2572_v8  ;;  %825 = vst [vmem:[#allocation2 + $0x18] sm:$0xff] (!%p2041_p4), %v2572_v8 }
  0x8b PF: > { %v2292_v9 = vld [vmem:[%s2981_s6 + $0x4] ss:$8 sps:$4 sm:$0xff]   ;;  %v2296_v11 = vld [vmem:[%s2981_s6] ss:$8 sps:$4 sm:$0xff]   ;;  %v2298_v13 = vld [vmem:[%s2981_s6 + $0x14] ss:$8 sps:$4 sm:$0xff]  }
  0x8c   : > { %v2294_v10 = vld [vmem:[%s2981_s6 + $0x204] ss:$8 sps:$4 sm:$0xff]   ;;  %1646 = vmatprep.subr.bf16.mxu1 %v2292_v9  ;;  %v2297_v12 = vld [vmem:[%s2981_s6 + $0x200] ss:$8 sps:$4 sm:$0xff]   ;;  %v2300_v14 = vld [vmem:[%s2981_s6 + $0x214] ss:$8 sps:$4 sm:$0xff]  }
  0x8d   : > { %1732 = vmatprep.subr.bf16.mxu0 %v2294_v10  ;;  %1647 = vmatpush1.bf16.msra.mxu1 %v2296_v11  ;;  %v2302_v15 = vld [vmem:[%s2981_s6 + $0x10] ss:$8 sps:$4 sm:$0xff]   ;;  %v2304_v17 = vld [vmem:[%s2981_s6 + $0x24] ss:$8 sps:$4 sm:$0xff]   ;;  %v2308_v19 = vld [vmem:[%s2981_s6 + $0x20] ss:$8 sps:$4 sm:$0xff]  }
  0x8e   : > { %1733 = vmatpush1.bf16.msra.mxu0 %v2297_v12  ;;  %1648 = vmatprep.subr.bf16.mxu1 %v2298_v13  ;;  %v2303_v16 = vld [vmem:[%s2981_s6 + $0x210] ss:$8 sps:$4 sm:$0xff]   ;;  %v2306_v18 = vld [vmem:[%s2981_s6 + $0x224] ss:$8 sps:$4 sm:$0xff]   ;;  %v2309_v20 = vld [vmem:[%s2981_s6 + $0x220] ss:$8 sps:$4 sm:$0xff]  }
  0x8f   : > { %1734 = vmatprep.subr.bf16.mxu0 %v2300_v14  ;;  %v2310_v21 = vld [vmem:[%s2981_s6 + $0x34] ss:$8 sps:$4 sm:$0xff]   ;;  %v2314_v23 = vld [vmem:[%s2981_s6 + $0x30] ss:$8 sps:$4 sm:$0xff]   ;;  %v2316_v25 = vld [vmem:[%s2981_s6 + $0x44] ss:$8 sps:$4 sm:$0xff]  }
  0x90   : > { %v2312_v22 = vld [vmem:[%s2981_s6 + $0x234] ss:$8 sps:$4 sm:$0xff]   ;;  %v2315_v24 = vld [vmem:[%s2981_s6 + $0x230] ss:$8 sps:$4 sm:$0xff]   ;;  %v2318_v26 = vld [vmem:[%s2981_s6 + $0x244] ss:$8 sps:$4 sm:$0xff]  }
  0x91   : > { %1649 = vmatpush1.bf16.msra.mxu1 %v2302_v15  ;;  %v2320_v27 = vld [vmem:[%s2981_s6 + $0x40] ss:$8 sps:$4 sm:$0xff]   ;;  %v2322_v29 = vld [vmem:[%s2981_s6 + $0x54] ss:$8 sps:$4 sm:$0xff]   ;;  %v2326_v31 = vld [vmem:[%s2981_s6 + $0x50] ss:$8 sps:$4 sm:$0xff]  }
  0x92   : > { %1735 = vmatpush1.bf16.msra.mxu0 %v2303_v16  ;;  %1650 = vmatprep.subr.bf16.mxu1 %v2304_v17  ;;  %v2321_v28 = vld [vmem:[%s2981_s6 + $0x240] ss:$8 sps:$4 sm:$0xff]   ;;  %v2324_v30 = vld [vmem:[%s2981_s6 + $0x254] ss:$8 sps:$4 sm:$0xff]   ;;  %v2327_v32 = vld [vmem:[%s2981_s6 + $0x250] ss:$8 sps:$4 sm:$0xff]  }
  0x93   : > { %1736 = vmatprep.subr.bf16.mxu0 %v2306_v18  ;;  %v2328_v33 = vld [vmem:[%s2981_s6 + $0x64] ss:$8 sps:$4 sm:$0xff]   ;;  %v2332_v35 = vld [vmem:[%s2981_s6 + $0x60] ss:$8 sps:$4 sm:$0xff]   ;;  %v2334_v37 = vld [vmem:[%s2981_s6 + $0x74] ss:$8 sps:$4 sm:$0xff]  }
  0x94   : > { %v2330_v34 = vld [vmem:[%s2981_s6 + $0x264] ss:$8 sps:$4 sm:$0xff]   ;;  %v2333_v36 = vld [vmem:[%s2981_s6 + $0x260] ss:$8 sps:$4 sm:$0xff]   ;;  %v2336_v38 = vld [vmem:[%s2981_s6 + $0x274] ss:$8 sps:$4 sm:$0xff]  }
  0x95   : > { %1651 = vmatpush1.bf16.msra.mxu1 %v2308_v19  ;;  %v2338_v39 = vld [vmem:[%s2981_s6 + $0x70] ss:$8 sps:$4 sm:$0xff]   ;;  %v2340_v41 = vld [vmem:[%s2981_s6 + $0x84] ss:$8 sps:$4 sm:$0xff]   ;;  %v2344_v43 = vld [vmem:[%s2981_s6 + $0x80] ss:$8 sps:$4 sm:$0xff]  }
  0x96   : > { %1737 = vmatpush1.bf16.msra.mxu0 %v2309_v20  ;;  %1652 = vmatprep.subr.bf16.mxu1 %v2310_v21  ;;  %v2339_v40 = vld [vmem:[%s2981_s6 + $0x270] ss:$8 sps:$4 sm:$0xff]   ;;  %v2342_v42 = vld [vmem:[%s2981_s6 + $0x284] ss:$8 sps:$4 sm:$0xff]   ;;  %v2345_v44 = vld [vmem:[%s2981_s6 + $0x280] ss:$8 sps:$4 sm:$0xff]  }
  0x97   : > { %1738 = vmatprep.subr.bf16.mxu0 %v2312_v22  ;;  %v2346_v45 = vld [vmem:[%s2981_s6 + $0x94] ss:$8 sps:$4 sm:$0xff]   ;;  %v2350_v47 = vld [vmem:[%s2981_s6 + $0x90] ss:$8 sps:$4 sm:$0xff]   ;;  %v2352_v49 = vld [vmem:[%s2981_s6 + $0xa4] ss:$8 sps:$4 sm:$0xff]  }
  0x98   : > { %v2348_v46 = vld [vmem:[%s2981_s6 + $0x294] ss:$8 sps:$4 sm:$0xff]   ;;  %v2351_v48 = vld [vmem:[%s2981_s6 + $0x290] ss:$8 sps:$4 sm:$0xff]   ;;  %v2354_v50 = vld [vmem:[%s2981_s6 + $0x2a4] ss:$8 sps:$4 sm:$0xff]  }
  0x99   : > { %1653 = vmatpush1.bf16.msra.mxu1 %v2314_v23  ;;  %v2356_v51 = vld [vmem:[%s2981_s6 + $0xa0] ss:$8 sps:$4 sm:$0xff]   ;;  %v2358_v53 = vld [vmem:[%s2981_s6 + $0xb4] ss:$8 sps:$4 sm:$0xff]   ;;  %v2362_v55 = vld [vmem:[%s2981_s6 + $0xb0] ss:$8 sps:$4 sm:$0xff]  }
  0x9a   : > { %1739 = vmatpush1.bf16.msra.mxu0 %v2315_v24  ;;  %1654 = vmatprep.subr.bf16.mxu1 %v2316_v25  ;;  %v2357_v52 = vld [vmem:[%s2981_s6 + $0x2a0] ss:$8 sps:$4 sm:$0xff]   ;;  %v2360_v54 = vld [vmem:[%s2981_s6 + $0x2b4] ss:$8 sps:$4 sm:$0xff]   ;;  %v2363_v56 = vld [vmem:[%s2981_s6 + $0x2b0] ss:$8 sps:$4 sm:$0xff]  }
  0x9b   : > { %1740 = vmatprep.subr.bf16.mxu0 %v2318_v26  ;;  %v830_v57 = vld [vmem:[%s2979_s4] sm:$0xff]  ;;  %v832_v62 = vld [vmem:[%s2979_s4 + $0x10] sm:$0xff]  ;;  %p2178_p5 = scmp.ne.s32.totalorder %s2554_s18, 4 }
  0x9c   : > { %v834_v58 = vld [vmem:[%s2979_s4 + $0x20] sm:$0xff]  ;;  %v836_v63 = vld [vmem:[%s2979_s4 + $0x30] sm:$0xff] }
  0x9d   : > { %1655 = vmatpush1.bf16.msra.mxu1 %v2320_v27  ;;  %v2364_v59 = vld [vmem:[%s2981_s6 + $0xc4] ss:$8 sps:$4 sm:$0xff]   ;;  %v2043_v61 = vcombine.high %v830_v57, %v834_v58  ;;  %v2047_v0 = vcombine.high %v832_v62, %v836_v63  ;;  %v2368_v1 = vld [vmem:[%s2981_s6 + $0xc0] ss:$8 sps:$4 sm:$0xff]   ;;  %v2370_v3 = vld [vmem:[%s2981_s6 + $0xd4] ss:$8 sps:$4 sm:$0xff]   ;;  %v2042_v17 = vcombine.low %v830_v57, %v834_v58  ;;  %v2046_v19 = vcombine.low %v832_v62, %v836_v63 }
  0x9e   : > { %1741 = vmatpush1.bf16.msra.mxu0 %v2321_v28  ;;  %1656 = vmatprep.subr.bf16.mxu1 %v2322_v29  ;;  %v2366_v60 = vld [vmem:[%s2981_s6 + $0x2c4] ss:$8 sps:$4 sm:$0xff]   ;;  %v2369_v2 = vld [vmem:[%s2981_s6 + $0x2c0] ss:$8 sps:$4 sm:$0xff]   ;;  %v2372_v4 = vld [vmem:[%s2981_s6 + $0x2d4] ss:$8 sps:$4 sm:$0xff]  }
  0x9f   : > { %1742 = vmatprep.subr.bf16.mxu0 %v2324_v30  ;;  %1678 = vmatprep.mubr.bf16.mxu1 %v2043_v61  ;;  %v2374_v5 = vld [vmem:[%s2981_s6 + $0xd0] ss:$8 sps:$4 sm:$0xff]   ;;  %v2376_v7 = vld [vmem:[%s2981_s6 + $0xe4] ss:$8 sps:$4 sm:$0xff]   ;;  %v2380_v9 = vld [vmem:[%s2981_s6 + $0xe0] ss:$8 sps:$4 sm:$0xff]  }
  0xa0   : > { %1764 = vmatprep.mubr.bf16.mxu0 %v2047_v0  ;;  %v2375_v6 = vld [vmem:[%s2981_s6 + $0x2d0] ss:$8 sps:$4 sm:$0xff]   ;;  %v2378_v8 = vld [vmem:[%s2981_s6 + $0x2e4] ss:$8 sps:$4 sm:$0xff]   ;;  %v2381_v10 = vld [vmem:[%s2981_s6 + $0x2e0] ss:$8 sps:$4 sm:$0xff]  }
  0xa1   : > { %1657 = vmatpush1.bf16.msra.mxu1 %v2326_v31  ;;  %v2382_v11 = vld [vmem:[%s2981_s6 + $0xf4] ss:$8 sps:$4 sm:$0xff]   ;;  %v2386_v13 = vld [vmem:[%s2981_s6 + $0xf0] ss:$8 sps:$4 sm:$0xff]   ;;  %v2390_v15 = vld [vmem:[%s2981_s6 + $0x104] ss:$8 sps:$4 sm:$0xff]  }
  0xa2   : > { %1743 = vmatpush1.bf16.msra.mxu0 %v2327_v32  ;;  %1658 = vmatprep.subr.bf16.mxu1 %v2328_v33  ;;  %v2384_v12 = vld [vmem:[%s2981_s6 + $0x2f4] ss:$8 sps:$4 sm:$0xff]   ;;  %v2387_v14 = vld [vmem:[%s2981_s6 + $0x2f0] ss:$8 sps:$4 sm:$0xff]   ;;  %v2393_v16 = vld [vmem:[%s2981_s6 + $0x304] ss:$8 sps:$4 sm:$0xff]  }
  0xa3   : > { %1744 = vmatprep.subr.bf16.mxu0 %v2330_v34  ;;  %v2388_v18 = vld [vmem:[%s2981_s6 + $0x100] ss:$8 sps:$4 sm:$0xff]   ;;  %v2396_v21 = vld [vmem:[%s2981_s6 + $0x114] ss:$8 sps:$4 sm:$0xff]   ;;  %v2394_v23 = vld [vmem:[%s2981_s6 + $0x110] ss:$8 sps:$4 sm:$0xff]  }
  0xa4   : > { %v2391_v20 = vld [vmem:[%s2981_s6 + $0x300] ss:$8 sps:$4 sm:$0xff]   ;;  %v2399_v22 = vld [vmem:[%s2981_s6 + $0x314] ss:$8 sps:$4 sm:$0xff]   ;;  %v2397_v24 = vld [vmem:[%s2981_s6 + $0x310] ss:$8 sps:$4 sm:$0xff]  }
  0xa5   : > { %1659 = vmatpush1.bf16.msra.mxu1 %v2332_v35  ;;  %v2402_v25 = vld [vmem:[%s2981_s6 + $0x124] ss:$8 sps:$4 sm:$0xff]   ;;  %v2400_v27 = vld [vmem:[%s2981_s6 + $0x120] ss:$8 sps:$4 sm:$0xff]   ;;  %v2408_v29 = vld [vmem:[%s2981_s6 + $0x134] ss:$8 sps:$4 sm:$0xff]  }
  0xa6   : > { %1745 = vmatpush1.bf16.msra.mxu0 %v2333_v36  ;;  %1660 = vmatprep.subr.bf16.mxu1 %v2334_v37  ;;  %v2405_v26 = vld [vmem:[%s2981_s6 + $0x324] ss:$8 sps:$4 sm:$0xff]   ;;  %v2403_v28 = vld [vmem:[%s2981_s6 + $0x320] ss:$8 sps:$4 sm:$0xff]   ;;  %v2411_v30 = vld [vmem:[%s2981_s6 + $0x334] ss:$8 sps:$4 sm:$0xff]  }
  0xa7   : > { %1746 = vmatprep.subr.bf16.mxu0 %v2336_v38  ;;  %v2406_v31 = vld [vmem:[%s2981_s6 + $0x130] ss:$8 sps:$4 sm:$0xff]   ;;  %v2414_v33 = vld [vmem:[%s2981_s6 + $0x144] ss:$8 sps:$4 sm:$0xff]   ;;  %v2412_v35 = vld [vmem:[%s2981_s6 + $0x140] ss:$8 sps:$4 sm:$0xff]  }
  0xa8   : > { %v2409_v32 = vld [vmem:[%s2981_s6 + $0x330] ss:$8 sps:$4 sm:$0xff]   ;;  %v2417_v34 = vld [vmem:[%s2981_s6 + $0x344] ss:$8 sps:$4 sm:$0xff]   ;;  %v2415_v36 = vld [vmem:[%s2981_s6 + $0x340] ss:$8 sps:$4 sm:$0xff]  }
  0xa9   : > { %1661 = vmatpush1.bf16.msra.mxu1 %v2338_v39  ;;  %v2420_v37 = vld [vmem:[%s2981_s6 + $0x154] ss:$8 sps:$4 sm:$0xff]   ;;  %v2418_v39 = vld [vmem:[%s2981_s6 + $0x150] ss:$8 sps:$4 sm:$0xff]   ;;  %v2436_v57 = vld [vmem:[%s2981_s6 + $0x180] ss:$8 sps:$4 sm:$0xff]  }
  0xaa   : > { %1747 = vmatpush1.bf16.msra.mxu0 %v2339_v40  ;;  %1662 = vmatprep.subr.bf16.mxu1 %v2340_v41  ;;  %v2423_v38 = vld [vmem:[%s2981_s6 + $0x354] ss:$8 sps:$4 sm:$0xff]   ;;  %v2421_v40 = vld [vmem:[%s2981_s6 + $0x350] ss:$8 sps:$4 sm:$0xff]   ;;  %v2426_v41 = vld [vmem:[%s2981_s6 + $0x164] ss:$8 sps:$4 sm:$0xff]  }
  0xab   : > { %1748 = vmatprep.subr.bf16.mxu0 %v2342_v42  ;;  %v2429_v42 = vld [vmem:[%s2981_s6 + $0x364] ss:$8 sps:$4 sm:$0xff]   ;;  %v2439_v58 = vld [vmem:[%s2981_s6 + $0x380] ss:$8 sps:$4 sm:$0xff]   ;;  %v2442_v61 = vld [vmem:[%s2981_s6 + $0x190] ss:$8 sps:$4 sm:$0xff]  }
  0xac   : > { %v2445_v62 = vld [vmem:[%s2981_s6 + $0x390] ss:$8 sps:$4 sm:$0xff]   ;;  %v2450_v63 = vld [vmem:[%s2981_s6 + $0x1a4] ss:$8 sps:$4 sm:$0xff]  }
  0xad   : > { %1663 = vmatpush1.bf16.msra.mxu1 %v2344_v43  ;;  %v3081_v43 = vld [vmem:[%s2979_s4 + $0x8] sm:$0xff] }
  0xae   : > { %1749 = vmatpush1.bf16.msra.mxu0 %v2345_v44  ;;  %1664 = vmatprep.subr.bf16.mxu1 %v2346_v45  ;;  %v3084_v44 = vld [vmem:[%s2979_s4 + $0x28] sm:$0xff]  ;;  %v3087_v45 = vld [vmem:[%s2979_s4 + $0x18] sm:$0xff] }
  0xaf   : > { %1750 = vmatprep.subr.bf16.mxu0 %v2348_v46  ;;  %v3090_v46 = vld [vmem:[%s2979_s4 + $0x38] sm:$0xff]  ;;  %v2453_v0 = vld [vmem:[%s2981_s6 + $0x3a4] ss:$8 sps:$4 sm:$0xff]  }
  0xb1   : > { %1665 = vmatpush1.bf16.msra.mxu1 %v2350_v47  ;;  %v2424_v47 = vld [vmem:[%s2981_s6 + $0x160] ss:$8 sps:$4 sm:$0xff]  }
  0xb2   : > { %1751 = vmatpush1.bf16.msra.mxu0 %v2351_v48  ;;  %1666 = vmatprep.subr.bf16.mxu1 %v2352_v49  ;;  %v2427_v48 = vld [vmem:[%s2981_s6 + $0x360] ss:$8 sps:$4 sm:$0xff]   ;;  %v2045_v49 = vcombine.high %v3081_v43, %v3084_v44 }
  0xb3   : > { %1752 = vmatprep.subr.bf16.mxu0 %v2354_v50  ;;  %v2432_v50 = vld [vmem:[%s2981_s6 + $0x174] ss:$8 sps:$4 sm:$0xff]  }
  0xb5   : > { %1667 = vmatpush1.bf16.msra.mxu1 %v2356_v51  ;;  %v2435_v51 = vld [vmem:[%s2981_s6 + $0x374] ss:$8 sps:$4 sm:$0xff]  }
  0xb6   : > { %1753 = vmatpush1.bf16.msra.mxu0 %v2357_v52  ;;  %1668 = vmatprep.subr.bf16.mxu1 %v2358_v53  ;;  %v2049_v52 = vcombine.high %v3087_v45, %v3090_v46  ;;  %v2430_v53 = vld [vmem:[%s2981_s6 + $0x170] ss:$8 sps:$4 sm:$0xff]  }
  0xb7   : > { %1754 = vmatprep.subr.bf16.mxu0 %v2360_v54  ;;  %v2433_v54 = vld [vmem:[%s2981_s6 + $0x370] ss:$8 sps:$4 sm:$0xff]  }
  0xb9   : > { %1669 = vmatpush1.bf16.msra.mxu1 %v2362_v55  ;;  %v2438_v55 = vld [vmem:[%s2981_s6 + $0x184] ss:$8 sps:$4 sm:$0xff]  }
  0xba   : > { %1755 = vmatpush1.bf16.msra.mxu0 %v2363_v56  ;;  %1670 = vmatprep.subr.bf16.mxu1 %v2364_v59  ;;  %v2441_v56 = vld [vmem:[%s2981_s6 + $0x384] ss:$8 sps:$4 sm:$0xff]   ;;  %v2444_v59 = vld [vmem:[%s2981_s6 + $0x194] ss:$8 sps:$4 sm:$0xff]  }
  0xbb   : > { %1756 = vmatprep.subr.bf16.mxu0 %v2366_v60  ;;  %v2447_v60 = vld [vmem:[%s2981_s6 + $0x394] ss:$8 sps:$4 sm:$0xff]  }
  0xbd   : > { %1671 = vmatpush1.bf16.msra.mxu1 %v2368_v1  ;;  %v2448_v1 = vld [vmem:[%s2981_s6 + $0x1a0] ss:$8 sps:$4 sm:$0xff]  }
  0xbe   : > { %1757 = vmatpush1.bf16.msra.mxu0 %v2369_v2  ;;  %1672 = vmatprep.subr.bf16.mxu1 %v2370_v3  ;;  %v2451_v2 = vld [vmem:[%s2981_s6 + $0x3a0] ss:$8 sps:$4 sm:$0xff]   ;;  %v2456_v3 = vld [vmem:[%s2981_s6 + $0x1b4] ss:$8 sps:$4 sm:$0xff]  }
  0xbf   : > { %1758 = vmatprep.subr.bf16.mxu0 %v2372_v4  ;;  %v2459_v4 = vld [vmem:[%s2981_s6 + $0x3b4] ss:$8 sps:$4 sm:$0xff]  }
  0xc1   : > { %1673 = vmatpush1.bf16.msra.mxu1 %v2374_v5  ;;  %v2454_v5 = vld [vmem:[%s2981_s6 + $0x1b0] ss:$8 sps:$4 sm:$0xff]  }
  0xc2   : > { %1759 = vmatpush1.bf16.msra.mxu0 %v2375_v6  ;;  %1674 = vmatprep.subr.bf16.mxu1 %v2376_v7  ;;  %v2457_v6 = vld [vmem:[%s2981_s6 + $0x3b0] ss:$8 sps:$4 sm:$0xff]   ;;  %v2462_v7 = vld [vmem:[%s2981_s6 + $0x1c4] ss:$8 sps:$4 sm:$0xff]  }
  0xc3   : > { %1760 = vmatprep.subr.bf16.mxu0 %v2378_v8  ;;  %v2465_v8 = vld [vmem:[%s2981_s6 + $0x3c4] ss:$8 sps:$4 sm:$0xff]  }
  0xc5   : > { %1675 = vmatpush1.bf16.msra.mxu1 %v2380_v9  ;;  %v2460_v9 = vld [vmem:[%s2981_s6 + $0x1c0] ss:$8 sps:$4 sm:$0xff]  }
  0xc6   : > { %1761 = vmatpush1.bf16.msra.mxu0 %v2381_v10  ;;  %1676 = vmatprep.subr.bf16.mxu1 %v2382_v11  ;;  %v2463_v10 = vld [vmem:[%s2981_s6 + $0x3c0] ss:$8 sps:$4 sm:$0xff]   ;;  %v2468_v11 = vld [vmem:[%s2981_s6 + $0x1d4] ss:$8 sps:$4 sm:$0xff]  }
  0xc7   : > { %1762 = vmatprep.subr.bf16.mxu0 %v2384_v12  ;;  %v2471_v12 = vld [vmem:[%s2981_s6 + $0x3d4] ss:$8 sps:$4 sm:$0xff]  }
  0xc9   : > { %1677 = vmatpush1.bf16.msra.mxu1 %v2386_v13  ;;  %v2466_v13 = vld [vmem:[%s2981_s6 + $0x1d0] ss:$8 sps:$4 sm:$0xff]  }
  0xca   : > { %1763 = vmatpush1.bf16.msra.mxu0 %v2387_v14  ;;  %1689 = vmatprep.subr.bf16.mxu1 %v2390_v15  ;;  %v2469_v14 = vld [vmem:[%s2981_s6 + $0x3d0] ss:$8 sps:$4 sm:$0xff]   ;;  %v2474_v15 = vld [vmem:[%s2981_s6 + $0x1e4] ss:$8 sps:$4 sm:$0xff]  }
  0xcb   : > { %1775 = vmatprep.subr.bf16.mxu0 %v2393_v16  ;;  %v2477_v16 = vld [vmem:[%s2981_s6 + $0x3e4] ss:$8 sps:$4 sm:$0xff]  }
  0xcc   : > { %1679 = vmatmul.mubr.bf16.vlgmr.msra.gmra.mrb[0].mxu1 %v2042_v17  ;;  %v2472_v17 = vld [vmem:[%s2981_s6 + $0x1e0] ss:$8 sps:$4 sm:$0xff]  }
  0xcd   : > { %1765 = vmatmul.mubr.bf16.vlgmr.msra.gmra.mrb[0].mxu0 %v2046_v19  ;;  %1690 = vmatpush1.bf16.msra.mxu1 %v2388_v18  ;;  %v2475_v18 = vld [vmem:[%s2981_s6 + $0x3e0] ss:$8 sps:$4 sm:$0xff]   ;;  %v2480_v19 = vld [vmem:[%s2981_s6 + $0x1f4] ss:$8 sps:$4 sm:$0xff]  }
  0xce   : > { %1776 = vmatpush1.bf16.msra.mxu0 %v2391_v20  ;;  %1691 = vmatprep.subr.bf16.mxu1 %v2396_v21  ;;  %v2483_v20 = vld [vmem:[%s2981_s6 + $0x3f4] ss:$8 sps:$4 sm:$0xff]   ;;  %v2478_v21 = vld [vmem:[%s2981_s6 + $0x1f0] ss:$8 sps:$4 sm:$0xff]  }
  0xcf   : > { %1777 = vmatprep.subr.bf16.mxu0 %v2399_v22  ;;  %1721 = vmatprep.mubr.bf16.mxu1 %v2045_v49  ;;  %v2481_v22 = vld [vmem:[%s2981_s6 + $0x3f0] ss:$8 sps:$4 sm:$0xff]  }
  0xd0   : > { %1807 = vmatprep.mubr.bf16.mxu0 %v2049_v52 }
  0xd1   : > { %1692 = vmatpush1.bf16.msra.mxu1 %v2394_v23  ;;  %v2044_v23 = vcombine.low %v3081_v43, %v3084_v44 }
  0xd2   : > { %1778 = vmatpush1.bf16.msra.mxu0 %v2397_v24  ;;  %1693 = vmatprep.subr.bf16.mxu1 %v2402_v25  ;;  %v2048_v24 = vcombine.low %v3087_v45, %v3090_v46  ;;  %v1836_v45 = vlaneseq (!%p2178_p5) }
  0xd3   : > { %1779 = vmatprep.subr.bf16.mxu0 %v2405_v26  ;;  %v826_v26 = vld [vmem:[#allocation2] sm:$0xff] }
  0xd4   : > { %v1837_v46 = vshrl.u32 (!%p2178_p5), %v1836_v45, 7 }
  0xd5   : > { %1694 = vmatpush1.bf16.msra.mxu1 %v2400_v27 }
  0xd6   : > { %1780 = vmatpush1.bf16.msra.mxu0 %v2403_v28  ;;  %1695 = vmatprep.subr.bf16.mxu1 %v2408_v29  ;;  %v1838_v49 = vsub.s32 (!%p2178_p5), 0, %v1837_v46 }
  0xd7   : > { %1781 = vmatprep.subr.bf16.mxu0 %v2411_v30  ;;  %v827_v30 = vld [vmem:[#allocation2 + $0x8] sm:$0xff] }
  0xd9   : > { %1696 = vmatpush1.bf16.msra.mxu1 %v2406_v31 }
  0xda   : > { %1782 = vmatpush1.bf16.msra.mxu0 %v2409_v32  ;;  %1697 = vmatprep.subr.bf16.mxu1 %v2414_v33 }
  0xdb   : > { %1783 = vmatprep.subr.bf16.mxu0 %v2417_v34  ;;  %v828_v34 = vld [vmem:[#allocation2 + $0x10] sm:$0xff] }
  0xdd   : > { %1698 = vmatpush1.bf16.msra.mxu1 %v2412_v35 }
  0xde   : > { %1784 = vmatpush1.bf16.msra.mxu0 %v2415_v36  ;;  %1699 = vmatprep.subr.bf16.mxu1 %v2420_v37 }
  0xdf   : > { %1785 = vmatprep.subr.bf16.mxu0 %v2423_v38 }
  0xe1   : > { %1700 = vmatpush1.bf16.msra.mxu1 %v2418_v39  ;;  %v829_v39 = vld [vmem:[#allocation2 + $0x18] sm:$0xff] }
  0xe2   : > { %1786 = vmatpush1.bf16.msra.mxu0 %v2421_v40  ;;  %1701 = vmatprep.subr.bf16.mxu1 %v2426_v41 }
  0xe3   : > { %1787 = vmatprep.subr.bf16.mxu0 %v2429_v42 }
  0xe5   : > { %1702 = vmatpush1.bf16.msra.mxu1 %v2424_v47  ;;  %v1834_v47 = vld [vmem:[%s814_s29] sm:$0x3] (!%p2178_p5) }
  0xe6   : > { %1788 = vmatpush1.bf16.msra.mxu0 %v2427_v48  ;;  %1703 = vmatprep.subr.bf16.mxu1 %v2432_v50  ;;  %v1842_v50 = vsub.s32 (!%p2178_p5), 1, %v1837_v46 }
  0xe7   : > { %1789 = vmatprep.subr.bf16.mxu0 %v2435_v51 }
  0xe9   : > { %1704 = vmatpush1.bf16.msra.mxu1 %v2430_v53 }
  0xea   : > { %1790 = vmatpush1.bf16.msra.mxu0 %v2433_v54  ;;  %1705 = vmatprep.subr.bf16.mxu1 %v2438_v55  ;;  %v1839_v54 = vrot.slane (!%p2178_p5), %v1834_v47, %v1838_v49  ;;  %v1843_v55 = vrot.slane (!%p2178_p5), %v1834_v47, %v1842_v50 }
  0xeb   : > { %1791 = vmatprep.subr.bf16.mxu0 %v2441_v56 }
  0xed   : > { %1706 = vmatpush1.bf16.msra.mxu1 %v2436_v57 }
  0xee   : > { %1792 = vmatpush1.bf16.msra.mxu0 %v2439_v58  ;;  %1707 = vmatprep.subr.bf16.mxu1 %v2444_v59 }
  0xef   : > { %1793 = vmatprep.subr.bf16.mxu0 %v2447_v60 }
  0xf1   : > { %1708 = vmatpush1.bf16.msra.mxu1 %v2442_v61 }
  0xf2   : > { %1794 = vmatpush1.bf16.msra.mxu0 %v2445_v62  ;;  %1709 = vmatprep.subr.bf16.mxu1 %v2450_v63 }
  0xf3   : > { %1795 = vmatprep.subr.bf16.mxu0 %v2453_v0 }
  0xf5   : > { %1710 = vmatpush1.bf16.msra.mxu1 %v2448_v1 }
  0xf6   : > { %1796 = vmatpush1.bf16.msra.mxu0 %v2451_v2  ;;  %1711 = vmatprep.subr.bf16.mxu1 %v2456_v3 }
  0xf7   : > { %1797 = vmatprep.subr.bf16.mxu0 %v2459_v4 }
  0xf9   : > { %1712 = vmatpush1.bf16.msra.mxu1 %v2454_v5 }
  0xfa   : > { %1798 = vmatpush1.bf16.msra.mxu0 %v2457_v6  ;;  %1713 = vmatprep.subr.bf16.mxu1 %v2462_v7 }
  0xfb   : > { %1799 = vmatprep.subr.bf16.mxu0 %v2465_v8 }
  0xfd   : > { %1714 = vmatpush1.bf16.msra.mxu1 %v2460_v9 }
  0xfe   : > { %1800 = vmatpush1.bf16.msra.mxu0 %v2463_v10  ;;  %1715 = vmatprep.subr.bf16.mxu1 %v2468_v11 }
  0xff   : > { %1801 = vmatprep.subr.bf16.mxu0 %v2471_v12 }
 0x101   : > { %1716 = vmatpush1.bf16.msra.mxu1 %v2466_v13 }
 0x102   : > { %1802 = vmatpush1.bf16.msra.mxu0 %v2469_v14  ;;  %1717 = vmatprep.subr.bf16.mxu1 %v2474_v15 }
 0x103   : > { %1803 = vmatprep.subr.bf16.mxu0 %v2477_v16 }
 0x105   : > { %1718 = vmatpush1.bf16.msra.mxu1 %v2472_v17 }
 0x106   : > { %1804 = vmatpush1.bf16.msra.mxu0 %v2475_v18  ;;  %1719 = vmatprep.subr.bf16.mxu1 %v2480_v19 }
 0x107   : > { %1805 = vmatprep.subr.bf16.mxu0 %v2483_v20 }
 0x109   : > { %1720 = vmatpush1.bf16.msra.mxu1 %v2478_v21 }
 0x10a   : > { %1806 = vmatpush1.bf16.msra.mxu0 %v2481_v22 }
 0x10c   : > { %1722 = vmatmul.mubr.bf16.vlgmr.msra.gmra.mrb[0].mxu1 %v2044_v23 }
 0x10d   : > { %1808 = vmatmul.mubr.bf16.vlgmr.msra.gmra.mrb[0].mxu0 %v2048_v24 }
 0x1df   : > { %v1723_v25 = vpop.f32.mrb[0].mxu1 }
 0x1e0   : > { %v1809_v27 = vpop.f32.mrb[0].mxu0  ;;  %v1725_v29 = vpop.f32.mrb[1].mxu1 }
 0x1e1   : > { %v2191_v28 = vadd.f32 %v1809_v27, %v1723_v25  ;;  %v1811_v31 = vpop.f32.mrb[1].mxu0  ;;  %v1727_v33 = vpop.f32.mrb[2].mxu1 }
 0x1e2   : > { %v2192_v32 = vadd.f32 %v1811_v31, %v1725_v29  ;;  %v1813_v35 = vpop.f32.mrb[2].mxu0  ;;  %v1729_v38 = vpop.f32.mrb[3].mxu1  ;;  %1829 = sbr.rel (%p2178_p5) target bundleno = 503 (0x1f7), region = 101 }
 0x1e3   : > { %v1818_v36 = vadd.f32 %v2191_v28, %v826_v26  ;;  %v2193_v37 = vadd.f32 %v1813_v35, %v1727_v33  ;;  %v1815_v40 = vpop.f32.mrb[3].mxu0 }
 0x1e4   : > { %v1819_v41 = vadd.f32 %v2192_v32, %v827_v30  ;;  %v2194_v42 = vadd.f32 %v1815_v40, %v1729_v38 }
 0x1e5   : > { %1822 = vst [vmem:[#allocation2] sm:$0xff] %v1818_v36  ;;  %v1820_v43 = vadd.f32 %v2193_v37, %v828_v34 }
 0x1e6   : > { %1823 = vst [vmem:[#allocation2 + $0x8] sm:$0xff] %v1819_v41  ;;  %v1821_v44 = vadd.f32 %v2194_v42, %v829_v39 }
 0x1e7   : > { %1824 = vst [vmem:[#allocation2 + $0x10] sm:$0xff] %v1820_v43 }
 0x1e8   : > { %1825 = vst [vmem:[#allocation2 + $0x18] sm:$0xff] %v1821_v44 }
 0x1ec   : > { %v1830_v48 = vld [vmem:[#allocation2] sm:$0xff] }
 0x1ed   : > { %v1831_v51 = vld [vmem:[#allocation2 + $0x8] sm:$0xff]  ;;  %v1846_v56 = vadd.f32 %v1839_v54, %v1830_v48 }
 0x1ee   : > { %v1832_v52 = vld [vmem:[#allocation2 + $0x10] sm:$0xff]  ;;  %v1847_v57 = vadd.f32 %v1843_v55, %v1831_v51 }
 0x1ef   : > { %v1833_v53 = vld [vmem:[#allocation2 + $0x18] sm:$0xff]  ;;  %v1848_v58 = vadd.f32 %v1839_v54, %v1832_v52  ;;  %v1850_v60 = vmax.f32 %v1846_v56, 0.0 }
 0x1f0   : > { %v1849_v59 = vadd.f32 %v1843_v55, %v1833_v53  ;;  %v1851_v61 = vmax.f32 %v1847_v57, 0.0 }
 0x1f1   : > { %v1852_v62 = vmax.f32 %v1848_v58, 0.0 }
 0x1f2   : > { %v1853_v63 = vmax.f32 %v1849_v59, 0.0  ;;  %v2188_v0 = vpack.c.bf16 %v1851_v61, %v1850_v60 }
 0x1f4   : > { %v2189_v1 = vpack.c.bf16 %v1853_v63, %v1852_v62  ;;  %1866 = vst [vmem:[%s2983_s1] sm:$0xff] %v2188_v0 }
 0x1f6   : > { %1867 = vst [vmem:[%s2983_s1 + $0x8] sm:$0xff] %v2189_v1 }
 0x1f7 PF: > { %1874 = sbr.rel (!%p2687_p12) target bundleno = 511 (0x1ff), region = 105  ;;  %s2190_s16 = sshll.u32 (%p2687_p12), %s2558_s19, 3 }
 0x1f8   : > { %s1880_s5 = scalar_lea.vmem (%p2687_p12), %s3190_s3, %s2190_s16 }
 0x1fb   : > { %v1910_v2 = vld [vmem:[%s2983_s1] sm:$0xff] (%p2687_p12) }
 0x1fc   : > { %1911 = vst [vmem:[%s1880_s5] sm:$0xff] (%p2687_p12), %v1910_v2 }
 0x1fd   : > { %v1912_v3 = vld [vmem:[%s2983_s1 + $0x8] sm:$0xff] (%p2687_p12) }
 0x1fe   : > { %1913 = vst [vmem:[%s1880_s5 + $0x10] sm:$0xff] %v1912_v3 }
 0x1ff PF: > { %s13_s22 = sadd.s32 1, %s2570_s22   ;;  %s3200_s1 = sld [smem:[#allocation6_spill]] }
 0x200   : > { %p10_p6 = scmp.ge.s32.totalorder %s13_s22, 12   ;;  %s3201_s12 = smov %s2534_s13 }
 0x201   : > { %s3202_s13 = smov %s2685_s9  ;;  %s3203_s14 = smov %s2542_s15 }
 0x202   : > { %s3204_s15 = smov %s2682_s8  ;;  %s3205_s16 = smov %s2550_s17 }
 0x203   : > { %s3206_s17 = smov %s2668_s30  ;;  %s3207_s18 = smov %s2562_s20 }
 0x204   : > { %s3208_s19 = smov %s2566_s21  ;;  %s3209_s20 = smov %s3212_s24 }
 0x205   : > { %s3210_s21 = smov %s3200_s1  ;;  %12 = sbr.rel (!%p10_p6) target bundleno = 9 (0x9), region = 185 }

// kernel: simple_dog_emotion_model.43
= control target key start
LH: loop header
LB: loop body
LE: loop exit
PB: predicated region body
PF: predicated region fallthrough
CT: control target
= control target key end

     0   :  { %v94_v51 = vlaneseq  ;;  %s695_s0 = inlined_call_operand.vmem [shape: bf16[2,1,512], index: 0, kind: input, shape index: {}]   ;;  %s696_s1 = inlined_call_operand.vmem [shape: f32[512,128], index: 1, kind: input, shape index: {}]   ;;  %s697_s2 = inlined_call_operand.vmem [shape: f32[1,128], index: 2, kind: input, shape index: {}]   ;;  %s698_s3 = inlined_call_operand.hbm [shape: f32[2,128], index: 3, kind: output, shape index: {}]  }
   0x1   :  { %v37_v0 = vld [vmem:[%s696_s1 + $0x80] sm:$0xff]  ;;  %v38_v1 = vld [vmem:[%s696_s1 + $0x88] sm:$0xff]  ;;  %v39_v11 = vld [vmem:[%s696_s1 + $0x90] sm:$0xff] }
   0x2   :  { %v21_v2 = vld [vmem:[%s696_s1] sm:$0xff]  ;;  %v365_v3 = vpack.c.bf16 %v38_v1, %v37_v0  ;;  %v22_v4 = vld [vmem:[%s696_s1 + $0x8] sm:$0xff]  ;;  %v40_v13 = vld [vmem:[%s696_s1 + $0x98] sm:$0xff]  ;;  %v607_v0 = vshrl.u32 %v94_v51, 7 }
   0x3   :  { %v69_v5 = vld [vmem:[%s696_s1 + $0x180] sm:$0xff]  ;;  %v70_v6 = vld [vmem:[%s696_s1 + $0x188] sm:$0xff]  ;;  %v367_v7 = vpack.c.bf16 %v22_v4, %v21_v2  ;;  %v23_v14 = vld [vmem:[%s696_s1 + $0x10] sm:$0xff]  ;;  %v369_v16 = vpack.c.bf16 %v40_v13, %v39_v11 }
   0x4   :  { %v397_v8 = vpack.c.bf16 %v70_v6, %v69_v5  ;;  %v53_v9 = vld [vmem:[%s696_s1 + $0x100] sm:$0xff]  ;;  %v54_v10 = vld [vmem:[%s696_s1 + $0x108] sm:$0xff]  ;;  %366 = vmatprep.subr.bf16.mxu0 %v365_v3  ;;  %v24_v15 = vld [vmem:[%s696_s1 + $0x18] sm:$0xff] }
   0x5   :  { %v399_v12 = vpack.c.bf16 %v54_v10, %v53_v9  ;;  %368 = vmatpush3.bf16.msra.mxu0 %v367_v7  ;;  %v371_v17 = vpack.c.bf16 %v24_v15, %v23_v14  ;;  %v71_v18 = vld [vmem:[%s696_s1 + $0x190] sm:$0xff]  ;;  %v72_v19 = vld [vmem:[%s696_s1 + $0x198] sm:$0xff]  ;;  %v41_v23 = vld [vmem:[%s696_s1 + $0xa0] sm:$0xff] }
   0x6   :  { %398 = vmatprep.subr.bf16.mxu1 %v397_v8  ;;  %v55_v20 = vld [vmem:[%s696_s1 + $0x110] sm:$0xff]  ;;  %v401_v21 = vpack.c.bf16 %v72_v19, %v71_v18  ;;  %v56_v22 = vld [vmem:[%s696_s1 + $0x118] sm:$0xff]  ;;  %v42_v24 = vld [vmem:[%s696_s1 + $0xa8] sm:$0xff]  ;;  %370 = vmatprep.subr.bf16.mxu0 %v369_v16  ;;  %v100_v16 = vsub.s32 2, %v607_v0 }
   0x7   :  { %400 = vmatpush3.bf16.msra.mxu1 %v399_v12  ;;  %v403_v25 = vpack.c.bf16 %v56_v22, %v55_v20  ;;  %v373_v26 = vpack.c.bf16 %v42_v24, %v41_v23  ;;  %v25_v27 = vld [vmem:[%s696_s1 + $0x20] sm:$0xff]  ;;  %v26_v28 = vld [vmem:[%s696_s1 + $0x28] sm:$0xff]  ;;  %v43_v35 = vld [vmem:[%s696_s1 + $0xb0] sm:$0xff] }
   0x8   :  { %v73_v29 = vld [vmem:[%s696_s1 + $0x1a0] sm:$0xff]  ;;  %402 = vmatprep.subr.bf16.mxu1 %v401_v21  ;;  %v74_v30 = vld [vmem:[%s696_s1 + $0x1a8] sm:$0xff]  ;;  %v375_v33 = vpack.c.bf16 %v26_v28, %v25_v27  ;;  %v44_v36 = vld [vmem:[%s696_s1 + $0xb8] sm:$0xff]  ;;  %v108_v21 = vsub.s32 6, %v607_v0 }
   0x9   :  { %v57_v31 = vld [vmem:[%s696_s1 + $0x120] sm:$0xff]  ;;  %v58_v32 = vld [vmem:[%s696_s1 + $0x128] sm:$0xff]  ;;  %372 = vmatpush3.bf16.msra.mxu0 %v371_v17  ;;  %v405_v34 = vpack.c.bf16 %v74_v30, %v73_v29  ;;  %v27_v37 = vld [vmem:[%s696_s1 + $0x30] sm:$0xff]  ;;  %v377_v39 = vpack.c.bf16 %v44_v36, %v43_v35 }
   0xa   :  { %374 = vmatprep.subr.bf16.mxu0 %v373_v26  ;;  %v407_v38 = vpack.c.bf16 %v58_v32, %v57_v31  ;;  %v28_v40 = vld [vmem:[%s696_s1 + $0x38] sm:$0xff]  ;;  %v75_v41 = vld [vmem:[%s696_s1 + $0x1b0] sm:$0xff]  ;;  %v45_v46 = vld [vmem:[%s696_s1 + $0xc0] sm:$0xff] }
   0xb   :  { %404 = vmatpush3.bf16.msra.mxu1 %v403_v25  ;;  %v76_v42 = vld [vmem:[%s696_s1 + $0x1b8] sm:$0xff]  ;;  %v59_v44 = vld [vmem:[%s696_s1 + $0x130] sm:$0xff]  ;;  %v46_v47 = vld [vmem:[%s696_s1 + $0xc8] sm:$0xff]  ;;  %v379_v48 = vpack.c.bf16 %v28_v40, %v27_v37 }
   0xc   :  { %406 = vmatprep.subr.bf16.mxu1 %v405_v34  ;;  %v409_v43 = vpack.c.bf16 %v76_v42, %v75_v41  ;;  %v60_v45 = vld [vmem:[%s696_s1 + $0x138] sm:$0xff]  ;;  %v77_v49 = vld [vmem:[%s696_s1 + $0x1c0] sm:$0xff]  ;;  %v78_v50 = vld [vmem:[%s696_s1 + $0x1c8] sm:$0xff]  ;;  %v381_v53 = vpack.c.bf16 %v46_v47, %v45_v46 }
   0xd   :  { %376 = vmatpush3.bf16.msra.mxu0 %v375_v33  ;;  %v411_v52 = vpack.c.bf16 %v60_v45, %v59_v44  ;;  %v29_v54 = vld [vmem:[%s696_s1 + $0x40] sm:$0xff]  ;;  %v30_v55 = vld [vmem:[%s696_s1 + $0x48] sm:$0xff]  ;;  %v413_v57 = vpack.c.bf16 %v78_v50, %v77_v49  ;;  %v47_v59 = vld [vmem:[%s696_s1 + $0xd0] sm:$0xff] }
   0xe   :  { %378 = vmatprep.subr.bf16.mxu0 %v377_v39  ;;  %v61_v56 = vld [vmem:[%s696_s1 + $0x140] sm:$0xff]  ;;  %v62_v58 = vld [vmem:[%s696_s1 + $0x148] sm:$0xff]  ;;  %v48_v60 = vld [vmem:[%s696_s1 + $0xd8] sm:$0xff]  ;;  %v383_v63 = vpack.c.bf16 %v30_v55, %v29_v54 }
   0xf   :  { %408 = vmatpush3.bf16.msra.mxu1 %v407_v38  ;;  %v79_v61 = vld [vmem:[%s696_s1 + $0x1d0] sm:$0xff]  ;;  %v80_v62 = vld [vmem:[%s696_s1 + $0x1d8] sm:$0xff]  ;;  %v415_v1 = vpack.c.bf16 %v62_v58, %v61_v56  ;;  %v385_v2 = vpack.c.bf16 %v48_v60, %v47_v59  ;;  %v49_v8 = vld [vmem:[%s696_s1 + $0xe0] sm:$0xff] }
  0x10   :  { %410 = vmatprep.subr.bf16.mxu1 %v409_v43  ;;  %v31_v3 = vld [vmem:[%s696_s1 + $0x50] sm:$0xff]  ;;  %v32_v4 = vld [vmem:[%s696_s1 + $0x58] sm:$0xff]  ;;  %v417_v6 = vpack.c.bf16 %v80_v62, %v79_v61  ;;  %v50_v9 = vld [vmem:[%s696_s1 + $0xe8] sm:$0xff] }
  0x11   :  { %380 = vmatpush3.bf16.msra.mxu0 %v379_v48  ;;  %v63_v5 = vld [vmem:[%s696_s1 + $0x150] sm:$0xff]  ;;  %v64_v7 = vld [vmem:[%s696_s1 + $0x158] sm:$0xff]  ;;  %v81_v10 = vld [vmem:[%s696_s1 + $0x1e0] sm:$0xff]  ;;  %v387_v12 = vpack.c.bf16 %v32_v4, %v31_v3  ;;  %v389_v18 = vpack.c.bf16 %v50_v9, %v49_v8 }
  0x12   :  { %382 = vmatprep.subr.bf16.mxu0 %v381_v53  ;;  %v82_v11 = vld [vmem:[%s696_s1 + $0x1e8] sm:$0xff]  ;;  %v33_v13 = vld [vmem:[%s696_s1 + $0x60] sm:$0xff]  ;;  %v419_v17 = vpack.c.bf16 %v64_v7, %v63_v5 }
  0x13   :  { %412 = vmatpush3.bf16.msra.mxu1 %v411_v52  ;;  %v34_v14 = vld [vmem:[%s696_s1 + $0x68] sm:$0xff]  ;;  %v65_v15 = vld [vmem:[%s696_s1 + $0x160] sm:$0xff] }
  0x14   :  { %414 = vmatprep.subr.bf16.mxu1 %v413_v57  ;;  %v66_v19 = vld [vmem:[%s696_s1 + $0x168] sm:$0xff]  ;;  %v292_v20 = vld [vmem:[%s695_s0] sm:$0xff]  }
  0x15   :  { %384 = vmatpush3.bf16.msra.mxu0 %v383_v63 }
  0x16   :  { %386 = vmatprep.subr.bf16.mxu0 %v385_v2 }
  0x17   :  { %416 = vmatpush3.bf16.msra.mxu1 %v415_v1 }
  0x18   :  { %8 = vsyncpa [#allocation3], 0  ;;  %418 = vmatprep.subr.bf16.mxu1 %v417_v6  ;;  %v421_v22 = vpack.c.bf16 %v82_v11, %v81_v10  ;;  %v51_v23 = vld [vmem:[%s696_s1 + $0xf0] sm:$0xff]  ;;  %v52_v24 = vld [vmem:[%s696_s1 + $0xf8] sm:$0xff]  ;;  %v293_v25 = vunpack.c.l.bf16 %v292_v20  ;;  %v294_v26 = vunpack.c.h.bf16 %v292_v20  ;;  %vm126_vm0 = vcmask 1041409   ;;  %s454_s7 = smov [#allocation2]  }
  0x19   :  { %v83_v27 = vld [vmem:[%s696_s1 + $0x1f0] sm:$0xff]  ;;  %v84_v28 = vld [vmem:[%s696_s1 + $0x1f8] sm:$0xff]  ;;  %v96_v29 = vsub.s32 0, %v607_v0  ;;  %388 = vmatpush3.bf16.msra.mxu0 %v387_v12  ;;  %v391_v30 = vpack.c.bf16 %v34_v14, %v33_v13  ;;  %v423_v31 = vpack.c.bf16 %v66_v19, %v65_v15  ;;  %v393_v34 = vpack.c.bf16 %v52_v24, %v51_v23  ;;  %v290_v54 = vld [vmem:[%s697_s2] ss:$0 sm:$0xff]  ;;  %s282_s8 = sshll.u32 %s454_s7, 4  ;;  %s283_s8 = int_to_ptr.vmem [resolvable:$true] %s282_s8 }
  0x1a   :  { %v101_v32 = vrot.slane %v293_v25, %v100_v16  ;;  %v117_v33 = vrot.slane %v294_v26, %v100_v16  ;;  %390 = vmatprep.subr.bf16.mxu0 %v389_v18  ;;  %v35_v35 = vld [vmem:[%s696_s1 + $0x70] sm:$0xff]  ;;  %v36_v36 = vld [vmem:[%s696_s1 + $0x78] sm:$0xff]  ;;  %v109_v37 = vrot.slane %v293_v25, %v108_v21  ;;  %v125_v38 = vrot.slane %v294_v26, %v108_v21  ;;  %s430_s9 = scalar_lea.vmem %s283_s8, 32  ;;  %p435_p1 = scmp.lt.s32.totalorder %s283_s8, %s283_s8 }
  0x1b   :  { %420 = vmatpush3.bf16.msra.mxu1 %v419_v17  ;;  %v104_v39 = vsub.s32 4, %v607_v0  ;;  %v425_v40 = vpack.c.bf16 %v84_v28, %v83_v27  ;;  %v67_v41 = vld [vmem:[%s696_s1 + $0x170] sm:$0xff]  ;;  %v68_v42 = vld [vmem:[%s696_s1 + $0x178] sm:$0xff]  ;;  %v395_v45 = vpack.c.bf16 %v36_v36, %v35_v35  ;;  %v97_v46 = vrot.slane %v293_v25, %v96_v29  ;;  %p431_p0 = scmp.ne.s32.totalorder %s283_s8, %s430_s9  ;;  %p436_p2 = scmp.lt.s32.totalorder %s430_s9, %s430_s9 }
  0x1c   :  { %422 = vmatprep.subr.bf16.mxu1 %v421_v22  ;;  %v128_v43 = vsel %vm126_vm0, %v117_v33, %v101_v32  ;;  %v130_v44 = vsel %vm126_vm0, %v125_v38, %v109_v37  ;;  %v113_v47 = vrot.slane %v294_v26, %v96_v29  ;;  %v427_v48 = vpack.c.bf16 %v68_v42, %v67_v41 }
  0x1d   :  { %199 = vmatprep.mubr.f32.mxu0 %v128_v43  ;;  %392 = vmatpush3.bf16.msra.mxu0 %v391_v30  ;;  %v105_v49 = vrot.slane %v293_v25, %v104_v39  ;;  %v121_v50 = vrot.slane %v294_v26, %v104_v39  ;;  %p437_p3 = por %p436_p2, %p435_p1 }
  0x1e   :  { %269 = vmatprep.mubr.f32.mxu1 %v130_v44  ;;  %394 = vmatprep.subr.bf16.mxu0 %v393_v34  ;;  %v127_v51 = vsel %vm126_vm0, %v113_v47, %v97_v46 }
  0x1f   :  { %424 = vmatpush3.bf16.msra.mxu1 %v423_v31  ;;  %v129_v52 = vsel %vm126_vm0, %v121_v50, %v105_v49  ;;  %p438_p4 = pnand %p437_p3, %p431_p0 }
  0x20   :  { %426 = vmatprep.subr.bf16.mxu1 %v425_v40 }
  0x21   :  { %396 = vmatpush3.bf16.msra.mxu0 %v395_v45 }
  0x23   :  { %428 = vmatpush3.bf16.msra.mxu1 %v427_v48 }
  0x24   :  { %200 = vmatmul.mubr.f32.vlgmr.msra.gmra.mrb[0].mxu0 %v127_v51 }
  0x26   :  { %270 = vmatmul.mubr.f32.vlgmr.msra.gmra.mrb[0].mxu1 %v129_v52 }
  0xf7   :  { %v327_v53 = vpop.f32.mrb[0].mxu0 }
  0xf8   :  { %v328_v55 = vpop.f32.mrb[1].mxu0 }
  0xf9   :  { %v362_v56 = vpop.f32.mrb[0].mxu1  ;;  %v329_v57 = vadd.f32 %v328_v55, %v327_v53 }
  0xfa   :  { %v363_v58 = vpop.f32.mrb[1].mxu1 }
  0xfb   :  { %v364_v59 = vadd.f32 %v363_v58, %v362_v56  ;;  %v202_v60 = vadd.f32 %v329_v57, %v290_v54 }
  0xfd   :  { %v272_v61 = vadd.f32 %v364_v59, %v202_v60 }
  0xff   :  { %275 = vst [vmem:[#allocation2] sm:$0x3] %v272_v61 }
 0x100   :  { %441 = shalt.err (!%p438_p4)
}
 0x101   :  { %s442_s11 = scalar_lea.hbm %s698_s3, 32 }
 0x102   :  { %p443_p5 = scmp.ne.s32.totalorder %s698_s3, %s442_s11  ;;  %p446_p6 = scmp.lt.u32.totalorder %s442_s11, %s698_s3 }
 0x104   :  { %p448_p7 = pnand %p446_p6, %p443_p5 }
 0x106   :  { %451 = shalt.err (!%p448_p7)
}
 0x107   :  { %285 = dma.vmem_to_hbm [thread:$0]  %s283_s8, 32, %s698_s3, [#allocation3]  }
 0x108   :  { %452 = dma.done.wait [#allocation3], 32  }
 0x109   :  { %453 = vsyncadd [#allocation3], 4294967264 }
 0x10a   :  { %289 = vsyncpa [#allocation3], 1 }

</bundles_post_ra>
